<compile_context>
chip_gen: v5e
topology: v5e:2x2
jax: 0.10.0
libtpu: 0.0.40
codegen_flags: <defaults>
</compile_context>

<pallas_src>
import functools
import math

import jax
import jax.numpy as jnp
from jax.experimental import pallas as pl
from jax.experimental.pallas import tpu as pltpu


def _round_up(x, m):
    return ((x + m - 1) // m) * m


def _ln(x, g, b, eps=1e-5):
    """LayerNorm over the last axis; centered-variance formula (f32)."""
    mu = jnp.mean(x, axis=-1, keepdims=True)
    xc = x - mu
    var = jnp.mean(xc * xc, axis=-1, keepdims=True)
    return xc * jax.lax.rsqrt(var + eps) * g + b


# ---------------------------------------------------------------------------
# Kernel 1: tiled matmul + bias + optional LeakyReLU (used for both 3x3x3
# convs via wrapper-side im2col). bf16 MXU operands, f32 accumulation.
# ---------------------------------------------------------------------------
def _matmul_bias_act_kernel(a_ref, w_ref, b_ref, o_ref, *, leaky_slope):
    acc = jnp.dot(a_ref[...], w_ref[...], preferred_element_type=jnp.float32)
    acc = acc + b_ref[...]
    if leaky_slope is not None:
        acc = jnp.where(acc >= 0.0, acc, leaky_slope * acc)
    o_ref[...] = acc.astype(o_ref.dtype)


def _im2col_3x3x3(x):
    """x: (B, D, H, W, Cin) -> (B*D*H*W, 27*Cin) patch matrix (channels-last)."""
    B, D, H, W, Cin = x.shape
    xp = jnp.pad(x, ((0, 0), (1, 1), (1, 1), (1, 1), (0, 0)))
    cols = []
    for kd in range(3):
        for kh in range(3):
            for kw in range(3):
                cols.append(xp[:, kd:kd + D, kh:kh + H, kw:kw + W, :])
    patches = jnp.concatenate(cols, axis=-1)            # (B, D, H, W, 27*Cin)
    return patches.reshape(B * D * H * W, 27 * Cin)


def conv3d_same(x, w, b, *, leaky_slope=None, out_dtype=jnp.bfloat16, tile_m=2048):
    """3x3x3 'same' conv as one tiled MXU matmul.

    x: (B, D, H, W, Cin); w: (3,3,3,Cin,Cout); b: (Cout,).
    Returns (B, D, H, W, Nc) with Nc = round_up(Cout, 8); real channels first.
    A matrix is left at its natural K = 27*Cin width (full-extent last-dim
    block); only the tiny weight/bias are channel-padded.
    """
    B, D, H, W, Cin = x.shape
    Cout = w.shape[-1]
    M = B * D * H * W
    K = 27 * Cin
    Nc = _round_up(Cout, 8)

    # TODO(synk): im2col is still materialized in HBM by XLA; fuse it in-kernel.
    a = _im2col_3x3x3(x.astype(jnp.bfloat16))            # (M, K) bf16, unpadded K

    tm = min(tile_m, _round_up(M, 8))
    # keep >=2 grid steps when cheaply possible (2 TensorCores on v7x)
    while tm % 16 == 0 and _round_up(M, tm) // tm < 2:
        tm //= 2
    M_pad = _round_up(M, tm)
    if M_pad != M:
        a = jnp.pad(a, ((0, M_pad - M), (0, 0)))

    w_flat = jnp.pad(w.reshape(K, Cout), ((0, 0), (0, Nc - Cout))).astype(jnp.bfloat16)
    b_pad = jnp.pad(b.astype(jnp.float32), (0, Nc - Cout)).reshape(1, Nc)

    kernel = functools.partial(_matmul_bias_act_kernel, leaky_slope=leaky_slope)
    out = pl.pallas_call(
        kernel,
        out_shape=jax.ShapeDtypeStruct((M_pad, Nc), out_dtype),
        grid=(M_pad // tm,),
        in_specs=[
            pl.BlockSpec((tm, K), lambda i: (i, 0)),
            pl.BlockSpec((K, Nc), lambda i: (0, 0)),
            pl.BlockSpec((1, Nc), lambda i: (0, 0)),
        ],
        out_specs=pl.BlockSpec((tm, Nc), lambda i: (i, 0)),
        compiler_params=pltpu.CompilerParams(dimension_semantics=("parallel",)),
    )(a, w_flat, b_pad)
    return out[:M].reshape(B, D, H, W, Nc)


# ---------------------------------------------------------------------------
# Kernel 2: per-token LN1 + merged QKV projection. 1/sqrt(C) folded into q,
# K written pre-transposed as (B, C, N) so the flash kernel's score matmul is
# a plain NN MXU op. Outputs are bf16.
# ---------------------------------------------------------------------------
def _qkv_proj_kernel(x_ref, wqkv_ref, g1_ref, b1_ref, q_ref, kt_ref, v_ref, *, C):
    x = x_ref[0].astype(jnp.float32)                      # (tn, C)
    h = _ln(x, g1_ref[...], b1_ref[...])
    qkv = jnp.dot(h.astype(jnp.bfloat16), wqkv_ref[...],
                  preferred_element_type=jnp.float32)     # (tn, 3C)
    scale = 1.0 / math.sqrt(C)
    q = qkv[:, :C] * scale
    k = qkv[:, C:2 * C]
    v = qkv[:, 2 * C:]
    q_ref[0] = q.astype(q_ref.dtype)
    kt_ref[0] = jnp.transpose(k).astype(kt_ref.dtype)     # (C, tn)
    v_ref[0] = v.astype(v_ref.dtype)


def qkv_projection(x, wqkv, g1, b1, *, C, tile):
    B, N_pad, _ = x.shape
    kernel = functools.partial(_qkv_proj_kernel, C=C)
    return pl.pallas_call(
        kernel,
        out_shape=(
            jax.ShapeDtypeStruct((B, N_pad, C), jnp.bfloat16),   # q
            jax.ShapeDtypeStruct((B, C, N_pad), jnp.bfloat16),   # k^T
            jax.ShapeDtypeStruct((B, N_pad, C), jnp.bfloat16),   # v
        ),
        grid=(B, N_pad // tile),
        in_specs=[
            pl.BlockSpec((1, tile, C), lambda b, i: (b, i, 0)),
            pl.BlockSpec((C, 3 * C), lambda b, i: (0, 0)),
            pl.BlockSpec((1, C), lambda b, i: (0, 0)),
            pl.BlockSpec((1, C), lambda b, i: (0, 0)),
        ],
        out_specs=(
            pl.BlockSpec((1, tile, C), lambda b, i: (b, i, 0)),
            pl.BlockSpec((1, C, tile), lambda b, i: (b, 0, i)),
            pl.BlockSpec((1, tile, C), lambda b, i: (b, i, 0)),
        ),
        compiler_params=pltpu.CompilerParams(
            dimension_semantics=("parallel", "parallel")),
    )(x, wqkv, g1, b1)


# ---------------------------------------------------------------------------
# Kernel 3: flash-style attention (online softmax over kv tiles) + residual +
# LN2 + MLP epilogue. Grid = (batch, q_tiles, kv_tiles); m/l/acc scratch
# persist over the kv axis. Padded keys are masked (static, only if needed).
# ---------------------------------------------------------------------------
def _flash_mlp_kernel(x_ref, q_ref, kt_ref, v_ref, wproj_ref, wfc1_ref, wfc2_ref,
                      g2_ref, b2_ref, o_ref, m_sc, l_sc, acc_sc,
                      *, n_real, tile_k):
    ki = pl.program_id(2)
    n_kv = pl.num_programs(2)

    @pl.when(ki == 0)
    def _():
        m_sc[...] = jnp.full_like(m_sc, -1e30)
        l_sc[...] = jnp.zeros_like(l_sc)
        acc_sc[...] = jnp.zeros_like(acc_sc)

    # Plain NN MXU matmul: q (tq, C) @ k^T (C, tk), both bf16, f32 accumulate.
    s = jnp.dot(q_ref[0], kt_ref[0], preferred_element_type=jnp.float32)

    if n_real % tile_k != 0:        # static: mask padded keys only if any exist
        kpos = ki * tile_k + jax.lax.broadcasted_iota(jnp.int32, (1, tile_k), 1)
        s = jnp.where(kpos < n_real, s, -1e30)

    m_prev = m_sc[...]
    m_new = jnp.maximum(m_prev, jnp.max(s, axis=-1, keepdims=True))
    alpha = jnp.exp(m_prev - m_new)
    # NOTE: on v6e/v7x a bf16 exp would ~double EUP throughput; kept in f32
    # (v5e has no bf16 EUP and this kernel is memory-bound anyway).
    p = jnp.exp(s - m_new)
    l_sc[...] = alpha * l_sc[...] + jnp.sum(p, axis=-1, keepdims=True)
    acc_sc[...] = alpha * acc_sc[...] + jnp.dot(
        p.astype(jnp.bfloat16), v_ref[0], preferred_element_type=jnp.float32)
    m_sc[...] = m_new

    @pl.when(ki == n_kv - 1)
    def _():
        attn = acc_sc[...] * pl.reciprocal(l_sc[...], approx=True)   # (tq, C)
        x_res = x_ref[0].astype(jnp.float32)
        x1 = x_res + jnp.dot(attn.astype(jnp.bfloat16), wproj_ref[...],
                             preferred_element_type=jnp.float32)
        h2 = _ln(x1, g2_ref[...], b2_ref[...])
        ff = jnp.dot(h2.astype(jnp.bfloat16), wfc1_ref[...],
                     preferred_element_type=jnp.float32)
        # TODO(synk): PyTorch nn.GELU defaults to exact erf GELU; tanh approx
        # is used here (this block is a structural stand-in for Swin attention).
        ff = jax.nn.gelu(ff, approximate=True)
        x2 = x1 + jnp.dot(ff.astype(jnp.bfloat16), wfc2_ref[...],
                          preferred_element_type=jnp.float32)
        o_ref[0] = x2.astype(o_ref.dtype)


def transformer_block(x, params, *, C, tile=256):
    """x: (B, N_real, C) bf16 tokens -> (B, N_real, C) bf16."""
    B, N_real, _ = x.shape
    if N_real >= tile:
        N_pad = _round_up(N_real, tile)
    else:
        tile = N_pad = _round_up(N_real, 8)
    if N_pad != N_real:
        x = jnp.pad(x, ((0, 0), (0, N_pad - N_real), (0, 0)))

    q, kt, v = qkv_projection(
        x, params["wqkv"].astype(jnp.bfloat16),
        params["g1"].reshape(1, C).astype(jnp.float32),
        params["b1"].reshape(1, C).astype(jnp.float32),
        C=C, tile=tile)

    F = params["wfc1"].shape[1]
    kernel = functools.partial(_flash_mlp_kernel, n_real=N_real, tile_k=tile)
    out = pl.pallas_call(
        kernel,
        out_shape=jax.ShapeDtypeStruct((B, N_pad, C), jnp.bfloat16),
        grid=(B, N_pad // tile, N_pad // tile),
        in_specs=[
            pl.BlockSpec((1, tile, C), lambda b, qi, ki: (b, qi, 0)),   # residual x
            pl.BlockSpec((1, tile, C), lambda b, qi, ki: (b, qi, 0)),   # q tile
            pl.BlockSpec((1, C, tile), lambda b, qi, ki: (b, 0, ki)),   # k^T tile
            pl.BlockSpec((1, tile, C), lambda b, qi, ki: (b, ki, 0)),   # v tile
            pl.BlockSpec((C, C), lambda b, qi, ki: (0, 0)),
            pl.BlockSpec((C, F), lambda b, qi, ki: (0, 0)),
            pl.BlockSpec((F, C), lambda b, qi, ki: (0, 0)),
            pl.BlockSpec((1, C), lambda b, qi, ki: (0, 0)),
            pl.BlockSpec((1, C), lambda b, qi, ki: (0, 0)),
        ],
        out_specs=pl.BlockSpec((1, tile, C), lambda b, qi, ki: (b, qi, 0)),
        scratch_shapes=[
            pltpu.VMEM((tile, 1), jnp.float32),    # m
            pltpu.VMEM((tile, 1), jnp.float32),    # l
            pltpu.VMEM((tile, C), jnp.float32),    # acc
        ],
        compiler_params=pltpu.CompilerParams(
            dimension_semantics=("parallel", "parallel", "arbitrary")),
    )(x, q, kt, v,
      params["wproj"].astype(jnp.bfloat16),
      params["wfc1"].astype(jnp.bfloat16),
      params["wfc2"].astype(jnp.bfloat16),
      params["g2"].reshape(1, C).astype(jnp.float32),
      params["b2"].reshape(1, C).astype(jnp.float32))
    return out[:, :N_real]


# ---------------------------------------------------------------------------
# Parameters
# ---------------------------------------------------------------------------
def init_params(key, in_chans=2, embed_dim=16, mlp_ratio=4):
    ks = jax.random.split(key, 6)
    C = embed_dim
    p = {}
    p["w_stem"] = 0.02 * jax.random.normal(ks[0], (3, 3, 3, in_chans, C), jnp.float32)
    p["b_stem"] = jnp.zeros((C,), jnp.float32)
    p["wqkv"] = 0.02 * jax.random.normal(ks[1], (C, 3 * C), jnp.float32)
    p["wproj"] = 0.02 * jax.random.normal(ks[2], (C, C), jnp.float32)
    p["wfc1"] = 0.02 * jax.random.normal(ks[3], (C, mlp_ratio * C), jnp.float32)
    p["wfc2"] = 0.02 * jax.random.normal(ks[4], (mlp_ratio * C, C), jnp.float32)
    p["g1"] = jnp.ones((C,), jnp.float32)
    p["b1"] = jnp.zeros((C,), jnp.float32)
    p["g2"] = jnp.ones((C,), jnp.float32)
    p["b2"] = jnp.zeros((C,), jnp.float32)
    # RegistrationHead in TransMorph: Conv3d(C, 3, 3), Normal(0, 1e-5) weight, zero bias.
    p["w_head"] = 1e-5 * jax.random.normal(ks[5], (3, 3, 3, C, 3), jnp.float32)
    p["b_head"] = jnp.zeros((3,), jnp.float32)
    return p


# ---------------------------------------------------------------------------
# Forward
# ---------------------------------------------------------------------------
def tsm_forward(fixed, moving, params, flow_multiplier=1.0):
    """fixed, moving: (B, 1, D, H, W) NCDHW -> flow (B, 3, D, H, W)."""
    x_in = jnp.concatenate([fixed, moving], axis=1)             # (B, 2, D, H, W)
    B, _, D, H, W = x_in.shape
    C = params["w_stem"].shape[-1]

    x = jnp.transpose(x_in, (0, 2, 3, 4, 1)).astype(jnp.bfloat16)   # (B,D,H,W,2)

    # Stem conv (2 -> C) + LeakyReLU(0.2); bf16 activations at real channel width.
    feat = conv3d_same(x, params["w_stem"], params["b_stem"],
                       leaky_slope=0.2, out_dtype=jnp.bfloat16)[..., :C]

    # Pre-LN attention + MLP block (QKV projection hoisted, flash softmax).
    tokens = feat.reshape(B, D * H * W, C)
    tokens = transformer_block(tokens, params, C=C)
    feat = tokens.reshape(B, D, H, W, C)

    # RegistrationHead conv (C -> 3). The double flow_multiplier scaling of the
    # reference (`flow = fm * flow; return flow * fm`) is folded into the
    # (linear) head weights, so no elementwise post-passes over the flow.
    fm2 = flow_multiplier * flow_multiplier
    flow = conv3d_same(feat, params["w_head"] * fm2, params["b_head"] * fm2,
                       out_dtype=jnp.float32)[..., :3]          # (B, D, H, W, 3)
    return jnp.transpose(flow, (0, 4, 1, 2, 3))                 # (B, 3, D, H, W)


if __name__ == "__main__":
    key = jax.random.PRNGKey(0)
    k1, k2, kp = jax.random.split(key, 3)
    B, D, H, W = 2, 8, 8, 8
    fixed = jax.random.normal(k1, (B, 1, D, H, W), jnp.float32)
    moving = jax.random.normal(k2, (B, 1, D, H, W), jnp.float32)
    params = init_params(kp, in_chans=2, embed_dim=16)

    fwd = jax.jit(functools.partial(tsm_forward, flow_multiplier=1.0))
    flow = jax.block_until_ready(fwd(fixed, moving, params))
    assert flow.shape == (B, 3, D, H, W), flow.shape
    assert bool(jnp.all(jnp.isfinite(flow)))
    print("KERNEL_OK")
</pallas_src>

<mosaic_0001>
module attributes {stable_mosaic.version = 11 : i64} {
  func.func @_matmul_bias_act_kernel(%arg0: i32, %arg1: memref<512x54xbf16, #tpu.memory_space<vmem>>, %arg2: memref<54x16xbf16, #tpu.memory_space<vmem>>, %arg3: memref<1x16xf32, #tpu.memory_space<vmem>>, %arg4: memref<512x16xbf16, #tpu.memory_space<vmem>>) attributes {dimension_semantics = [#tpu.dimension_semantics<parallel>], iteration_bounds = array<i64: 2>, scalar_prefetch = 0 : i64, scratch_operands = 0 : i64, tpu.core_type = #tpu.core_type<tc>, window_params = [{transform_indices = @transform_0, window_bounds = array<i64: 512, 54>}, {pipeline_mode = #tpu.pipeline_mode<synchronous>, transform_indices = @transform_1, window_bounds = array<i64: 54, 16>}, {pipeline_mode = #tpu.pipeline_mode<synchronous>, transform_indices = @transform_2, window_bounds = array<i64: 1, 16>}, {transform_indices = @transform_3, window_bounds = array<i64: 512, 16>}]} {
    %c0 = arith.constant 0 : index
    %c0_0 = arith.constant 0 : index
    %0 = vector.load %arg1[%c0, %c0_0] : memref<512x54xbf16, #tpu.memory_space<vmem>>, vector<512x54xbf16>
    %c0_1 = arith.constant 0 : index
    %c0_2 = arith.constant 0 : index
    %1 = vector.load %arg2[%c0_1, %c0_2] : memref<54x16xbf16, #tpu.memory_space<vmem>>, vector<54x16xbf16>
    %cst = arith.constant dense<0.000000e+00> : vector<512x16xf32>
    %2 = tpu.matmul %0, %1, %cst {dimension_numbers = #tpu.dot_dimension_numbers<[1], [0], [0], [1], [0, 0, 1, 1], [], []>} : vector<512x54xbf16>, vector<54x16xbf16>, vector<512x16xf32> -> vector<512x16xf32>
    %c0_3 = arith.constant 0 : index
    %c0_4 = arith.constant 0 : index
    %3 = vector.load %arg3[%c0_3, %c0_4] : memref<1x16xf32, #tpu.memory_space<vmem>>, vector<1x16xf32>
    %4 = vector.broadcast %3 : vector<1x16xf32> to vector<512x16xf32>
    %5 = arith.addf %2, %4 : vector<512x16xf32>
    %cst_5 = arith.constant 0.000000e+00 : f32
    %6 = vector.broadcast %cst_5 : f32 to vector<512x16xf32>
    %7 = arith.cmpf oge, %5, %6 : vector<512x16xf32>
    %cst_6 = arith.constant 2.000000e-01 : f32
    %8 = vector.broadcast %cst_6 : f32 to vector<512x16xf32>
    %9 = arith.mulf %8, %5 : vector<512x16xf32>
    %10 = arith.select %7, %5, %9 : vector<512x16xi1>, vector<512x16xf32>
    %11 = arith.truncf %10 : vector<512x16xf32> to vector<512x16xbf16>
    %c0_7 = arith.constant 0 : index
    %c0_8 = arith.constant 0 : index
    %12 = vector.load %arg4[%c0_7, %c0_8] : memref<512x16xbf16, #tpu.memory_space<vmem>>, vector<512x16xbf16>
    tpu.vector_store %arg4[%c0_7, %c0_8], %11 {strides = array<i32>} : memref<512x16xbf16, #tpu.memory_space<vmem>>, vector<512x16xbf16>,
    return
  }
  func.func @transform_0(%arg0: i32) -> (i32, i32) {
    %c0_i32 = arith.constant 0 : i32
    %c0_i32_0 = arith.constant 0 : i32
    return %arg0, %c0_i32 : i32, i32
  }
  func.func @transform_1(%arg0: i32) -> (i32, i32) {
    %c0_i32 = arith.constant 0 : i32
    %c0_i32_0 = arith.constant 0 : i32
    %c0_i32_1 = arith.constant 0 : i32
    return %c0_i32, %c0_i32_0 : i32, i32
  }
  func.func @transform_2(%arg0: i32) -> (i32, i32) {
    %c0_i32 = arith.constant 0 : i32
    %c0_i32_0 = arith.constant 0 : i32
    %c0_i32_1 = arith.constant 0 : i32
    return %c0_i32, %c0_i32_0 : i32, i32
  }
  func.func @transform_3(%arg0: i32) -> (i32, i32) {
    %c0_i32 = arith.constant 0 : i32
    %c0_i32_0 = arith.constant 0 : i32
    return %arg0, %c0_i32 : i32, i32
  }
}

module attributes {stable_mosaic.version = 11 : i64} {
  func.func @_qkv_proj_kernel(%arg0: i32, %arg1: i32, %arg2: memref<1x256x16xbf16, #tpu.memory_space<vmem>>, %arg3: memref<16x48xbf16, #tpu.memory_space<vmem>>, %arg4: memref<1x16xf32, #tpu.memory_space<vmem>>, %arg5: memref<1x16xf32, #tpu.memory_space<vmem>>, %arg6: memref<1x256x16xbf16, #tpu.memory_space<vmem>>, %arg7: memref<1x16x256xbf16, #tpu.memory_space<vmem>>, %arg8: memref<1x256x16xbf16, #tpu.memory_space<vmem>>) attributes {dimension_semantics = [#tpu.dimension_semantics<parallel>, #tpu.dimension_semantics<parallel>], iteration_bounds = array<i64: 2, 2>, scalar_prefetch = 0 : i64, scratch_operands = 0 : i64, tpu.core_type = #tpu.core_type<tc>, window_params = [{transform_indices = @transform_0, window_bounds = array<i64: 1, 256, 16>}, {pipeline_mode = #tpu.pipeline_mode<synchronous>, transform_indices = @transform_1, window_bounds = array<i64: 16, 48>}, {pipeline_mode = #tpu.pipeline_mode<synchronous>, transform_indices = @transform_2, window_bounds = array<i64: 1, 16>}, {pipeline_mode = #tpu.pipeline_mode<synchronous>, transform_indices = @transform_3, window_bounds = array<i64: 1, 16>}, {transform_indices = @transform_4, window_bounds = array<i64: 1, 256, 16>}, {transform_indices = @transform_5, window_bounds = array<i64: 1, 16, 256>}, {transform_indices = @transform_6, window_bounds = array<i64: 1, 256, 16>}]} {
    %c0 = arith.constant 0 : index
    %c0_0 = arith.constant 0 : index
    %c0_1 = arith.constant 0 : index
    %0 = vector.load %arg2[%c0, %c0_0, %c0_1] : memref<1x256x16xbf16, #tpu.memory_space<vmem>>, vector<1x256x16xbf16>
    %1 = vector.shape_cast %0 : vector<1x256x16xbf16> to vector<256x16xbf16>
    %2 = arith.extf %1 : vector<256x16xbf16> to vector<256x16xf32>
    %c0_2 = arith.constant 0 : index
    %c0_3 = arith.constant 0 : index
    %3 = vector.load %arg4[%c0_2, %c0_3] : memref<1x16xf32, #tpu.memory_space<vmem>>, vector<1x16xf32>
    %c0_4 = arith.constant 0 : index
    %c0_5 = arith.constant 0 : index
    %4 = vector.load %arg5[%c0_4, %c0_5] : memref<1x16xf32, #tpu.memory_space<vmem>>, vector<1x16xf32>
    %cst = arith.constant dense<0.000000e+00> : vector<256xf32>
    %5 = vector.multi_reduction <add>, %2, %cst [1] : vector<256x16xf32> to vector<256xf32>
    %6 = vector.shape_cast %5 : vector<256xf32> to vector<256x1xf32>
    %cst_6 = arith.constant 1.600000e+01 : f32
    %7 = vector.broadcast %cst_6 : f32 to vector<256x1xf32>
    %8 = arith.divf %6, %7 : vector<256x1xf32>
    %9 = vector.broadcast %8 : vector<256x1xf32> to vector<256x16xf32>
    %10 = arith.subf %2, %9 : vector<256x16xf32>
    %11 = arith.mulf %10, %10 : vector<256x16xf32>
    %cst_7 = arith.constant dense<0.000000e+00> : vector<256xf32>
    %12 = vector.multi_reduction <add>, %11, %cst_7 [1] : vector<256x16xf32> to vector<256xf32>
    %13 = vector.shape_cast %12 : vector<256xf32> to vector<256x1xf32>
    %cst_8 = arith.constant 1.600000e+01 : f32
    %14 = vector.broadcast %cst_8 : f32 to vector<256x1xf32>
    %15 = arith.divf %13, %14 : vector<256x1xf32>
    %cst_9 = arith.constant 9.99999974E-6 : f32
    %16 = vector.broadcast %cst_9 : f32 to vector<256x1xf32>
    %17 = arith.addf %15, %16 : vector<256x1xf32>
    %18 = math.rsqrt %17 : vector<256x1xf32>
    %19 = vector.broadcast %18 : vector<256x1xf32> to vector<256x16xf32>
    %20 = arith.mulf %10, %19 : vector<256x16xf32>
    %21 = vector.broadcast %3 : vector<1x16xf32> to vector<256x16xf32>
    %22 = arith.mulf %20, %21 : vector<256x16xf32>
    %23 = vector.broadcast %4 : vector<1x16xf32> to vector<256x16xf32>
    %24 = arith.addf %22, %23 : vector<256x16xf32>
    %25 = arith.truncf %24 : vector<256x16xf32> to vector<256x16xbf16>
    %c0_10 = arith.constant 0 : index
    %c0_11 = arith.constant 0 : index
    %26 = vector.load %arg3[%c0_10, %c0_11] : memref<16x48xbf16, #tpu.memory_space<vmem>>, vector<16x48xbf16>
    %cst_12 = arith.constant dense<0.000000e+00> : vector<256x48xf32>
    %27 = tpu.matmul %25, %26, %cst_12 {dimension_numbers = #tpu.dot_dimension_numbers<[1], [0], [0], [1], [0, 0, 1, 1], [], []>} : vector<256x16xbf16>, vector<16x48xbf16>, vector<256x48xf32> -> vector<256x48xf32>
    %28 = vector.extract_strided_slice %27 {offsets = [0, 0], sizes = [256, 16], strides = [1, 1]} : vector<256x48xf32> to vector<256x16xf32>
    %cst_13 = arith.constant 2.500000e-01 : f32
    %29 = vector.broadcast %cst_13 : f32 to vector<256x16xf32>
    %30 = arith.mulf %28, %29 : vector<256x16xf32>
    %31 = vector.extract_strided_slice %27 {offsets = [0, 16], sizes = [256, 16], strides = [1, 1]} : vector<256x48xf32> to vector<256x16xf32>
    %32 = vector.extract_strided_slice %27 {offsets = [0, 32], sizes = [256, 16], strides = [1, 1]} : vector<256x48xf32> to vector<256x16xf32>
    %33 = arith.truncf %30 : vector<256x16xf32> to vector<256x16xbf16>
    %c0_14 = arith.constant 0 : index
    %c0_15 = arith.constant 0 : index
    %c0_16 = arith.constant 0 : index
    %34 = vector.load %arg6[%c0_14, %c0_15, %c0_16] : memref<1x256x16xbf16, #tpu.memory_space<vmem>>, vector<1x256x16xbf16>
    %35 = vector.shape_cast %34 : vector<1x256x16xbf16> to vector<256x16xbf16>
    %36 = vector.shape_cast %33 : vector<256x16xbf16> to vector<1x256x16xbf16>
    tpu.vector_store %arg6[%c0_14, %c0_15, %c0_16], %36 {strides = array<i32>} : memref<1x256x16xbf16, #tpu.memory_space<vmem>>, vector<1x256x16xbf16>,
    %37 = tpu.transpose %31, [1, 0] : vector<256x16xf32> -> vector<16x256xf32>
    %38 = arith.truncf %37 : vector<16x256xf32> to vector<16x256xbf16>
    %c0_17 = arith.constant 0 : index
    %c0_18 = arith.constant 0 : index
    %c0_19 = arith.constant 0 : index
    %39 = vector.load %arg7[%c0_17, %c0_18, %c0_19] : memref<1x16x256xbf16, #tpu.memory_space<vmem>>, vector<1x16x256xbf16>
    %40 = vector.shape_cast %39 : vector<1x16x256xbf16> to vector<16x256xbf16>
    %41 = vector.shape_cast %38 : vector<16x256xbf16> to vector<1x16x256xbf16>
    tpu.vector_store %arg7[%c0_17, %c0_18, %c0_19], %41 {strides = array<i32>} : memref<1x16x256xbf16, #tpu.memory_space<vmem>>, vector<1x16x256xbf16>,
    %42 = arith.truncf %32 : vector<256x16xf32> to vector<256x16xbf16>
    %c0_20 = arith.constant 0 : index
    %c0_21 = arith.constant 0 : index
    %c0_22 = arith.constant 0 : index
    %43 = vector.load %arg8[%c0_20, %c0_21, %c0_22] : memref<1x256x16xbf16, #tpu.memory_space<vmem>>, vector<1x256x16xbf16>
    %44 = vector.shape_cast %43 : vector<1x256x16xbf16> to vector<256x16xbf16>
    %45 = vector.shape_cast %42 : vector<256x16xbf16> to vector<1x256x16xbf16>
    tpu.vector_store %arg8[%c0_20, %c0_21, %c0_22], %45 {strides = array<i32>} : memref<1x256x16xbf16, #tpu.memory_space<vmem>>, vector<1x256x16xbf16>,
    return
  }
  func.func @transform_0(%arg0: i32, %arg1: i32) -> (i32, i32, i32) {
    %c0_i32 = arith.constant 0 : i32
    %c0_i32_0 = arith.constant 0 : i32
    return %arg0, %arg1, %c0_i32 : i32, i32, i32
  }
  func.func @transform_1(%arg0: i32, %arg1: i32) -> (i32, i32) {
    %c0_i32 = arith.constant 0 : i32
    %c0_i32_0 = arith.constant 0 : i32
    %c0_i32_1 = arith.constant 0 : i32
    return %c0_i32, %c0_i32_0 : i32, i32
  }
  func.func @transform_2(%arg0: i32, %arg1: i32) -> (i32, i32) {
    %c0_i32 = arith.constant 0 : i32
    %c0_i32_0 = arith.constant 0 : i32
    %c0_i32_1 = arith.constant 0 : i32
    return %c0_i32, %c0_i32_0 : i32, i32
  }
  func.func @transform_3(%arg0: i32, %arg1: i32) -> (i32, i32) {
    %c0_i32 = arith.constant 0 : i32
    %c0_i32_0 = arith.constant 0 : i32
    %c0_i32_1 = arith.constant 0 : i32
    return %c0_i32, %c0_i32_0 : i32, i32
  }
  func.func @transform_4(%arg0: i32, %arg1: i32) -> (i32, i32, i32) {
    %c0_i32 = arith.constant 0 : i32
    %c0_i32_0 = arith.constant 0 : i32
    return %arg0, %arg1, %c0_i32 : i32, i32, i32
  }
  func.func @transform_5(%arg0: i32, %arg1: i32) -> (i32, i32, i32) {
    %c0_i32 = arith.constant 0 : i32
    %c0_i32_0 = arith.constant 0 : i32
    return %arg0, %c0_i32, %arg1 : i32, i32, i32
  }
  func.func @transform_6(%arg0: i32, %arg1: i32) -> (i32, i32, i32) {
    %c0_i32 = arith.constant 0 : i32
    %c0_i32_0 = arith.constant 0 : i32
    return %arg0, %arg1, %c0_i32 : i32, i32, i32
  }
}

module attributes {stable_mosaic.version = 11 : i64} {
  func.func @_flash_mlp_kernel(%arg0: i32, %arg1: i32, %arg2: i32, %arg3: memref<1x256x16xbf16, #tpu.memory_space<vmem>>, %arg4: memref<1x256x16xbf16, #tpu.memory_space<vmem>>, %arg5: memref<1x16x256xbf16, #tpu.memory_space<vmem>>, %arg6: memref<1x256x16xbf16, #tpu.memory_space<vmem>>, %arg7: memref<16x16xbf16, #tpu.memory_space<vmem>>, %arg8: memref<16x64xbf16, #tpu.memory_space<vmem>>, %arg9: memref<64x16xbf16, #tpu.memory_space<vmem>>, %arg10: memref<1x16xf32, #tpu.memory_space<vmem>>, %arg11: memref<1x16xf32, #tpu.memory_space<vmem>>, %arg12: memref<1x256x16xbf16, #tpu.memory_space<vmem>>, %arg13: memref<256x1xf32, #tpu.memory_space<vmem>>, %arg14: memref<256x1xf32, #tpu.memory_space<vmem>>, %arg15: memref<256x16xf32, #tpu.memory_space<vmem>>) attributes {dimension_semantics = [#tpu.dimension_semantics<parallel>, #tpu.dimension_semantics<parallel>, #tpu.dimension_semantics<arbitrary>], iteration_bounds = array<i64: 2, 2, 2>, scalar_prefetch = 0 : i64, scratch_operands = 3 : i64, tpu.core_type = #tpu.core_type<tc>, window_params = [{transform_indices = @transform_0, window_bounds = array<i64: 1, 256, 16>}, {transform_indices = @transform_1, window_bounds = array<i64: 1, 256, 16>}, {transform_indices = @transform_2, window_bounds = array<i64: 1, 16, 256>}, {transform_indices = @transform_3, window_bounds = array<i64: 1, 256, 16>}, {pipeline_mode = #tpu.pipeline_mode<synchronous>, transform_indices = @transform_4, window_bounds = array<i64: 16, 16>}, {pipeline_mode = #tpu.pipeline_mode<synchronous>, transform_indices = @transform_5, window_bounds = array<i64: 16, 64>}, {pipeline_mode = #tpu.pipeline_mode<synchronous>, transform_indices = @transform_6, window_bounds = array<i64: 64, 16>}, {pipeline_mode = #tpu.pipeline_mode<synchronous>, transform_indices = @transform_7, window_bounds = array<i64: 1, 16>}, {pipeline_mode = #tpu.pipeline_mode<synchronous>, transform_indices = @transform_8, window_bounds = array<i64: 1, 16>}, {transform_indices = @transform_9, window_bounds = array<i64: 1, 256, 16>}]} {
    %c0_i32 = arith.constant 0 : i32
    %0 = arith.cmpi eq, %arg2, %c0_i32 : i32
    %1 = arith.extui %0 : i1 to i32
    %c0_i32_0 = arith.constant 0 : i32
    %2 = arith.cmpi ne, %1, %c0_i32_0 : i32
    scf.if %2 {
      %cst_25 = arith.constant -1.000000e+30 : f32
      %36 = vector.broadcast %cst_25 : f32 to vector<256x1xf32>
      %c0_26 = arith.constant 0 : index
      %c0_27 = arith.constant 0 : index
      %37 = vector.load %arg13[%c0_26, %c0_27] : memref<256x1xf32, #tpu.memory_space<vmem>>, vector<256x1xf32>
      tpu.vector_store %arg13[%c0_26, %c0_27], %36 {strides = array<i32>} : memref<256x1xf32, #tpu.memory_space<vmem>>, vector<256x1xf32>,
      %cst_28 = arith.constant 0.000000e+00 : f32
      %38 = vector.broadcast %cst_28 : f32 to vector<256x1xf32>
      %c0_29 = arith.constant 0 : index
      %c0_30 = arith.constant 0 : index
      %39 = vector.load %arg14[%c0_29, %c0_30] : memref<256x1xf32, #tpu.memory_space<vmem>>, vector<256x1xf32>
      tpu.vector_store %arg14[%c0_29, %c0_30], %38 {strides = array<i32>} : memref<256x1xf32, #tpu.memory_space<vmem>>, vector<256x1xf32>,
      %cst_31 = arith.constant 0.000000e+00 : f32
      %40 = vector.broadcast %cst_31 : f32 to vector<256x16xf32>
      %c0_32 = arith.constant 0 : index
      %c0_33 = arith.constant 0 : index
      %41 = vector.load %arg15[%c0_32, %c0_33] : memref<256x16xf32, #tpu.memory_space<vmem>>, vector<256x16xf32>
      tpu.vector_store %arg15[%c0_32, %c0_33], %40 {strides = array<i32>} : memref<256x16xf32, #tpu.memory_space<vmem>>, vector<256x16xf32>,
    } else {
    }
    %c0 = arith.constant 0 : index
    %c0_1 = arith.constant 0 : index
    %c0_2 = arith.constant 0 : index
    %3 = vector.load %arg4[%c0, %c0_1, %c0_2] : memref<1x256x16xbf16, #tpu.memory_space<vmem>>, vector<1x256x16xbf16>
    %4 = vector.shape_cast %3 : vector<1x256x16xbf16> to vector<256x16xbf16>
    %c0_3 = arith.constant 0 : index
    %c0_4 = arith.constant 0 : index
    %c0_5 = arith.constant 0 : index
    %5 = vector.load %arg5[%c0_3, %c0_4, %c0_5] : memref<1x16x256xbf16, #tpu.memory_space<vmem>>, vector<1x16x256xbf16>
    %6 = vector.shape_cast %5 : vector<1x16x256xbf16> to vector<16x256xbf16>
    %cst = arith.constant dense<0.000000e+00> : vector<256x256xf32>
    %7 = tpu.matmul %4, %6, %cst {dimension_numbers = #tpu.dot_dimension_numbers<[1], [0], [0], [1], [0, 0, 1, 1], [], []>} : vector<256x16xbf16>, vector<16x256xbf16>, vector<256x256xf32> -> vector<256x256xf32>
    %c0_6 = arith.constant 0 : index
    %c0_7 = arith.constant 0 : index
    %8 = vector.load %arg13[%c0_6, %c0_7] : memref<256x1xf32, #tpu.memory_space<vmem>>, vector<256x1xf32>
    %cst_8 = arith.constant dense<0xFF800000> : vector<256xf32>
    %9 = vector.multi_reduction <maximumf>, %7, %cst_8 [1] : vector<256x256xf32> to vector<256xf32>
    %10 = vector.shape_cast %9 : vector<256xf32> to vector<256x1xf32>
    %11 = arith.maximumf %8, %10 : vector<256x1xf32>
    %12 = arith.subf %8, %11 : vector<256x1xf32>
    %13 = math.exp %12 : vector<256x1xf32>
    %14 = vector.broadcast %11 : vector<256x1xf32> to vector<256x256xf32>
    %15 = arith.subf %7, %14 : vector<256x256xf32>
    %16 = math.exp %15 : vector<256x256xf32>
    %c0_9 = arith.constant 0 : index
    %c0_10 = arith.constant 0 : index
    %17 = vector.load %arg14[%c0_9, %c0_10] : memref<256x1xf32, #tpu.memory_space<vmem>>, vector<256x1xf32>
    %18 = arith.mulf %13, %17 : vector<256x1xf32>
    %cst_11 = arith.constant dense<0.000000e+00> : vector<256xf32>
    %19 = vector.multi_reduction <add>, %16, %cst_11 [1] : vector<256x256xf32> to vector<256xf32>
    %20 = vector.shape_cast %19 : vector<256xf32> to vector<256x1xf32>
    %21 = arith.addf %18, %20 : vector<256x1xf32>
    %c0_12 = arith.constant 0 : index
    %c0_13 = arith.constant 0 : index
    %22 = vector.load %arg14[%c0_12, %c0_13] : memref<256x1xf32, #tpu.memory_space<vmem>>, vector<256x1xf32>
    tpu.vector_store %arg14[%c0_12, %c0_13], %21 {strides = array<i32>} : memref<256x1xf32, #tpu.memory_space<vmem>>, vector<256x1xf32>,
    %c0_14 = arith.constant 0 : index
    %c0_15 = arith.constant 0 : index
    %23 = vector.load %arg15[%c0_14, %c0_15] : memref<256x16xf32, #tpu.memory_space<vmem>>, vector<256x16xf32>
    %24 = vector.broadcast %13 : vector<256x1xf32> to vector<256x16xf32>
    %25 = arith.mulf %24, %23 : vector<256x16xf32>
    %26 = arith.truncf %16 : vector<256x256xf32> to vector<256x256xbf16>
    %c0_16 = arith.constant 0 : index
    %c0_17 = arith.constant 0 : index
    %c0_18 = arith.constant 0 : index
    %27 = vector.load %arg6[%c0_16, %c0_17, %c0_18] : memref<1x256x16xbf16, #tpu.memory_space<vmem>>, vector<1x256x16xbf16>
    %28 = vector.shape_cast %27 : vector<1x256x16xbf16> to vector<256x16xbf16>
    %cst_19 = arith.constant dense<0.000000e+00> : vector<256x16xf32>
    %29 = tpu.matmul %26, %28, %cst_19 {dimension_numbers = #tpu.dot_dimension_numbers<[1], [0], [0], [1], [0, 0, 1, 1], [], []>} : vector<256x256xbf16>, vector<256x16xbf16>, vector<256x16xf32> -> vector<256x16xf32>
    %30 = arith.addf %25, %29 : vector<256x16xf32>
    %c0_20 = arith.constant 0 : index
    %c0_21 = arith.constant 0 : index
    %31 = vector.load %arg15[%c0_20, %c0_21] : memref<256x16xf32, #tpu.memory_space<vmem>>, vector<256x16xf32>
    tpu.vector_store %arg15[%c0_20, %c0_21], %30 {strides = array<i32>} : memref<256x16xf32, #tpu.memory_space<vmem>>, vector<256x16xf32>,
    %c0_22 = arith.constant 0 : index
    %c0_23 = arith.constant 0 : index
    %32 = vector.load %arg13[%c0_22, %c0_23] : memref<256x1xf32, #tpu.memory_space<vmem>>, vector<256x1xf32>
    tpu.vector_store %arg13[%c0_22, %c0_23], %11 {strides = array<i32>} : memref<256x1xf32, #tpu.memory_space<vmem>>, vector<256x1xf32>,
    %c1_i32 = arith.constant 1 : i32
    %33 = arith.cmpi eq, %arg2, %c1_i32 : i32
    %34 = arith.extui %33 : i1 to i32
    %c0_i32_24 = arith.constant 0 : i32
    %35 = arith.cmpi ne, %34, %c0_i32_24 : i32
    scf.if %35 {
      %c0_25 = arith.constant 0 : index
      %c0_26 = arith.constant 0 : index
      %36 = vector.load %arg15[%c0_25, %c0_26] : memref<256x16xf32, #tpu.memory_space<vmem>>, vector<256x16xf32>
      %c0_27 = arith.constant 0 : index
      %c0_28 = arith.constant 0 : index
      %37 = vector.load %arg14[%c0_27, %c0_28] : memref<256x1xf32, #tpu.memory_space<vmem>>, vector<256x1xf32>
      %38 = tpu.reciprocal %37 {approx = true} : vector<256x1xf32> -> vector<256x1xf32>
      %39 = vector.broadcast %38 : vector<256x1xf32> to vector<256x16xf32>
      %40 = arith.mulf %36, %39 : vector<256x16xf32>
      %c0_29 = arith.constant 0 : index
      %c0_30 = arith.constant 0 : index
      %c0_31 = arith.constant 0 : index
      %41 = vector.load %arg3[%c0_29, %c0_30, %c0_31] : memref<1x256x16xbf16, #tpu.memory_space<vmem>>, vector<1x256x16xbf16>
      %42 = vector.shape_cast %41 : vector<1x256x16xbf16> to vector<256x16xbf16>
      %43 = arith.extf %42 : vector<256x16xbf16> to vector<256x16xf32>
      %44 = arith.truncf %40 : vector<256x16xf32> to vector<256x16xbf16>
      %c0_32 = arith.constant 0 : index
      %c0_33 = arith.constant 0 : index
      %45 = vector.load %arg7[%c0_32, %c0_33] : memref<16x16xbf16, #tpu.memory_space<vmem>>, vector<16x16xbf16>
      %cst_34 = arith.constant dense<0.000000e+00> : vector<256x16xf32>
      %46 = tpu.matmul %44, %45, %cst_34 {dimension_numbers = #tpu.dot_dimension_numbers<[1], [0], [0], [1], [0, 0, 1, 1], [], []>} : vector<256x16xbf16>, vector<16x16xbf16>, vector<256x16xf32> -> vector<256x16xf32>
      %47 = arith.addf %43, %46 : vector<256x16xf32>
      %c0_35 = arith.constant 0 : index
      %c0_36 = arith.constant 0 : index
      %48 = vector.load %arg10[%c0_35, %c0_36] : memref<1x16xf32, #tpu.memory_space<vmem>>, vector<1x16xf32>
      %c0_37 = arith.constant 0 : index
      %c0_38 = arith.constant 0 : index
      %49 = vector.load %arg11[%c0_37, %c0_38] : memref<1x16xf32, #tpu.memory_space<vmem>>, vector<1x16xf32>
      %cst_39 = arith.constant dense<0.000000e+00> : vector<256xf32>
      %50 = vector.multi_reduction <add>, %47, %cst_39 [1] : vector<256x16xf32> to vector<256xf32>
      %51 = vector.shape_cast %50 : vector<256xf32> to vector<256x1xf32>
      %cst_40 = arith.constant 1.600000e+01 : f32
      %52 = vector.broadcast %cst_40 : f32 to vector<256x1xf32>
      %53 = arith.divf %51, %52 : vector<256x1xf32>
      %54 = vector.broadcast %53 : vector<256x1xf32> to vector<256x16xf32>
      %55 = arith.subf %47, %54 : vector<256x16xf32>
      %56 = arith.mulf %55, %55 : vector<256x16xf32>
      %cst_41 = arith.constant dense<0.000000e+00> : vector<256xf32>
      %57 = vector.multi_reduction <add>, %56, %cst_41 [1] : vector<256x16xf32> to vector<256xf32>
      %58 = vector.shape_cast %57 : vector<256xf32> to vector<256x1xf32>
      %cst_42 = arith.constant 1.600000e+01 : f32
      %59 = vector.broadcast %cst_42 : f32 to vector<256x1xf32>
      %60 = arith.divf %58, %59 : vector<256x1xf32>
      %cst_43 = arith.constant 9.99999974E-6 : f32
      %61 = vector.broadcast %cst_43 : f32 to vector<256x1xf32>
      %62 = arith.addf %60, %61 : vector<256x1xf32>
      %63 = math.rsqrt %62 : vector<256x1xf32>
      %64 = vector.broadcast %63 : vector<256x1xf32> to vector<256x16xf32>
      %65 = arith.mulf %55, %64 : vector<256x16xf32>
      %66 = vector.broadcast %48 : vector<1x16xf32> to vector<256x16xf32>
      %67 = arith.mulf %65, %66 : vector<256x16xf32>
      %68 = vector.broadcast %49 : vector<1x16xf32> to vector<256x16xf32>
      %69 = arith.addf %67, %68 : vector<256x16xf32>
      %70 = arith.truncf %69 : vector<256x16xf32> to vector<256x16xbf16>
      %c0_44 = arith.constant 0 : index
      %c0_45 = arith.constant 0 : index
      %71 = vector.load %arg8[%c0_44, %c0_45] : memref<16x64xbf16, #tpu.memory_space<vmem>>, vector<16x64xbf16>
      %cst_46 = arith.constant dense<0.000000e+00> : vector<256x64xf32>
      %72 = tpu.matmul %70, %71, %cst_46 {dimension_numbers = #tpu.dot_dimension_numbers<[1], [0], [0], [1], [0, 0, 1, 1], [], []>} : vector<256x16xbf16>, vector<16x64xbf16>, vector<256x64xf32> -> vector<256x64xf32>
      %73 = arith.mulf %72, %72 : vector<256x64xf32>
      %74 = arith.mulf %72, %73 : vector<256x64xf32>
      %cst_47 = arith.constant 4.471500e-02 : f32
      %75 = vector.broadcast %cst_47 : f32 to vector<256x64xf32>
      %76 = arith.mulf %75, %74 : vector<256x64xf32>
      %77 = arith.addf %72, %76 : vector<256x64xf32>
      %cst_48 = arith.constant 0.797884583 : f32
      %78 = vector.broadcast %cst_48 : f32 to vector<256x64xf32>
      %79 = arith.mulf %78, %77 : vector<256x64xf32>
      %80 = math.tanh %79 : vector<256x64xf32>
      %cst_49 = arith.constant 1.000000e+00 : f32
      %81 = vector.broadcast %cst_49 : f32 to vector<256x64xf32>
      %82 = arith.addf %81, %80 : vector<256x64xf32>
      %cst_50 = arith.constant 5.000000e-01 : f32
      %83 = vector.broadcast %cst_50 : f32 to vector<256x64xf32>
      %84 = arith.mulf %83, %82 : vector<256x64xf32>
      %85 = arith.mulf %72, %84 : vector<256x64xf32>
      %86 = arith.truncf %85 : vector<256x64xf32> to vector<256x64xbf16>
      %c0_51 = arith.constant 0 : index
      %c0_52 = arith.constant 0 : index
      %87 = vector.load %arg9[%c0_51, %c0_52] : memref<64x16xbf16, #tpu.memory_space<vmem>>, vector<64x16xbf16>
      %cst_53 = arith.constant dense<0.000000e+00> : vector<256x16xf32>
      %88 = tpu.matmul %86, %87, %cst_53 {dimension_numbers = #tpu.dot_dimension_numbers<[1], [0], [0], [1], [0, 0, 1, 1], [], []>} : vector<256x64xbf16>, vector<64x16xbf16>, vector<256x16xf32> -> vector<256x16xf32>
      %89 = arith.addf %47, %88 : vector<256x16xf32>
      %90 = arith.truncf %89 : vector<256x16xf32> to vector<256x16xbf16>
      %c0_54 = arith.constant 0 : index
      %c0_55 = arith.constant 0 : index
      %c0_56 = arith.constant 0 : index
      %91 = vector.load %arg12[%c0_54, %c0_55, %c0_56] : memref<1x256x16xbf16, #tpu.memory_space<vmem>>, vector<1x256x16xbf16>
      %92 = vector.shape_cast %91 : vector<1x256x16xbf16> to vector<256x16xbf16>
      %93 = vector.shape_cast %90 : vector<256x16xbf16> to vector<1x256x16xbf16>
      tpu.vector_store %arg12[%c0_54, %c0_55, %c0_56], %93 {strides = array<i32>} : memref<1x256x16xbf16, #tpu.memory_space<vmem>>, vector<1x256x16xbf16>,
    } else {
    }
    return
  }
  func.func @transform_0(%arg0: i32, %arg1: i32, %arg2: i32) -> (i32, i32, i32) {
    %c0_i32 = arith.constant 0 : i32
    %c0_i32_0 = arith.constant 0 : i32
    return %arg0, %arg1, %c0_i32 : i32, i32, i32
  }
  func.func @transform_1(%arg0: i32, %arg1: i32, %arg2: i32) -> (i32, i32, i32) {
    %c0_i32 = arith.constant 0 : i32
    %c0_i32_0 = arith.constant 0 : i32
    return %arg0, %arg1, %c0_i32 : i32, i32, i32
  }
  func.func @transform_2(%arg0: i32, %arg1: i32, %arg2: i32) -> (i32, i32, i32) {
    %c0_i32 = arith.constant 0 : i32
    %c0_i32_0 = arith.constant 0 : i32
    return %arg0, %c0_i32, %arg2 : i32, i32, i32
  }
  func.func @transform_3(%arg0: i32, %arg1: i32, %arg2: i32) -> (i32, i32, i32) {
    %c0_i32 = arith.constant 0 : i32
    %c0_i32_0 = arith.constant 0 : i32
    return %arg0, %arg2, %c0_i32 : i32, i32, i32
  }
  func.func @transform_4(%arg0: i32, %arg1: i32, %arg2: i32) -> (i32, i32) {
    %c0_i32 = arith.constant 0 : i32
    %c0_i32_0 = arith.constant 0 : i32
    %c0_i32_1 = arith.constant 0 : i32
    return %c0_i32, %c0_i32_0 : i32, i32
  }
  func.func @transform_5(%arg0: i32, %arg1: i32, %arg2: i32) -> (i32, i32) {
    %c0_i32 = arith.constant 0 : i32
    %c0_i32_0 = arith.constant 0 : i32
    %c0_i32_1 = arith.constant 0 : i32
    return %c0_i32, %c0_i32_0 : i32, i32
  }
  func.func @transform_6(%arg0: i32, %arg1: i32, %arg2: i32) -> (i32, i32) {
    %c0_i32 = arith.constant 0 : i32
    %c0_i32_0 = arith.constant 0 : i32
    %c0_i32_1 = arith.constant 0 : i32
    return %c0_i32, %c0_i32_0 : i32, i32
  }
  func.func @transform_7(%arg0: i32, %arg1: i32, %arg2: i32) -> (i32, i32) {
    %c0_i32 = arith.constant 0 : i32
    %c0_i32_0 = arith.constant 0 : i32
    %c0_i32_1 = arith.constant 0 : i32
    return %c0_i32, %c0_i32_0 : i32, i32
  }
  func.func @transform_8(%arg0: i32, %arg1: i32, %arg2: i32) -> (i32, i32) {
    %c0_i32 = arith.constant 0 : i32
    %c0_i32_0 = arith.constant 0 : i32
    %c0_i32_1 = arith.constant 0 : i32
    return %c0_i32, %c0_i32_0 : i32, i32
  }
  func.func @transform_9(%arg0: i32, %arg1: i32, %arg2: i32) -> (i32, i32, i32) {
    %c0_i32 = arith.constant 0 : i32
    %c0_i32_0 = arith.constant 0 : i32
    return %arg0, %arg1, %c0_i32 : i32, i32, i32
  }
}

module attributes {stable_mosaic.version = 11 : i64} {
  func.func @_matmul_bias_act_kernel(%arg0: i32, %arg1: memref<512x432xbf16, #tpu.memory_space<vmem>>, %arg2: memref<432x8xbf16, #tpu.memory_space<vmem>>, %arg3: memref<1x8xf32, #tpu.memory_space<vmem>>, %arg4: memref<512x8xf32, #tpu.memory_space<vmem>>) attributes {dimension_semantics = [#tpu.dimension_semantics<parallel>], iteration_bounds = array<i64: 2>, scalar_prefetch = 0 : i64, scratch_operands = 0 : i64, tpu.core_type = #tpu.core_type<tc>, window_params = [{transform_indices = @transform_0, window_bounds = array<i64: 512, 432>}, {pipeline_mode = #tpu.pipeline_mode<synchronous>, transform_indices = @transform_1, window_bounds = array<i64: 432, 8>}, {pipeline_mode = #tpu.pipeline_mode<synchronous>, transform_indices = @transform_2, window_bounds = array<i64: 1, 8>}, {transform_indices = @transform_3, window_bounds = array<i64: 512, 8>}]} {
    %c0 = arith.constant 0 : index
    %c0_0 = arith.constant 0 : index
    %0 = vector.load %arg1[%c0, %c0_0] : memref<512x432xbf16, #tpu.memory_space<vmem>>, vector<512x432xbf16>
    %c0_1 = arith.constant 0 : index
    %c0_2 = arith.constant 0 : index
    %1 = vector.load %arg2[%c0_1, %c0_2] : memref<432x8xbf16, #tpu.memory_space<vmem>>, vector<432x8xbf16>
    %cst = arith.constant dense<0.000000e+00> : vector<512x8xf32>
    %2 = tpu.matmul %0, %1, %cst {dimension_numbers = #tpu.dot_dimension_numbers<[1], [0], [0], [1], [0, 0, 1, 1], [], []>} : vector<512x432xbf16>, vector<432x8xbf16>, vector<512x8xf32> -> vector<512x8xf32>
    %c0_3 = arith.constant 0 : index
    %c0_4 = arith.constant 0 : index
    %3 = vector.load %arg3[%c0_3, %c0_4] : memref<1x8xf32, #tpu.memory_space<vmem>>, vector<1x8xf32>
    %4 = vector.broadcast %3 : vector<1x8xf32> to vector<512x8xf32>
    %5 = arith.addf %2, %4 : vector<512x8xf32>
    %c0_5 = arith.constant 0 : index
    %c0_6 = arith.constant 0 : index
    %6 = vector.load %arg4[%c0_5, %c0_6] : memref<512x8xf32, #tpu.memory_space<vmem>>, vector<512x8xf32>
    tpu.vector_store %arg4[%c0_5, %c0_6], %5 {strides = array<i32>} : memref<512x8xf32, #tpu.memory_space<vmem>>, vector<512x8xf32>,
    return
  }
  func.func @transform_0(%arg0: i32) -> (i32, i32) {
    %c0_i32 = arith.constant 0 : i32
    %c0_i32_0 = arith.constant 0 : i32
    return %arg0, %c0_i32 : i32, i32
  }
  func.func @transform_1(%arg0: i32) -> (i32, i32) {
    %c0_i32 = arith.constant 0 : i32
    %c0_i32_0 = arith.constant 0 : i32
    %c0_i32_1 = arith.constant 0 : i32
    return %c0_i32, %c0_i32_0 : i32, i32
  }
  func.func @transform_2(%arg0: i32) -> (i32, i32) {
    %c0_i32 = arith.constant 0 : i32
    %c0_i32_0 = arith.constant 0 : i32
    %c0_i32_1 = arith.constant 0 : i32
    return %c0_i32, %c0_i32_0 : i32, i32
  }
  func.func @transform_3(%arg0: i32) -> (i32, i32) {
    %c0_i32 = arith.constant 0 : i32
    %c0_i32_0 = arith.constant 0 : i32
    return %arg0, %c0_i32 : i32, i32
  }
}

</mosaic_0001>

<bundles_post_ra>
// kernel: tsm_forward.4
= control target key start
LH: loop header
LB: loop body
LE: loop exit
PB: predicated region body
PF: predicated region fallthrough
CT: control target
= control target key end

     0   :  { %s1345_s12 = smov 0   ;;  %s1646_s0 = inlined_call_operand.vmem [shape: bf16[1024,54], index: 0, kind: input, shape index: {}]   ;;  %s1647_s1 = inlined_call_operand.vmem [shape: bf16[54,16], index: 1, kind: input, shape index: {}]   ;;  %s1648_s2 = inlined_call_operand.vmem [shape: f32[1,16], index: 2, kind: input, shape index: {}]   ;;  %s1649_s3 = inlined_call_operand.vmem [shape: bf16[1024,16], index: 3, kind: output, shape index: {}]  }
   0x1 LB: > { %s1078_s13 = sadd.s32 4294967295, %s1323_s12   ;;  %p1082_p0 = scmp.ge.s32.totalorder %s1323_s12, 1  ;;  %s1323_s12 = sphi %s1345_s12, %s13_s12  }
   0x2   : > { %p138_p1 = scmp.lt.s32.totalorder %s1323_s12, 3 }
   0x4   : > { %p139_p2 = pnand %p1082_p0, %p138_p1 }
   0x5   : > { %s1083_s16 = sshll.u32 (!%p139_p2), %s1078_s13, 6 }
   0x6   : > { %142 = sbr.rel (%p139_p2) target bundleno = 294 (0x126), region = 32  ;;  %p163_p3 = scmp.lt.s32.totalorder (!%p139_p2), %s1083_s16, 127 }
   0xb   : > { %v245_v0 = vld [vmem:[%s1647_s1 + $0x18] sm:$0x7]  ;;  %vm528_vm0 = vcmask 1042432   ;;  %v1295_v4 = vld [vmem:[%s1647_s1 + $0x10] sm:$0xff]  ;;  %s1651_s16 = smov (!%p163_p3, %s1083_s16), 127  ;;  %v1294_v5 = vld [vmem:[%s1647_s1 + $0x8] sm:$0xff] }
   0xc   : > { %v423_v1 = vunpack.c.l.b16 %v245_v0  ;;  %s1084_s21 = sshll.u32 %s1651_s16, 2  ;;  %v1293_v6 = vld [vmem:[%s1647_s1] sm:$0xff]  ;;  %vm431_vm1 = vcmask 441344   ;;  %vm957_vm4 = vcmask 125952  }
   0xd   : > { %s1373_s26 = scalar_lea.vmem %s1646_s0, %s1084_s21  ;;  %v1442_v39 = vld [vmem:[%s1648_s2] ss:$0 sm:$0xff]  ;;  %s1451_s4 = scalar_lea.vmem %s1649_s3, %s1084_s21 }
   0xe   : > { %v427_v2 = vpack.c.b16 %v423_v1, %v423_v1  ;;  %v1261_v7 = vld [vmem:[%s1373_s26] sm:$0xff]  ;;  %v1262_v11 = vld [vmem:[%s1373_s26 + $0x8] sm:$0xff]  ;;  %v1263_v15 = vld [vmem:[%s1373_s26 + $0x10] sm:$0xff] }
   0xf   : > { %v1269_v8 = vld [vmem:[%s1373_s26 + $0x40] sm:$0xff]  ;;  %v1270_v12 = vld [vmem:[%s1373_s26 + $0x48] sm:$0xff]  ;;  %v1271_v16 = vld [vmem:[%s1373_s26 + $0x50] sm:$0xff] }
  0x10   : > { %v530_v3 = vsel %vm528_vm0, %v427_v2, 0  ;;  %v1277_v9 = vld [vmem:[%s1373_s26 + $0x80] sm:$0xff]  ;;  %v1278_v13 = vld [vmem:[%s1373_s26 + $0x88] sm:$0xff]  ;;  %v1279_v17 = vld [vmem:[%s1373_s26 + $0x90] sm:$0xff] }
  0x11   : > { %536 = vmatpush.bf16.msra.mxu0 %v530_v3  ;;  %1296 = vmatpush.bf16.msra.mxu1 %v530_v3  ;;  %v1285_v10 = vld [vmem:[%s1373_s26 + $0xc0] sm:$0xff]  ;;  %v1286_v14 = vld [vmem:[%s1373_s26 + $0xc8] sm:$0xff]  ;;  %v1287_v18 = vld [vmem:[%s1373_s26 + $0xd0] sm:$0xff] }
  0x12   : > { %1297 = vmatpush.bf16.msra.mxu2 %v530_v3  ;;  %1298 = vmatpush.bf16.msra.mxu3 %v530_v3  ;;  %v1264_v19 = vld [vmem:[%s1373_s26 + $0x18] sm:$0xff]  ;;  %v1265_v23 = vld [vmem:[%s1373_s26 + $0x20] sm:$0xff]  ;;  %v1266_v27 = vld [vmem:[%s1373_s26 + $0x28] sm:$0xff] }
  0x13   : > { %v1272_v20 = vld [vmem:[%s1373_s26 + $0x58] sm:$0xff]  ;;  %v1273_v24 = vld [vmem:[%s1373_s26 + $0x60] sm:$0xff]  ;;  %v1274_v28 = vld [vmem:[%s1373_s26 + $0x68] sm:$0xff] }
  0x14   : > { %v1280_v21 = vld [vmem:[%s1373_s26 + $0x98] sm:$0xff]  ;;  %v1281_v25 = vld [vmem:[%s1373_s26 + $0xa0] sm:$0xff]  ;;  %v1282_v29 = vld [vmem:[%s1373_s26 + $0xa8] sm:$0xff] }
  0x15   : > { %537 = vmatpush.bf16.msra.mxu0 %v1295_v4  ;;  %1299 = vmatpush.bf16.msra.mxu1 %v1295_v4  ;;  %v1288_v22 = vld [vmem:[%s1373_s26 + $0xd8] sm:$0xff]  ;;  %v1289_v26 = vld [vmem:[%s1373_s26 + $0xe0] sm:$0xff]  ;;  %v1290_v30 = vld [vmem:[%s1373_s26 + $0xe8] sm:$0xff] }
  0x16   : > { %1300 = vmatpush.bf16.msra.mxu2 %v1295_v4  ;;  %1301 = vmatpush.bf16.msra.mxu3 %v1295_v4  ;;  %v1267_v31 = vld [vmem:[%s1373_s26 + $0x30] sm:$0xff]  ;;  %v1268_v35 = vld [vmem:[%s1373_s26 + $0x38] sm:$0xff] }
  0x17   : > { %v1275_v32 = vld [vmem:[%s1373_s26 + $0x70] sm:$0xff]  ;;  %v1276_v36 = vld [vmem:[%s1373_s26 + $0x78] sm:$0xff] }
  0x18   : > { %v1283_v33 = vld [vmem:[%s1373_s26 + $0xb0] sm:$0xff]  ;;  %v1284_v37 = vld [vmem:[%s1373_s26 + $0xb8] sm:$0xff] }
  0x19   : > { %538 = vmatpush.bf16.msra.mxu0 %v1294_v5  ;;  %1302 = vmatpush.bf16.msra.mxu1 %v1294_v5  ;;  %v1291_v34 = vld [vmem:[%s1373_s26 + $0xf0] sm:$0xff]  ;;  %v1292_v38 = vld [vmem:[%s1373_s26 + $0xf8] sm:$0xff] }
  0x1a   : > { %1303 = vmatpush.bf16.msra.mxu2 %v1294_v5  ;;  %1304 = vmatpush.bf16.msra.mxu3 %v1294_v5 }
  0x1d   : > { %539 = vmatpush.bf16.msra.mxu0 %v1293_v6  ;;  %1305 = vmatpush.bf16.msra.mxu1 %v1293_v6 }
  0x1e   : > { %1306 = vmatpush.bf16.msra.mxu2 %v1293_v6  ;;  %1307 = vmatpush.bf16.msra.mxu3 %v1293_v6 }
  0x20   : > { %1227 = vmatmul.msk.bf16.vlgmr.msra.gmra.mxu0 %vm431_vm1, %v1261_v7  ;;  %1235 = vmatmul.msk.bf16.vlgmr.msra.gmra.mxu1 %vm431_vm1, %v1269_v8 }
  0x21   : > { %1243 = vmatmul.msk.bf16.vlgmr.msra.gmra.mxu2 %vm431_vm1, %v1277_v9  ;;  %1251 = vmatmul.msk.bf16.vlgmr.msra.gmra.mxu3 %vm431_vm1, %v1285_v10 }
  0x30   : > { %1228 = vmatmul.msk.bf16.gmra.mxu0 %vm431_vm1, %v1262_v11  ;;  %1236 = vmatmul.msk.bf16.gmra.mxu1 %vm431_vm1, %v1270_v12 }
  0x31   : > { %1244 = vmatmul.msk.bf16.gmra.mxu2 %vm431_vm1, %v1278_v13  ;;  %1252 = vmatmul.msk.bf16.gmra.mxu3 %vm431_vm1, %v1286_v14 }
  0x40   : > { %1229 = vmatmul.msk.bf16.gmra.mxu0 %vm431_vm1, %v1263_v15  ;;  %1237 = vmatmul.msk.bf16.gmra.mxu1 %vm431_vm1, %v1271_v16 }
  0x41   : > { %1245 = vmatmul.msk.bf16.gmra.mxu2 %vm431_vm1, %v1279_v17  ;;  %1253 = vmatmul.msk.bf16.gmra.mxu3 %vm431_vm1, %v1287_v18 }
  0x50   : > { %1230 = vmatmul.msk.bf16.gmra.mxu0 %vm431_vm1, %v1264_v19  ;;  %1238 = vmatmul.msk.bf16.gmra.mxu1 %vm431_vm1, %v1272_v20 }
  0x51   : > { %1246 = vmatmul.msk.bf16.gmra.mxu2 %vm431_vm1, %v1280_v21  ;;  %1254 = vmatmul.msk.bf16.gmra.mxu3 %vm431_vm1, %v1288_v22 }
  0x60   : > { %1231 = vmatmul.msk.bf16.gmra.mxu0 %vm431_vm1, %v1265_v23  ;;  %1239 = vmatmul.msk.bf16.gmra.mxu1 %vm431_vm1, %v1273_v24 }
  0x61   : > { %1247 = vmatmul.msk.bf16.gmra.mxu2 %vm431_vm1, %v1281_v25  ;;  %1255 = vmatmul.msk.bf16.gmra.mxu3 %vm431_vm1, %v1289_v26 }
  0x70   : > { %1232 = vmatmul.msk.bf16.gmra.mxu0 %vm431_vm1, %v1266_v27  ;;  %1240 = vmatmul.msk.bf16.gmra.mxu1 %vm431_vm1, %v1274_v28 }
  0x71   : > { %1248 = vmatmul.msk.bf16.gmra.mxu2 %vm431_vm1, %v1282_v29  ;;  %1256 = vmatmul.msk.bf16.gmra.mxu3 %vm431_vm1, %v1290_v30 }
  0x80   : > { %1233 = vmatmul.msk.bf16.gmra.mxu0 %vm431_vm1, %v1267_v31  ;;  %1241 = vmatmul.msk.bf16.gmra.mxu1 %vm431_vm1, %v1275_v32 }
  0x81   : > { %1249 = vmatmul.msk.bf16.gmra.mxu2 %vm431_vm1, %v1283_v33  ;;  %1257 = vmatmul.msk.bf16.gmra.mxu3 %vm431_vm1, %v1291_v34 }
  0x90   : > { %1234 = vmatmul.msk.bf16.gmra.mxu0 %vm431_vm1, %v1268_v35  ;;  %1242 = vmatmul.msk.bf16.gmra.mxu1 %vm431_vm1, %v1276_v36 }
  0x91   : > { %1250 = vmatmul.msk.bf16.gmra.mxu2 %vm431_vm1, %v1284_v37  ;;  %1258 = vmatmul.msk.bf16.gmra.mxu3 %vm431_vm1, %v1292_v38 }
  0x9d   : > { %v541_v40 = vpop.f32.mrf.mxu0  ;;  %v581_v41 = vpop.f32.mrf.mxu1 }
  0x9e   : > { %v542_v42 = vadd.f32 %v1442_v39, %v541_v40  ;;  %v582_v43 = vadd.f32 %v1442_v39, %v581_v41 }
  0xa0   : > { %vm701_vm2 = vcmp.ge.f32.partialorder %v542_v42, 0.0  ;;  %v765_v44 = vmul.f32 0.2, %v542_v42  ;;  %vm717_vm3 = vcmp.ge.f32.partialorder %v582_v43, 0.0  ;;  %v781_v45 = vmul.f32 0.2, %v582_v43 }
  0xa2   : > { %v829_v46 = vsel %vm701_vm2, %v542_v42, %v765_v44  ;;  %v845_v47 = vsel %vm717_vm3, %v582_v43, %v781_v45 }
  0xa3   : > { %v893_v48 = vpack.c.bf16 %v829_v46, %v829_v46  ;;  %v909_v49 = vpack.c.bf16 %v845_v47, %v845_v47 }
  0xa4   : > { %v621_v50 = vpop.f32.mrf.mxu2  ;;  %v661_v51 = vpop.f32.mrf.mxu3 }
  0xa5   : > { %958 = vst.msk [vmem:[%s1451_s4] sm:$0xf] %vm957_vm4, %v893_v48  ;;  %v622_v52 = vadd.f32 %v1442_v39, %v621_v50  ;;  %v662_v53 = vadd.f32 %v1442_v39, %v661_v51  ;;  %v543_v54 = vpop.f32.mrf.mxu0  ;;  %v583_v55 = vpop.f32.mrf.mxu1 }
  0xa6   : > { %974 = vst.msk [vmem:[%s1451_s4 + $0x40] sm:$0xf] %vm957_vm4, %v909_v49  ;;  %v544_v56 = vadd.f32 %v1442_v39, %v543_v54  ;;  %v584_v57 = vadd.f32 %v1442_v39, %v583_v55 }
  0xa7   : > { %vm733_vm5 = vcmp.ge.f32.partialorder %v622_v52, 0.0  ;;  %v797_v58 = vmul.f32 0.2, %v622_v52  ;;  %vm749_vm6 = vcmp.ge.f32.partialorder %v662_v53, 0.0  ;;  %v813_v59 = vmul.f32 0.2, %v662_v53 }
  0xa8   : > { %vm702_vm7 = vcmp.ge.f32.partialorder %v544_v56, 0.0  ;;  %v766_v60 = vmul.f32 0.2, %v544_v56  ;;  %vm718_vm8 = vcmp.ge.f32.partialorder %v584_v57, 0.0  ;;  %v782_v61 = vmul.f32 0.2, %v584_v57 }
  0xa9   : > { %v861_v62 = vsel %vm733_vm5, %v622_v52, %v797_v58  ;;  %v877_v63 = vsel %vm749_vm6, %v662_v53, %v813_v59 }
  0xaa   : > { %v925_v0 = vpack.c.bf16 %v861_v62, %v861_v62  ;;  %v941_v1 = vpack.c.bf16 %v877_v63, %v877_v63  ;;  %v830_v2 = vsel %vm702_vm7, %v544_v56, %v766_v60  ;;  %v846_v3 = vsel %vm718_vm8, %v584_v57, %v782_v61 }
  0xab   : > { %v894_v4 = vpack.c.bf16 %v830_v2, %v830_v2  ;;  %v910_v5 = vpack.c.bf16 %v846_v3, %v846_v3 }
  0xac   : > { %990 = vst.msk [vmem:[%s1451_s4 + $0x80] sm:$0xf] %vm957_vm4, %v925_v0  ;;  %v623_v6 = vpop.f32.mrf.mxu2  ;;  %v663_v7 = vpop.f32.mrf.mxu3 }
  0xad   : > { %1006 = vst.msk [vmem:[%s1451_s4 + $0xc0] sm:$0xf] %vm957_vm4, %v941_v1  ;;  %v624_v8 = vadd.f32 %v1442_v39, %v623_v6  ;;  %v664_v9 = vadd.f32 %v1442_v39, %v663_v7  ;;  %v546_v10 = vpop.f32.mrf.mxu0  ;;  %v586_v11 = vpop.f32.mrf.mxu1 }
  0xae   : > { %959 = vst.msk [vmem:[%s1451_s4 + $0x4] sm:$0xf] %vm957_vm4, %v894_v4  ;;  %v547_v12 = vadd.f32 %v1442_v39, %v546_v10  ;;  %v587_v13 = vadd.f32 %v1442_v39, %v586_v11 }
  0xaf   : > { %975 = vst.msk [vmem:[%s1451_s4 + $0x44] sm:$0xf] %vm957_vm4, %v910_v5  ;;  %vm734_vm9 = vcmp.ge.f32.partialorder %v624_v8, 0.0  ;;  %v798_v14 = vmul.f32 0.2, %v624_v8  ;;  %vm750_vm10 = vcmp.ge.f32.partialorder %v664_v9, 0.0 }
  0xb0   : > { %v814_v15 = vmul.f32 0.2, %v664_v9  ;;  %vm703_vm11 = vcmp.ge.f32.partialorder %v547_v12, 0.0  ;;  %v767_v16 = vmul.f32 0.2, %v547_v12  ;;  %vm719_vm12 = vcmp.ge.f32.partialorder %v587_v13, 0.0 }
  0xb1   : > { %v862_v17 = vsel %vm734_vm9, %v624_v8, %v798_v14  ;;  %v783_v18 = vmul.f32 0.2, %v587_v13 }
  0xb2   : > { %v926_v19 = vpack.c.bf16 %v862_v17, %v862_v17  ;;  %v878_v20 = vsel %vm750_vm10, %v664_v9, %v814_v15  ;;  %v831_v21 = vsel %vm703_vm11, %v547_v12, %v767_v16 }
  0xb3   : > { %v942_v22 = vpack.c.bf16 %v878_v20, %v878_v20  ;;  %v895_v23 = vpack.c.bf16 %v831_v21, %v831_v21  ;;  %v847_v24 = vsel %vm719_vm12, %v587_v13, %v783_v18 }
  0xb4   : > { %991 = vst.msk [vmem:[%s1451_s4 + $0x84] sm:$0xf] %vm957_vm4, %v926_v19  ;;  %v911_v25 = vpack.c.bf16 %v847_v24, %v847_v24  ;;  %v626_v26 = vpop.f32.mrf.mxu2  ;;  %v666_v27 = vpop.f32.mrf.mxu3 }
  0xb5   : > { %1007 = vst.msk [vmem:[%s1451_s4 + $0xc4] sm:$0xf] %vm957_vm4, %v942_v22  ;;  %v627_v28 = vadd.f32 %v1442_v39, %v626_v26  ;;  %v667_v29 = vadd.f32 %v1442_v39, %v666_v27  ;;  %v548_v30 = vpop.f32.mrf.mxu0  ;;  %v588_v31 = vpop.f32.mrf.mxu1 }
  0xb6   : > { %960 = vst.msk [vmem:[%s1451_s4 + $0x8] sm:$0xf] %vm957_vm4, %v895_v23  ;;  %v549_v32 = vadd.f32 %v1442_v39, %v548_v30  ;;  %v589_v33 = vadd.f32 %v1442_v39, %v588_v31 }
  0xb7   : > { %976 = vst.msk [vmem:[%s1451_s4 + $0x48] sm:$0xf] %vm957_vm4, %v911_v25  ;;  %vm735_vm13 = vcmp.ge.f32.partialorder %v627_v28, 0.0  ;;  %v799_v34 = vmul.f32 0.2, %v627_v28  ;;  %vm751_vm14 = vcmp.ge.f32.partialorder %v667_v29, 0.0 }
  0xb8   : > { %v815_v35 = vmul.f32 0.2, %v667_v29  ;;  %vm704_vm15 = vcmp.ge.f32.partialorder %v549_v32, 0.0  ;;  %v768_v36 = vmul.f32 0.2, %v549_v32  ;;  %vm720_vm0 = vcmp.ge.f32.partialorder %v589_v33, 0.0 }
  0xb9   : > { %v863_v37 = vsel %vm735_vm13, %v627_v28, %v799_v34  ;;  %v784_v38 = vmul.f32 0.2, %v589_v33 }
  0xba   : > { %v927_v40 = vpack.c.bf16 %v863_v37, %v863_v37  ;;  %v879_v41 = vsel %vm751_vm14, %v667_v29, %v815_v35  ;;  %v832_v42 = vsel %vm704_vm15, %v549_v32, %v768_v36 }
  0xbb   : > { %v943_v43 = vpack.c.bf16 %v879_v41, %v879_v41  ;;  %v896_v44 = vpack.c.bf16 %v832_v42, %v832_v42  ;;  %v848_v45 = vsel %vm720_vm0, %v589_v33, %v784_v38 }
  0xbc   : > { %992 = vst.msk [vmem:[%s1451_s4 + $0x88] sm:$0xf] %vm957_vm4, %v927_v40  ;;  %v912_v46 = vpack.c.bf16 %v848_v45, %v848_v45  ;;  %v628_v47 = vpop.f32.mrf.mxu2  ;;  %v668_v48 = vpop.f32.mrf.mxu3 }
  0xbd   : > { %1008 = vst.msk [vmem:[%s1451_s4 + $0xc8] sm:$0xf] %vm957_vm4, %v943_v43  ;;  %v629_v49 = vadd.f32 %v1442_v39, %v628_v47  ;;  %v669_v50 = vadd.f32 %v1442_v39, %v668_v48  ;;  %v551_v51 = vpop.f32.mrf.mxu0  ;;  %v591_v52 = vpop.f32.mrf.mxu1 }
  0xbe   : > { %961 = vst.msk [vmem:[%s1451_s4 + $0xc] sm:$0xf] %vm957_vm4, %v896_v44  ;;  %v552_v53 = vadd.f32 %v1442_v39, %v551_v51  ;;  %v592_v54 = vadd.f32 %v1442_v39, %v591_v52 }
  0xbf   : > { %977 = vst.msk [vmem:[%s1451_s4 + $0x4c] sm:$0xf] %vm957_vm4, %v912_v46  ;;  %vm736_vm1 = vcmp.ge.f32.partialorder %v629_v49, 0.0  ;;  %v800_v55 = vmul.f32 0.2, %v629_v49  ;;  %vm752_vm2 = vcmp.ge.f32.partialorder %v669_v50, 0.0 }
  0xc0   : > { %v816_v56 = vmul.f32 0.2, %v669_v50  ;;  %vm705_vm3 = vcmp.ge.f32.partialorder %v552_v53, 0.0  ;;  %v769_v57 = vmul.f32 0.2, %v552_v53  ;;  %vm721_vm5 = vcmp.ge.f32.partialorder %v592_v54, 0.0 }
  0xc1   : > { %v864_v58 = vsel %vm736_vm1, %v629_v49, %v800_v55  ;;  %v785_v59 = vmul.f32 0.2, %v592_v54 }
  0xc2   : > { %v928_v60 = vpack.c.bf16 %v864_v58, %v864_v58  ;;  %v880_v61 = vsel %vm752_vm2, %v669_v50, %v816_v56  ;;  %v833_v62 = vsel %vm705_vm3, %v552_v53, %v769_v57 }
  0xc3   : > { %v944_v63 = vpack.c.bf16 %v880_v61, %v880_v61  ;;  %v897_v0 = vpack.c.bf16 %v833_v62, %v833_v62  ;;  %v849_v1 = vsel %vm721_vm5, %v592_v54, %v785_v59 }
  0xc4   : > { %993 = vst.msk [vmem:[%s1451_s4 + $0x8c] sm:$0xf] %vm957_vm4, %v928_v60  ;;  %v913_v2 = vpack.c.bf16 %v849_v1, %v849_v1  ;;  %v631_v3 = vpop.f32.mrf.mxu2  ;;  %v671_v4 = vpop.f32.mrf.mxu3 }
  0xc5   : > { %1009 = vst.msk [vmem:[%s1451_s4 + $0xcc] sm:$0xf] %vm957_vm4, %v944_v63  ;;  %v632_v5 = vadd.f32 %v1442_v39, %v631_v3  ;;  %v672_v6 = vadd.f32 %v1442_v39, %v671_v4  ;;  %v553_v7 = vpop.f32.mrf.mxu0  ;;  %v593_v8 = vpop.f32.mrf.mxu1 }
  0xc6   : > { %962 = vst.msk [vmem:[%s1451_s4 + $0x10] sm:$0xf] %vm957_vm4, %v897_v0  ;;  %v554_v9 = vadd.f32 %v1442_v39, %v553_v7  ;;  %v594_v10 = vadd.f32 %v1442_v39, %v593_v8 }
  0xc7   : > { %978 = vst.msk [vmem:[%s1451_s4 + $0x50] sm:$0xf] %vm957_vm4, %v913_v2  ;;  %vm737_vm6 = vcmp.ge.f32.partialorder %v632_v5, 0.0  ;;  %v801_v11 = vmul.f32 0.2, %v632_v5  ;;  %vm753_vm7 = vcmp.ge.f32.partialorder %v672_v6, 0.0 }
  0xc8   : > { %v817_v12 = vmul.f32 0.2, %v672_v6  ;;  %vm706_vm8 = vcmp.ge.f32.partialorder %v554_v9, 0.0  ;;  %v770_v13 = vmul.f32 0.2, %v554_v9  ;;  %vm722_vm9 = vcmp.ge.f32.partialorder %v594_v10, 0.0 }
  0xc9   : > { %v865_v14 = vsel %vm737_vm6, %v632_v5, %v801_v11  ;;  %v786_v15 = vmul.f32 0.2, %v594_v10 }
  0xca   : > { %v929_v16 = vpack.c.bf16 %v865_v14, %v865_v14  ;;  %v881_v17 = vsel %vm753_vm7, %v672_v6, %v817_v12  ;;  %v834_v18 = vsel %vm706_vm8, %v554_v9, %v770_v13 }
  0xcb   : > { %v945_v19 = vpack.c.bf16 %v881_v17, %v881_v17  ;;  %v898_v20 = vpack.c.bf16 %v834_v18, %v834_v18  ;;  %v850_v21 = vsel %vm722_vm9, %v594_v10, %v786_v15 }
  0xcc   : > { %994 = vst.msk [vmem:[%s1451_s4 + $0x90] sm:$0xf] %vm957_vm4, %v929_v16  ;;  %v914_v22 = vpack.c.bf16 %v850_v21, %v850_v21  ;;  %v633_v23 = vpop.f32.mrf.mxu2  ;;  %v673_v24 = vpop.f32.mrf.mxu3 }
  0xcd   : > { %1010 = vst.msk [vmem:[%s1451_s4 + $0xd0] sm:$0xf] %vm957_vm4, %v945_v19  ;;  %v634_v25 = vadd.f32 %v1442_v39, %v633_v23  ;;  %v674_v26 = vadd.f32 %v1442_v39, %v673_v24  ;;  %v556_v27 = vpop.f32.mrf.mxu0  ;;  %v596_v28 = vpop.f32.mrf.mxu1 }
  0xce   : > { %963 = vst.msk [vmem:[%s1451_s4 + $0x14] sm:$0xf] %vm957_vm4, %v898_v20  ;;  %v557_v29 = vadd.f32 %v1442_v39, %v556_v27  ;;  %v597_v30 = vadd.f32 %v1442_v39, %v596_v28 }
  0xcf   : > { %979 = vst.msk [vmem:[%s1451_s4 + $0x54] sm:$0xf] %vm957_vm4, %v914_v22  ;;  %vm738_vm10 = vcmp.ge.f32.partialorder %v634_v25, 0.0  ;;  %v802_v31 = vmul.f32 0.2, %v634_v25  ;;  %vm754_vm11 = vcmp.ge.f32.partialorder %v674_v26, 0.0 }
  0xd0   : > { %v818_v32 = vmul.f32 0.2, %v674_v26  ;;  %vm707_vm12 = vcmp.ge.f32.partialorder %v557_v29, 0.0  ;;  %v771_v33 = vmul.f32 0.2, %v557_v29  ;;  %vm723_vm13 = vcmp.ge.f32.partialorder %v597_v30, 0.0 }
  0xd1   : > { %v866_v34 = vsel %vm738_vm10, %v634_v25, %v802_v31  ;;  %v787_v35 = vmul.f32 0.2, %v597_v30 }
  0xd2   : > { %v930_v36 = vpack.c.bf16 %v866_v34, %v866_v34  ;;  %v882_v37 = vsel %vm754_vm11, %v674_v26, %v818_v32  ;;  %v835_v38 = vsel %vm707_vm12, %v557_v29, %v771_v33 }
  0xd3   : > { %v946_v40 = vpack.c.bf16 %v882_v37, %v882_v37  ;;  %v899_v41 = vpack.c.bf16 %v835_v38, %v835_v38  ;;  %v851_v42 = vsel %vm723_vm13, %v597_v30, %v787_v35 }
  0xd4   : > { %995 = vst.msk [vmem:[%s1451_s4 + $0x94] sm:$0xf] %vm957_vm4, %v930_v36  ;;  %v915_v43 = vpack.c.bf16 %v851_v42, %v851_v42  ;;  %v636_v44 = vpop.f32.mrf.mxu2  ;;  %v676_v45 = vpop.f32.mrf.mxu3 }
  0xd5   : > { %1011 = vst.msk [vmem:[%s1451_s4 + $0xd4] sm:$0xf] %vm957_vm4, %v946_v40  ;;  %v637_v46 = vadd.f32 %v1442_v39, %v636_v44  ;;  %v677_v47 = vadd.f32 %v1442_v39, %v676_v45  ;;  %v558_v48 = vpop.f32.mrf.mxu0  ;;  %v598_v49 = vpop.f32.mrf.mxu1 }
  0xd6   : > { %964 = vst.msk [vmem:[%s1451_s4 + $0x18] sm:$0xf] %vm957_vm4, %v899_v41  ;;  %v559_v50 = vadd.f32 %v1442_v39, %v558_v48  ;;  %v599_v51 = vadd.f32 %v1442_v39, %v598_v49 }
  0xd7   : > { %980 = vst.msk [vmem:[%s1451_s4 + $0x58] sm:$0xf] %vm957_vm4, %v915_v43  ;;  %vm739_vm14 = vcmp.ge.f32.partialorder %v637_v46, 0.0  ;;  %v803_v52 = vmul.f32 0.2, %v637_v46  ;;  %vm755_vm15 = vcmp.ge.f32.partialorder %v677_v47, 0.0 }
  0xd8   : > { %v819_v53 = vmul.f32 0.2, %v677_v47  ;;  %vm708_vm0 = vcmp.ge.f32.partialorder %v559_v50, 0.0  ;;  %v772_v54 = vmul.f32 0.2, %v559_v50  ;;  %vm724_vm1 = vcmp.ge.f32.partialorder %v599_v51, 0.0 }
  0xd9   : > { %v867_v55 = vsel %vm739_vm14, %v637_v46, %v803_v52  ;;  %v788_v56 = vmul.f32 0.2, %v599_v51 }
  0xda   : > { %v931_v57 = vpack.c.bf16 %v867_v55, %v867_v55  ;;  %v883_v58 = vsel %vm755_vm15, %v677_v47, %v819_v53  ;;  %v836_v59 = vsel %vm708_vm0, %v559_v50, %v772_v54 }
  0xdb   : > { %v947_v60 = vpack.c.bf16 %v883_v58, %v883_v58  ;;  %v900_v61 = vpack.c.bf16 %v836_v59, %v836_v59  ;;  %v852_v62 = vsel %vm724_vm1, %v599_v51, %v788_v56 }
  0xdc   : > { %996 = vst.msk [vmem:[%s1451_s4 + $0x98] sm:$0xf] %vm957_vm4, %v931_v57  ;;  %v916_v63 = vpack.c.bf16 %v852_v62, %v852_v62  ;;  %v638_v0 = vpop.f32.mrf.mxu2  ;;  %v678_v1 = vpop.f32.mrf.mxu3 }
  0xdd   : > { %1012 = vst.msk [vmem:[%s1451_s4 + $0xd8] sm:$0xf] %vm957_vm4, %v947_v60  ;;  %v639_v2 = vadd.f32 %v1442_v39, %v638_v0  ;;  %v679_v3 = vadd.f32 %v1442_v39, %v678_v1  ;;  %v561_v4 = vpop.f32.mrf.mxu0  ;;  %v601_v5 = vpop.f32.mrf.mxu1 }
  0xde   : > { %965 = vst.msk [vmem:[%s1451_s4 + $0x1c] sm:$0xf] %vm957_vm4, %v900_v61  ;;  %v562_v6 = vadd.f32 %v1442_v39, %v561_v4  ;;  %v602_v7 = vadd.f32 %v1442_v39, %v601_v5 }
  0xdf   : > { %981 = vst.msk [vmem:[%s1451_s4 + $0x5c] sm:$0xf] %vm957_vm4, %v916_v63  ;;  %vm740_vm2 = vcmp.ge.f32.partialorder %v639_v2, 0.0  ;;  %v804_v8 = vmul.f32 0.2, %v639_v2  ;;  %vm756_vm3 = vcmp.ge.f32.partialorder %v679_v3, 0.0 }
  0xe0   : > { %v820_v9 = vmul.f32 0.2, %v679_v3  ;;  %vm709_vm5 = vcmp.ge.f32.partialorder %v562_v6, 0.0  ;;  %v773_v10 = vmul.f32 0.2, %v562_v6  ;;  %vm725_vm6 = vcmp.ge.f32.partialorder %v602_v7, 0.0 }
  0xe1   : > { %v868_v11 = vsel %vm740_vm2, %v639_v2, %v804_v8  ;;  %v789_v12 = vmul.f32 0.2, %v602_v7 }
  0xe2   : > { %v932_v13 = vpack.c.bf16 %v868_v11, %v868_v11  ;;  %v884_v14 = vsel %vm756_vm3, %v679_v3, %v820_v9  ;;  %v837_v15 = vsel %vm709_vm5, %v562_v6, %v773_v10 }
  0xe3   : > { %v948_v16 = vpack.c.bf16 %v884_v14, %v884_v14  ;;  %v901_v17 = vpack.c.bf16 %v837_v15, %v837_v15  ;;  %v853_v18 = vsel %vm725_vm6, %v602_v7, %v789_v12 }
  0xe4   : > { %997 = vst.msk [vmem:[%s1451_s4 + $0x9c] sm:$0xf] %vm957_vm4, %v932_v13  ;;  %v917_v19 = vpack.c.bf16 %v853_v18, %v853_v18  ;;  %v641_v20 = vpop.f32.mrf.mxu2  ;;  %v681_v21 = vpop.f32.mrf.mxu3 }
  0xe5   : > { %1013 = vst.msk [vmem:[%s1451_s4 + $0xdc] sm:$0xf] %vm957_vm4, %v948_v16  ;;  %v642_v22 = vadd.f32 %v1442_v39, %v641_v20  ;;  %v682_v23 = vadd.f32 %v1442_v39, %v681_v21  ;;  %v563_v24 = vpop.f32.mrf.mxu0  ;;  %v603_v25 = vpop.f32.mrf.mxu1 }
  0xe6   : > { %966 = vst.msk [vmem:[%s1451_s4 + $0x20] sm:$0xf] %vm957_vm4, %v901_v17  ;;  %v564_v26 = vadd.f32 %v1442_v39, %v563_v24  ;;  %v604_v27 = vadd.f32 %v1442_v39, %v603_v25 }
  0xe7   : > { %982 = vst.msk [vmem:[%s1451_s4 + $0x60] sm:$0xf] %vm957_vm4, %v917_v19  ;;  %vm741_vm7 = vcmp.ge.f32.partialorder %v642_v22, 0.0  ;;  %v805_v28 = vmul.f32 0.2, %v642_v22  ;;  %vm757_vm8 = vcmp.ge.f32.partialorder %v682_v23, 0.0 }
  0xe8   : > { %v821_v29 = vmul.f32 0.2, %v682_v23  ;;  %vm710_vm9 = vcmp.ge.f32.partialorder %v564_v26, 0.0  ;;  %v774_v30 = vmul.f32 0.2, %v564_v26  ;;  %vm726_vm10 = vcmp.ge.f32.partialorder %v604_v27, 0.0 }
  0xe9   : > { %v869_v31 = vsel %vm741_vm7, %v642_v22, %v805_v28  ;;  %v790_v32 = vmul.f32 0.2, %v604_v27 }
  0xea   : > { %v933_v33 = vpack.c.bf16 %v869_v31, %v869_v31  ;;  %v885_v34 = vsel %vm757_vm8, %v682_v23, %v821_v29  ;;  %v838_v35 = vsel %vm710_vm9, %v564_v26, %v774_v30 }
  0xeb   : > { %v949_v36 = vpack.c.bf16 %v885_v34, %v885_v34  ;;  %v902_v37 = vpack.c.bf16 %v838_v35, %v838_v35  ;;  %v854_v38 = vsel %vm726_vm10, %v604_v27, %v790_v32 }
  0xec   : > { %998 = vst.msk [vmem:[%s1451_s4 + $0xa0] sm:$0xf] %vm957_vm4, %v933_v33  ;;  %v918_v40 = vpack.c.bf16 %v854_v38, %v854_v38  ;;  %v643_v41 = vpop.f32.mrf.mxu2  ;;  %v683_v42 = vpop.f32.mrf.mxu3 }
  0xed   : > { %1014 = vst.msk [vmem:[%s1451_s4 + $0xe0] sm:$0xf] %vm957_vm4, %v949_v36  ;;  %v644_v43 = vadd.f32 %v1442_v39, %v643_v41  ;;  %v684_v44 = vadd.f32 %v1442_v39, %v683_v42  ;;  %v566_v45 = vpop.f32.mrf.mxu0  ;;  %v606_v46 = vpop.f32.mrf.mxu1 }
  0xee   : > { %967 = vst.msk [vmem:[%s1451_s4 + $0x24] sm:$0xf] %vm957_vm4, %v902_v37  ;;  %v567_v47 = vadd.f32 %v1442_v39, %v566_v45  ;;  %v607_v48 = vadd.f32 %v1442_v39, %v606_v46 }
  0xef   : > { %983 = vst.msk [vmem:[%s1451_s4 + $0x64] sm:$0xf] %vm957_vm4, %v918_v40  ;;  %vm742_vm11 = vcmp.ge.f32.partialorder %v644_v43, 0.0  ;;  %v806_v49 = vmul.f32 0.2, %v644_v43  ;;  %vm758_vm12 = vcmp.ge.f32.partialorder %v684_v44, 0.0 }
  0xf0   : > { %v822_v50 = vmul.f32 0.2, %v684_v44  ;;  %vm711_vm13 = vcmp.ge.f32.partialorder %v567_v47, 0.0  ;;  %v775_v51 = vmul.f32 0.2, %v567_v47  ;;  %vm727_vm14 = vcmp.ge.f32.partialorder %v607_v48, 0.0 }
  0xf1   : > { %v870_v52 = vsel %vm742_vm11, %v644_v43, %v806_v49  ;;  %v791_v53 = vmul.f32 0.2, %v607_v48 }
  0xf2   : > { %v934_v54 = vpack.c.bf16 %v870_v52, %v870_v52  ;;  %v886_v55 = vsel %vm758_vm12, %v684_v44, %v822_v50  ;;  %v839_v56 = vsel %vm711_vm13, %v567_v47, %v775_v51 }
  0xf3   : > { %v950_v57 = vpack.c.bf16 %v886_v55, %v886_v55  ;;  %v903_v58 = vpack.c.bf16 %v839_v56, %v839_v56  ;;  %v855_v59 = vsel %vm727_vm14, %v607_v48, %v791_v53 }
  0xf4   : > { %999 = vst.msk [vmem:[%s1451_s4 + $0xa4] sm:$0xf] %vm957_vm4, %v934_v54  ;;  %v919_v60 = vpack.c.bf16 %v855_v59, %v855_v59  ;;  %v646_v61 = vpop.f32.mrf.mxu2  ;;  %v686_v62 = vpop.f32.mrf.mxu3 }
  0xf5   : > { %1015 = vst.msk [vmem:[%s1451_s4 + $0xe4] sm:$0xf] %vm957_vm4, %v950_v57  ;;  %v647_v63 = vadd.f32 %v1442_v39, %v646_v61  ;;  %v687_v0 = vadd.f32 %v1442_v39, %v686_v62  ;;  %v568_v1 = vpop.f32.mrf.mxu0  ;;  %v608_v2 = vpop.f32.mrf.mxu1 }
  0xf6   : > { %968 = vst.msk [vmem:[%s1451_s4 + $0x28] sm:$0xf] %vm957_vm4, %v903_v58  ;;  %v569_v3 = vadd.f32 %v1442_v39, %v568_v1  ;;  %v609_v4 = vadd.f32 %v1442_v39, %v608_v2 }
  0xf7   : > { %984 = vst.msk [vmem:[%s1451_s4 + $0x68] sm:$0xf] %vm957_vm4, %v919_v60  ;;  %vm743_vm15 = vcmp.ge.f32.partialorder %v647_v63, 0.0  ;;  %v807_v5 = vmul.f32 0.2, %v647_v63  ;;  %vm759_vm0 = vcmp.ge.f32.partialorder %v687_v0, 0.0 }
  0xf8   : > { %v823_v6 = vmul.f32 0.2, %v687_v0  ;;  %vm712_vm1 = vcmp.ge.f32.partialorder %v569_v3, 0.0  ;;  %v776_v7 = vmul.f32 0.2, %v569_v3  ;;  %vm728_vm2 = vcmp.ge.f32.partialorder %v609_v4, 0.0 }
  0xf9   : > { %v871_v8 = vsel %vm743_vm15, %v647_v63, %v807_v5  ;;  %v792_v9 = vmul.f32 0.2, %v609_v4 }
  0xfa   : > { %v935_v10 = vpack.c.bf16 %v871_v8, %v871_v8  ;;  %v887_v11 = vsel %vm759_vm0, %v687_v0, %v823_v6  ;;  %v840_v12 = vsel %vm712_vm1, %v569_v3, %v776_v7 }
  0xfb   : > { %v951_v13 = vpack.c.bf16 %v887_v11, %v887_v11  ;;  %v904_v14 = vpack.c.bf16 %v840_v12, %v840_v12  ;;  %v856_v15 = vsel %vm728_vm2, %v609_v4, %v792_v9 }
  0xfc   : > { %1000 = vst.msk [vmem:[%s1451_s4 + $0xa8] sm:$0xf] %vm957_vm4, %v935_v10  ;;  %v920_v16 = vpack.c.bf16 %v856_v15, %v856_v15  ;;  %v648_v17 = vpop.f32.mrf.mxu2  ;;  %v688_v18 = vpop.f32.mrf.mxu3 }
  0xfd   : > { %1016 = vst.msk [vmem:[%s1451_s4 + $0xe8] sm:$0xf] %vm957_vm4, %v951_v13  ;;  %v649_v19 = vadd.f32 %v1442_v39, %v648_v17  ;;  %v689_v20 = vadd.f32 %v1442_v39, %v688_v18  ;;  %v571_v21 = vpop.f32.mrf.mxu0  ;;  %v611_v22 = vpop.f32.mrf.mxu1 }
  0xfe   : > { %969 = vst.msk [vmem:[%s1451_s4 + $0x2c] sm:$0xf] %vm957_vm4, %v904_v14  ;;  %v572_v23 = vadd.f32 %v1442_v39, %v571_v21  ;;  %v612_v24 = vadd.f32 %v1442_v39, %v611_v22 }
  0xff   : > { %985 = vst.msk [vmem:[%s1451_s4 + $0x6c] sm:$0xf] %vm957_vm4, %v920_v16  ;;  %vm744_vm3 = vcmp.ge.f32.partialorder %v649_v19, 0.0  ;;  %v808_v25 = vmul.f32 0.2, %v649_v19  ;;  %vm760_vm5 = vcmp.ge.f32.partialorder %v689_v20, 0.0 }
 0x100   : > { %v824_v26 = vmul.f32 0.2, %v689_v20  ;;  %vm713_vm6 = vcmp.ge.f32.partialorder %v572_v23, 0.0  ;;  %v777_v27 = vmul.f32 0.2, %v572_v23  ;;  %vm729_vm7 = vcmp.ge.f32.partialorder %v612_v24, 0.0 }
 0x101   : > { %v872_v28 = vsel %vm744_vm3, %v649_v19, %v808_v25  ;;  %v793_v29 = vmul.f32 0.2, %v612_v24 }
 0x102   : > { %v936_v30 = vpack.c.bf16 %v872_v28, %v872_v28  ;;  %v888_v31 = vsel %vm760_vm5, %v689_v20, %v824_v26  ;;  %v841_v32 = vsel %vm713_vm6, %v572_v23, %v777_v27 }
 0x103   : > { %v952_v33 = vpack.c.bf16 %v888_v31, %v888_v31  ;;  %v905_v34 = vpack.c.bf16 %v841_v32, %v841_v32  ;;  %v857_v35 = vsel %vm729_vm7, %v612_v24, %v793_v29 }
 0x104   : > { %1001 = vst.msk [vmem:[%s1451_s4 + $0xac] sm:$0xf] %vm957_vm4, %v936_v30  ;;  %v921_v36 = vpack.c.bf16 %v857_v35, %v857_v35  ;;  %v651_v37 = vpop.f32.mrf.mxu2  ;;  %v691_v38 = vpop.f32.mrf.mxu3 }
 0x105   : > { %1017 = vst.msk [vmem:[%s1451_s4 + $0xec] sm:$0xf] %vm957_vm4, %v952_v33  ;;  %v652_v40 = vadd.f32 %v1442_v39, %v651_v37  ;;  %v692_v41 = vadd.f32 %v1442_v39, %v691_v38  ;;  %v573_v42 = vpop.f32.mrf.mxu0  ;;  %v613_v43 = vpop.f32.mrf.mxu1 }
 0x106   : > { %970 = vst.msk [vmem:[%s1451_s4 + $0x30] sm:$0xf] %vm957_vm4, %v905_v34  ;;  %v574_v44 = vadd.f32 %v1442_v39, %v573_v42  ;;  %v614_v45 = vadd.f32 %v1442_v39, %v613_v43 }
 0x107   : > { %986 = vst.msk [vmem:[%s1451_s4 + $0x70] sm:$0xf] %vm957_vm4, %v921_v36  ;;  %vm745_vm8 = vcmp.ge.f32.partialorder %v652_v40, 0.0  ;;  %v809_v46 = vmul.f32 0.2, %v652_v40  ;;  %vm761_vm9 = vcmp.ge.f32.partialorder %v692_v41, 0.0 }
 0x108   : > { %v825_v47 = vmul.f32 0.2, %v692_v41  ;;  %vm714_vm10 = vcmp.ge.f32.partialorder %v574_v44, 0.0  ;;  %v778_v48 = vmul.f32 0.2, %v574_v44  ;;  %vm730_vm11 = vcmp.ge.f32.partialorder %v614_v45, 0.0 }
 0x109   : > { %v873_v49 = vsel %vm745_vm8, %v652_v40, %v809_v46  ;;  %v794_v50 = vmul.f32 0.2, %v614_v45 }
 0x10a   : > { %v937_v51 = vpack.c.bf16 %v873_v49, %v873_v49  ;;  %v889_v52 = vsel %vm761_vm9, %v692_v41, %v825_v47  ;;  %v842_v53 = vsel %vm714_vm10, %v574_v44, %v778_v48 }
 0x10b   : > { %v953_v54 = vpack.c.bf16 %v889_v52, %v889_v52  ;;  %v906_v55 = vpack.c.bf16 %v842_v53, %v842_v53  ;;  %v858_v56 = vsel %vm730_vm11, %v614_v45, %v794_v50 }
 0x10c   : > { %1002 = vst.msk [vmem:[%s1451_s4 + $0xb0] sm:$0xf] %vm957_vm4, %v937_v51  ;;  %v922_v57 = vpack.c.bf16 %v858_v56, %v858_v56  ;;  %v653_v58 = vpop.f32.mrf.mxu2  ;;  %v693_v59 = vpop.f32.mrf.mxu3 }
 0x10d   : > { %1018 = vst.msk [vmem:[%s1451_s4 + $0xf0] sm:$0xf] %vm957_vm4, %v953_v54  ;;  %v654_v60 = vadd.f32 %v1442_v39, %v653_v58  ;;  %v694_v61 = vadd.f32 %v1442_v39, %v693_v59  ;;  %v576_v62 = vpop.f32.mrf.mxu0  ;;  %v616_v63 = vpop.f32.mrf.mxu1 }
 0x10e   : > { %971 = vst.msk [vmem:[%s1451_s4 + $0x34] sm:$0xf] %vm957_vm4, %v906_v55  ;;  %v577_v0 = vadd.f32 %v1442_v39, %v576_v62  ;;  %v617_v1 = vadd.f32 %v1442_v39, %v616_v63 }
 0x10f   : > { %987 = vst.msk [vmem:[%s1451_s4 + $0x74] sm:$0xf] %vm957_vm4, %v922_v57  ;;  %vm746_vm12 = vcmp.ge.f32.partialorder %v654_v60, 0.0  ;;  %v810_v2 = vmul.f32 0.2, %v654_v60  ;;  %vm762_vm13 = vcmp.ge.f32.partialorder %v694_v61, 0.0 }
 0x110   : > { %v826_v3 = vmul.f32 0.2, %v694_v61  ;;  %vm715_vm14 = vcmp.ge.f32.partialorder %v577_v0, 0.0  ;;  %v779_v4 = vmul.f32 0.2, %v577_v0  ;;  %vm731_vm15 = vcmp.ge.f32.partialorder %v617_v1, 0.0 }
 0x111   : > { %v874_v5 = vsel %vm746_vm12, %v654_v60, %v810_v2  ;;  %v795_v6 = vmul.f32 0.2, %v617_v1 }
 0x112   : > { %v938_v7 = vpack.c.bf16 %v874_v5, %v874_v5  ;;  %v890_v8 = vsel %vm762_vm13, %v694_v61, %v826_v3  ;;  %v843_v9 = vsel %vm715_vm14, %v577_v0, %v779_v4 }
 0x113   : > { %v954_v10 = vpack.c.bf16 %v890_v8, %v890_v8  ;;  %v907_v11 = vpack.c.bf16 %v843_v9, %v843_v9  ;;  %v859_v12 = vsel %vm731_vm15, %v617_v1, %v795_v6 }
 0x114   : > { %1003 = vst.msk [vmem:[%s1451_s4 + $0xb4] sm:$0xf] %vm957_vm4, %v938_v7  ;;  %v923_v13 = vpack.c.bf16 %v859_v12, %v859_v12  ;;  %v656_v14 = vpop.f32.mrf.mxu2  ;;  %v696_v15 = vpop.f32.mrf.mxu3 }
 0x115   : > { %1019 = vst.msk [vmem:[%s1451_s4 + $0xf4] sm:$0xf] %vm957_vm4, %v954_v10  ;;  %v657_v16 = vadd.f32 %v1442_v39, %v656_v14  ;;  %v697_v17 = vadd.f32 %v1442_v39, %v696_v15  ;;  %v578_v18 = vpop.f32.mrf.mxu0  ;;  %v618_v19 = vpop.f32.mrf.mxu1 }
 0x116   : > { %972 = vst.msk [vmem:[%s1451_s4 + $0x38] sm:$0xf] %vm957_vm4, %v907_v11  ;;  %v579_v20 = vadd.f32 %v1442_v39, %v578_v18  ;;  %v619_v21 = vadd.f32 %v1442_v39, %v618_v19 }
 0x117   : > { %988 = vst.msk [vmem:[%s1451_s4 + $0x78] sm:$0xf] %vm957_vm4, %v923_v13  ;;  %vm747_vm0 = vcmp.ge.f32.partialorder %v657_v16, 0.0  ;;  %v811_v22 = vmul.f32 0.2, %v657_v16  ;;  %vm763_vm1 = vcmp.ge.f32.partialorder %v697_v17, 0.0 }
 0x118   : > { %v827_v23 = vmul.f32 0.2, %v697_v17  ;;  %vm716_vm2 = vcmp.ge.f32.partialorder %v579_v20, 0.0  ;;  %v780_v24 = vmul.f32 0.2, %v579_v20  ;;  %vm732_vm3 = vcmp.ge.f32.partialorder %v619_v21, 0.0 }
 0x119   : > { %v875_v25 = vsel %vm747_vm0, %v657_v16, %v811_v22  ;;  %v796_v26 = vmul.f32 0.2, %v619_v21 }
 0x11a   : > { %v939_v27 = vpack.c.bf16 %v875_v25, %v875_v25  ;;  %v891_v28 = vsel %vm763_vm1, %v697_v17, %v827_v23  ;;  %v844_v29 = vsel %vm716_vm2, %v579_v20, %v780_v24 }
 0x11b   : > { %v955_v30 = vpack.c.bf16 %v891_v28, %v891_v28  ;;  %v908_v31 = vpack.c.bf16 %v844_v29, %v844_v29  ;;  %v860_v32 = vsel %vm732_vm3, %v619_v21, %v796_v26 }
 0x11c   : > { %1004 = vst.msk [vmem:[%s1451_s4 + $0xb8] sm:$0xf] %vm957_vm4, %v939_v27  ;;  %v924_v33 = vpack.c.bf16 %v860_v32, %v860_v32  ;;  %v658_v34 = vpop.f32.mrf.mxu2  ;;  %v698_v35 = vpop.f32.mrf.mxu3 }
 0x11d   : > { %1020 = vst.msk [vmem:[%s1451_s4 + $0xf8] sm:$0xf] %vm957_vm4, %v955_v30  ;;  %v659_v36 = vadd.f32 %v1442_v39, %v658_v34  ;;  %v699_v37 = vadd.f32 %v1442_v39, %v698_v35 }
 0x11e   : > { %973 = vst.msk [vmem:[%s1451_s4 + $0x3c] sm:$0xf] %vm957_vm4, %v908_v31 }
 0x11f   : > { %989 = vst.msk [vmem:[%s1451_s4 + $0x7c] sm:$0xf] %vm957_vm4, %v924_v33  ;;  %vm748_vm5 = vcmp.ge.f32.partialorder %v659_v36, 0.0  ;;  %v812_v38 = vmul.f32 0.2, %v659_v36  ;;  %vm764_vm6 = vcmp.ge.f32.partialorder %v699_v37, 0.0 }
 0x120   : > { %v828_v40 = vmul.f32 0.2, %v699_v37 }
 0x121   : > { %v876_v41 = vsel %vm748_vm5, %v659_v36, %v812_v38 }
 0x122   : > { %v940_v42 = vpack.c.bf16 %v876_v41, %v876_v41  ;;  %v892_v43 = vsel %vm764_vm6, %v699_v37, %v828_v40 }
 0x123   : > { %v956_v44 = vpack.c.bf16 %v892_v43, %v892_v43 }
 0x124   : > { %1005 = vst.msk [vmem:[%s1451_s4 + $0xbc] sm:$0xf] %vm957_vm4, %v940_v42 }
 0x125   : > { %1021 = vst.msk [vmem:[%s1451_s4 + $0xfc] sm:$0xf] %vm957_vm4, %v956_v44 }
 0x126 PF: > { %s13_s12 = sadd.s32 1, %s1323_s12  }
 0x127   : > { %p10_p4 = scmp.ge.s32.totalorder %s13_s12, 4  }
 0x129   :  { %12 = sbr.rel (!%p10_p4) target bundleno = 1 (0x1), region = 62 }

// kernel: tsm_forward.5
= control target key start
LH: loop header
LB: loop body
LE: loop exit
PB: predicated region body
PF: predicated region fallthrough
CT: control target
= control target key end

     0   :  { %s2506_s21 = smov 0   ;;  %s2508_s22 = smov 0   ;;  %s4188_s0 = inlined_call_operand.vmem [shape: bf16[2,512,16], index: 0, kind: input, shape index: {}]   ;;  %s4189_s1 = inlined_call_operand.vmem [shape: bf16[16,48], index: 1, kind: input, shape index: {}]   ;;  %s4190_s2 = inlined_call_operand.vmem [shape: f32[1,16], index: 2, kind: input, shape index: {}]   ;;  %s4191_s3 = inlined_call_operand.vmem [shape: f32[1,16], index: 3, kind: input, shape index: {}]   ;;  %s4192_s4 = inlined_call_operand.vmem [shape: bf16[2,512,16], index: 4, kind: output, shape index: {0}]   ;;  %s4193_s5 = inlined_call_operand.vmem [shape: bf16[2,16,512], index: 5, kind: output, shape index: {1}]   ;;  %s4194_s6 = inlined_call_operand.vmem [shape: bf16[2,512,16], index: 6, kind: output, shape index: {2}]  }
   0x1   :  { %s2510_s23 = smov 0   ;;  %s2512_s24 = smov 0  }
   0x2   :  { %s2514_s25 = smov 0   ;;  %s2516_s26 = smov 0  }
   0x3   :  { %s2518_s27 = smov 0  }
   0x4 LB: > { %s26_s28 = sadd.s32 1, %s2458_s25  ;;  %s29_s29 = sadd.s32 1, %s2462_s26  ;;  %s2466_s27 = sphi %s2518_s27, %s17_s27   ;;  %s2462_s26 = sphi %s2516_s26, %s4270_s26   ;;  %s2458_s25 = sphi %s2514_s25, %s4269_s25   ;;  %s2454_s24 = sphi %s2512_s24, %s4268_s24   ;;  %s2450_s23 = sphi %s2510_s23, %s4267_s23   ;;  %s2446_s22 = sphi %s2508_s22, %s4266_s22   ;;  %s2442_s21 = sphi %s2506_s21, %s4265_s21  }
   0x5   : > { %p27_p0 = scmp.ge.s32.totalorder %s26_s28, 2  ;;  %s2039_s30 = sadd.s32 4294967295, %s2466_s27  }
   0x6   : > { %p167_p1 = scmp.ne.s32.totalorder %s2446_s22, %s2442_s21  ;;  %p168_p2 = scmp.eq.s32.totalorder %s2039_s30, 3 }
   0x7   : > { %s4272_s28 = smov (%p27_p0, %s26_s28), 0  ;;  %s4274_s29 = smov (!%p27_p0, %s29_s29), %s2462_s26 }
   0x8   : > { %s153_s7 = ssub.s32 %s2458_s25, %s4272_s28  ;;  %p31_p3 = scmp.ge.s32.totalorder %s4274_s29, 2 }
   0x9   : > { %p2043_p4 = scmp.ge.s32.totalorder %s2466_s27, 1  ;;  %p2552_p5 = por %p168_p2, %p167_p1 }
   0xa   : > { %p242_p6 = scmp.lt.s32.totalorder %s2466_s27, 5  ;;  %s4276_s29 = smov (%p31_p3, %s4274_s29), 0 }
   0xb   : > { %s152_s9 = ssub.s32 %s2462_s26, %s4276_s29  ;;  %s157_s11 = sadd.s32 1, %s2446_s22 }
   0xc   : > { %p243_p7 = pnand %p2043_p4, %p242_p6  ;;  %s154_s10 = sor.u32 %s153_s7, %s152_s9 }
   0xd   : > { %p155_p8 = scmp.eq.s32.totalorder %s154_s10, 0 }
   0xe   : > { %246 = sbr.rel (%p243_p7) target bundleno = 849 (0x351), region = 36 }
   0xf   : > { %s2563_s12 = scalar_select %p155_p8, %s2446_s22, %s157_s11  }
  0x13   : > { %s2045_s13 = sshll.u32 %s2450_s23, 5  ;;  %p294_p9 = scmp.lt.s32.totalorder %s2454_s24, 1  ;;  %vm391_vm0 = vcmask 130048  }
  0x14   : > { %p296_p10 = scmp.lt.s32.totalorder %s2045_s13, 63  ;;  %s2469_s18 = smov 96  }
  0x15   : > { %s295_s14 = scalar_select %p294_p9, %s2454_s24, 1 }
  0x16   : > { %s4278_s13 = smov (!%p296_p10, %s2045_s13), 63  ;;  %s2470_s19 = smov 112  }
  0x17   : > { %s2046_s15 = sshll.u32 %s295_s14, 6  ;;  %s2075_s11 = sshll.u32 (%p2552_p5), %s2450_s23, 1 }
  0x18   : > { %s299_s16 = sadd.s32 %s2046_s15, %s4278_s13  ;;  %s2076_s13 = sshll.u32 (%p2552_p5), %s2454_s24, 3 }
  0x19   : > { %s2568_s17 = sshll.u32 %s299_s16, 2 }
  0x1a   : > { %s2574_s20 = scalar_lea.vmem %s4188_s0, %s2568_s17  ;;  %s3790_s16 = scalar_lea.vmem %s4192_s4, %s2568_s17 }
  0x1b   : > { %v2577_v0 = vld [vmem:[%s2574_s20 + $0x10] sm:$0xff]   ;;  %v2580_v1 = vld [vmem:[%s2574_s20 + $0x8] sm:$0xff]   ;;  %v2583_v2 = vld [vmem:[%s2574_s20] sm:$0xff]   ;;  %s3924_s7 = scalar_lea.vmem %s4194_s6, %s2568_s17  ;;  %s279_s17 = sand.u32 1, %s2442_s21  }
  0x1c   : > { %v2091_v3 = vunpack.c.l.bf16 %v2577_v0  ;;  %v2087_v4 = vunpack.c.l.bf16 %v2580_v1  ;;  %v2083_v5 = vunpack.c.l.bf16 %v2583_v2  ;;  %v2092_v9 = vunpack.c.h.bf16 %v2577_v0  ;;  %v2610_v15 = vld [vmem:[%s2574_s20 + $0x20] sm:$0xff]   ;;  %v2613_v16 = vld [vmem:[%s2574_s20 + $0x18] sm:$0xff]   ;;  %v2628_v23 = vld [vmem:[%s2574_s20 + $0x28] sm:$0xff]   ;;  %s2044_s9 = sshll.u32 %s279_s17, 4  ;;  %s1850_s21 = sadd.s32 (%p2552_p5), %s2076_s13, %s2075_s11 }
  0x1d   : > { %v2088_v10 = vunpack.c.h.bf16 %v2580_v1  ;;  %v2084_v11 = vunpack.c.h.bf16 %v2583_v2  ;;  %v2099_v17 = vunpack.c.l.bf16 %v2610_v15  ;;  %v2096_v18 = vunpack.c.h.bf16 %v2613_v16  ;;  %v2643_v30 = vld [vmem:[%s2574_s20 + $0x38] sm:$0xff]   ;;  %v2646_v31 = vld [vmem:[%s2574_s20 + $0x30] sm:$0xff]   ;;  %v2661_v38 = vld [vmem:[%s2574_s20 + $0x40] sm:$0xff]   ;;  %s281_s10 = scalar_lea.vmem [#allocation2], %s2044_s9  ;;  %s2077_s14 = sshll.u32 (%p2552_p5), %s1850_s21, 2 }
  0x1e   : > { %v404_v6 = vsel %vm391_vm0, %v2091_v3, 0.0  ;;  %v398_v7 = vsel %vm391_vm0, %v2087_v4, 0.0  ;;  %v392_v8 = vsel %vm391_vm0, %v2083_v5, 0.0  ;;  %v407_v12 = vsel %vm391_vm0, %v2092_v9, 0.0  ;;  %v2676_v45 = vld [vmem:[%s2574_s20 + $0x50] sm:$0xff]   ;;  %v2679_v46 = vld [vmem:[%s2574_s20 + $0x48] sm:$0xff]  }
  0x1f   : > { %405 = vadd.xlane.f32.xlu2 %v404_v6  ;;  %399 = vadd.xlane.f32.xlu1 %v398_v7  ;;  %v401_v13 = vsel %vm391_vm0, %v2088_v10, 0.0  ;;  %v395_v14 = vsel %vm391_vm0, %v2084_v11, 0.0  ;;  %v2095_v19 = vunpack.c.l.bf16 %v2613_v16  ;;  %v416_v20 = vsel %vm391_vm0, %v2099_v17, 0.0  ;;  %v2694_v53 = vld [vmem:[%s2574_s20 + $0x58] sm:$0xff]   ;;  %v2709_v60 = vld [vmem:[%s2574_s20 + $0x68] sm:$0xff]   ;;  %v2712_v61 = vld [vmem:[%s2574_s20 + $0x60] sm:$0xff]  }
  0x20   : > { %393 = vadd.xlane.f32.xlu0 %v392_v8  ;;  %v413_v21 = vsel %vm391_vm0, %v2096_v18, 0.0  ;;  %v2104_v24 = vunpack.c.h.bf16 %v2628_v23  ;;  %v2103_v25 = vunpack.c.l.bf16 %v2628_v23  ;;  %v2100_v26 = vunpack.c.h.bf16 %v2610_v15 }
  0x21   : > { %v410_v22 = vsel %vm391_vm0, %v2095_v19, 0.0  ;;  %v2111_v32 = vunpack.c.l.bf16 %v2643_v30  ;;  %v2108_v33 = vunpack.c.h.bf16 %v2646_v31  ;;  %v2107_v34 = vunpack.c.l.bf16 %v2646_v31 }
  0x22   : > { %v425_v27 = vsel %vm391_vm0, %v2104_v24, 0.0  ;;  %v422_v28 = vsel %vm391_vm0, %v2103_v25, 0.0  ;;  %v419_v29 = vsel %vm391_vm0, %v2100_v26, 0.0  ;;  %v2116_v39 = vunpack.c.h.bf16 %v2661_v38 }
  0x23   : > { %v434_v35 = vsel %vm391_vm0, %v2111_v32, 0.0  ;;  %v431_v36 = vsel %vm391_vm0, %v2108_v33, 0.0  ;;  %v428_v37 = vsel %vm391_vm0, %v2107_v34, 0.0  ;;  %v2115_v40 = vunpack.c.l.bf16 %v2661_v38 }
  0x24   : > { %v2112_v41 = vunpack.c.h.bf16 %v2643_v30  ;;  %v443_v42 = vsel %vm391_vm0, %v2116_v39, 0.0  ;;  %v2123_v47 = vunpack.c.l.bf16 %v2676_v45  ;;  %v2120_v48 = vunpack.c.h.bf16 %v2679_v46 }
  0x25   : > { %v440_v43 = vsel %vm391_vm0, %v2115_v40, 0.0  ;;  %v2119_v49 = vunpack.c.l.bf16 %v2679_v46  ;;  %v2128_v54 = vunpack.c.h.bf16 %v2694_v53  ;;  %v2127_v55 = vunpack.c.l.bf16 %v2694_v53 }
  0x26   : > { %v437_v44 = vsel %vm391_vm0, %v2112_v41, 0.0  ;;  %v452_v50 = vsel %vm391_vm0, %v2123_v47, 0.0  ;;  %v449_v51 = vsel %vm391_vm0, %v2120_v48, 0.0  ;;  %v2124_v56 = vunpack.c.h.bf16 %v2676_v45 }
  0x27   : > { %408 = vadd.xlane.f32.xlu2 %v407_v12  ;;  %402 = vadd.xlane.f32.xlu1 %v401_v13  ;;  %v446_v52 = vsel %vm391_vm0, %v2119_v49, 0.0  ;;  %v461_v57 = vsel %vm391_vm0, %v2128_v54, 0.0  ;;  %v458_v58 = vsel %vm391_vm0, %v2127_v55, 0.0  ;;  %v2135_v62 = vunpack.c.l.bf16 %v2709_v60  ;;  %v2727_v13 = vld [vmem:[%s2574_s20 + $0x70] sm:$0xff]  }
  0x28   : > { %396 = vadd.xlane.f32.xlu0 %v395_v14  ;;  %v455_v59 = vsel %vm391_vm0, %v2124_v56, 0.0  ;;  %v2132_v63 = vunpack.c.h.bf16 %v2712_v61  ;;  %v2131_v6 = vunpack.c.l.bf16 %v2712_v61  ;;  %v2140_v14 = vunpack.c.h.bf16 %v2727_v13 }
  0x29   : > { %v470_v7 = vsel %vm391_vm0, %v2135_v62, 0.0 }
  0x2a   : > { %v467_v8 = vsel %vm391_vm0, %v2132_v63, 0.0  ;;  %v464_v12 = vsel %vm391_vm0, %v2131_v6, 0.0 }
  0x2f   : > { %417 = vadd.xlane.f32.xlu2 %v416_v20  ;;  %414 = vadd.xlane.f32.xlu1 %v413_v21  ;;  %v2139_v20 = vunpack.c.l.bf16 %v2727_v13  ;;  %v2136_v21 = vunpack.c.h.bf16 %v2709_v60 }
  0x30   : > { %411 = vadd.xlane.f32.xlu0 %v410_v22  ;;  %v479_v22 = vsel %vm391_vm0, %v2140_v14, 0.0 }
  0x37   : > { %426 = vadd.xlane.f32.xlu2 %v425_v27  ;;  %423 = vadd.xlane.f32.xlu1 %v422_v28  ;;  %v476_v27 = vsel %vm391_vm0, %v2139_v20, 0.0  ;;  %v473_v28 = vsel %vm391_vm0, %v2136_v21, 0.0 }
  0x38   : > { %420 = vadd.xlane.f32.xlu0 %v419_v29  ;;  %v2742_v29 = vld [vmem:[%s2574_s20 + $0x78] sm:$0xff]  }
  0x3f   : > { %435 = vadd.xlane.f32.xlu2 %v434_v35  ;;  %432 = vadd.xlane.f32.xlu1 %v431_v36  ;;  %v2144_v35 = vunpack.c.h.bf16 %v2742_v29  ;;  %v2143_v36 = vunpack.c.l.bf16 %v2742_v29 }
  0x40   : > { %429 = vadd.xlane.f32.xlu0 %v428_v37 }
  0x41   : > { %v485_v37 = vsel %vm391_vm0, %v2144_v35, 0.0 }
  0x47   : > { %444 = vadd.xlane.f32.xlu2 %v443_v42  ;;  %441 = vadd.xlane.f32.xlu1 %v440_v43  ;;  %v482_v42 = vsel %vm391_vm0, %v2143_v36, 0.0  ;;  %v2468_v43 = vmov 16.0  }
  0x48   : > { %438 = vadd.xlane.f32.xlu0 %v437_v44  ;;  %2346 = vrcp.f32 %v2468_v43 }
  0x4e   : > { %v2347_v44 = vpop.eup %2346 }
  0x4f   : > { %453 = vadd.xlane.f32.xlu2 %v452_v50  ;;  %450 = vadd.xlane.f32.xlu1 %v449_v51  ;;  %v489_v50 = vmul.f32 16.0, %v2347_v44  ;;  %vm493_vm1 = vweird.f32 %v2347_v44 }
  0x50   : > { %447 = vadd.xlane.f32.xlu0 %v446_v52 }
  0x51   : > { %v490_v51 = vsub.f32 1.0, %v489_v50 }
  0x53   : > { %v491_v52 = vmul.f32 %v2347_v44, %v490_v51 }
  0x57   : > { %462 = vadd.xlane.f32.xlu2 %v461_v57  ;;  %459 = vadd.xlane.f32.xlu1 %v458_v58  ;;  %v492_v57 = vadd.f32 %v2347_v44, %v491_v52 }
  0x58   : > { %456 = vadd.xlane.f32.xlu0 %v455_v59 }
  0x59   : > { %v2752_v58 = vsel %vm493_vm1, %v2347_v44, %v492_v57 }
  0x5f   : > { %471 = vadd.xlane.f32.xlu2 %v470_v7  ;;  %468 = vadd.xlane.f32.xlu1 %v467_v8 }
  0x60   : > { %465 = vadd.xlane.f32.xlu0 %v464_v12 }
  0x67   : > { %480 = vadd.xlane.f32.xlu2 %v479_v22  ;;  %477 = vadd.xlane.f32.xlu1 %v476_v27 }
  0x68   : > { %474 = vadd.xlane.f32.xlu0 %v473_v28 }
  0x6f   : > { %486 = vadd.xlane.f32.xlu1 %v485_v37 }
  0x70   : > { %483 = vadd.xlane.f32.xlu0 %v482_v42 }
  0x92   : > { %v406_v59 = vpop.xlane.xlu2 %405  ;;  %v400_v7 = vpop.xlane.xlu1 %399 }
  0x93   : > { %v497_v8 = vmul.f32 %v2752_v58, %v400_v7  ;;  %v394_v12 = vpop.xlane.xlu0 %393 }
  0x94   : > { %v495_v22 = vmul.f32 %v2752_v58, %v394_v12  ;;  %v499_v12 = vmul.f32 %v2752_v58, %v406_v59 }
  0x95   : > { %v2758_v27 = vsub.f32 %v2087_v4, %v497_v8 }
  0x96   : > { %v2762_v28 = vsub.f32 %v2083_v5, %v495_v22 }
  0x97   : > { %v561_v37 = vmul.f32 %v2758_v27, %v2758_v27 }
  0x98   : > { %v559_v42 = vmul.f32 %v2762_v28, %v2762_v28 }
  0x99   : > { %v597_v43 = vsel %vm391_vm0, %v561_v37, 0.0 }
  0x9a   : > { %v409_v44 = vpop.xlane.xlu2 %408  ;;  %598 = vadd.xlane.f32.xlu1 %v597_v43  ;;  %v403_v50 = vpop.xlane.xlu1 %402  ;;  %v591_v51 = vsel %vm391_vm0, %v559_v42, 0.0 }
  0x9b   : > { %v500_v4 = vmul.f32 %v2752_v58, %v409_v44  ;;  %v498_v52 = vmul.f32 %v2752_v58, %v403_v50  ;;  %592 = vadd.xlane.f32.xlu2 %v591_v51  ;;  %v397_v5 = vpop.xlane.xlu0 %396 }
  0x9c   : > { %v496_v57 = vmul.f32 %v2752_v58, %v397_v5 }
  0x9d   : > { %v2775_v7 = vsub.f32 %v2092_v9, %v500_v4  ;;  %v2779_v8 = vsub.f32 %v2088_v10, %v498_v52  ;;  %v2796_v10 = vsub.f32 %v2091_v3, %v499_v12 }
  0x9e   : > { %v2784_v22 = vsub.f32 %v2084_v11, %v496_v57 }
  0x9f   : > { %v564_v37 = vmul.f32 %v2775_v7, %v2775_v7  ;;  %v562_v42 = vmul.f32 %v2779_v8, %v2779_v8  ;;  %v563_v3 = vmul.f32 %v2796_v10, %v2796_v10 }
  0xa0   : > { %v560_v9 = vmul.f32 %v2784_v22, %v2784_v22 }
  0xa1   : > { %v606_v43 = vsel %vm391_vm0, %v564_v37, 0.0  ;;  %v600_v1 = vsel %vm391_vm0, %v562_v42, 0.0 }
  0xa2   : > { %v418_v2 = vpop.xlane.xlu2 %417  ;;  %607 = vadd.xlane.f32.xlu1 %v606_v43  ;;  %v594_v11 = vsel %vm391_vm0, %v560_v9, 0.0  ;;  %v415_v59 = vpop.xlane.xlu1 %414 }
  0xa3   : > { %v503_v44 = vmul.f32 %v2752_v58, %v418_v2  ;;  %601 = vadd.xlane.f32.xlu2 %v600_v1  ;;  %595 = vadd.xlane.f32.xlu0 %v594_v11  ;;  %v412_v50 = vpop.xlane.xlu0 %411  ;;  %v502_v4 = vmul.f32 %v2752_v58, %v415_v59 }
  0xa4   : > { %v501_v51 = vmul.f32 %v2752_v58, %v412_v50 }
  0xa5   : > { %v2804_v52 = vsub.f32 %v2099_v17, %v503_v44  ;;  %v2816_v57 = vsub.f32 %v2096_v18, %v502_v4 }
  0xa6   : > { %v2808_v0 = vsub.f32 %v2095_v19, %v501_v51  ;;  %v603_v19 = vsel %vm391_vm0, %v563_v3, 0.0 }
  0xa7   : > { %v567_v5 = vmul.f32 %v2804_v52, %v2804_v52  ;;  %v566_v2 = vmul.f32 %v2816_v57, %v2816_v57 }
  0xa8   : > { %v565_v12 = vmul.f32 %v2808_v0, %v2808_v0 }
  0xa9   : > { %v615_v17 = vsel %vm391_vm0, %v567_v5, 0.0  ;;  %v612_v51 = vsel %vm391_vm0, %v566_v2, 0.0 }
  0xaa   : > { %v427_v37 = vpop.xlane.xlu2 %426  ;;  %616 = vadd.xlane.f32.xlu1 %v615_v17  ;;  %v609_v42 = vsel %vm391_vm0, %v565_v12, 0.0  ;;  %v424_v9 = vpop.xlane.xlu1 %423 }
  0xab   : > { %v506_v43 = vmul.f32 %v2752_v58, %v427_v37  ;;  %604 = vadd.xlane.f32.xlu0 %v603_v19  ;;  %610 = vadd.xlane.f32.xlu2 %v609_v42  ;;  %v421_v1 = vpop.xlane.xlu0 %420  ;;  %v505_v18 = vmul.f32 %v2752_v58, %v424_v9 }
  0xac   : > { %v504_v16 = vmul.f32 %v2752_v58, %v421_v1 }
  0xad   : > { %v2830_v11 = vsub.f32 %v2104_v24, %v506_v43  ;;  %v2840_v50 = vsub.f32 %v2103_v25, %v505_v18 }
  0xae   : > { %v2834_v59 = vsub.f32 %v2100_v26, %v504_v16 }
  0xaf   : > { %v570_v44 = vmul.f32 %v2830_v11, %v2830_v11  ;;  %v569_v17 = vmul.f32 %v2840_v50, %v2840_v50 }
  0xb0   : > { %v568_v4 = vmul.f32 %v2834_v59, %v2834_v59 }
  0xb1   : > { %v624_v3 = vsel %vm391_vm0, %v570_v44, 0.0  ;;  %v621_v43 = vsel %vm391_vm0, %v569_v17, 0.0 }
  0xb2   : > { %v436_v24 = vpop.xlane.xlu2 %435  ;;  %625 = vadd.xlane.f32.xlu1 %v624_v3  ;;  %v618_v15 = vsel %vm391_vm0, %v568_v4, 0.0  ;;  %v433_v26 = vpop.xlane.xlu1 %432 }
  0xb3   : > { %v509_v5 = vmul.f32 %v2752_v58, %v436_v24  ;;  %613 = vadd.xlane.f32.xlu0 %v612_v51  ;;  %619 = vadd.xlane.f32.xlu2 %v618_v15  ;;  %v430_v12 = vpop.xlane.xlu0 %429  ;;  %v508_v25 = vmul.f32 %v2752_v58, %v433_v26 }
  0xb4   : > { %v507_v23 = vmul.f32 %v2752_v58, %v430_v12 }
  0xb5   : > { %v2854_v37 = vsub.f32 %v2111_v32, %v509_v5  ;;  %v2864_v9 = vsub.f32 %v2108_v33, %v508_v25 }
  0xb6   : > { %v2858_v19 = vsub.f32 %v2107_v34, %v507_v23 }
  0xb7   : > { %v573_v42 = vmul.f32 %v2854_v37, %v2854_v37  ;;  %v572_v51 = vmul.f32 %v2864_v9, %v2864_v9 }
  0xb8   : > { %v571_v1 = vmul.f32 %v2858_v19, %v2858_v19 }
  0xb9   : > { %v633_v16 = vsel %vm391_vm0, %v573_v42, 0.0  ;;  %v630_v26 = vsel %vm391_vm0, %v572_v51, 0.0 }
  0xba   : > { %v445_v32 = vpop.xlane.xlu2 %444  ;;  %634 = vadd.xlane.f32.xlu1 %v633_v16  ;;  %v627_v18 = vsel %vm391_vm0, %v571_v1, 0.0  ;;  %v442_v34 = vpop.xlane.xlu1 %441 }
  0xbb   : > { %v512_v2 = vmul.f32 %v2752_v58, %v445_v32  ;;  %622 = vadd.xlane.f32.xlu0 %v621_v43  ;;  %628 = vadd.xlane.f32.xlu2 %v627_v18  ;;  %v439_v44 = vpop.xlane.xlu0 %438  ;;  %v511_v33 = vmul.f32 %v2752_v58, %v442_v34 }
  0xbc   : > { %v510_v31 = vmul.f32 %v2752_v58, %v439_v44 }
  0xbd   : > { %v2878_v4 = vsub.f32 %v2116_v39, %v512_v2  ;;  %v2888_v15 = vsub.f32 %v2115_v40, %v511_v33 }
  0xbe   : > { %v2882_v3 = vsub.f32 %v2112_v41, %v510_v31 }
  0xbf   : > { %v576_v24 = vmul.f32 %v2878_v4, %v2878_v4  ;;  %v575_v17 = vmul.f32 %v2888_v15, %v2888_v15 }
  0xc0   : > { %v574_v5 = vmul.f32 %v2882_v3, %v2882_v3 }
  0xc1   : > { %v642_v12 = vsel %vm391_vm0, %v576_v24, 0.0  ;;  %v639_v32 = vsel %vm391_vm0, %v575_v17, 0.0 }
  0xc2   : > { %v454_v39 = vpop.xlane.xlu2 %453  ;;  %643 = vadd.xlane.f32.xlu1 %v642_v12  ;;  %v636_v30 = vsel %vm391_vm0, %v574_v5, 0.0  ;;  %v451_v41 = vpop.xlane.xlu1 %450 }
  0xc3   : > { %v515_v23 = vmul.f32 %v2752_v58, %v454_v39  ;;  %631 = vadd.xlane.f32.xlu0 %v630_v26  ;;  %637 = vadd.xlane.f32.xlu2 %v636_v30  ;;  %v448_v25 = vpop.xlane.xlu0 %447  ;;  %v514_v40 = vmul.f32 %v2752_v58, %v451_v41 }
  0xc4   : > { %v513_v38 = vmul.f32 %v2752_v58, %v448_v25 }
  0xc5   : > { %v2902_v42 = vsub.f32 %v2123_v47, %v515_v23  ;;  %v2912_v16 = vsub.f32 %v2120_v48, %v514_v40 }
  0xc6   : > { %v2906_v43 = vsub.f32 %v2119_v49, %v513_v38 }
  0xc7   : > { %v579_v1 = vmul.f32 %v2902_v42, %v2902_v42  ;;  %v578_v33 = vmul.f32 %v2912_v16, %v2912_v16 }
  0xc8   : > { %v577_v18 = vmul.f32 %v2906_v43, %v2906_v43 }
  0xc9   : > { %v651_v34 = vsel %vm391_vm0, %v579_v1, 0.0  ;;  %v648_v12 = vsel %vm391_vm0, %v578_v33, 0.0 }
  0xca   : > { %v463_v47 = vpop.xlane.xlu2 %462  ;;  %652 = vadd.xlane.f32.xlu1 %v651_v34  ;;  %v645_v2 = vsel %vm391_vm0, %v577_v18, 0.0  ;;  %v460_v49 = vpop.xlane.xlu1 %459 }
  0xcb   : > { %v518_v44 = vmul.f32 %v2752_v58, %v463_v47  ;;  %640 = vadd.xlane.f32.xlu0 %v639_v32  ;;  %646 = vadd.xlane.f32.xlu2 %v645_v2  ;;  %v457_v31 = vpop.xlane.xlu0 %456  ;;  %v517_v48 = vmul.f32 %v2752_v58, %v460_v49 }
  0xcc   : > { %v516_v46 = vmul.f32 %v2752_v58, %v457_v31 }
  0xcd   : > { %v2926_v51 = vsub.f32 %v2128_v54, %v518_v44  ;;  %v2936_v5 = vsub.f32 %v2127_v55, %v517_v48 }
  0xce   : > { %v2930_v24 = vsub.f32 %v2124_v56, %v516_v46 }
  0xcf   : > { %4203 = vst [vmem:[#allocation3_spill] sm:$0xff] %v2926_v51  ;;  %v582_v26 = vmul.f32 %v2926_v51, %v2926_v51  ;;  %v581_v25 = vmul.f32 %v2936_v5, %v2936_v5 }
  0xd0   : > { %4204 = vst [vmem:[#allocation4_spill] sm:$0xff] %v2936_v5  ;;  %v580_v39 = vmul.f32 %v2930_v24, %v2930_v24 }
  0xd1   : > { %v660_v30 = vsel %vm391_vm0, %v582_v26, 0.0  ;;  %v657_v32 = vsel %vm391_vm0, %v581_v25, 0.0 }
  0xd2   : > { %v472_v54 = vpop.xlane.xlu2 %471  ;;  %661 = vadd.xlane.f32.xlu1 %v660_v30  ;;  %v654_v45 = vsel %vm391_vm0, %v580_v39, 0.0  ;;  %v469_v56 = vpop.xlane.xlu1 %468 }
  0xd3   : > { %v521_v41 = vmul.f32 %v2752_v58, %v472_v54  ;;  %649 = vadd.xlane.f32.xlu0 %v648_v12  ;;  %655 = vadd.xlane.f32.xlu2 %v654_v45  ;;  %v466_v23 = vpop.xlane.xlu0 %465  ;;  %v520_v55 = vmul.f32 %v2752_v58, %v469_v56 }
  0xd4   : > { %v519_v53 = vmul.f32 %v2752_v58, %v466_v23 }
  0xd5   : > { %v2950_v38 = vsub.f32 %v2135_v62, %v521_v41  ;;  %v2960_v1 = vsub.f32 %v2132_v63, %v520_v55 }
  0xd6   : > { %v2954_v40 = vsub.f32 %v2131_v6, %v519_v53 }
  0xd7   : > { %4205 = vst [vmem:[#allocation5_spill] sm:$0xff] %v2950_v38  ;;  %v585_v17 = vmul.f32 %v2950_v38, %v2950_v38  ;;  %v584_v44 = vmul.f32 %v2960_v1, %v2960_v1 }
  0xd8   : > { %v583_v18 = vmul.f32 %v2954_v40, %v2954_v40 }
  0xd9   : > { %v669_v34 = vsel %vm391_vm0, %v585_v17, 0.0  ;;  %v666_v26 = vsel %vm391_vm0, %v584_v44, 0.0 }
  0xda   : > { %v481_v62 = vpop.xlane.xlu2 %480  ;;  %670 = vadd.xlane.f32.xlu1 %v669_v34  ;;  %v663_v47 = vsel %vm391_vm0, %v583_v18, 0.0  ;;  %v478_v6 = vpop.xlane.xlu1 %477 }
  0xdb   : > { %v524_v2 = vmul.f32 %v2752_v58, %v481_v62  ;;  %658 = vadd.xlane.f32.xlu0 %v657_v32  ;;  %664 = vadd.xlane.f32.xlu2 %v663_v47  ;;  %v475_v49 = vpop.xlane.xlu0 %474  ;;  %v523_v63 = vmul.f32 %v2752_v58, %v478_v6  ;;  %v2080_v62 = vld [vmem:[%s4189_s1] sm:$0xff] }
  0xdc   : > { %v522_v61 = vmul.f32 %v2752_v58, %v475_v49  ;;  %1252 = vmatpush.bf16.msra.mxu0 %v2080_v62  ;;  %2160 = vmatpush.bf16.msra.mxu1 %v2080_v62 }
  0xdd   : > { %v2974_v31 = vsub.f32 %v2140_v14, %v524_v2  ;;  %v2984_v33 = vsub.f32 %v2139_v20, %v523_v63  ;;  %2161 = vmatpush.bf16.msra.mxu2 %v2080_v62  ;;  %2162 = vmatpush.bf16.msra.mxu3 %v2080_v62 }
  0xde   : > { %v2978_v46 = vsub.f32 %v2136_v21, %v522_v61 }
  0xdf   : > { %4206 = vst [vmem:[#allocation6_spill] sm:$0xff] %v2974_v31  ;;  %v588_v48 = vmul.f32 %v2974_v31, %v2974_v31  ;;  %v587_v20 = vmul.f32 %v2984_v33, %v2984_v33 }
  0xe0   : > { %4207 = vst [vmem:[#allocation7_spill] sm:$0xff] %v2984_v33  ;;  %v586_v12 = vmul.f32 %v2978_v46, %v2978_v46 }
  0xe1   : > { %v678_v39 = vsel %vm391_vm0, %v588_v48, 0.0  ;;  %v675_v56 = vsel %vm391_vm0, %v587_v20, 0.0 }
  0xe2   : > { %679 = vadd.xlane.f32.xlu1 %v678_v39  ;;  %v672_v14 = vsel %vm391_vm0, %v586_v12, 0.0  ;;  %v487_v60 = vpop.xlane.xlu1 %486 }
  0xe3   : > { %667 = vadd.xlane.f32.xlu0 %v666_v26  ;;  %673 = vadd.xlane.f32.xlu2 %v672_v14  ;;  %v484_v21 = vpop.xlane.xlu0 %483  ;;  %v526_v13 = vmul.f32 %v2752_v58, %v487_v60 }
  0xe4   : > { %v525_v30 = vmul.f32 %v2752_v58, %v484_v21 }
  0xe5   : > { %v3001_v45 = vsub.f32 %v2144_v35, %v526_v13 }
  0xe6   : > { %v2997_v54 = vsub.f32 %v2143_v36, %v525_v30 }
  0xe7   : > { %4209 = vst [vmem:[#allocation9_spill] sm:$0xff] %v3001_v45  ;;  %v590_v53 = vmul.f32 %v3001_v45, %v3001_v45 }
  0xe8   : > { %4208 = vst [vmem:[#allocation8_spill] sm:$0xff] %v2997_v54  ;;  %v589_v41 = vmul.f32 %v2997_v54, %v2997_v54 }
  0xe9   : > { %v684_v55 = vsel %vm391_vm0, %v590_v53, 0.0 }
  0xea   : > { %v681_v23 = vsel %vm391_vm0, %v589_v41, 0.0 }
  0xeb   : > { %676 = vadd.xlane.f32.xlu0 %v675_v56  ;;  %682 = vadd.xlane.f32.xlu2 %v681_v23 }
  0xf3   : > { %685 = vadd.xlane.f32.xlu0 %v684_v55 }
 0x10d   : > { %v599_v36 = vpop.xlane.xlu1 %598 }
 0x10e   : > { %v593_v25 = vpop.xlane.xlu2 %592  ;;  %v689_v2 = vmul.f32 %v599_v36, %v2752_v58 }
 0x10f   : > { %v687_v29 = vmul.f32 %v593_v25, %v2752_v58 }
 0x110   : > { %v3020_v26 = vadd.f32 1e-05, %v689_v2 }
 0x111   : > { %v719_v35 = vadd.f32 1e-05, %v687_v29 }
 0x112   : > { %vm777_vm8 = vweird.f32 %v3020_v26 }
 0x113   : > { %2348 = vrsqrt.f32 %v719_v35  ;;  %vm757_vm3 = vweird.f32 %v719_v35 }
 0x115   : > { %v608_v17 = vpop.xlane.xlu1 %607 }
 0x116   : > { %v602_v32 = vpop.xlane.xlu2 %601  ;;  %v596_v18 = vpop.xlane.xlu0 %595  ;;  %v692_v12 = vmul.f32 %v608_v17, %v2752_v58 }
 0x117   : > { %v688_v34 = vmul.f32 %v596_v18, %v2752_v58  ;;  %v690_v49 = vmul.f32 %v602_v32, %v2752_v58 }
 0x118   : > { %v3028_v13 = vadd.f32 1e-05, %v692_v12 }
 0x119   : > { %v720_v47 = vadd.f32 1e-05, %v688_v34  ;;  %v3015_v6 = vpop.eup %2348  ;;  %v3023_v39 = vadd.f32 1e-05, %v690_v49 }
 0x11a   : > { %v752_v61 = vmul.f32 %v3015_v6, %v719_v35  ;;  %vm758_vm2 = vweird.f32 %v3015_v6  ;;  %vm807_vm12 = vweird.f32 %v3028_v13 }
 0x11b   : > { %2350 = vrsqrt.f32 %v720_v47  ;;  %vm759_vm5 = vmor %vm757_vm3, %vm758_vm2  ;;  %vm767_vm6 = vweird.f32 %v720_v47  ;;  %vm787_vm10 = vweird.f32 %v3023_v39 }
 0x11c   : > { %v753_v14 = vmul.f32 %v3015_v6, %v752_v61  ;;  %2352 = vrsqrt.f32 %v3020_v26 }
 0x11d   : > { %v617_v63 = vpop.xlane.xlu1 %616  ;;  %2354 = vrsqrt.f32 %v3023_v39 }
 0x11e   : > { %v611_v44 = vpop.xlane.xlu2 %610  ;;  %v605_v48 = vpop.xlane.xlu0 %604  ;;  %v695_v60 = vmul.f32 %v617_v63, %v2752_v58  ;;  %v754_v20 = vmul.f32 0.5, %v753_v14  ;;  %2356 = vrsqrt.f32 %v3028_v13 }
 0x11f   : > { %v691_v61 = vmul.f32 %v605_v48, %v2752_v58 }
 0x120   : > { %v3031_v41 = vadd.f32 1e-05, %v695_v60  ;;  %v755_v29 = vsub.f32 1.5, %v754_v20  ;;  %v693_v20 = vmul.f32 %v611_v44, %v2752_v58 }
 0x121   : > { %v2351_v21 = vpop.eup %2350 }
 0x122   : > { %v762_v30 = vmul.f32 %v2351_v21, %v720_v47  ;;  %v3035_v25 = vpop.eup %2352  ;;  %2358 = vrsqrt.f32 %v3031_v41  ;;  %v756_v2 = vmul.f32 %v3015_v6, %v755_v29  ;;  %vm768_vm4 = vweird.f32 %v2351_v21 }
 0x123   : > { %v3038_v17 = vpop.eup %2354  ;;  %v772_v34 = vmul.f32 %v3035_v25, %v3020_v26  ;;  %vm769_vm7 = vmor %vm767_vm6, %vm768_vm4  ;;  %vm778_vm9 = vweird.f32 %v3035_v25  ;;  %vm837_vm3 = vweird.f32 %v3031_v41 }
 0x124   : > { %v763_v56 = vmul.f32 %v2351_v21, %v762_v30  ;;  %v782_v49 = vmul.f32 %v3038_v17, %v3023_v39  ;;  %v3050_v63 = vpop.eup %2356  ;;  %v760_v48 = vsel %vm759_vm5, %v3015_v6, %v756_v2  ;;  %v3071_v2 = vadd.f32 1e-05, %v693_v20  ;;  %vm3129_vm13 = vmor %vm777_vm8, %vm778_vm9 }
 0x125   : > { %v626_v62 = vpop.xlane.xlu1 %625  ;;  %v773_v30 = vmul.f32 %v3035_v25, %v772_v34  ;;  %v1071_v6 = vmul.f32 %v760_v48, %v2762_v28  ;;  %vm788_vm11 = vweird.f32 %v3038_v17  ;;  %vm808_vm14 = vweird.f32 %v3050_v63 }
 0x126   : > { %v620_v23 = vpop.xlane.xlu2 %619  ;;  %v614_v53 = vpop.xlane.xlu0 %613  ;;  %v764_v55 = vmul.f32 0.5, %v763_v56  ;;  %vm3149_vm2 = vmor %vm787_vm10, %vm788_vm11  ;;  %vm817_vm8 = vweird.f32 %v3071_v2 }
 0x127   : > { %v696_v36 = vmul.f32 %v620_v23, %v2752_v58  ;;  %v802_v23 = vmul.f32 %v3050_v63, %v3028_v13  ;;  %v774_v34 = vmul.f32 0.5, %v773_v30  ;;  %vm3182_vm6 = vmor %vm807_vm12, %vm808_vm14 }
 0x128   : > { %v765_v18 = vsub.f32 1.5, %v764_v55  ;;  %v3052_v14 = vpop.eup %2358  ;;  %v783_v55 = vmul.f32 %v3038_v17, %v782_v49 }
 0x129   : > { %v3040_v32 = vadd.f32 1e-05, %v696_v36  ;;  %v3062_v36 = vadd.f32 1e-05, %v691_v61  ;;  %v832_v35 = vmul.f32 %v3052_v14, %v3031_v41  ;;  %v3078_v61 = vld [vmem:[%s4190_s2] ss:$0 sm:$0xff]  ;;  %vm838_vm4 = vweird.f32 %v3052_v14 }
 0x12a   : > { %v766_v60 = vmul.f32 %v2351_v21, %v765_v18  ;;  %v698_v18 = vmul.f32 %v626_v62, %v2752_v58  ;;  %v784_v54 = vmul.f32 0.5, %v783_v55  ;;  %v775_v31 = vsub.f32 1.5, %v774_v34 }
 0x12b   : > { %2360 = vrsqrt.f32 %v3040_v32  ;;  %v833_v28 = vmul.f32 %v3052_v14, %v832_v35  ;;  %vm847_vm15 = vweird.f32 %v3040_v32  ;;  %vm797_vm9 = vweird.f32 %v3062_v36 }
 0x12c   : > { %v770_v44 = vsel %vm769_vm7, %v2351_v21, %v766_v60  ;;  %2362 = vrsqrt.f32 %v3062_v36  ;;  %v694_v21 = vmul.f32 %v614_v53, %v2752_v58  ;;  %v3088_v48 = vadd.f32 1e-05, %v698_v18  ;;  %v3096_v53 = vld [vmem:[%s4191_s3] ss:$0 sm:$0xff]  ;;  %vm839_vm7 = vmor %vm837_vm3, %vm838_vm4 }
 0x12d   : > { %v1072_v62 = vmul.f32 %v770_v44, %v2784_v22  ;;  %v635_v30 = vpop.xlane.xlu1 %634  ;;  %v785_v55 = vsub.f32 1.5, %v784_v54  ;;  %2364 = vrsqrt.f32 %v3071_v2 }
 0x12e   : > { %v623_v12 = vpop.xlane.xlu0 %622  ;;  %v3056_v56 = vpop.xlane.xlu2 %628  ;;  %v3099_v35 = vadd.f32 1e-05, %v694_v21  ;;  %vm867_vm10 = vweird.f32 %v3088_v48 }
 0x12f   : > { %v697_v29 = vmul.f32 %v623_v12, %v2752_v58  ;;  %v803_v12 = vmul.f32 %v3050_v63, %v802_v23  ;;  %v1106_v23 = vmul.f32 %v3078_v61, %v1071_v6  ;;  %v1107_v18 = vmul.f32 %v3078_v61, %v1072_v62 }
 0x130   : > { %v786_v62 = vmul.f32 %v3038_v17, %v785_v55  ;;  %v699_v55 = vmul.f32 %v3056_v56, %v2752_v58 }
 0x131   : > { %v3067_v47 = vpop.eup %2360  ;;  %v3086_v20 = vadd.f32 1e-05, %v697_v29  ;;  %v804_v22 = vmul.f32 0.5, %v803_v12  ;;  %v834_v29 = vmul.f32 0.5, %v833_v28  ;;  %v1141_v54 = vadd.f32 %v3096_v53, %v1106_v23 }
 0x132   : > { %v842_v49 = vmul.f32 %v3067_v47, %v3040_v32  ;;  %v3105_v6 = vpop.eup %2362  ;;  %v776_v12 = vmul.f32 %v3035_v25, %v775_v31  ;;  %vm848_vm1 = vweird.f32 %v3067_v47  ;;  %v790_v56 = vsel %vm3149_vm2, %v3038_v17, %v786_v62 }
 0x133   : > { %2366 = vrsqrt.f32 %v3086_v20  ;;  %v805_v21 = vsub.f32 1.5, %v804_v22  ;;  %v835_v28 = vsub.f32 1.5, %v834_v29  ;;  %v3117_v51 = vpop.eup %2364  ;;  %v792_v23 = vmul.f32 %v3105_v6, %v3062_v36  ;;  %vm3169_vm5 = vmor %vm847_vm15, %vm848_vm1 }
 0x134   : > { %v843_v60 = vmul.f32 %v3067_v47, %v842_v49  ;;  %2368 = vrsqrt.f32 %v3088_v48  ;;  %v1142_v49 = vadd.f32 %v3096_v53, %v1107_v18  ;;  %v701_v18 = vmul.f32 %v635_v30, %v2752_v58 }
 0x135   : > { %2370 = vrsqrt.f32 %v3099_v35  ;;  %v644_v30 = vpop.xlane.xlu1 %643  ;;  %v780_v26 = vsel %vm3129_vm13, %v3035_v25, %v776_v12  ;;  %v836_v25 = vmul.f32 %v3052_v14, %v835_v28  ;;  %v1074_v13 = vmul.f32 %v790_v56, %v2779_v8 }
 0x136   : > { %v3090_v45 = vpop.xlane.xlu0 %631  ;;  %v844_v44 = vmul.f32 0.5, %v843_v60  ;;  %v3103_v34 = vpop.xlane.xlu2 %637  ;;  %v1173_v33 = vpack.c.bf16 %v1142_v49, %v1141_v54  ;;  %v812_v49 = vmul.f32 %v3117_v51, %v3071_v2  ;;  %v3173_v17 = vadd.f32 1e-05, %v701_v18 }
 0x137   : > { %v704_v28 = vmul.f32 %v644_v30, %v2752_v58  ;;  %v1073_v5 = vmul.f32 %v780_v26, %v2758_v27  ;;  %v840_v38 = vsel %vm839_vm7, %v3052_v14, %v836_v25  ;;  %v700_v14 = vmul.f32 %v3090_v45, %v2752_v58 }
 0x138   : > { %v845_v60 = vsub.f32 1.5, %v844_v44  ;;  %2058 = vmatmul.msk.bf16.vlgmr.msra.gmra.mxu0 %vm391_vm0, %v1173_v33  ;;  %v806_v44 = vmul.f32 %v3050_v63, %v805_v21  ;;  %v793_v21 = vmul.f32 %v3105_v6, %v792_v23  ;;  %v3188_v23 = vadd.f32 1e-05, %v699_v55 }
 0x139   : > { %v3123_v31 = vpop.eup %2366  ;;  %v813_v55 = vmul.f32 %v3117_v51, %v812_v49  ;;  %2372 = vrsqrt.f32 %v3173_v17  ;;  %v1108_v25 = vmul.f32 %v3078_v61, %v1073_v5  ;;  %v1109_v49 = vmul.f32 %v3078_v61, %v1074_v13 }
 0x13a   : > { %v3139_v29 = vpop.eup %2368  ;;  %v846_v39 = vmul.f32 %v3067_v47, %v845_v60  ;;  %v852_v62 = vmul.f32 %v3123_v31, %v3086_v20  ;;  %v810_v30 = vsel %vm3182_vm6, %v3050_v63, %v806_v44  ;;  %v794_v26 = vmul.f32 0.5, %v793_v21 }
 0x13b   : > { %v3162_v12 = vpop.eup %2370  ;;  %v862_v32 = vmul.f32 %v3139_v29, %v3088_v48  ;;  %v3209_v63 = vadd.f32 1e-05, %v704_v28  ;;  %2374 = vrsqrt.f32 %v3188_v23  ;;  %v3225_v22 = vmul.f32 %v810_v30, %v2775_v7 }
 0x13c   : > { %v822_v27 = vmul.f32 %v3162_v12, %v3099_v35  ;;  %v853_v8 = vmul.f32 %v3123_v31, %v852_v62  ;;  %v795_v45 = vsub.f32 1.5, %v794_v26  ;;  %v1143_v28 = vadd.f32 %v3096_v53, %v1108_v25 }
 0x13d   : > { %v863_v41 = vmul.f32 %v3139_v29, %v862_v32  ;;  %2376 = vrsqrt.f32 %v3209_v63  ;;  %v1144_v7 = vadd.f32 %v3096_v53, %v1109_v49  ;;  %vm818_vm11 = vweird.f32 %v3117_v51 }
 0x13e   : > { %v641_v33 = vpop.xlane.xlu0 %640  ;;  %v647_v18 = vpop.xlane.xlu2 %646  ;;  %v823_v21 = vmul.f32 %v3162_v12, %v822_v27  ;;  %v854_v62 = vmul.f32 0.5, %v853_v8  ;;  %vm798_vm12 = vweird.f32 %v3105_v6  ;;  %vm3267_vm13 = vmor %vm817_vm8, %vm818_vm11  ;;  %vm868_vm14 = vweird.f32 %v3139_v29 }
 0x13f   : > { %v703_v54 = vmul.f32 %v641_v33, %v2752_v58  ;;  %v850_v33 = vsel %vm3169_vm5, %v3067_v47, %v846_v39  ;;  %v1079_v47 = vmul.f32 %v840_v38, %v2804_v52  ;;  %v814_v39 = vmul.f32 0.5, %v813_v55  ;;  %v3233_v38 = vpop.eup %2372  ;;  %v653_v55 = vpop.xlane.xlu1 %652  ;;  %vm3277_vm1 = vmor %vm797_vm9, %vm798_vm12 }
 0x140   : > { %v1080_v56 = vmul.f32 %v850_v33, %v2834_v59  ;;  %v864_v52 = vmul.f32 0.5, %v863_v41  ;;  %v3229_v59 = vadd.f32 1e-05, %v700_v14  ;;  %v705_v5 = vmul.f32 %v647_v18, %v2752_v58  ;;  %vm3318_vm6 = vmor %vm867_vm10, %vm868_vm14 }
 0x141   : > { %v3215_v44 = vadd.f32 1e-05, %v703_v54  ;;  %v1114_v60 = vmul.f32 %v3078_v61, %v1079_v47  ;;  %v3239_v54 = vpop.eup %2374  ;;  %v815_v30 = vsub.f32 1.5, %v814_v39  ;;  %v824_v13 = vmul.f32 0.5, %v823_v21 }
 0x142   : > { %v1115_v32 = vmul.f32 %v3078_v61, %v1080_v56  ;;  %v702_v18 = vmul.f32 %v3103_v34, %v2752_v58  ;;  %v855_v27 = vsub.f32 1.5, %v854_v62  ;;  %v1174_v26 = vpack.c.bf16 %v1144_v7, %v1143_v28 }
 0x143   : > { %2378 = vrsqrt.f32 %v3215_v44  ;;  %v1149_v8 = vadd.f32 %v3096_v53, %v1114_v60  ;;  %v796_v14 = vmul.f32 %v3105_v6, %v795_v45  ;;  %v865_v47 = vsub.f32 1.5, %v864_v52  ;;  %v3251_v56 = vpop.eup %2376 }
 0x144   : > { %v1150_v41 = vadd.f32 %v3096_v53, %v1115_v32  ;;  %2380 = vrsqrt.f32 %v3229_v59  ;;  %v892_v34 = vmul.f32 %v3233_v38, %v3173_v17  ;;  %v872_v25 = vmul.f32 %v3239_v54, %v3188_v23 }
 0x145   : > { %v3257_v49 = vadd.f32 1e-05, %v705_v5  ;;  %v816_v45 = vmul.f32 %v3117_v51, %v815_v30  ;;  %v825_v52 = vsub.f32 1.5, %v824_v13  ;;  %vm827_vm15 = vweird.f32 %v3099_v35 }
 0x146   : > { %v3244_v33 = vpop.xlane.xlu2 %655  ;;  %v1177_v39 = vpack.c.bf16 %v1150_v41, %v1149_v8  ;;  %v856_v28 = vmul.f32 %v3123_v31, %v855_v27  ;;  %vm858_vm2 = vweird.f32 %v3123_v31  ;;  %v3283_v2 = vadd.f32 1e-05, %v702_v18  ;;  %v650_v60 = vpop.xlane.xlu0 %649 }
 0x147   : > { %v800_v36 = vsel %vm3277_vm1, %v3105_v6, %v796_v14  ;;  %v866_v32 = vmul.f32 %v3139_v29, %v865_v47  ;;  %v922_v30 = vmul.f32 %v3251_v56, %v3209_v63  ;;  %v707_v13 = vmul.f32 %v653_v55, %v2752_v58 }
 0x148   : > { %2059 = vmatmul.msk.bf16.gmra.mxu0 %vm391_vm0, %v1174_v26  ;;  %2062 = vmatmul.msk.bf16.vlgmr.msra.gmra.mxu1 %vm391_vm0, %v1177_v39  ;;  %v893_v18 = vmul.f32 %v3233_v38, %v892_v34  ;;  %v873_v27 = vmul.f32 %v3239_v54, %v872_v25  ;;  %vm857_vm3 = vweird.f32 %v3086_v20  ;;  %2382 = vrsqrt.f32 %v3257_v49  ;;  %v3335_v25 = vpop.xlane.xlu1 %661 }
 0x149   : > { %v3260_v21 = vpop.eup %2378  ;;  %v820_v6 = vsel %vm3267_vm13, %v3117_v51, %v816_v45  ;;  %vm828_vm4 = vweird.f32 %v3162_v12  ;;  %vm3307_vm5 = vmor %vm857_vm3, %vm858_vm2  ;;  %v706_v20 = vmul.f32 %v650_v60, %v2752_v58  ;;  %v1075_v41 = vmul.f32 %v800_v36, %v2796_v10 }
 0x14a   : > { %v912_v7 = vmul.f32 %v3260_v21, %v3215_v44  ;;  %v3299_v26 = vpop.eup %2380  ;;  %v3323_v14 = vmul.f32 %v3162_v12, %v825_v52  ;;  %v860_v47 = vsel %vm3307_vm5, %v3123_v31, %v856_v28  ;;  %2384 = vrsqrt.f32 %v3283_v2  ;;  %vm3348_vm7 = vmor %vm827_vm15, %vm828_vm4 }
 0x14b   : > { %v870_v10 = vsel %vm3318_vm6, %v3139_v29, %v866_v32  ;;  %v923_v34 = vmul.f32 %v3251_v56, %v922_v30  ;;  %v3333_v48 = vadd.f32 1e-05, %v707_v13  ;;  %v3337_v39 = vadd.f32 1e-05, %v706_v20 }
 0x14c   : > { %v913_v8 = vmul.f32 %v3260_v21, %v912_v7  ;;  %v3340_v62 = vmul.f32 %v820_v6, %v2808_v0  ;;  %v894_v52 = vmul.f32 0.5, %v893_v18  ;;  %v874_v31 = vmul.f32 0.5, %v873_v27 }
 0x14d   : > { %v882_v5 = vmul.f32 %v3299_v26, %v3229_v59  ;;  %vm897_vm8 = vweird.f32 %v3173_v17  ;;  %vm877_vm9 = vweird.f32 %v3188_v23  ;;  %v1081_v0 = vmul.f32 %v860_v47, %v2840_v50 }
 0x14e   : > { %v665_v45 = vpop.xlane.xlu2 %664  ;;  %v914_v28 = vmul.f32 0.5, %v913_v8  ;;  %2386 = vrsqrt.f32 %v3337_v39  ;;  %v3356_v7 = vpop.eup %2382  ;;  %v1082_v60 = vmul.f32 %v870_v10, %v2830_v11  ;;  %v830_v35 = vsel %vm3348_vm7, %v3162_v12, %v3323_v14 }
 0x14f   : > { %vm898_vm10 = vweird.f32 %v3233_v38  ;;  %v711_v36 = vmul.f32 %v665_v45, %v2752_v58  ;;  %v924_v32 = vmul.f32 0.5, %v923_v34  ;;  %2388 = vrsqrt.f32 %v3333_v48  ;;  %v3374_v12 = vpop.xlane.xlu0 %658 }
 0x150   : > { %v1110_v50 = vmul.f32 %v3078_v61, %v1075_v41  ;;  %v1111_v30 = vmul.f32 %v3078_v61, %v3225_v22  ;;  %v3369_v13 = vpop.eup %2384  ;;  %v895_v11 = vsub.f32 1.5, %v894_v52  ;;  %v875_v18 = vsub.f32 1.5, %v874_v31  ;;  %vm3426_vm2 = vmor %vm897_vm8, %vm898_vm10 }
 0x151   : > { %v883_v27 = vmul.f32 %v3299_v26, %v882_v5  ;;  %v3372_v6 = vadd.f32 1e-05, %v711_v36  ;;  %v932_v55 = vmul.f32 %v3356_v7, %v3257_v49  ;;  %v915_v8 = vsub.f32 1.5, %v914_v28  ;;  %v671_v28 = vpop.xlane.xlu1 %670 }
 0x152   : > { %v708_v20 = vmul.f32 %v3244_v33, %v2752_v58  ;;  %v1116_v41 = vmul.f32 %v3078_v61, %v1081_v0  ;;  %v1145_v22 = vadd.f32 %v3096_v53, %v1110_v50  ;;  %v1146_v51 = vadd.f32 %v3096_v53, %v1111_v30 }
 0x153   : > { %2390 = vrsqrt.f32 %v3372_v6  ;;  %v1117_v14 = vmul.f32 %v3078_v61, %v1082_v60  ;;  %vm878_vm11 = vweird.f32 %v3239_v54  ;;  %v925_v10 = vsub.f32 1.5, %v924_v32 }
 0x154   : > { %v3385_v47 = vpop.eup %2386  ;;  %vm927_vm12 = vweird.f32 %v3209_v63  ;;  %v902_v33 = vmul.f32 %v3369_v13, %v3283_v2  ;;  %v3392_v34 = vmul.f32 %v3233_v38, %v895_v11  ;;  %v876_v45 = vmul.f32 %v3239_v54, %v875_v18  ;;  %vm3406_vm15 = vmor %vm877_vm9, %vm878_vm11 }
 0x155   : > { %v942_v52 = vmul.f32 %v3385_v47, %v3337_v39  ;;  %v1175_v31 = vpack.c.bf16 %v1146_v51, %v1145_v22  ;;  %v3397_v5 = vpop.eup %2388  ;;  %vm928_vm13 = vweird.f32 %v3251_v56  ;;  %v884_v29 = vmul.f32 0.5, %v883_v27 }
 0x156   : > { %v933_v0 = vmul.f32 %v3356_v7, %v932_v55  ;;  %vm918_vm14 = vweird.f32 %v3260_v21  ;;  %v674_v60 = vpop.xlane.xlu2 %673  ;;  %v916_v32 = vmul.f32 %v3260_v21, %v915_v8  ;;  %v3411_v50 = vadd.f32 1e-05, %v708_v20  ;;  %vm3451_vm5 = vmor %vm927_vm12, %vm928_vm13 }
 0x157   : > { %v1151_v30 = vadd.f32 %v3096_v53, %v1116_v41  ;;  %v1152_v11 = vadd.f32 %v3096_v53, %v1117_v14  ;;  %v926_v18 = vmul.f32 %v3251_v56, %v925_v10  ;;  %v903_v27 = vmul.f32 %v3369_v13, %v902_v33 }
 0x158   : > { %2060 = vmatmul.msk.bf16.gmra.mxu0 %vm391_vm0, %v1175_v31  ;;  %vm917_vm1 = vweird.f32 %v3215_v44  ;;  %v943_v23 = vmul.f32 %v3385_v47, %v942_v52  ;;  %v952_v20 = vmul.f32 %v3397_v5, %v3333_v48  ;;  %v713_v41 = vmul.f32 %v671_v28, %v2752_v58 }
 0x159   : > { %v3420_v55 = vpop.eup %2390  ;;  %v1178_v22 = vpack.c.bf16 %v1152_v11, %v1151_v30  ;;  %v714_v44 = vmul.f32 %v674_v60, %v2752_v58  ;;  %v3435_v51 = vmul.f32 %v830_v35, %v2816_v57  ;;  %v880_v14 = vsel %vm3406_vm15, %v3239_v54, %v876_v45  ;;  %vm3443_vm4 = vmor %vm917_vm1, %vm918_vm14  ;;  %v668_v45 = vpop.xlane.xlu0 %667 }
 0x15a   : > { %vm887_vm3 = vweird.f32 %v3229_v59  ;;  %v934_v17 = vmul.f32 0.5, %v933_v0  ;;  %v885_v35 = vsub.f32 1.5, %v884_v29  ;;  %v920_v54 = vsel %vm3443_vm4, %v3260_v21, %v916_v32 }
 0x15b   : > { %2392 = vrsqrt.f32 %v3411_v50  ;;  %v992_v33 = vmul.f32 %v3420_v55, %v3372_v6  ;;  %2063 = vmatmul.msk.bf16.gmra.mxu1 %vm391_vm0, %v1178_v22  ;;  %v900_v63 = vsel %vm3426_vm2, %v3233_v38, %v3392_v34  ;;  %v930_v52 = vsel %vm3451_vm5, %v3251_v56, %v926_v18 }
 0x15c   : > { %v904_v31 = vmul.f32 0.5, %v903_v27  ;;  %v944_v29 = vmul.f32 0.5, %v943_v23  ;;  %v953_v21 = vmul.f32 %v3397_v5, %v952_v20  ;;  %v710_v0 = vmul.f32 %v3335_v25, %v2752_v58 }
 0x15d   : > { %v3472_v28 = vadd.f32 1e-05, %v713_v41  ;;  %v3474_v60 = vadd.f32 1e-05, %v714_v44  ;;  %v1083_v36 = vmul.f32 %v880_v14, %v2858_v19  ;;  %v935_v32 = vsub.f32 1.5, %v934_v17 }
 0x15e   : > { %v1087_v30 = vmul.f32 %v920_v54, %v2888_v15  ;;  %v712_v11 = vmul.f32 %v668_v45, %v2752_v58  ;;  %v1088_v56 = vmul.f32 %v930_v52, %v2878_v4  ;;  %v886_v18 = vmul.f32 %v3299_v26, %v885_v35  ;;  %v680_v54 = vpop.xlane.xlu1 %679 }
 0x15f   : > { %vm888_vm6 = vweird.f32 %v3299_v26  ;;  %v993_v27 = vmul.f32 %v3420_v55, %v992_v33  ;;  %vm907_vm7 = vweird.f32 %v3283_v2  ;;  %vm908_vm8 = vweird.f32 %v3369_v13 }
 0x160   : > { %vm937_vm9 = vweird.f32 %v3257_v49  ;;  %vm938_vm10 = vweird.f32 %v3356_v7  ;;  %v945_v19 = vsub.f32 1.5, %v944_v29  ;;  %2394 = vrsqrt.f32 %v3474_v60  ;;  %vm3497_vm11 = vmor %vm887_vm3, %vm888_vm6 }
 0x161   : > { %v3488_v15 = vpop.eup %2392  ;;  %v905_v4 = vsub.f32 1.5, %v904_v31  ;;  %v3490_v25 = vmul.f32 0.5, %v953_v21  ;;  %v3492_v23 = vadd.f32 1e-05, %v710_v0  ;;  %2396 = vrsqrt.f32 %v3472_v28  ;;  %vm3512_vm12 = vmor %vm937_vm9, %vm938_vm10  ;;  %v677_v52 = vpop.xlane.xlu0 %676 }
 0x162   : > { %v936_v41 = vmul.f32 %v3356_v7, %v935_v32  ;;  %v709_v22 = vmul.f32 %v3374_v12, %v2752_v58  ;;  %v3504_v44 = vadd.f32 1e-05, %v712_v11  ;;  %v1122_v14 = vmul.f32 %v3078_v61, %v1087_v30  ;;  %vm3575_vm6 = vmor %vm907_vm7, %vm908_vm8 }
 0x163   : > { %v890_v17 = vsel %vm3497_vm11, %v3299_v26, %v886_v18  ;;  %vm947_vm13 = vweird.f32 %v3337_v39  ;;  %v994_v10 = vmul.f32 0.5, %v993_v27  ;;  %v1123_v57 = vmul.f32 %v3078_v61, %v1088_v56 }
 0x164   : > { %v962_v12 = vmul.f32 %v3488_v15, %v3411_v50  ;;  %v946_v35 = vmul.f32 %v3385_v47, %v945_v19  ;;  %vm948_vm14 = vweird.f32 %v3385_v47  ;;  %2398 = vrsqrt.f32 %v3504_v44 }
 0x165   : > { %v3524_v49 = vmul.f32 %v3369_v13, %v905_v4  ;;  %v955_v26 = vsub.f32 1.5, %v3490_v25  ;;  %v1157_v33 = vadd.f32 %v3096_v53, %v1122_v14  ;;  %v1158_v45 = vadd.f32 %v3096_v53, %v1123_v57  ;;  %vm3546_vm3 = vmor %vm947_vm13, %vm948_vm14 }
 0x166   : > { %v3529_v31 = vpop.eup %2394  ;;  %v1084_v29 = vmul.f32 %v890_v17, %v2864_v9  ;;  %vm957_vm15 = vweird.f32 %v3333_v48  ;;  %vm958_vm1 = vweird.f32 %v3397_v5  ;;  %v940_v21 = vsel %vm3512_vm12, %v3356_v7, %v936_v41 }
 0x167   : > { %2400 = vrsqrt.f32 %v3492_v23  ;;  %v3538_v0 = vadd.f32 1e-05, %v709_v22  ;;  %v3540_v32 = vpop.eup %2396  ;;  %v995_v30 = vsub.f32 1.5, %v994_v10  ;;  %v716_v11 = vmul.f32 %v680_v54, %v2752_v58  ;;  %vm3623_vm10 = vmor %vm957_vm15, %vm958_vm1 }
 0x168   : > { %v1181_v56 = vpack.c.bf16 %v1158_v45, %v1157_v33  ;;  %v1112_v7 = vmul.f32 %v3078_v61, %v3340_v62  ;;  %v963_v18 = vmul.f32 %v3488_v15, %v962_v12  ;;  %v950_v27 = vsel %vm3546_vm3, %v3385_v47, %v946_v35 }
 0x169   : > { %v715_v19 = vmul.f32 %v677_v52, %v2752_v58  ;;  %v1113_v39 = vmul.f32 %v3078_v61, %v3435_v51  ;;  %vm997_vm4 = vweird.f32 %v3372_v6  ;;  %vm998_vm5 = vweird.f32 %v3420_v55  ;;  %v686_v34 = vpop.xlane.xlu0 %685 }
 0x16a   : > { %v1022_v4 = vmul.f32 %v3529_v31, %v3474_v60  ;;  %2066 = vmatmul.msk.bf16.vlgmr.msra.gmra.mxu2 %vm391_vm0, %v1181_v56  ;;  %v1118_v62 = vmul.f32 %v3078_v61, %v1083_v36  ;;  %v2399_v25 = vpop.eup %2398  ;;  %v1012_v47 = vmul.f32 %v3540_v32, %v3472_v28  ;;  %2402 = vrsqrt.f32 %v3538_v0  ;;  %vm3590_vm7 = vmor %vm997_vm4, %vm998_vm5 }
 0x16b   : > { %v1147_v20 = vadd.f32 %v3096_v53, %v1112_v7  ;;  %v1148_v51 = vadd.f32 %v3096_v53, %v1113_v39  ;;  %v1090_v36 = vmul.f32 %v950_v27, %v2912_v16  ;;  %v996_v22 = vmul.f32 %v3420_v55, %v995_v30 }
 0x16c   : > { %v1002_v14 = vmul.f32 %v2399_v25, %v3504_v44  ;;  %v1119_v17 = vmul.f32 %v3078_v61, %v1084_v29  ;;  %v1089_v10 = vmul.f32 %v940_v21, %v2906_v43  ;;  %v964_v57 = vmul.f32 0.5, %v963_v18 }
 0x16d   : > { %v3583_v59 = vpop.eup %2400  ;;  %v3594_v16 = vadd.f32 1e-05, %v715_v19  ;;  %v1176_v12 = vpack.c.bf16 %v1148_v51, %v1147_v20  ;;  %v1023_v35 = vmul.f32 %v3529_v31, %v1022_v4  ;;  %v1153_v33 = vadd.f32 %v3096_v53, %v1118_v62  ;;  %v683_v51 = vpop.xlane.xlu2 %682 }
 0x16e   : > { %v1003_v54 = vmul.f32 %v2399_v25, %v1002_v14  ;;  %v1154_v45 = vadd.f32 %v3096_v53, %v1119_v17  ;;  %v910_v43 = vsel %vm3575_vm6, %v3369_v13, %v3524_v49  ;;  %v3604_v6 = vmul.f32 %v3397_v5, %v955_v26 }
 0x16f   : > { %v1013_v52 = vmul.f32 %v3540_v32, %v1012_v47  ;;  %v3607_v29 = vadd.f32 1e-05, %v716_v11  ;;  %2061 = vmatmul.msk.bf16.gmra.mxu0 %vm391_vm0, %v1176_v12  ;;  %v1000_v21 = vsel %vm3590_vm7, %v3420_v55, %v996_v22  ;;  %v1125_v56 = vmul.f32 %v3078_v61, %v1090_v36 }
 0x170   : > { %v1004_v9 = vmul.f32 0.5, %v1003_v54  ;;  %v1179_v30 = vpack.c.bf16 %v1154_v45, %v1153_v33  ;;  %v3614_v7 = vpop.eup %2402  ;;  %v965_v13 = vsub.f32 1.5, %v964_v57  ;;  %vm967_vm8 = vweird.f32 %v3411_v50 }
 0x171   : > { %vm1007_vm9 = vweird.f32 %v3504_v44  ;;  %2404 = vrsqrt.f32 %v3594_v16  ;;  %v1024_v55 = vmul.f32 0.5, %v1023_v35  ;;  %vm1008_vm11 = vweird.f32 %v2399_v25 }
 0x172   : > { %v1005_v26 = vsub.f32 1.5, %v1004_v9  ;;  %2064 = vmatmul.msk.bf16.gmra.mxu1 %vm391_vm0, %v1179_v30  ;;  %v1124_v11 = vmul.f32 %v3078_v61, %v1089_v10  ;;  %vm968_vm12 = vweird.f32 %v3488_v15  ;;  %v1014_v18 = vmul.f32 0.5, %v1013_v52  ;;  %vm1009_vm13 = vmor %vm1007_vm9, %vm1008_vm11 }
 0x173   : > { %v1095_v27 = vmul.f32 %v1000_v21, %v2954_v40  ;;  %2406 = vrsqrt.f32 %v3607_v29  ;;  %v1086_v48 = vmul.f32 %v910_v43, %v2882_v3  ;;  %v1160_v39 = vadd.f32 %v3096_v53, %v1125_v56  ;;  %vm3651_vm14 = vmor %vm967_vm8, %vm968_vm12 }
 0x174   : > { %v1006_v19 = vmul.f32 %v2399_v25, %v1005_v26  ;;  %v1085_v4 = vmul.f32 %v900_v63, %v2854_v37  ;;  %v960_v62 = vsel %vm3623_vm10, %v3397_v5, %v3604_v6  ;;  %v966_v40 = vmul.f32 %v3488_v15, %v965_v13 }
 0x175   : > { %v972_v3 = vmul.f32 %v3614_v7, %v3538_v0  ;;  %vm1017_vm2 = vweird.f32 %v3472_v28  ;;  %v1025_v37 = vsub.f32 1.5, %v1024_v55  ;;  %v1159_v5 = vadd.f32 %v3096_v53, %v1124_v11 }
 0x176   : > { %v1010_v38 = vsel %vm1009_vm13, %v2399_v25, %v1006_v19  ;;  %v982_v47 = vmul.f32 %v3583_v59, %v3492_v23  ;;  %v1015_v44 = vsub.f32 1.5, %v1014_v18  ;;  %v1130_v50 = vmul.f32 %v3078_v61, %v1095_v27 }
 0x177   : > { %v3657_v63 = vpop.eup %2404  ;;  %v1096_v20 = vmul.f32 %v1010_v38, %v2960_v1  ;;  %vm1027_vm15 = vweird.f32 %v3474_v60  ;;  %vm1028_vm1 = vweird.f32 %v3529_v31  ;;  %v1182_v41 = vpack.c.bf16 %v1160_v39, %v1159_v5  ;;  %v4254_v39 = vld [vmem:[#allocation5_spill] sm:$0xff] }
 0x178   : > { %v1121_v25 = vmul.f32 %v3078_v61, %v1086_v48  ;;  %v970_v22 = vsel %vm3651_vm14, %v3488_v15, %v966_v40  ;;  %v973_v14 = vmul.f32 %v3614_v7, %v972_v3  ;;  %v718_v1 = vmul.f32 %v686_v34, %v2752_v58  ;;  %vm3685_vm4 = vmor %vm1027_vm15, %vm1028_vm1 }
 0x179   : > { %v3666_v36 = vpop.eup %2406  ;;  %v1131_v17 = vmul.f32 %v3078_v61, %v1096_v20  ;;  %vm1018_vm3 = vweird.f32 %v3540_v32  ;;  %v1026_v10 = vmul.f32 %v3529_v31, %v1025_v37  ;;  %v1032_v57 = vmul.f32 %v3657_v63, %v3594_v16 }
 0x17a   : > { %2067 = vmatmul.msk.bf16.gmra.mxu2 %vm391_vm0, %v1182_v41  ;;  %v1120_v2 = vmul.f32 %v3078_v61, %v1085_v4  ;;  %v983_v12 = vmul.f32 %v3583_v59, %v982_v47  ;;  %v717_v35 = vmul.f32 %v683_v51, %v2752_v58  ;;  %v1165_v54 = vadd.f32 %v3096_v53, %v1130_v50  ;;  %vm3699_vm5 = vmor %vm1017_vm2, %vm1018_vm3 }
 0x17b   : > { %v1166_v33 = vadd.f32 %v3096_v53, %v1131_v17  ;;  %v1092_v45 = vmul.f32 %v970_v22, %v2930_v24  ;;  %v1016_v43 = vmul.f32 %v3540_v32, %v1015_v44  ;;  %v1042_v6 = vmul.f32 %v3666_v36, %v3607_v29  ;;  %v4260_v17 = vld [vmem:[#allocation3_spill] sm:$0xff] }
 0x17c   : > { %v1156_v52 = vadd.f32 %v3096_v53, %v1121_v25  ;;  %v974_v58 = vmul.f32 0.5, %v973_v14  ;;  %v3703_v21 = vadd.f32 1e-05, %v718_v1  ;;  %v1091_v30 = vmul.f32 %v960_v62, %v2902_v42 }
 0x17d   : > { %v1185_v9 = vpack.c.bf16 %v1166_v33, %v1165_v54  ;;  %v1030_v24 = vsel %vm3685_vm4, %v3529_v31, %v1026_v10  ;;  %v1033_v56 = vmul.f32 %v3657_v63, %v1032_v57  ;;  %v1155_v13 = vadd.f32 %v3096_v53, %v1120_v2 }
 0x17e   : > { %v984_v49 = vmul.f32 0.5, %v983_v12  ;;  %v3711_v28 = vadd.f32 1e-05, %v717_v35  ;;  %v1020_v55 = vsel %vm3699_vm5, %v3540_v32, %v1016_v43  ;;  %v1043_v26 = vmul.f32 %v3666_v36, %v1042_v6  ;;  %v4261_v35 = vld [vmem:[#allocation7_spill] sm:$0xff]  ;;  %v4262_v43 = vld [vmem:[#allocation6_spill] sm:$0xff] }
 0x17f   : > { %2070 = vmatmul.msk.bf16.vlgmr.msra.gmra.mxu3 %vm391_vm0, %v1185_v9  ;;  %v1180_v42 = vpack.c.bf16 %v1156_v52, %v1155_v13  ;;  %v1127_v11 = vmul.f32 %v3078_v61, %v1092_v45  ;;  %v975_v18 = vsub.f32 1.5, %v974_v58  ;;  %v1098_v31 = vmul.f32 %v1030_v24, %v2978_v46 }
 0x180   : > { %2408 = vrsqrt.f32 %v3703_v21  ;;  %v1034_v27 = vmul.f32 0.5, %v1033_v56  ;;  %v1126_v48 = vmul.f32 %v3078_v61, %v1091_v30  ;;  %v985_v19 = vsub.f32 1.5, %v984_v49 }
 0x181   : > { %v1097_v4 = vmul.f32 %v1020_v55, %v4254_v39  ;;  %2410 = vrsqrt.f32 %v3711_v28  ;;  %vm987_vm6 = vweird.f32 %v3492_v23  ;;  %vm988_vm7 = vweird.f32 %v3583_v59 }
 0x182   : > { %2065 = vmatmul.msk.bf16.gmra.mxu1 %vm391_vm0, %v1180_v42  ;;  %v1044_v32 = vmul.f32 0.5, %v1043_v26  ;;  %v1162_v62 = vadd.f32 %v3096_v53, %v1127_v11  ;;  %v976_v46 = vmul.f32 %v3614_v7, %v975_v18  ;;  %vm977_vm8 = vweird.f32 %v3538_v0  ;;  %vm3734_vm10 = vmor %vm987_vm6, %vm988_vm7  ;;  %v4263_v11 = vld [vmem:[#allocation9_spill] sm:$0xff] }
 0x183   : > { %vm978_vm9 = vweird.f32 %v3614_v7  ;;  %v1133_v40 = vmul.f32 %v3078_v61, %v1098_v31  ;;  %v1035_v3 = vsub.f32 1.5, %v1034_v27  ;;  %v1161_v8 = vadd.f32 %v3096_v53, %v1126_v48  ;;  %v4264_v31 = vld [vmem:[#allocation8_spill] sm:$0xff] }
 0x184   : > { %v986_v38 = vmul.f32 %v3583_v59, %v985_v19  ;;  %v1132_v34 = vmul.f32 %v3078_v61, %v1097_v4  ;;  %vm3739_vm11 = vmor %vm977_vm8, %vm978_vm9  ;;  %v1045_v0 = vsub.f32 1.5, %v1044_v32  ;;  %vm1037_vm12 = vweird.f32 %v3594_v16 }
 0x185   : > { %vm1038_vm13 = vweird.f32 %v3657_v63  ;;  %v1183_v47 = vpack.c.bf16 %v1162_v62, %v1161_v8  ;;  %v980_v20 = vsel %vm3739_vm11, %v3614_v7, %v976_v46  ;;  %v1168_v50 = vadd.f32 %v3096_v53, %v1133_v40  ;;  %v4259_v7 = vld [vmem:[#allocation4_spill] sm:$0xff] }
 0x186   : > { %v2409_v37 = vpop.eup %2408  ;;  %vm1047_vm14 = vweird.f32 %v3607_v29  ;;  %vm1048_vm2 = vweird.f32 %v3666_v36  ;;  %v1036_v51 = vmul.f32 %v3657_v63, %v1035_v3  ;;  %v990_v16 = vsel %vm3734_vm10, %v3583_v59, %v986_v38  ;;  %vm1039_vm15 = vmor %vm1037_vm12, %vm1038_vm13 }
 0x187   : > { %v2411_v44 = vpop.eup %2410  ;;  %v1062_v41 = vmul.f32 %v2409_v37, %v3703_v21  ;;  %v1167_v25 = vadd.f32 %v3096_v53, %v1132_v34  ;;  %v1093_v22 = vmul.f32 %v980_v20, %v4259_v7  ;;  %v1046_v14 = vmul.f32 %v3666_v36, %v1045_v0  ;;  %vm1049_vm1 = vmor %vm1047_vm14, %vm1048_vm2 }
 0x188   : > { %v1052_v29 = vmul.f32 %v2411_v44, %v3711_v28  ;;  %v1094_v10 = vmul.f32 %v990_v16, %v4260_v17  ;;  %v1040_v57 = vsel %vm1039_vm15, %v3657_v63, %v1036_v51  ;;  %vm1067_vm3 = vweird.f32 %v3703_v21 }
 0x189   : > { %v1186_v1 = vpack.c.bf16 %v1168_v50, %v1167_v25  ;;  %v1063_v2 = vmul.f32 %v2409_v37, %v1062_v41  ;;  %v1050_v59 = vsel %vm1049_vm1, %v3666_v36, %v1046_v14  ;;  %v1128_v15 = vmul.f32 %v3078_v61, %v1093_v22 }
 0x18a   : > { %2068 = vmatmul.msk.bf16.gmra.mxu2 %vm391_vm0, %v1183_v47  ;;  %v1053_v12 = vmul.f32 %v2411_v44, %v1052_v29  ;;  %v1099_v54 = vmul.f32 %v1040_v57, %v4261_v35  ;;  %v1129_v45 = vmul.f32 %v3078_v61, %v1094_v10  ;;  %v1100_v6 = vmul.f32 %v1050_v59, %v4262_v43 }
 0x18b   : > { %v1064_v33 = vmul.f32 0.5, %v1063_v2  ;;  %v1163_v60 = vadd.f32 %v3096_v53, %v1128_v15  ;;  %vm1068_vm4 = vweird.f32 %v2409_v37  ;;  %vm1057_vm5 = vweird.f32 %v3711_v28 }
 0x18c   : > { %v1054_v52 = vmul.f32 0.5, %v1053_v12  ;;  %v1134_v63 = vmul.f32 %v3078_v61, %v1099_v54  ;;  %v1164_v9 = vadd.f32 %v3096_v53, %v1129_v45  ;;  %v1135_v36 = vmul.f32 %v3078_v61, %v1100_v6  ;;  %vm1069_vm7 = vmor %vm1067_vm3, %vm1068_vm4 }
 0x18d   : > { %v1065_v58 = vsub.f32 1.5, %v1064_v33  ;;  %vm1058_vm6 = vweird.f32 %v2411_v44  ;;  %vm1398_vm9 = vcmask 125952  }
 0x18e   : > { %v1055_v30 = vsub.f32 1.5, %v1054_v52  ;;  %v1184_v24 = vpack.c.bf16 %v1164_v9, %v1163_v60  ;;  %v1169_v56 = vadd.f32 %v3096_v53, %v1134_v63  ;;  %v1170_v49 = vadd.f32 %v3096_v53, %v1135_v36  ;;  %vm1059_vm8 = vmor %vm1057_vm5, %vm1058_vm6 }
 0x18f   : > { %2071 = vmatmul.msk.bf16.gmra.mxu3 %vm391_vm0, %v1186_v1  ;;  %v1066_v13 = vmul.f32 %v2409_v37, %v1065_v58 }
 0x190   : > { %v1056_v55 = vmul.f32 %v2411_v44, %v1055_v30  ;;  %v1187_v26 = vpack.c.bf16 %v1170_v49, %v1169_v56 }
 0x191   : > { %v1070_v42 = vsel %vm1069_vm7, %v2409_v37, %v1066_v13 }
 0x192   : > { %v1060_v21 = vsel %vm1059_vm8, %v2411_v44, %v1056_v55  ;;  %v1102_v18 = vmul.f32 %v1070_v42, %v4263_v11 }
 0x193   : > { %v1101_v27 = vmul.f32 %v1060_v21, %v4264_v31 }
 0x194   : > { %v1137_v28 = vmul.f32 %v3078_v61, %v1102_v18 }
 0x195   : > { %v1136_v48 = vmul.f32 %v3078_v61, %v1101_v27 }
 0x196   : > { %v1172_v19 = vadd.f32 %v3096_v53, %v1137_v28 }
 0x197   : > { %v1171_v39 = vadd.f32 %v3096_v53, %v1136_v48 }
 0x199   : > { %v1188_v4 = vpack.c.bf16 %v1172_v19, %v1171_v39 }
 0x19a   : > { %2069 = vmatmul.msk.bf16.gmra.mxu2 %vm391_vm0, %v1184_v24 }
 0x19f   : > { %2072 = vmatmul.msk.bf16.gmra.mxu3 %vm391_vm0, %v1187_v26 }
 0x1af   : > { %2073 = vmatmul.msk.bf16.gmra.mxu3 %vm391_vm0, %v1188_v4 }
 0x1b5   : > { %v1254_v32 = vpop.f32.mrf.mxu0 }
 0x1b6   : > { %v1334_v62 = vmul.f32 0.25, %v1254_v32  ;;  %v1627_v46 = vpack.c.bf16 %v1254_v32, %v1254_v32 }
 0x1b8   : > { %v1366_v40 = vpack.c.bf16 %v1334_v62, %v1334_v62  ;;  %1691 = vrot.lane.b32.xlu0 %v1627_v46, %s2469_s18 }
 0x1ba   : > { %1399 = vst.msk [vmem:[%s3790_s16] sm:$0xf] %vm1398_vm9, %v1366_v40 }
 0x1bd   : > { %v1256_v61 = vpop.f32.mrf.mxu0 }
 0x1be   : > { %v2222_v53 = vpack.i.bf16 %v1256_v61, %v1254_v32  ;;  %v1335_v3 = vmul.f32 0.25, %v1256_v61  ;;  %v1628_v8 = vpack.c.bf16 %v1256_v61, %v1256_v61 }
 0x1c0   : > { %v1367_v37 = vpack.c.bf16 %v1335_v3, %v1335_v3  ;;  %2223 = vrot.lane.b32.xlu1 %v2222_v53, %s2470_s19  ;;  %1693 = vrot.lane.b32.xlu2 %v1628_v8, %s2469_s18 }
 0x1c2   : > { %1400 = vst.msk [vmem:[%s3790_s16 + $0x4] sm:$0xf] %vm1398_vm9, %v1367_v37 }
 0x1c5   : > { %v3799_v38 = vpop.f32.mrf.mxu0  ;;  %v1274_v34 = vpop.f32.mrf.mxu1 }
 0x1c6   : > { %v1336_v23 = vmul.f32 0.25, %v3799_v38  ;;  %v1342_v0 = vmul.f32 0.25, %v1274_v34  ;;  %v1635_v47 = vpack.c.bf16 %v1274_v34, %v1274_v34  ;;  %v1629_v19 = vpack.c.bf16 %v3799_v38, %v3799_v38 }
 0x1c8   : > { %v1368_v5 = vpack.c.bf16 %v1336_v23, %v1336_v23  ;;  %v1374_v44 = vpack.c.bf16 %v1342_v0, %v1342_v0  ;;  %1707 = vrot.lane.b32.xlu0 %v1635_v47, %s2469_s18 }
 0x1ca   : > { %1401 = vst.msk [vmem:[%s3790_s16 + $0x8] sm:$0xf] %vm1398_vm9, %v1368_v5 }
 0x1cb   : > { %1407 = vst.msk [vmem:[%s3790_s16 + $0x20] sm:$0xf] %vm1398_vm9, %v1374_v44 }
 0x1cd   : > { %v3807_v20 = vpop.f32.mrf.mxu0  ;;  %v1276_v41 = vpop.f32.mrf.mxu1 }
 0x1ce   : > { %v2242_v50 = vpack.i.bf16 %v3807_v20, %v3799_v38  ;;  %v1337_v51 = vmul.f32 0.25, %v3807_v20  ;;  %v2227_v25 = vpack.i.bf16 %v1276_v41, %v1274_v34  ;;  %v1343_v7 = vmul.f32 0.25, %v1276_v41 }
 0x1cf   : > { %v1636_v22 = vpack.c.bf16 %v1276_v41, %v1276_v41  ;;  %v1630_v38 = vpack.c.bf16 %v3807_v20, %v3807_v20 }
 0x1d0   : > { %v1369_v16 = vpack.c.bf16 %v1337_v51, %v1337_v51  ;;  %v1375_v14 = vpack.c.bf16 %v1343_v7, %v1343_v7  ;;  %2228 = vrot.lane.b32.xlu1 %v2227_v25, %s2470_s19 }
 0x1d1   : > { %1709 = vrot.lane.b32.xlu2 %v1636_v22, %s2469_s18 }
 0x1d2   : > { %1402 = vst.msk [vmem:[%s3790_s16 + $0xc] sm:$0xf] %vm1398_vm9, %v1369_v16 }
 0x1d3   : > { %1408 = vst.msk [vmem:[%s3790_s16 + $0x24] sm:$0xf] %vm1398_vm9, %v1375_v14 }
 0x1d5   : > { %v3818_v29 = vpop.f32.mrf.mxu0 }
 0x1d6   : > { %v1338_v1 = vmul.f32 0.25, %v3818_v29 }
 0x1d8   : > { %v1370_v17 = vpack.c.bf16 %v1338_v1, %v1338_v1  ;;  %v3821_v10 = vpop.f32.mrf.mxu1 }
 0x1d9   : > { %v1344_v57 = vmul.f32 0.25, %v3821_v10  ;;  %v1637_v8 = vpack.c.bf16 %v3821_v10, %v3821_v10 }
 0x1da   : > { %1403 = vst.msk [vmem:[%s3790_s16 + $0x10] sm:$0xf] %vm1398_vm9, %v1370_v17 }
 0x1db   : > { %v1376_v2 = vpack.c.bf16 %v1344_v57, %v1344_v57 }
 0x1dd   : > { %v3826_v59 = vpop.f32.mrf.mxu0  ;;  %1409 = vst.msk [vmem:[%s3790_s16 + $0x28] sm:$0xf] %vm1398_vm9, %v1376_v2 }
 0x1de   : > { %v2262_v12 = vpack.i.bf16 %v3826_v59, %v3818_v29  ;;  %v1339_v15 = vmul.f32 0.25, %v3826_v59 }
 0x1e0   : > { %v1371_v35 = vpack.c.bf16 %v1339_v15, %v1339_v15  ;;  %v3833_v54 = vpop.f32.mrf.mxu1 }
 0x1e1   : > { %v1345_v33 = vmul.f32 0.25, %v3833_v54  ;;  %v2247_v25 = vpack.i.bf16 %v3833_v54, %v3821_v10 }
 0x1e2   : > { %1404 = vst.msk [vmem:[%s3790_s16 + $0x14] sm:$0xf] %vm1398_vm9, %v1371_v35 }
 0x1e3   : > { %v1377_v45 = vpack.c.bf16 %v1345_v33, %v1345_v33 }
 0x1e5   : > { %1410 = vst.msk [vmem:[%s3790_s16 + $0x2c] sm:$0xf] %vm1398_vm9, %v1377_v45 }
 0x1ec   : > { %v3840_v43 = vpop.f32.mrf.mxu0 }
 0x1ed   : > { %v1294_v6 = vpop.f32.mrf.mxu2  ;;  %v1340_v52 = vmul.f32 0.25, %v3840_v43 }
 0x1ee   : > { %v1350_v60 = vmul.f32 0.25, %v1294_v6  ;;  %v1643_v63 = vpack.c.bf16 %v1294_v6, %v1294_v6 }
 0x1ef   : > { %v1372_v58 = vpack.c.bf16 %v1340_v52, %v1340_v52  ;;  %v3843_v9 = vpop.f32.mrf.mxu1 }
 0x1f0   : > { %v1382_v36 = vpack.c.bf16 %v1350_v60, %v1350_v60  ;;  %v1346_v30 = vmul.f32 0.25, %v3843_v9  ;;  %1723 = vrot.lane.b32.xlu0 %v1643_v63, %s2469_s18 }
 0x1f1   : > { %1405 = vst.msk [vmem:[%s3790_s16 + $0x18] sm:$0xf] %vm1398_vm9, %v1372_v58  ;;  %v1631_v58 = vpack.c.bf16 %v3818_v29, %v3818_v29 }
 0x1f2   : > { %1415 = vst.msk [vmem:[%s3790_s16 + $0x40] sm:$0xf] %vm1398_vm9, %v1382_v36  ;;  %v1378_v24 = vpack.c.bf16 %v1346_v30, %v1346_v30 }
 0x1f4   : > { %1411 = vst.msk [vmem:[%s3790_s16 + $0x30] sm:$0xf] %vm1398_vm9, %v1378_v24  ;;  %v3853_v56 = vpop.f32.mrf.mxu0 }
 0x1f5   : > { %v1296_v13 = vpop.f32.mrf.mxu2  ;;  %v2282_v49 = vpack.i.bf16 %v3853_v56, %v3840_v43  ;;  %v1341_v55 = vmul.f32 0.25, %v3853_v56 }
 0x1f6   : > { %v2232_v26 = vpack.i.bf16 %v1296_v13, %v1294_v6  ;;  %v1351_v42 = vmul.f32 0.25, %v1296_v13  ;;  %v1644_v1 = vpack.c.bf16 %v1296_v13, %v1296_v13 }
 0x1f7   : > { %v1373_v21 = vpack.c.bf16 %v1341_v55, %v1341_v55  ;;  %v3858_v11 = vpop.f32.mrf.mxu1 }
 0x1f8   : > { %v1383_v18 = vpack.c.bf16 %v1351_v42, %v1351_v42  ;;  %v2267_v31 = vpack.i.bf16 %v3858_v11, %v3843_v9  ;;  %v1347_v27 = vmul.f32 0.25, %v3858_v11  ;;  %2233 = vrot.lane.b32.xlu0 %v2232_v26, %s2470_s19  ;;  %v1639_v42 = vpack.c.bf16 %v3843_v9, %v3843_v9 }
 0x1f9   : > { %1406 = vst.msk [vmem:[%s3790_s16 + $0x1c] sm:$0xf] %vm1398_vm9, %v1373_v21  ;;  %v1640_v9 = vpack.c.bf16 %v3858_v11, %v3858_v11  ;;  %v1634_v11 = vpack.c.bf16 %v3853_v56, %v3853_v56 }
 0x1fa   : > { %1416 = vst.msk [vmem:[%s3790_s16 + $0x44] sm:$0xf] %vm1398_vm9, %v1383_v18  ;;  %v1379_v28 = vpack.c.bf16 %v1347_v27, %v1347_v27 }
 0x1fc   : > { %1412 = vst.msk [vmem:[%s3790_s16 + $0x34] sm:$0xf] %vm1398_vm9, %v1379_v28 }
 0x1fd   : > { %v3870_v48 = vpop.f32.mrf.mxu2 }
 0x1fe   : > { %v1352_v39 = vmul.f32 0.25, %v3870_v48  ;;  %v1645_v2 = vpack.c.bf16 %v3870_v48, %v3870_v48 }
 0x1ff   : > { %v3875_v4 = vpop.f32.mrf.mxu1 }
 0x200   : > { %v1384_v32 = vpack.c.bf16 %v1352_v39, %v1352_v39  ;;  %v1348_v62 = vmul.f32 0.25, %v3875_v4  ;;  %1695 = vrot.lane.b32.xlu0 %v1629_v19, %s2469_s18  ;;  %v1638_v19 = vpack.c.bf16 %v3833_v54, %v3833_v54 }
 0x202   : > { %1417 = vst.msk [vmem:[%s3790_s16 + $0x48] sm:$0xf] %vm1398_vm9, %v1384_v32  ;;  %v1380_v46 = vpack.c.bf16 %v1348_v62, %v1348_v62  ;;  %v3881_v40 = vpop.f32.mrf.mxu3 }
 0x203   : > { %v1358_v61 = vmul.f32 0.25, %v3881_v40 }
 0x204   : > { %1413 = vst.msk [vmem:[%s3790_s16 + $0x38] sm:$0xf] %vm1398_vm9, %v1380_v46 }
 0x205   : > { %v3886_v53 = vpop.f32.mrf.mxu2  ;;  %v1390_v3 = vpack.c.bf16 %v1358_v61, %v1358_v61 }
 0x206   : > { %v1353_v37 = vmul.f32 0.25, %v3886_v53  ;;  %v2252_v46 = vpack.i.bf16 %v3886_v53, %v3870_v48 }
 0x207   : > { %1423 = vst.msk [vmem:[%s3790_s16 + $0x60] sm:$0xf] %vm1398_vm9, %v1390_v3  ;;  %v3893_v23 = vpop.f32.mrf.mxu1 }
 0x208   : > { %v1385_v34 = vpack.c.bf16 %v1353_v37, %v1353_v37  ;;  %v1349_v5 = vmul.f32 0.25, %v3893_v23  ;;  %1711 = vrot.lane.b32.xlu0 %v1637_v8, %s2469_s18  ;;  %v2287_v39 = vpack.i.bf16 %v3893_v23, %v3875_v4  ;;  %v1646_v37 = vpack.c.bf16 %v3886_v53, %v3886_v53 }
 0x209   : > { %v1641_v53 = vpack.c.bf16 %v3875_v4, %v3875_v4 }
 0x20a   : > { %1418 = vst.msk [vmem:[%s3790_s16 + $0x4c] sm:$0xf] %vm1398_vm9, %v1385_v34  ;;  %v1381_v0 = vpack.c.bf16 %v1349_v5, %v1349_v5  ;;  %v3899_v47 = vpop.f32.mrf.mxu3 }
 0x20b   : > { %v2237_v44 = vpack.i.bf16 %v3899_v47, %v3881_v40  ;;  %v1359_v51 = vmul.f32 0.25, %v3899_v47 }
 0x20c   : > { %1414 = vst.msk [vmem:[%s3790_s16 + $0x3c] sm:$0xf] %vm1398_vm9, %v1381_v0  ;;  %v1633_v0 = vpack.c.bf16 %v3840_v43, %v3840_v43 }
 0x20d   : > { %v3906_v41 = vpop.f32.mrf.mxu2  ;;  %v1391_v16 = vpack.c.bf16 %v1359_v51, %v1359_v51  ;;  %2238 = vrot.lane.b32.xlu2 %v2237_v44, %s2470_s19  ;;  %v1632_v44 = vpack.c.bf16 %v3826_v59, %v3826_v59 }
 0x20e   : > { %v1354_v7 = vmul.f32 0.25, %v3906_v41 }
 0x20f   : > { %1424 = vst.msk [vmem:[%s3790_s16 + $0x64] sm:$0xf] %vm1398_vm9, %v1391_v16 }
 0x210   : > { %v1386_v22 = vpack.c.bf16 %v1354_v7, %v1354_v7  ;;  %2248 = vrot.lane.b32.xlu0 %v2247_v25, %s2470_s19  ;;  %v1642_v25 = vpack.c.bf16 %v3893_v23, %v3893_v23 }
 0x212   : > { %1419 = vst.msk [vmem:[%s3790_s16 + $0x50] sm:$0xf] %vm1398_vm9, %v1386_v22  ;;  %v3917_v14 = vpop.f32.mrf.mxu3 }
 0x213   : > { %v1360_v17 = vmul.f32 0.25, %v3917_v14 }
 0x215   : > { %v3926_v10 = vpop.f32.mrf.mxu2  ;;  %v1392_v57 = vpack.c.bf16 %v1360_v17, %v1360_v17  ;;  %1725 = vrot.lane.b32.xlu2 %v1644_v1, %s2469_s18  ;;  %v1653_v1 = vpack.c.bf16 %v3917_v14, %v3917_v14 }
 0x216   : > { %v1355_v15 = vmul.f32 0.25, %v3926_v10  ;;  %v1648_v23 = vpack.c.bf16 %v3926_v10, %v3926_v10 }
 0x217   : > { %1425 = vst.msk [vmem:[%s3790_s16 + $0x68] sm:$0xf] %vm1398_vm9, %v1392_v57 }
 0x218   : > { %v1387_v33 = vpack.c.bf16 %v1355_v15, %v1355_v15  ;;  %1727 = vrot.lane.b32.xlu0 %v1645_v2, %s2469_s18 }
 0x21a   : > { %v1694_v35 = vpop.permute.xlu2 %1693  ;;  %1420 = vst.msk [vmem:[%s3790_s16 + $0x54] sm:$0xf] %vm1398_vm9, %v1387_v33  ;;  %v3939_v45 = vpop.f32.mrf.mxu3 }
 0x21b   : > { %1788 = vst.msk [vmem:[%s3924_s7 + $0x4] sm:$0xf] %vm1398_vm9, %v1694_v35  ;;  %v2257_v6 = vpack.i.bf16 %v3939_v45, %v3917_v14  ;;  %v1361_v52 = vmul.f32 0.25, %v3939_v45 }
 0x21d   : > { %v3944_v60 = vpop.f32.mrf.mxu2  ;;  %v1393_v63 = vpack.c.bf16 %v1361_v52, %v1361_v52  ;;  %2243 = vrot.lane.b32.xlu2 %v2242_v50, %s2470_s19  ;;  %2258 = vrot.lane.b32.xlu1 %v2257_v6, %s2470_s19  ;;  %v2272_v50 = vpack.i.bf16 %v3926_v10, %v3906_v41  ;;  %v1652_v10 = vpack.c.bf16 %v3899_v47, %v3899_v47 }
 0x21e   : > { %v1356_v36 = vmul.f32 0.25, %v3944_v60  ;;  %v1649_v59 = vpack.c.bf16 %v3944_v60, %v3944_v60 }
 0x21f   : > { %1426 = vst.msk [vmem:[%s3790_s16 + $0x6c] sm:$0xf] %vm1398_vm9, %v1393_v63  ;;  %v1654_v63 = vpack.c.bf16 %v3939_v45, %v3939_v45 }
 0x220   : > { %v1388_v30 = vpack.c.bf16 %v1356_v36, %v1356_v36  ;;  %1699 = vrot.lane.b32.xlu0 %v1631_v58, %s2469_s18 }
 0x222   : > { %1421 = vst.msk [vmem:[%s3790_s16 + $0x58] sm:$0xf] %vm1398_vm9, %v1388_v30  ;;  %v3959_v24 = vpop.f32.mrf.mxu3 }
 0x223   : > { %v1362_v13 = vmul.f32 0.25, %v3959_v24  ;;  %v1655_v14 = vpack.c.bf16 %v3959_v24, %v3959_v24 }
 0x225   : > { %v3966_v55 = vpop.f32.mrf.mxu2  ;;  %v1394_v26 = vpack.c.bf16 %v1362_v13, %v1362_v13  ;;  %1697 = vrot.lane.b32.xlu2 %v1630_v38, %s2469_s18  ;;  %2273 = vrot.lane.b32.xlu1 %v2272_v50, %s2470_s19 }
 0x226   : > { %v1357_v21 = vmul.f32 0.25, %v3966_v55  ;;  %v2292_v51 = vpack.i.bf16 %v3966_v55, %v3944_v60 }
 0x227   : > { %1427 = vst.msk [vmem:[%s3790_s16 + $0x70] sm:$0xf] %vm1398_vm9, %v1394_v26 }
 0x228   : > { %v1389_v18 = vpack.c.bf16 %v1357_v21, %v1357_v21  ;;  %1715 = vrot.lane.b32.xlu0 %v1639_v42, %s2469_s18 }
 0x22a   : > { %v1692_v20 = vpop.permute.xlu0 %1691  ;;  %1422 = vst.msk [vmem:[%s3790_s16 + $0x5c] sm:$0xf] %vm1398_vm9, %v1389_v18  ;;  %v3980_v27 = vpop.f32.mrf.mxu3 }
 0x22b   : > { %1787 = vst.msk [vmem:[%s3924_s7] sm:$0xf] %vm1398_vm9, %v1692_v20  ;;  %v1710_v28 = vpop.permute.xlu2 %1709  ;;  %v1363_v32 = vmul.f32 0.25, %v3980_v27  ;;  %v2277_v8 = vpack.i.bf16 %v3980_v27, %v3959_v24 }
 0x22c   : > { %1796 = vst.msk [vmem:[%s3924_s7 + $0x24] sm:$0xf] %vm1398_vm9, %v1710_v28 }
 0x22d   : > { %v1395_v62 = vpack.c.bf16 %v1363_v32, %v1363_v32  ;;  %1713 = vrot.lane.b32.xlu2 %v1638_v19, %s2469_s18  ;;  %2288 = vrot.lane.b32.xlu1 %v2287_v39, %s2470_s19  ;;  %v1656_v19 = vpack.c.bf16 %v3980_v27, %v3980_v27 }
 0x22f   : > { %1428 = vst.msk [vmem:[%s3790_s16 + $0x74] sm:$0xf] %vm1398_vm9, %v1395_v62 }
 0x230   : > { %2263 = vrot.lane.b32.xlu0 %v2262_v12, %s2470_s19 }
 0x232   : > { %v3997_v54 = vpop.f32.mrf.mxu3  ;;  %v2224_v43 = vpop.permute.xlu1 %2223 }
 0x233   : > { %v1364_v61 = vmul.f32 0.25, %v3997_v54  ;;  %v2225_v7 = vunpack.i.l.bf16 %v2224_v43  ;;  %v2226_v2 = vunpack.i.h.bf16 %v2224_v43  ;;  %v1657_v6 = vpack.c.bf16 %v3997_v54, %v3997_v54 }
 0x235   : > { %v1396_v3 = vpack.c.bf16 %v1364_v61, %v1364_v61  ;;  %2253 = vrot.lane.b32.xlu2 %v2252_v46, %s2470_s19  ;;  %v1650_v61 = vpack.c.bf16 %v3966_v55, %v3966_v55 }
 0x237   : > { %1429 = vst.msk [vmem:[%s3790_s16 + $0x78] sm:$0xf] %vm1398_vm9, %v1396_v3 }
 0x238   : > { %2278 = vrot.lane.b32.xlu0 %v2277_v8, %s2470_s19 }
 0x23a   : > { %v4008_v29 = vpop.f32.mrf.mxu3  ;;  %v1708_v12 = vpop.permute.xlu0 %1707 }
 0x23b   : > { %v2297_v48 = vpack.i.bf16 %v4008_v29, %v3997_v54  ;;  %v1365_v34 = vmul.f32 0.25, %v4008_v29  ;;  %1795 = vst.msk [vmem:[%s3924_s7 + $0x20] sm:$0xf] %vm1398_vm9, %v1708_v12  ;;  %v1658_v12 = vpack.c.bf16 %v4008_v29, %v4008_v29 }
 0x23d   : > { %v1397_v5 = vpack.c.bf16 %v1365_v34, %v1365_v34  ;;  %1729 = vrot.lane.b32.xlu2 %v1646_v37, %s2469_s18 }
 0x23f   : > { %1430 = vst.msk [vmem:[%s3790_s16 + $0x7c] sm:$0xf] %vm1398_vm9, %v1397_v5 }
 0x240   : > { %1703 = vrot.lane.b32.xlu0 %v1633_v0, %s2469_s18 }
 0x242   : > { %v4088_v58 = vpop.permute.xlu1 %2228 }
 0x245   : > { %2268 = vrot.lane.b32.xlu2 %v2267_v31, %s2470_s19  ;;  %v1647_v31 = vpack.c.bf16 %v3906_v41, %v3906_v41  ;;  %v1651_v41 = vpack.c.bf16 %v3881_v40, %v3881_v40 }
 0x248   : > { %1719 = vrot.lane.b32.xlu0 %v1641_v53, %s2469_s18 }
 0x24d   : > { %1701 = vrot.lane.b32.xlu2 %v1632_v44, %s2469_s18 }
 0x250   : > { %2293 = vrot.lane.b32.xlu0 %v2292_v51, %s2470_s19 }
 0x255   : > { %1717 = vrot.lane.b32.xlu2 %v1640_v9, %s2469_s18 }
 0x258   : > { %1731 = vrot.lane.b32.xlu0 %v1647_v31, %s2469_s18 }
 0x25d   : > { %2283 = vrot.lane.b32.xlu2 %v2282_v49, %s2470_s19 }
 0x260   : > { %1735 = vrot.lane.b32.xlu0 %v1649_v59, %s2469_s18 }
 0x262   : > { %v1724_v4 = vpop.permute.xlu0 %1723 }
 0x263   : > { %1803 = vst.msk [vmem:[%s3924_s7 + $0x40] sm:$0xf] %vm1398_vm9, %v1724_v4 }
 0x265   : > { %1705 = vrot.lane.b32.xlu2 %v1634_v11, %s2469_s18 }
 0x267   : > { %v4056_v16 = vpop.permute.xlu2 %2238 }
 0x268   : > { %1739 = vrot.lane.b32.xlu0 %v1651_v41, %s2469_s18 }
 0x26a   : > { %v2234_v49 = vpop.permute.xlu0 %2233 }
 0x26b   : > { %v2235_v56 = vunpack.i.l.bf16 %v2234_v49  ;;  %v2236_v17 = vunpack.i.h.bf16 %v2234_v49 }
 0x26d   : > { %v2302_v22 = vpack.i.bf16 %v2235_v56, %v2225_v7  ;;  %1721 = vrot.lane.b32.xlu2 %v1642_v25, %s2469_s18  ;;  %v2304_v15 = vpack.i.bf16 %v2236_v17, %v2226_v2 }
 0x26f   : > { %2303 = vxpose.xlu1.b32.start [1/16] (narrow) %v2302_v22, 16  ;;  %v1726_v40 = vpop.permute.xlu2 %1725 }
 0x270   : > { %1743 = vrot.lane.b32.xlu0 %v1653_v1, %s2469_s18  ;;  %1804 = vst.msk [vmem:[%s3924_s7 + $0x44] sm:$0xf] %vm1398_vm9, %v1726_v40 }
 0x272   : > { %v1696_v57 = vpop.permute.xlu0 %1695 }
 0x273   : > { %1789 = vst.msk [vmem:[%s3924_s7 + $0x8] sm:$0xf] %vm1398_vm9, %v1696_v57 }
 0x275   : > { %1733 = vrot.lane.b32.xlu2 %v1648_v23, %s2469_s18 }
 0x277   : > { %2305 = vxpose.xlu1.b32.cont [2/16] (narrow) %v2304_v15, 16  ;;  %v2244_v35 = vpop.permute.xlu2 %2243 }
 0x278   : > { %1747 = vrot.lane.b32.xlu0 %v1655_v14, %s2469_s18  ;;  %v2245_v30 = vunpack.i.l.bf16 %v2244_v35  ;;  %v2246_v62 = vunpack.i.h.bf16 %v2244_v35  ;;  %v2240_v14 = vunpack.i.l.bf16 %v4056_v16 }
 0x27a   : > { %v1712_v33 = vpop.permute.xlu0 %1711 }
 0x27b   : > { %1797 = vst.msk [vmem:[%s3924_s7 + $0x28] sm:$0xf] %vm1398_vm9, %v1712_v33  ;;  %v2230_v33 = vunpack.i.l.bf16 %v4088_v58 }
 0x27d   : > { %1741 = vrot.lane.b32.xlu2 %v1652_v10, %s2469_s18  ;;  %v2318_v10 = vpack.i.bf16 %v2240_v14, %v2230_v33 }
 0x27f   : > { %v1698_v52 = vpop.permute.xlu2 %1697 }
 0x280   : > { %1751 = vrot.lane.b32.xlu0 %v1657_v6, %s2469_s18  ;;  %1790 = vst.msk [vmem:[%s3924_s7 + $0xc] sm:$0xf] %vm1398_vm9, %v1698_v52  ;;  %v2241_v52 = vunpack.i.h.bf16 %v4056_v16 }
 0x282   : > { %v2249_v60 = vpop.permute.xlu0 %2248 }
 0x283   : > { %v2251_v24 = vunpack.i.h.bf16 %v2249_v60  ;;  %v2250_v50 = vunpack.i.l.bf16 %v2249_v60 }
 0x285   : > { %1745 = vrot.lane.b32.xlu2 %v1654_v63, %s2469_s18  ;;  %v2231_v63 = vunpack.i.h.bf16 %v4088_v58 }
 0x287   : > { %v1714_v47 = vpop.permute.xlu2 %1713 }
 0x288   : > { %1798 = vst.msk [vmem:[%s3924_s7 + $0x2c] sm:$0xf] %vm1398_vm9, %v1714_v47  ;;  %v2320_v47 = vpack.i.bf16 %v2241_v52, %v2231_v63 }
 0x28a   : > { %v1728_v36 = vpop.permute.xlu0 %1727 }
 0x28b   : > { %1805 = vst.msk [vmem:[%s3924_s7 + $0x48] sm:$0xf] %vm1398_vm9, %v1728_v36 }
 0x28d   : > { %2298 = vrot.lane.b32.xlu2 %v2297_v48, %s2470_s19 }
 0x28f   : > { %v2254_v38 = vpop.permute.xlu2 %2253  ;;  %v2259_v45 = vpop.permute.xlu1 %2258 }
 0x290   : > { %v2255_v13 = vunpack.i.l.bf16 %v2254_v38  ;;  %v2261_v26 = vunpack.i.h.bf16 %v2259_v45  ;;  %v2260_v42 = vunpack.i.l.bf16 %v2259_v45  ;;  %v2256_v39 = vunpack.i.h.bf16 %v2254_v38 }
 0x292   : > { %v2306_v21 = vpack.i.bf16 %v2255_v13, %v2245_v30  ;;  %v4098_v20 = vpack.i.bf16 %v2261_v26, %v2251_v24  ;;  %v4100_v18 = vpack.i.bf16 %v2260_v42, %v2250_v50  ;;  %v1700_v28 = vpop.permute.xlu0 %1699  ;;  %v2308_v54 = vpack.i.bf16 %v2256_v39, %v2246_v62 }
 0x293   : > { %1791 = vst.msk [vmem:[%s3924_s7 + $0x10] sm:$0xf] %vm1398_vm9, %v1700_v28 }
 0x294   : > { %2307 = vxpose.xlu1.b32.cont [3/16] (narrow) %v2306_v21, 16 }
 0x295   : > { %1749 = vrot.lane.b32.xlu2 %v1656_v19, %s2469_s18 }
 0x297   : > { %v1730_v32 = vpop.permute.xlu2 %1729  ;;  %v2274_v3 = vpop.permute.xlu1 %2273 }
 0x298   : > { %1806 = vst.msk [vmem:[%s3924_s7 + $0x4c] sm:$0xf] %vm1398_vm9, %v1730_v32  ;;  %v2275_v37 = vunpack.i.l.bf16 %v2274_v3  ;;  %v2276_v0 = vunpack.i.h.bf16 %v2274_v3 }
 0x29a   : > { %v1716_v46 = vpop.permute.xlu0 %1715 }
 0x29b   : > { %1799 = vst.msk [vmem:[%s3924_s7 + $0x30] sm:$0xf] %vm1398_vm9, %v1716_v46 }
 0x29c   : > { %2309 = vxpose.xlu1.b32.cont [4/16] (narrow) %v2308_v54, 16 }
 0x29d   : > { %1737 = vrot.lane.b32.xlu2 %v1650_v61, %s2469_s18 }
 0x29f   : > { %v2269_v27 = vpop.permute.xlu2 %2268  ;;  %v2289_v13 = vpop.permute.xlu1 %2288 }
 0x2a0   : > { %v2271_v44 = vunpack.i.h.bf16 %v2269_v27  ;;  %v2270_v51 = vunpack.i.l.bf16 %v2269_v27  ;;  %v2290_v42 = vunpack.i.l.bf16 %v2289_v13 }
 0x2a2   : > { %v2264_v8 = vpop.permute.xlu0 %2263 }
 0x2a3   : > { %v2265_v48 = vunpack.i.l.bf16 %v2264_v8  ;;  %v2266_v55 = vunpack.i.h.bf16 %v2264_v8 }
 0x2a5   : > { %v2310_v34 = vpack.i.bf16 %v2275_v37, %v2265_v48  ;;  %1753 = vrot.lane.b32.xlu2 %v1658_v12, %s2469_s18  ;;  %v2312_v31 = vpack.i.bf16 %v2276_v0, %v2266_v55  ;;  %s1852_s18 = scalar_lea.vmem (%p2552_p5), %s4193_s5, %s2077_s14 }
 0x2a7   : > { %2311 = vxpose.xlu1.b32.cont [5/16] (narrow) %v2310_v34, 16  ;;  %v1702_v5 = vpop.permute.xlu2 %1701 }
 0x2a8   : > { %1792 = vst.msk [vmem:[%s3924_s7 + $0x14] sm:$0xf] %vm1398_vm9, %v1702_v5 }
 0x2aa   : > { %v2279_v53 = vpop.permute.xlu0 %2278 }
 0x2ab   : > { %v2281_v9 = vunpack.i.h.bf16 %v2279_v53  ;;  %v2280_v29 = vunpack.i.l.bf16 %v2279_v53 }
 0x2ad   : > { %v2328_v59 = vpack.i.bf16 %v2281_v9, %v2271_v44  ;;  %v2326_v4 = vpack.i.bf16 %v2280_v29, %v2270_v51 }
 0x2af   : > { %2313 = vxpose.xlu1.b32.cont [6/16] (narrow) %v2312_v31, 16  ;;  %v1718_v11 = vpop.permute.xlu2 %1717 }
 0x2b0   : > { %1800 = vst.msk [vmem:[%s3924_s7 + $0x34] sm:$0xf] %vm1398_vm9, %v1718_v11 }
 0x2b2   : > { %v1704_v41 = vpop.permute.xlu0 %1703 }
 0x2b3   : > { %1793 = vst.msk [vmem:[%s3924_s7 + $0x18] sm:$0xf] %vm1398_vm9, %v1704_v41 }
 0x2b7   : > { %v2284_v43 = vpop.permute.xlu2 %2283 }
 0x2b8   : > { %v2285_v56 = vunpack.i.l.bf16 %v2284_v43  ;;  %v2286_v23 = vunpack.i.h.bf16 %v2284_v43 }
 0x2ba   : > { %v1720_v49 = vpop.permute.xlu0 %1719 }
 0x2bb   : > { %1801 = vst.msk [vmem:[%s3924_s7 + $0x38] sm:$0xf] %vm1398_vm9, %v1720_v49 }
 0x2bf   : > { %v1706_v25 = vpop.permute.xlu2 %1705 }
 0x2c0   : > { %1794 = vst.msk [vmem:[%s3924_s7 + $0x1c] sm:$0xf] %vm1398_vm9, %v1706_v25 }
 0x2c2   : > { %v2294_v7 = vpop.permute.xlu0 %2293 }
 0x2c3   : > { %v2295_v22 = vunpack.i.l.bf16 %v2294_v7  ;;  %v2296_v17 = vunpack.i.h.bf16 %v2294_v7 }
 0x2c5   : > { %v2314_v1 = vpack.i.bf16 %v2295_v22, %v2285_v56  ;;  %v2316_v2 = vpack.i.bf16 %v2296_v17, %v2286_v23 }
 0x2c7   : > { %2315 = vxpose.xlu1.b32.cont [7/16] (narrow) %v2314_v1, 16  ;;  %v1722_v40 = vpop.permute.xlu2 %1721 }
 0x2c8   : > { %1802 = vst.msk [vmem:[%s3924_s7 + $0x3c] sm:$0xf] %vm1398_vm9, %v1722_v40 }
 0x2ca   : > { %v1732_v57 = vpop.permute.xlu0 %1731 }
 0x2cb   : > { %1807 = vst.msk [vmem:[%s3924_s7 + $0x50] sm:$0xf] %vm1398_vm9, %v1732_v57 }
 0x2cf   : > { %2317 = vxpose.xlu1.b32.cont [8/16] (narrow) %v2316_v2, 16  ;;  %v1734_v15 = vpop.permute.xlu2 %1733 }
 0x2d0   : > { %1808 = vst.msk [vmem:[%s3924_s7 + $0x54] sm:$0xf] %vm1398_vm9, %v1734_v15 }
 0x2d2   : > { %v1736_v35 = vpop.permute.xlu0 %1735 }
 0x2d3   : > { %1809 = vst.msk [vmem:[%s3924_s7 + $0x58] sm:$0xf] %vm1398_vm9, %v1736_v35 }
 0x2d7   : > { %2319 = vxpose.xlu1.b32.cont [9/16] (narrow) %v2318_v10, 16  ;;  %v1742_v6 = vpop.permute.xlu2 %1741 }
 0x2d8   : > { %1812 = vst.msk [vmem:[%s3924_s7 + $0x64] sm:$0xf] %vm1398_vm9, %v1742_v6 }
 0x2da   : > { %v1740_v60 = vpop.permute.xlu0 %1739 }
 0x2db   : > { %1811 = vst.msk [vmem:[%s3924_s7 + $0x60] sm:$0xf] %vm1398_vm9, %v1740_v60 }
 0x2df   : > { %2321 = vxpose.xlu1.b32.cont [10/16] (narrow) %v2320_v47, 16  ;;  %v1746_v36 = vpop.permute.xlu2 %1745 }
 0x2e0   : > { %1814 = vst.msk [vmem:[%s3924_s7 + $0x6c] sm:$0xf] %vm1398_vm9, %v1746_v36 }
 0x2e2   : > { %v1744_v30 = vpop.permute.xlu0 %1743 }
 0x2e3   : > { %1813 = vst.msk [vmem:[%s3924_s7 + $0x68] sm:$0xf] %vm1398_vm9, %v1744_v30 }
 0x2e7   : > { %2323 = vxpose.xlu1.b32.cont [11/16] (narrow) %v4100_v18, 16  ;;  %v2299_v16 = vpop.permute.xlu2 %2298  ;;  %v2291_v18 = vunpack.i.h.bf16 %v2289_v13 }
 0x2e8   : > { %v2300_v26 = vunpack.i.l.bf16 %v2299_v16 }
 0x2ea   : > { %v1748_v24 = vpop.permute.xlu0 %1747  ;;  %v2330_v21 = vpack.i.bf16 %v2300_v26, %v2290_v42 }
 0x2eb   : > { %1815 = vst.msk [vmem:[%s3924_s7 + $0x70] sm:$0xf] %vm1398_vm9, %v1748_v24 }
 0x2ef   : > { %2325 = vxpose.xlu1.b32.cont [12/16] (narrow) %v4098_v20, 16  ;;  %v1750_v58 = vpop.permute.xlu2 %1749  ;;  %v2301_v20 = vunpack.i.h.bf16 %v2299_v16 }
 0x2f0   : > { %1816 = vst.msk [vmem:[%s3924_s7 + $0x74] sm:$0xf] %vm1398_vm9, %v1750_v58 }
 0x2f1   : > { %v2332_v28 = vpack.i.bf16 %v2301_v20, %v2291_v18 }
 0x2f2   : > { %v1752_v38 = vpop.permute.xlu0 %1751 }
 0x2f3   : > { %1817 = vst.msk [vmem:[%s3924_s7 + $0x78] sm:$0xf] %vm1398_vm9, %v1752_v38 }
 0x2f7   : > { %2327 = vxpose.xlu1.b32.cont [13/16] (narrow) %v2326_v4, 16  ;;  %v1738_v45 = vpop.permute.xlu2 %1737 }
 0x2f8   : > { %1810 = vst.msk [vmem:[%s3924_s7 + $0x5c] sm:$0xf] %vm1398_vm9, %v1738_v45 }
 0x2ff   : > { %2329 = vxpose.xlu1.b32.cont [14/16] (narrow) %v2328_v59, 16  ;;  %v1754_v50 = vpop.permute.xlu2 %1753 }
 0x300   : > { %1818 = vst.msk [vmem:[%s3924_s7 + $0x7c] sm:$0xf] %vm1398_vm9, %v1754_v50 }
 0x307   : > { %2331 = vxpose.xlu1.b32.cont [15/16] (narrow) %v2330_v21, 16 }
 0x30f   : > { %2333 = vxpose.xlu1.b32.end [16/16] (narrow) %v2332_v28, 16 }
 0x33b   : > { %v2334_v19 = vpop.trf.xlu1 }
 0x33c   : > { %v2338_v39 = vunpack.i.h.bf16 %v2334_v19  ;;  %v2335_v32 = vunpack.i.l.bf16 %v2334_v19 }
 0x33e   : > { %v1623_v62 = vpack.c.bf16 %v2338_v39, %v2335_v32 }
 0x340   : > { %1625 = vst [vmem:[%s281_s10] sm:$0xff] %v1623_v62 }
 0x343   : > { %v2339_v54 = vpop.trf.xlu1 }
 0x344   : > { %v2343_v46 = vunpack.i.h.bf16 %v2339_v54  ;;  %v2340_v61 = vunpack.i.l.bf16 %v2339_v54  ;;  %1847 = sbr.rel (!%p2552_p5) target bundleno = 849 (0x351), region = 44 }
 0x346   : > { %v1624_v27 = vpack.c.bf16 %v2343_v46, %v2340_v61 }
 0x347   : > { %v1883_v3 = vld [vmem:[%s281_s10] sm:$0xff] (%p2552_p5) }
 0x348   : > { %1626 = vst [vmem:[%s281_s10 + $0x8] sm:$0xff] %v1624_v27 }
 0x349   : > { %1884 = vst [vmem:[%s1852_s18] sm:$0xff] %v1883_v3 }
 0x34f   : > { %v1885_v8 = vld [vmem:[%s281_s10 + $0x8] sm:$0xff] }
 0x350   : > { %1886 = vst [vmem:[%s1852_s18 + $0x10] sm:$0xff] %v1885_v8 }
 0x351 PF: > { %s17_s27 = sadd.s32 1, %s2466_s27   ;;  %s4265_s21 = smov %s2446_s22 }
 0x352   : > { %p14_p11 = scmp.ge.s32.totalorder %s17_s27, 6   ;;  %s4266_s22 = smov %s2563_s12 }
 0x353   : > { %s4267_s23 = smov %s2458_s25  ;;  %s4268_s24 = smov %s2462_s26 }
 0x354   : > { %s4269_s25 = smov %s4272_s28  ;;  %s4270_s26 = smov %s4276_s29 }
 0x355   :  { %16 = sbr.rel (!%p14_p11) target bundleno = 4 (0x4), region = 128 }

// kernel: tsm_forward.6
= control target key start
LH: loop header
LB: loop body
LE: loop exit
PB: predicated region body
PF: predicated region fallthrough
CT: control target
= control target key end

     0   :  { %s8001_s0 = inlined_call_operand.vmem [shape: bf16[2,512,16], index: 0, kind: input, shape index: {}]   ;;  %s8002_s1 = inlined_call_operand.vmem [shape: bf16[2,512,16], index: 1, kind: input, shape index: {}]   ;;  %s8003_s2 = inlined_call_operand.vmem [shape: bf16[2,16,512], index: 2, kind: input, shape index: {}]   ;;  %s8004_s3 = inlined_call_operand.vmem [shape: bf16[2,512,16], index: 3, kind: input, shape index: {}]   ;;  %s8005_s4 = inlined_call_operand.vmem [shape: bf16[16,16], index: 4, kind: input, shape index: {}]   ;;  %s8006_s5 = inlined_call_operand.vmem [shape: bf16[16,64], index: 5, kind: input, shape index: {}]   ;;  %s8007_s6 = inlined_call_operand.vmem [shape: bf16[64,16], index: 6, kind: input, shape index: {}]   ;;  %s8008_s7 = inlined_call_operand.vmem [shape: f32[1,16], index: 7, kind: input, shape index: {}]   ;;  %s8009_s8 = inlined_call_operand.vmem [shape: f32[1,16], index: 8, kind: input, shape index: {}]   ;;  %s8010_s9 = inlined_call_operand.vmem [shape: bf16[2,512,16], index: 9, kind: output, shape index: {}]  }
   0x1   :  { %8085 = sst [smem:[#allocation77_spill]] %s8003_s2 }
   0x2   :  { %s5670_s30 = smov 0   ;;  %s5672_s10 = smov 0  }
   0x3   :  { %s5674_s11 = smov 0   ;;  %s5676_s12 = smov 0  }
   0x4   :  { %s5678_s13 = smov 0   ;;  %s5680_s14 = smov 0  }
   0x5   :  { %s5682_s15 = smov 0   ;;  %s5684_s16 = smov 0  }
   0x6   :  { %s5686_s17 = smov 0  }
   0x7 LB: > { %8086 = sst [smem:[#allocation6_spill]] %s5601_s14  ;;  %s31_s18 = sadd.s32 1, %s5601_s14  ;;  %s5613_s17 = sphi %s5686_s17, %s19_s17   ;;  %s5609_s16 = sphi %s5684_s16, %s8248_s16   ;;  %s5605_s15 = sphi %s5682_s15, %s8247_s15   ;;  %s5601_s14 = sphi %s5680_s14, %s8246_s14   ;;  %s5597_s13 = sphi %s5678_s13, %s8245_s13   ;;  %s5593_s12 = sphi %s5676_s12, %s8244_s12   ;;  %s5589_s11 = sphi %s5674_s11, %s8243_s11   ;;  %s5585_s10 = sphi %s5672_s10, %s8250_s10   ;;  %s5581_s30 = sphi %s5670_s30, %s8249_s30  }
   0x8   : > { %8087 = sst [smem:[#allocation7_spill]] %s5605_s15  ;;  %p32_p0 = scmp.ge.s32.totalorder %s31_s18, 2 }
   0x9   : > { %8088 = sst [smem:[#allocation8_spill]] %s5609_s16  ;;  %s34_s19 = sadd.s32 1, %s5605_s15 }
   0xa   : > { %p110_p1 = scmp.ne.s32.totalorder %s5585_s10, %s5581_s30  ;;  %s8252_s18 = smov (%p32_p0, %s31_s18), 0 }
   0xb   : > { %8089 = sst [smem:[#allocation9_spill]] %s8252_s18  ;;  %s8254_s19 = smov (!%p32_p0, %s34_s19), %s5605_s15 }
   0xc   : > { %p111_p2 = scmp.eq.s32.totalorder %s5613_s17, 0  ;;  %p36_p3 = scmp.ge.s32.totalorder %s8254_s19, 2 }
   0xd   : > { %s38_s20 = sadd.s32 1, %s5609_s16  ;;  %s99_s21 = ssub.s32 %s5601_s14, %s8252_s18 }
   0xe   : > { %p112_p4 = por %p111_p2, %p110_p1  ;;  %s8256_s19 = smov (%p36_p3, %s8254_s19), 0 }
   0xf   : > { %8090 = sst [smem:[#allocation10_spill]] %s8256_s19  ;;  %s8258_s20 = smov (!%p36_p3, %s38_s20), %s5609_s16 }
  0x10   : > { %p40_p5 = scmp.ge.s32.totalorder %s8258_s20, 2  ;;  %s103_s24 = sadd.s32 1, %s5585_s10 }
  0x11   : > { %p4681_p7 = scmp.ge.s32.totalorder %s5613_s17, 8 }
  0x12   : > { %s8260_s20 = smov (%p40_p5, %s8258_s20), 0 }
  0x13   : > { %8091 = sst [smem:[#allocation11_spill]] %s8260_s20  ;;  %s98_s22 = ssub.s32 %s5609_s16, %s8260_s20 }
  0x14   : > { %s100_s23 = sor.u32 %s99_s21, %s98_s22  ;;  %312 = sbr.rel (%p4681_p7) target bundleno = 37 (0x25), region = 36 }
  0x15   : > { %p101_p6 = scmp.eq.s32.totalorder %s100_s23, 0 }
  0x17   : > { %s5735_s25 = scalar_select %p101_p6, %s5585_s10, %s103_s24  }
  0x19   : > { %341 = sbr.rel (!%p112_p4) target bundleno = 37 (0x25), region = 48  ;;  %s343_s26 = sand.u32 (%p112_p4), 1, %s5585_s10  }
  0x1a   : > { %s4683_s27 = sshll.u32 (%p112_p4), %s5601_s14, 1  ;;  %s4682_s28 = sshll.u32 (%p112_p4), %s343_s26, 4 }
  0x1b   : > { %s4684_s29 = sshll.u32 (%p112_p4), %s5609_s16, 3  ;;  %s8092_s2 = sld [smem:[#allocation77_spill]] (%p112_p4) }
  0x1c   : > { %s348_s19 = sadd.s32 (%p112_p4), %s4684_s29, %s4683_s27  ;;  %s345_s22 = scalar_lea.vmem (%p112_p4), [#allocation5], %s4682_s28 }
  0x1d   : > { %s4685_s18 = sshll.u32 (%p112_p4), %s348_s19, 2 }
  0x21   : > { %s350_s21 = scalar_lea.vmem %s8092_s2, %s4685_s18 }
  0x22   : > { %v381_v0 = vld [vmem:[%s350_s21] sm:$0xff]  ;;  %v383_v1 = vld [vmem:[%s350_s21 + $0x10] sm:$0xff] }
  0x23   : > { %382 = vst [vmem:[%s345_s22] sm:$0xff] %v381_v0 }
  0x24   : > { %384 = vst [vmem:[%s345_s22 + $0x8] sm:$0xff] %v383_v1 }
  0x25 PF: > { %p4686_p8 = scmp.ge.s32.totalorder %s5613_s17, 1  ;;  %p402_p9 = scmp.lt.s32.totalorder %s5613_s17, 9 }
  0x27   : > { %p403_p10 = pnand %p4686_p8, %p402_p9 }
  0x29   : > { %406 = sbr.rel (%p403_p10) target bundleno = 2764 (0xacc), region = 90 }
  0x2e   : > { %s409_s15 = sand.u32 1, %s5581_s30   ;;  %s4688_s18 = sshll.u32 %s5593_s12, 5 }
  0x2f   : > { %s4687_s19 = sshll.u32 %s409_s15, 4  ;;  %p476_p11 = scmp.lt.s32.totalorder %s5597_s13, 1 }
  0x30   : > { %p478_p12 = scmp.lt.s32.totalorder %s4688_s18, 63  ;;  %s4694_s23 = sshll.u32 %s5589_s11, 5 }
  0x31   : > { %s8262_s13 = smov (!%p476_p11, %s5597_s13), 1  ;;  %p499_p13 = scmp.lt.s32.totalorder %s4694_s23, 63 }
  0x32   : > { %s8264_s18 = smov (!%p478_p12, %s4688_s18), 63  ;;  %s4689_s20 = sshll.u32 %s8262_s13, 6 }
  0x33   : > { %s481_s24 = sadd.s32 %s4689_s20, %s8264_s18  ;;  %s8266_s23 = smov (!%p499_p13, %s4694_s23), 63 }
  0x34   : > { %s4690_s26 = sshll.u32 %s481_s24, 2  ;;  %s502_s13 = sadd.s32 %s4689_s20, %s8266_s23 }
  0x35   : > { %s5754_s29 = scalar_lea.vmem %s8001_s0, %s4690_s26  ;;  %s5759_s30 = scalar_lea.vmem %s8002_s1, %s4690_s26 }
  0x36   : > { %s5764_s2 = scalar_lea.vmem %s8010_s9, %s4690_s26  ;;  %s4696_s18 = sshll.u32 %s502_s13, 2 }
  0x37   : > { %s5769_s14 = scalar_lea.vmem %s8004_s3, %s4696_s18  ;;  %s5771_s27 = scalar_lea.vmem [#allocation5], %s4687_s19 }
  0x38   : > { %p4700_p0 = scmp.ne.s32.totalorder %s5589_s11, 0 }
  0x3a   : > { %520 = sbr.rel (%p4700_p0) target bundleno = 160 (0xa0), region = 98 }
  0x3f   : > { %vm521_vm0 = vcmask 7168   ;;  %v5615_v2 = vmov -1e+30   ;;  %v5616_v3 = vmov 0.0   ;;  %vm586_vm1 = vcmask 130048  }
  0x40   : > { %522 = vst.msk [vmem:[#allocation2] sm:$0xff] %vm521_vm0, %v5615_v2 }
  0x41   : > { %523 = vst.msk [vmem:[#allocation2 + $0x8] sm:$0xff] %vm521_vm0, %v5615_v2 }
  0x42   : > { %524 = vst.msk [vmem:[#allocation2 + $0x10] sm:$0xff] %vm521_vm0, %v5615_v2 }
  0x43   : > { %525 = vst.msk [vmem:[#allocation2 + $0x18] sm:$0xff] %vm521_vm0, %v5615_v2 }
  0x44   : > { %526 = vst.msk [vmem:[#allocation2 + $0x20] sm:$0xff] %vm521_vm0, %v5615_v2 }
  0x45   : > { %527 = vst.msk [vmem:[#allocation2 + $0x28] sm:$0xff] %vm521_vm0, %v5615_v2 }
  0x46   : > { %528 = vst.msk [vmem:[#allocation2 + $0x30] sm:$0xff] %vm521_vm0, %v5615_v2 }
  0x47   : > { %529 = vst.msk [vmem:[#allocation2 + $0x38] sm:$0xff] %vm521_vm0, %v5615_v2 }
  0x48   : > { %530 = vst.msk [vmem:[#allocation2 + $0x40] sm:$0xff] %vm521_vm0, %v5615_v2 }
  0x49   : > { %531 = vst.msk [vmem:[#allocation2 + $0x48] sm:$0xff] %vm521_vm0, %v5615_v2 }
  0x4a   : > { %532 = vst.msk [vmem:[#allocation2 + $0x50] sm:$0xff] %vm521_vm0, %v5615_v2 }
  0x4b   : > { %533 = vst.msk [vmem:[#allocation2 + $0x58] sm:$0xff] %vm521_vm0, %v5615_v2 }
  0x4c   : > { %534 = vst.msk [vmem:[#allocation2 + $0x60] sm:$0xff] %vm521_vm0, %v5615_v2 }
  0x4d   : > { %535 = vst.msk [vmem:[#allocation2 + $0x68] sm:$0xff] %vm521_vm0, %v5615_v2 }
  0x4e   : > { %536 = vst.msk [vmem:[#allocation2 + $0x70] sm:$0xff] %vm521_vm0, %v5615_v2 }
  0x4f   : > { %537 = vst.msk [vmem:[#allocation2 + $0x78] sm:$0xff] %vm521_vm0, %v5615_v2 }
  0x50   : > { %538 = vst.msk [vmem:[#allocation2 + $0x80] sm:$0xff] %vm521_vm0, %v5615_v2 }
  0x51   : > { %539 = vst.msk [vmem:[#allocation2 + $0x88] sm:$0xff] %vm521_vm0, %v5615_v2 }
  0x52   : > { %540 = vst.msk [vmem:[#allocation2 + $0x90] sm:$0xff] %vm521_vm0, %v5615_v2 }
  0x53   : > { %541 = vst.msk [vmem:[#allocation2 + $0x98] sm:$0xff] %vm521_vm0, %v5615_v2 }
  0x54   : > { %542 = vst.msk [vmem:[#allocation2 + $0xa0] sm:$0xff] %vm521_vm0, %v5615_v2 }
  0x55   : > { %543 = vst.msk [vmem:[#allocation2 + $0xa8] sm:$0xff] %vm521_vm0, %v5615_v2 }
  0x56   : > { %544 = vst.msk [vmem:[#allocation2 + $0xb0] sm:$0xff] %vm521_vm0, %v5615_v2 }
  0x57   : > { %545 = vst.msk [vmem:[#allocation2 + $0xb8] sm:$0xff] %vm521_vm0, %v5615_v2 }
  0x58   : > { %546 = vst.msk [vmem:[#allocation2 + $0xc0] sm:$0xff] %vm521_vm0, %v5615_v2 }
  0x59   : > { %547 = vst.msk [vmem:[#allocation2 + $0xc8] sm:$0xff] %vm521_vm0, %v5615_v2 }
  0x5a   : > { %548 = vst.msk [vmem:[#allocation2 + $0xd0] sm:$0xff] %vm521_vm0, %v5615_v2 }
  0x5b   : > { %549 = vst.msk [vmem:[#allocation2 + $0xd8] sm:$0xff] %vm521_vm0, %v5615_v2 }
  0x5c   : > { %550 = vst.msk [vmem:[#allocation2 + $0xe0] sm:$0xff] %vm521_vm0, %v5615_v2 }
  0x5d   : > { %551 = vst.msk [vmem:[#allocation2 + $0xe8] sm:$0xff] %vm521_vm0, %v5615_v2 }
  0x5e   : > { %552 = vst.msk [vmem:[#allocation2 + $0xf0] sm:$0xff] %vm521_vm0, %v5615_v2 }
  0x5f   : > { %553 = vst.msk [vmem:[#allocation2 + $0xf8] sm:$0xff] %vm521_vm0, %v5615_v2 }
  0x60   : > { %554 = vst.msk [vmem:[#allocation3] sm:$0xff] %vm521_vm0, %v5616_v3 }
  0x61   : > { %555 = vst.msk [vmem:[#allocation3 + $0x8] sm:$0xff] %vm521_vm0, %v5616_v3 }
  0x62   : > { %556 = vst.msk [vmem:[#allocation3 + $0x10] sm:$0xff] %vm521_vm0, %v5616_v3 }
  0x63   : > { %557 = vst.msk [vmem:[#allocation3 + $0x18] sm:$0xff] %vm521_vm0, %v5616_v3 }
  0x64   : > { %558 = vst.msk [vmem:[#allocation3 + $0x20] sm:$0xff] %vm521_vm0, %v5616_v3 }
  0x65   : > { %559 = vst.msk [vmem:[#allocation3 + $0x28] sm:$0xff] %vm521_vm0, %v5616_v3 }
  0x66   : > { %560 = vst.msk [vmem:[#allocation3 + $0x30] sm:$0xff] %vm521_vm0, %v5616_v3 }
  0x67   : > { %561 = vst.msk [vmem:[#allocation3 + $0x38] sm:$0xff] %vm521_vm0, %v5616_v3 }
  0x68   : > { %562 = vst.msk [vmem:[#allocation3 + $0x40] sm:$0xff] %vm521_vm0, %v5616_v3 }
  0x69   : > { %563 = vst.msk [vmem:[#allocation3 + $0x48] sm:$0xff] %vm521_vm0, %v5616_v3 }
  0x6a   : > { %564 = vst.msk [vmem:[#allocation3 + $0x50] sm:$0xff] %vm521_vm0, %v5616_v3 }
  0x6b   : > { %565 = vst.msk [vmem:[#allocation3 + $0x58] sm:$0xff] %vm521_vm0, %v5616_v3 }
  0x6c   : > { %566 = vst.msk [vmem:[#allocation3 + $0x60] sm:$0xff] %vm521_vm0, %v5616_v3 }
  0x6d   : > { %567 = vst.msk [vmem:[#allocation3 + $0x68] sm:$0xff] %vm521_vm0, %v5616_v3 }
  0x6e   : > { %568 = vst.msk [vmem:[#allocation3 + $0x70] sm:$0xff] %vm521_vm0, %v5616_v3 }
  0x6f   : > { %569 = vst.msk [vmem:[#allocation3 + $0x78] sm:$0xff] %vm521_vm0, %v5616_v3 }
  0x70   : > { %570 = vst.msk [vmem:[#allocation3 + $0x80] sm:$0xff] %vm521_vm0, %v5616_v3 }
  0x71   : > { %571 = vst.msk [vmem:[#allocation3 + $0x88] sm:$0xff] %vm521_vm0, %v5616_v3 }
  0x72   : > { %572 = vst.msk [vmem:[#allocation3 + $0x90] sm:$0xff] %vm521_vm0, %v5616_v3 }
  0x73   : > { %573 = vst.msk [vmem:[#allocation3 + $0x98] sm:$0xff] %vm521_vm0, %v5616_v3 }
  0x74   : > { %574 = vst.msk [vmem:[#allocation3 + $0xa0] sm:$0xff] %vm521_vm0, %v5616_v3 }
  0x75   : > { %575 = vst.msk [vmem:[#allocation3 + $0xa8] sm:$0xff] %vm521_vm0, %v5616_v3 }
  0x76   : > { %576 = vst.msk [vmem:[#allocation3 + $0xb0] sm:$0xff] %vm521_vm0, %v5616_v3 }
  0x77   : > { %577 = vst.msk [vmem:[#allocation3 + $0xb8] sm:$0xff] %vm521_vm0, %v5616_v3 }
  0x78   : > { %578 = vst.msk [vmem:[#allocation3 + $0xc0] sm:$0xff] %vm521_vm0, %v5616_v3 }
  0x79   : > { %579 = vst.msk [vmem:[#allocation3 + $0xc8] sm:$0xff] %vm521_vm0, %v5616_v3 }
  0x7a   : > { %580 = vst.msk [vmem:[#allocation3 + $0xd0] sm:$0xff] %vm521_vm0, %v5616_v3 }
  0x7b   : > { %581 = vst.msk [vmem:[#allocation3 + $0xd8] sm:$0xff] %vm521_vm0, %v5616_v3 }
  0x7c   : > { %582 = vst.msk [vmem:[#allocation3 + $0xe0] sm:$0xff] %vm521_vm0, %v5616_v3 }
  0x7d   : > { %583 = vst.msk [vmem:[#allocation3 + $0xe8] sm:$0xff] %vm521_vm0, %v5616_v3 }
  0x7e   : > { %584 = vst.msk [vmem:[#allocation3 + $0xf0] sm:$0xff] %vm521_vm0, %v5616_v3 }
  0x7f   : > { %585 = vst.msk [vmem:[#allocation3 + $0xf8] sm:$0xff] %vm521_vm0, %v5616_v3 }
  0x80   : > { %587 = vst.msk [vmem:[#allocation4] sm:$0xff] %vm586_vm1, %v5616_v3 }
  0x81   : > { %588 = vst.msk [vmem:[#allocation4 + $0x8] sm:$0xff] %vm586_vm1, %v5616_v3 }
  0x82   : > { %589 = vst.msk [vmem:[#allocation4 + $0x10] sm:$0xff] %vm586_vm1, %v5616_v3 }
  0x83   : > { %590 = vst.msk [vmem:[#allocation4 + $0x18] sm:$0xff] %vm586_vm1, %v5616_v3 }
  0x84   : > { %591 = vst.msk [vmem:[#allocation4 + $0x20] sm:$0xff] %vm586_vm1, %v5616_v3 }
  0x85   : > { %592 = vst.msk [vmem:[#allocation4 + $0x28] sm:$0xff] %vm586_vm1, %v5616_v3 }
  0x86   : > { %593 = vst.msk [vmem:[#allocation4 + $0x30] sm:$0xff] %vm586_vm1, %v5616_v3 }
  0x87   : > { %594 = vst.msk [vmem:[#allocation4 + $0x38] sm:$0xff] %vm586_vm1, %v5616_v3 }
  0x88   : > { %595 = vst.msk [vmem:[#allocation4 + $0x40] sm:$0xff] %vm586_vm1, %v5616_v3 }
  0x89   : > { %596 = vst.msk [vmem:[#allocation4 + $0x48] sm:$0xff] %vm586_vm1, %v5616_v3 }
  0x8a   : > { %597 = vst.msk [vmem:[#allocation4 + $0x50] sm:$0xff] %vm586_vm1, %v5616_v3 }
  0x8b   : > { %598 = vst.msk [vmem:[#allocation4 + $0x58] sm:$0xff] %vm586_vm1, %v5616_v3 }
  0x8c   : > { %599 = vst.msk [vmem:[#allocation4 + $0x60] sm:$0xff] %vm586_vm1, %v5616_v3 }
  0x8d   : > { %600 = vst.msk [vmem:[#allocation4 + $0x68] sm:$0xff] %vm586_vm1, %v5616_v3 }
  0x8e   : > { %601 = vst.msk [vmem:[#allocation4 + $0x70] sm:$0xff] %vm586_vm1, %v5616_v3 }
  0x8f   : > { %602 = vst.msk [vmem:[#allocation4 + $0x78] sm:$0xff] %vm586_vm1, %v5616_v3 }
  0x90   : > { %603 = vst.msk [vmem:[#allocation4 + $0x80] sm:$0xff] %vm586_vm1, %v5616_v3 }
  0x91   : > { %604 = vst.msk [vmem:[#allocation4 + $0x88] sm:$0xff] %vm586_vm1, %v5616_v3 }
  0x92   : > { %605 = vst.msk [vmem:[#allocation4 + $0x90] sm:$0xff] %vm586_vm1, %v5616_v3 }
  0x93   : > { %606 = vst.msk [vmem:[#allocation4 + $0x98] sm:$0xff] %vm586_vm1, %v5616_v3 }
  0x94   : > { %607 = vst.msk [vmem:[#allocation4 + $0xa0] sm:$0xff] %vm586_vm1, %v5616_v3 }
  0x95   : > { %608 = vst.msk [vmem:[#allocation4 + $0xa8] sm:$0xff] %vm586_vm1, %v5616_v3 }
  0x96   : > { %609 = vst.msk [vmem:[#allocation4 + $0xb0] sm:$0xff] %vm586_vm1, %v5616_v3 }
  0x97   : > { %610 = vst.msk [vmem:[#allocation4 + $0xb8] sm:$0xff] %vm586_vm1, %v5616_v3 }
  0x98   : > { %611 = vst.msk [vmem:[#allocation4 + $0xc0] sm:$0xff] %vm586_vm1, %v5616_v3 }
  0x99   : > { %612 = vst.msk [vmem:[#allocation4 + $0xc8] sm:$0xff] %vm586_vm1, %v5616_v3 }
  0x9a   : > { %613 = vst.msk [vmem:[#allocation4 + $0xd0] sm:$0xff] %vm586_vm1, %v5616_v3 }
  0x9b   : > { %614 = vst.msk [vmem:[#allocation4 + $0xd8] sm:$0xff] %vm586_vm1, %v5616_v3 }
  0x9c   : > { %615 = vst.msk [vmem:[#allocation4 + $0xe0] sm:$0xff] %vm586_vm1, %v5616_v3 }
  0x9d   : > { %616 = vst.msk [vmem:[#allocation4 + $0xe8] sm:$0xff] %vm586_vm1, %v5616_v3 }
  0x9e   : > { %617 = vst.msk [vmem:[#allocation4 + $0xf0] sm:$0xff] %vm586_vm1, %v5616_v3 }
  0x9f   : > { %618 = vst.msk [vmem:[#allocation4 + $0xf8] sm:$0xff] %vm586_vm1, %v5616_v3 }
  0xa0 PF: > { %v4767_v4 = vld [vmem:[%s5771_s27] sm:$0xf]  ;;  %v4961_v5 = vld [vmem:[%s5771_s27 + $0x4] sm:$0xf0]  ;;  %v4960_v6 = vld [vmem:[%s5771_s27 + $0x4] sm:$0xf] }
  0xa1   : > { %v4768_v7 = vor.u32 %v4961_v5, %v4767_v4  ;;  %v4769_v8 = vld [vmem:[%s5771_s27 + $0x8] sm:$0xf0]  ;;  %v4944_v10 = vld [vmem:[%s5759_s30] sm:$0xff]  ;;  %vm743_vm2 = vcmask 130048   ;;  %v4946_v12 = vld [vmem:[%s5759_s30 + $0x10] sm:$0xff]  ;;  %v5617_v63 = vmov 0  }
  0xa2   : > { %v4772_v9 = vor.u32 %v4960_v6, %v4769_v8  ;;  %v4945_v11 = vld [vmem:[%s5759_s30 + $0x8] sm:$0xff]  ;;  %v4947_v13 = vld [vmem:[%s5759_s30 + $0x18] sm:$0xff]  ;;  %v4948_v14 = vld [vmem:[%s5759_s30 + $0x20] sm:$0xff]  ;;  %5146 = vset.pattern.permute.xlu2 %v5617_v63  ;;  %5147 = vset.pattern.permute.xlu0 %v5617_v63  ;;  %vm1770_vm3 = vcmask 7168   ;;  %p4869_p1 = scmp.ne.s32.totalorder %s5589_s11, 1 }
  0xa3   : > { %799 = vmatpush.bf16.msra.mxu0 %v4768_v7  ;;  %v4949_v15 = vld [vmem:[%s5759_s30 + $0x28] sm:$0xff]  ;;  %v4950_v16 = vld [vmem:[%s5759_s30 + $0x30] sm:$0xff]  ;;  %v4951_v17 = vld [vmem:[%s5759_s30 + $0x38] sm:$0xff]  ;;  %5148 = vset.pattern.permute.xlu1 %v5617_v63 }
  0xa4   : > { %888 = vmatpush.bf16.msra.mxu1 %v4772_v9  ;;  %v4952_v18 = vld [vmem:[%s5759_s30 + $0x40] sm:$0xff]  ;;  %v4953_v29 = vld [vmem:[%s5759_s30 + $0x48] sm:$0xff]  ;;  %v4954_v53 = vld [vmem:[%s5759_s30 + $0x50] sm:$0xff] }
  0xa5   : > { %v970_v3 = vld [vmem:[#allocation2] sm:$0xff]  ;;  %v6068_v9 = vld [vmem:[#allocation2 + $0x8] sm:$0xff] }
  0xa6   : > { %4773 = vmatmul.msk.bf16.vlgmr.msra.gmra.mxu0 %vm743_vm2, %v4944_v10 }
  0xa7   : > { %4789 = vmatmul.msk.bf16.vlgmr.msra.gmra.mxu1 %vm743_vm2, %v4944_v10  ;;  %v4955_v10 = vld [vmem:[%s5759_s30 + $0x58] sm:$0xff] }
  0xb6   : > { %4774 = vmatmul.msk.bf16.gmra.mxu0 %vm743_vm2, %v4945_v11 }
  0xb7   : > { %4790 = vmatmul.msk.bf16.gmra.mxu1 %vm743_vm2, %v4945_v11 }
  0xc6   : > { %4775 = vmatmul.msk.bf16.gmra.mxu0 %vm743_vm2, %v4946_v12 }
  0xc7   : > { %4791 = vmatmul.msk.bf16.gmra.mxu1 %vm743_vm2, %v4946_v12 }
  0xd6   : > { %4776 = vmatmul.msk.bf16.gmra.mxu0 %vm743_vm2, %v4947_v13 }
  0xd7   : > { %4792 = vmatmul.msk.bf16.gmra.mxu1 %vm743_vm2, %v4947_v13 }
  0xe6   : > { %4777 = vmatmul.msk.bf16.gmra.mxu0 %vm743_vm2, %v4948_v14 }
  0xe7   : > { %4793 = vmatmul.msk.bf16.gmra.mxu1 %vm743_vm2, %v4948_v14 }
  0xf6   : > { %4778 = vmatmul.msk.bf16.gmra.mxu0 %vm743_vm2, %v4949_v15 }
  0xf7   : > { %4794 = vmatmul.msk.bf16.gmra.mxu1 %vm743_vm2, %v4949_v15 }
 0x106   : > { %4779 = vmatmul.msk.bf16.gmra.mxu0 %vm743_vm2, %v4950_v16 }
 0x107   : > { %4795 = vmatmul.msk.bf16.gmra.mxu1 %vm743_vm2, %v4950_v16 }
 0x116   : > { %4780 = vmatmul.msk.bf16.gmra.mxu0 %vm743_vm2, %v4951_v17 }
 0x117   : > { %4796 = vmatmul.msk.bf16.gmra.mxu1 %vm743_vm2, %v4951_v17  ;;  %v972_v17 = vld [vmem:[#allocation2 + $0x10] sm:$0xff] }
 0x123   : > { %v5963_v19 = vpop.f32.mrf.mxu0 }
 0x124   : > { %v5965_v20 = vpop.f32.mrf.mxu1 }
 0x125   : > { %v1002_v21 = vmax.f32 %v5963_v19, %v5965_v20 }
 0x126   : > { %4781 = vmatmul.msk.bf16.gmra.mxu0 %vm743_vm2, %v4952_v18 }
 0x127   : > { %4797 = vmatmul.msk.bf16.gmra.mxu1 %vm743_vm2, %v4952_v18  ;;  %1003 = vmax.xlane.f32.xlu0 %v1002_v21 }
 0x12b   : > { %v5971_v22 = vpop.f32.mrf.mxu0 }
 0x12c   : > { %v5973_v23 = vpop.f32.mrf.mxu1 }
 0x12d   : > { %v1005_v24 = vmax.f32 %v5971_v22, %v5973_v23 }
 0x12f   : > { %1006 = vmax.xlane.f32.xlu0 %v1005_v24  ;;  %v6083_v24 = vld [vmem:[#allocation2 + $0x18] sm:$0xff] }
 0x133   : > { %v5977_v25 = vpop.f32.mrf.mxu0 }
 0x134   : > { %v5979_v26 = vpop.f32.mrf.mxu1 }
 0x135   : > { %v1008_v27 = vmax.f32 %v5977_v25, %v5979_v26 }
 0x136   : > { %4782 = vmatmul.msk.bf16.gmra.mxu0 %vm743_vm2, %v4953_v29 }
 0x137   : > { %1009 = vmax.xlane.f32.xlu1 %v1008_v27  ;;  %4798 = vmatmul.msk.bf16.gmra.mxu1 %vm743_vm2, %v4953_v29 }
 0x13b   : > { %v5983_v28 = vpop.f32.mrf.mxu0 }
 0x13c   : > { %v5986_v30 = vpop.f32.mrf.mxu1 }
 0x13d   : > { %v1011_v31 = vmax.f32 %v5983_v28, %v5986_v30 }
 0x13f   : > { %1012 = vmax.xlane.f32.xlu1 %v1011_v31 }
 0x143   : > { %v5992_v32 = vpop.f32.mrf.mxu0 }
 0x144   : > { %v5994_v33 = vpop.f32.mrf.mxu1 }
 0x145   : > { %v1014_v34 = vmax.f32 %v5992_v32, %v5994_v33 }
 0x146   : > { %4783 = vmatmul.msk.bf16.gmra.mxu0 %vm743_vm2, %v4954_v53 }
 0x147   : > { %1015 = vmax.xlane.f32.xlu2 %v1014_v34  ;;  %4799 = vmatmul.msk.bf16.gmra.mxu1 %vm743_vm2, %v4954_v53 }
 0x14b   : > { %v5998_v35 = vpop.f32.mrf.mxu0 }
 0x14c   : > { %v6000_v36 = vpop.f32.mrf.mxu1 }
 0x14d   : > { %v1017_v37 = vmax.f32 %v5998_v35, %v6000_v36 }
 0x14f   : > { %1018 = vmax.xlane.f32.xlu2 %v1017_v37  ;;  %v974_v37 = vld [vmem:[#allocation2 + $0x20] sm:$0xff] }
 0x153   : > { %v6004_v38 = vpop.f32.mrf.mxu0 }
 0x154   : > { %v6006_v39 = vpop.f32.mrf.mxu1 }
 0x155   : > { %v1020_v40 = vmax.f32 %v6004_v38, %v6006_v39 }
 0x156   : > { %4784 = vmatmul.msk.bf16.gmra.mxu0 %vm743_vm2, %v4955_v10 }
 0x157   : > { %1021 = vmax.xlane.f32.xlu0 %v1020_v40  ;;  %4800 = vmatmul.msk.bf16.gmra.mxu1 %vm743_vm2, %v4955_v10 }
 0x15b   : > { %v6010_v41 = vpop.f32.mrf.mxu0 }
 0x15c   : > { %v6012_v42 = vpop.f32.mrf.mxu1 }
 0x15d   : > { %v1023_v43 = vmax.f32 %v6010_v41, %v6012_v42 }
 0x15f   : > { %1024 = vmax.xlane.f32.xlu1 %v1023_v43 }
 0x163   : > { %v6016_v44 = vpop.f32.mrf.mxu0 }
 0x164   : > { %v6018_v45 = vpop.f32.mrf.mxu1 }
 0x165   : > { %v1026_v46 = vmax.f32 %v6016_v44, %v6018_v45 }
 0x167   : > { %1027 = vmax.xlane.f32.xlu2 %v1026_v46 }
 0x16b   : > { %v6022_v47 = vpop.f32.mrf.mxu0 }
 0x16c   : > { %v6024_v48 = vpop.f32.mrf.mxu1 }
 0x16d   : > { %v1029_v49 = vmax.f32 %v6022_v47, %v6024_v48 }
 0x16f   : > { %1030 = vmax.xlane.f32.xlu0 %v1029_v49  ;;  %v6097_v49 = vld [vmem:[#allocation2 + $0x28] sm:$0xff] }
 0x173   : > { %v6028_v50 = vpop.f32.mrf.mxu0 }
 0x174   : > { %v6030_v51 = vpop.f32.mrf.mxu1 }
 0x175   : > { %v1032_v52 = vmax.f32 %v6028_v50, %v6030_v51 }
 0x177   : > { %1033 = vmax.xlane.f32.xlu1 %v1032_v52 }
 0x17b   : > { %v6035_v54 = vpop.f32.mrf.mxu0 }
 0x17c   : > { %v6039_v55 = vpop.f32.mrf.mxu1 }
 0x17d   : > { %v1035_v56 = vmax.f32 %v6035_v54, %v6039_v55 }
 0x17f   : > { %1036 = vmax.xlane.f32.xlu2 %v1035_v56  ;;  %v4956_v56 = vld [vmem:[%s5759_s30 + $0x60] sm:$0xff] }
 0x180   : > { %4785 = vmatmul.msk.bf16.gmra.mxu0 %vm743_vm2, %v4956_v56  ;;  %4801 = vmatmul.msk.bf16.gmra.mxu1 %vm743_vm2, %v4956_v56 }
 0x183   : > { %v6043_v57 = vpop.f32.mrf.mxu0 }
 0x184   : > { %v6045_v58 = vpop.f32.mrf.mxu1 }
 0x185   : > { %v1038_v59 = vmax.f32 %v6043_v57, %v6045_v58 }
 0x187   : > { %1039 = vmax.xlane.f32.xlu0 %v1038_v59  ;;  %v6105_v59 = vld [vmem:[#allocation2 + $0x30] sm:$0xff] }
 0x18b   : > { %v6049_v60 = vpop.f32.mrf.mxu0 }
 0x18c   : > { %v6051_v61 = vpop.f32.mrf.mxu1 }
 0x18d   : > { %v1041_v62 = vmax.f32 %v6049_v60, %v6051_v61 }
 0x18f   : > { %1042 = vmax.xlane.f32.xlu1 %v1041_v62 }
 0x193   : > { %v6055_v0 = vpop.f32.mrf.mxu0 }
 0x194   : > { %v6057_v1 = vpop.f32.mrf.mxu1 }
 0x195   : > { %v1044_v2 = vmax.f32 %v6055_v0, %v6057_v1 }
 0x197   : > { %1045 = vmax.xlane.f32.xlu2 %v1044_v2 }
 0x19a   : > { %v1004_v4 = vpop.xlane.xlu0 %1003 }
 0x19b   : > { %v1098_v5 = vmax.f32 %v970_v3, %v1004_v4  ;;  %v6061_v6 = vpop.f32.mrf.mxu0  ;;  %v6118_v4 = vld [vmem:[#allocation2 + $0x38] sm:$0xff] }
 0x19c   : > { %8093 = vst [vmem:[#allocation12_spill] sm:$0xff] %v6061_v6  ;;  %v6063_v7 = vpop.f32.mrf.mxu1 }
 0x19d   : > { %8094 = vst [vmem:[#allocation13_spill] sm:$0xff] %v6063_v7  ;;  %v1047_v8 = vmax.f32 %v6061_v6, %v6063_v7  ;;  %v1130_v27 = vsub.f32 %v970_v3, %v1098_v5  ;;  %v4958_v6 = vld [vmem:[%s5759_s30 + $0x70] sm:$0xff] }
 0x19e   : > { %2429 = vst.msk [vmem:[#allocation2] sm:$0xff] %vm1770_vm3, %v1098_v5 }
 0x19f   : > { %1048 = vmax.xlane.f32.xlu0 %v1047_v8  ;;  %v1162_v34 = vmul.f32 1.442695, %v1130_v27 }
 0x1a1   : > { %5149 = vpow2.f32 %v1162_v34 }
 0x1a2   : > { %v1007_v11 = vpop.xlane.xlu0 %1006 }
 0x1a3   : > { %v1099_v12 = vmax.f32 %v6068_v9, %v1007_v11  ;;  %v6074_v13 = vpop.f32.mrf.mxu0 }
 0x1a4   : > { %v6076_v14 = vpop.f32.mrf.mxu1 }
 0x1a5   : > { %v1131_v15 = vsub.f32 %v6068_v9, %v1099_v12  ;;  %2430 = vst.msk [vmem:[#allocation2 + $0x8] sm:$0xff] %vm1770_vm3, %v1099_v12  ;;  %v1050_v16 = vmax.f32 %v6074_v13, %v6076_v14 }
 0x1a7   : > { %1051 = vmax.xlane.f32.xlu1 %v1050_v16  ;;  %v6094_v46 = vpop.eup %5149  ;;  %v1164_v56 = vmul.f32 1.442695, %v1131_v15 }
 0x1a9   : > { %5151 = vpow2.f32 %v1164_v56 }
 0x1aa   : > { %v1010_v18 = vpop.xlane.xlu1 %1009 }
 0x1ab   : > { %v1100_v21 = vmax.f32 %v972_v17, %v1010_v18  ;;  %v6114_v2 = vpop.f32.mrf.mxu0 }
 0x1ac   : > { %v6116_v3 = vpop.f32.mrf.mxu1 }
 0x1ad   : > { %2431 = vst.msk [vmem:[#allocation2 + $0x10] sm:$0xff] %vm1770_vm3, %v1100_v21  ;;  %v1053_v9 = vmax.f32 %v6114_v2, %v6116_v3  ;;  %v1132_v34 = vsub.f32 %v972_v17, %v1100_v21 }
 0x1ae   : > { %8095 = vst [vmem:[#allocation14_spill] sm:$0xff] %v6116_v3 }
 0x1af   : > { %1228 = vperm.xlu2 %5146, %v1098_v5  }
 0x1b2   : > { %v1013_v29 = vpop.xlane.xlu1 %1012 }
 0x1b3   : > { %v6086_v31 = vmax.f32 %v6083_v24, %v1013_v29  ;;  %1233 = vperm.xlu0 %5147, %v1099_v12   ;;  %v6129_v11 = vpop.f32.mrf.mxu0  ;;  %v6131_v12 = vld [vmem:[#allocation2 + $0x40] sm:$0xff]  ;;  %v6140_v29 = vld [vmem:[#allocation2 + $0x48] sm:$0xff] }
 0x1b4   : > { %v6127_v10 = vpop.f32.mrf.mxu1  ;;  %8097 = vst [vmem:[#allocation16_spill] sm:$0xff] %v6129_v11 }
 0x1b5   : > { %2432 = vst.msk [vmem:[#allocation2 + $0x18] sm:$0xff] %vm1770_vm3, %v6086_v31  ;;  %v1056_v16 = vmax.f32 %v6129_v11, %v6127_v10 }
 0x1b6   : > { %8096 = vst [vmem:[#allocation15_spill] sm:$0xff] %v6127_v10  ;;  %v4976_v10 = vld [vmem:[%s5769_s14 + $0x70] sm:$0xff] }
 0x1b7   : > { %8098 = vst [vmem:[#allocation17_spill] sm:$0xff] %v6140_v29 }
 0x1ba   : > { %v1016_v40 = vpop.xlane.xlu2 %1015 }
 0x1bb   : > { %v6090_v43 = vmax.f32 %v974_v37, %v1016_v40  ;;  %v6155_v15 = vpop.f32.mrf.mxu0 }
 0x1bc   : > { %8102 = vst [vmem:[#allocation21_spill] sm:$0xff] %v6155_v15  ;;  %v6157_v17 = vpop.f32.mrf.mxu1 }
 0x1bd   : > { %2433 = vst.msk [vmem:[#allocation2 + $0x20] sm:$0xff] %vm1770_vm3, %v6090_v43  ;;  %v1059_v56 = vmax.f32 %v6155_v15, %v6157_v17 }
 0x1be   : > { %8103 = vst [vmem:[#allocation22_spill] sm:$0xff] %v6157_v17  ;;  %v6224_v17 = vld [vmem:[#allocation2 + $0x78] sm:$0xff] }
 0x1bf   : > { %8116 = vst [vmem:[#allocation35_spill] sm:$0xff] %v6224_v17 }
 0x1c0   : > { %1837 = vperm.xlu1 %5148, %v6094_v46  }
 0x1c2   : > { %v1019_v52 = vpop.xlane.xlu2 %1018 }
 0x1c3   : > { %v6100_v53 = vmax.f32 %v6097_v49, %v1019_v52 }
 0x1c4   : > { %v6228_v15 = vpop.f32.mrf.mxu1 }
 0x1c5   : > { %2434 = vst.msk [vmem:[#allocation2 + $0x28] sm:$0xff] %vm1770_vm3, %v6100_v53 }
 0x1c6   : > { %8118 = vst [vmem:[#allocation37_spill] sm:$0xff] %v6228_v15 }
 0x1c8   : > { %1238 = vperm.xlu1 %5148, %v1100_v21  }
 0x1ca   : > { %v1022_v62 = vpop.xlane.xlu0 %1021 }
 0x1cb   : > { %v6110_v63 = vmax.f32 %v6105_v59, %v1022_v62  ;;  %v1166_v62 = vmul.f32 1.442695, %v1132_v34  ;;  %v6159_v34 = vpop.eup %5151 }
 0x1cc   : > { %8104 = vst [vmem:[#allocation23_spill] sm:$0xff] %v6159_v34 }
 0x1cd   : > { %2435 = vst.msk [vmem:[#allocation2 + $0x30] sm:$0xff] %vm1770_vm3, %v6110_v63  ;;  %5153 = vpow2.f32 %v1166_v62 }
 0x1d2   : > { %v1025_v5 = vpop.xlane.xlu1 %1024 }
 0x1d3   : > { %v6121_v8 = vmax.f32 %v6118_v4, %v1025_v5  ;;  %v6147_v5 = vld [vmem:[#allocation2 + $0x50] sm:$0xff] }
 0x1d4   : > { %8100 = vst [vmem:[#allocation19_spill] sm:$0xff] %v6147_v5 }
 0x1d5   : > { %2436 = vst.msk [vmem:[#allocation2 + $0x38] sm:$0xff] %vm1770_vm3, %v6121_v8 }
 0x1d8   : > { %1054 = vmax.xlane.f32.xlu2 %v1053_v9  ;;  %v1134_v9 = vsub.f32 %v974_v37, %v6090_v43  ;;  %v6164_v37 = vld [vmem:[#allocation2 + $0x58] sm:$0xff] }
 0x1d9   : > { %8106 = vst [vmem:[#allocation25_spill] sm:$0xff] %v6164_v37 }
 0x1da   : > { %v1028_v18 = vpop.xlane.xlu2 %1027  ;;  %v1170_v21 = vmul.f32 1.442695, %v1134_v9 }
 0x1db   : > { %v6136_v27 = vmax.f32 %v6131_v12, %v1028_v18 }
 0x1dc   : > { %5155 = vpow2.f32 %v1170_v21  ;;  %v6181_v21 = vld [vmem:[#allocation2 + $0x60] sm:$0xff] }
 0x1dd   : > { %2437 = vst.msk [vmem:[#allocation2 + $0x40] sm:$0xff] %vm1770_vm3, %v6136_v27  ;;  %1057 = vmax.xlane.f32.xlu0 %v1056_v16 }
 0x1de   : > { %8109 = vst [vmem:[#allocation28_spill] sm:$0xff] %v6181_v21 }
 0x1e2   : > { %v1031_v40 = vpop.xlane.xlu0 %1030 }
 0x1e3   : > { %v6143_v52 = vmax.f32 %v6140_v29, %v1031_v40  ;;  %v6161_v40 = vpop.eup %5153  ;;  %v4977_v29 = vld [vmem:[%s5769_s14 + $0x78] sm:$0xff] }
 0x1e4   : > { %8105 = vst [vmem:[#allocation24_spill] sm:$0xff] %v6161_v40  ;;  %2276 = vmatpush.bf16.msra.mxu3 %v4977_v29  ;;  %v6178_v11 = vpop.eup %5155  ;;  %v4975_v29 = vld [vmem:[%s5769_s14 + $0x68] sm:$0xff] }
 0x1e5   : > { %8099 = vst [vmem:[#allocation18_spill] sm:$0xff] %v6143_v52 }
 0x1e6   : > { %2438 = vst.msk [vmem:[#allocation2 + $0x48] sm:$0xff] %vm1770_vm3, %v6143_v52 }
 0x1e7   : > { %8108 = vst [vmem:[#allocation27_spill] sm:$0xff] %v6178_v11 }
 0x1e8   : > { %2277 = vmatpush.bf16.msra.mxu3 %v4976_v10  ;;  %v4966_v10 = vld [vmem:[%s5769_s14 + $0x20] sm:$0xff] }
 0x1ea   : > { %v1034_v18 = vpop.xlane.xlu1 %1033 }
 0x1eb   : > { %v6151_v16 = vmax.f32 %v6147_v5, %v1034_v18  ;;  %v4969_v18 = vld [vmem:[%s5769_s14 + $0x38] sm:$0xff]  ;;  %v4968_v5 = vld [vmem:[%s5769_s14 + $0x30] sm:$0xff] }
 0x1ec   : > { %2187 = vmatpush.bf16.msra.mxu2 %v4969_v18  ;;  %v4967_v18 = vld [vmem:[%s5769_s14 + $0x28] sm:$0xff]  ;;  %2278 = vmatpush.bf16.msra.mxu3 %v4975_v29  ;;  %v4973_v29 = vld [vmem:[%s5769_s14 + $0x58] sm:$0xff] }
 0x1ed   : > { %8101 = vst [vmem:[#allocation20_spill] sm:$0xff] %v6151_v16 }
 0x1ee   : > { %2439 = vst.msk [vmem:[#allocation2 + $0x50] sm:$0xff] %vm1770_vm3, %v6151_v16 }
 0x1f0   : > { %1842 = vperm.xlu2 %5146, %v6159_v34   ;;  %2188 = vmatpush.bf16.msra.mxu2 %v4968_v5  ;;  %v1133_v34 = vsub.f32 %v6083_v24, %v6086_v31  ;;  %v4974_v5 = vld [vmem:[%s5769_s14 + $0x60] sm:$0xff] }
 0x1f1   : > { %1847 = vperm.xlu0 %5147, %v6161_v40   ;;  %2279 = vmatpush.bf16.msra.mxu3 %v4974_v5 }
 0x1f2   : > { %v1037_v62 = vpop.xlane.xlu2 %1036  ;;  %1060 = vmax.xlane.f32.xlu1 %v1059_v56 }
 0x1f3   : > { %v6170_v9 = vmax.f32 %v6164_v37, %v1037_v62  ;;  %v4957_v37 = vld [vmem:[%s5759_s30 + $0x68] sm:$0xff] }
 0x1f4   : > { %2189 = vmatpush.bf16.msra.mxu2 %v4967_v18  ;;  %4786 = vmatmul.msk.bf16.gmra.mxu0 %vm743_vm2, %v4957_v37  ;;  %v4965_v18 = vld [vmem:[%s5769_s14 + $0x18] sm:$0xff] }
 0x1f5   : > { %8107 = vst [vmem:[#allocation26_spill] sm:$0xff] %v6170_v9  ;;  %4802 = vmatmul.msk.bf16.gmra.mxu1 %vm743_vm2, %v4957_v37  ;;  %2280 = vmatpush.bf16.msra.mxu3 %v4973_v29  ;;  %v6210_v37 = vld [vmem:[#allocation2 + $0x70] sm:$0xff]  ;;  %v4970_v29 = vld [vmem:[%s5769_s14 + $0x40] sm:$0xff] }
 0x1f6   : > { %2440 = vst.msk [vmem:[#allocation2 + $0x58] sm:$0xff] %vm1770_vm3, %v6170_v9 }
 0x1f7   : > { %8113 = vst [vmem:[#allocation32_spill] sm:$0xff] %v6210_v37 }
 0x1f8   : > { %1243 = vperm.xlu2 %5146, %v6086_v31   ;;  %2190 = vmatpush.bf16.msra.mxu2 %v4966_v10 }
 0x1f9   : > { %1857 = vperm.xlu0 %5147, %v6178_v11  }
 0x1fa   : > { %v1040_v56 = vpop.xlane.xlu0 %1039 }
 0x1fb   : > { %v6185_v62 = vmax.f32 %v6181_v21, %v1040_v56  ;;  %v1168_v56 = vmul.f32 1.442695, %v1133_v34  ;;  %v6199_v21 = vld [vmem:[#allocation2 + $0x68] sm:$0xff]  ;;  %v4972_v34 = vld [vmem:[%s5769_s14 + $0x50] sm:$0xff] }
 0x1fc   : > { %8111 = vst [vmem:[#allocation30_spill] sm:$0xff] %v6199_v21  ;;  %2191 = vmatpush.bf16.msra.mxu2 %v4965_v18  ;;  %2281 = vmatpush.bf16.msra.mxu3 %v4972_v34  ;;  %v4962_v18 = vld [vmem:[%s5769_s14] sm:$0xff] }
 0x1fd   : > { %8110 = vst [vmem:[#allocation29_spill] sm:$0xff] %v6185_v62  ;;  %5157 = vpow2.f32 %v1168_v56  ;;  %v4963_v56 = vld [vmem:[%s5769_s14 + $0x8] sm:$0xff] }
 0x1fe   : > { %2441 = vst.msk [vmem:[#allocation2 + $0x60] sm:$0xff] %vm1770_vm3, %v6185_v62 }
 0x200   : > { %1248 = vperm.xlu2 %5146, %v6090_v43   ;;  %v4964_v43 = vld [vmem:[%s5769_s14 + $0x10] sm:$0xff] }
 0x201   : > { %2192 = vmatpush.bf16.msra.mxu2 %v4964_v43  ;;  %v6226_v43 = vpop.f32.mrf.mxu0 }
 0x202   : > { %v1043_v24 = vpop.xlane.xlu1 %1042  ;;  %8117 = vst [vmem:[#allocation36_spill] sm:$0xff] %v6226_v43 }
 0x203   : > { %v6202_v31 = vmax.f32 %v6199_v21, %v1043_v24  ;;  %v6212_v10 = vpop.eup %5157  ;;  %v4971_v21 = vld [vmem:[%s5769_s14 + $0x48] sm:$0xff] }
 0x204   : > { %8114 = vst [vmem:[#allocation33_spill] sm:$0xff] %v6212_v10  ;;  %2282 = vmatpush.bf16.msra.mxu3 %v4971_v21  ;;  %4787 = vmatmul.msk.bf16.gmra.mxu0 %vm743_vm2, %v4958_v6 }
 0x205   : > { %8112 = vst [vmem:[#allocation31_spill] sm:$0xff] %v6202_v31  ;;  %2193 = vmatpush.bf16.msra.mxu2 %v4963_v56  ;;  %4803 = vmatmul.msk.bf16.gmra.mxu1 %vm743_vm2, %v4958_v6 }
 0x206   : > { %2442 = vst.msk [vmem:[#allocation2 + $0x68] sm:$0xff] %vm1770_vm3, %v6202_v31 }
 0x208   : > { %2283 = vmatpush.bf16.msra.mxu3 %v4970_v29  ;;  %v6246_v29 = vpop.f32.mrf.mxu1 }
 0x209   : > { %2194 = vmatpush.bf16.msra.mxu2 %v4962_v18  ;;  %v6238_v18 = vld [vmem:[#allocation2 + $0x80] sm:$0xff]  ;;  %8121 = vst [vmem:[#allocation40_spill] sm:$0xff] %v6246_v29 }
 0x20a   : > { %v1046_v5 = vpop.xlane.xlu2 %1045  ;;  %8119 = vst [vmem:[#allocation38_spill] sm:$0xff] %v6238_v18 }
 0x20b   : > { %v6215_v24 = vmax.f32 %v6210_v37, %v1046_v5  ;;  %1852 = vperm.xlu1 %5148, %v6212_v10  }
 0x20d   : > { %8115 = vst [vmem:[#allocation34_spill] sm:$0xff] %v6215_v24 }
 0x20e   : > { %2443 = vst.msk [vmem:[#allocation2 + $0x70] sm:$0xff] %vm1770_vm3, %v6215_v24 }
 0x212   : > { %v1229_v34 = vpop.permute.xlu2 %1228  ;;  %v1049_v5 = vpop.xlane.xlu0 %1048 }
 0x213   : > { %v1386_v37 = vsub.f32 %v5963_v19, %v1229_v34  ;;  %v1387_v10 = vsub.f32 %v5965_v20, %v1229_v34  ;;  %v6233_v11 = vmax.f32 %v6224_v17, %v1049_v5  ;;  %1253 = vperm.xlu1 %5148, %v6100_v53   ;;  %v6244_v20 = vpop.f32.mrf.mxu0 }
 0x214   : > { %8120 = vst [vmem:[#allocation39_spill] sm:$0xff] %v6244_v20  ;;  %v1065_v34 = vmax.f32 %v6244_v20, %v6246_v29  ;;  %v1137_v29 = vsub.f32 %v6118_v4, %v6121_v8 }
 0x215   : > { %v1450_v21 = vmul.f32 1.442695, %v1386_v37  ;;  %v1452_v56 = vmul.f32 1.442695, %v1387_v10  ;;  %2444 = vst.msk [vmem:[#allocation2 + $0x78] sm:$0xff] %vm1770_vm3, %v6233_v11 }
 0x217   : > { %5159 = vpow2.f32 %v1450_v21 }
 0x218   : > { %5161 = vpow2.f32 %v1452_v56 }
 0x21a   : > { %v1052_v40 = vpop.xlane.xlu1 %1051 }
 0x21b   : > { %1263 = vperm.xlu1 %5148, %v6121_v8   ;;  %v6242_v19 = vmax.f32 %v6238_v18, %v1052_v40  ;;  %v1062_v40 = vmax.f32 %v6226_v43, %v6228_v15 }
 0x21d   : > { %v5160_v37 = vpop.eup %5159  ;;  %2445 = vst.msk [vmem:[#allocation2 + $0x80] sm:$0xff] %vm1770_vm3, %v6242_v19 }
 0x21e   : > { %v5162_v10 = vpop.eup %5161 }
 0x21f   : > { %v6252_v5 = vadd.f32 %v5162_v10, %v5160_v37 }
 0x223   : > { %1066 = vmax.xlane.f32.xlu0 %v1065_v34 }
 0x225   : > { %v1234_v21 = vpop.permute.xlu0 %1233 }
 0x226   : > { %v1388_v56 = vsub.f32 %v5971_v22, %v1234_v21  ;;  %v1389_v17 = vsub.f32 %v5973_v23, %v1234_v21 }
 0x228   : > { %v1454_v18 = vmul.f32 1.442695, %v1388_v56  ;;  %v1456_v7 = vmul.f32 1.442695, %v1389_v17  ;;  %v1176_v17 = vmul.f32 1.442695, %v1137_v29  ;;  %v6277_v29 = vpop.f32.mrf.mxu0 }
 0x229   : > { %1063 = vmax.xlane.f32.xlu2 %v1062_v40  ;;  %v6290_v56 = vld [vmem:[#allocation2 + $0x88] sm:$0xff] }
 0x22a   : > { %5163 = vpow2.f32 %v1454_v18  ;;  %8123 = vst [vmem:[#allocation42_spill] sm:$0xff] %v6290_v56 }
 0x22b   : > { %5165 = vpow2.f32 %v1456_v7  ;;  %v1135_v7 = vsub.f32 %v6097_v49, %v6100_v53 }
 0x22c   : > { %5167 = vpow2.f32 %v1176_v17  ;;  %v6297_v17 = vld [vmem:[#allocation2 + $0x90] sm:$0xff] }
 0x22d   : > { %8124 = vst [vmem:[#allocation43_spill] sm:$0xff] %v6297_v17 }
 0x230   : > { %v5164_v3 = vpop.eup %5163 }
 0x231   : > { %v5166_v20 = vpop.eup %5165  ;;  %v2027_v34 = vpack.c.bf16 %v5164_v3, %v5160_v37 }
 0x232   : > { %v6263_v15 = vpop.permute.xlu1 %1837  ;;  %v2028_v22 = vpack.c.bf16 %v5166_v20, %v5162_v10  ;;  %v6265_v23 = vadd.f32 %v5166_v20, %v5164_v3  ;;  %v6272_v10 = vpop.eup %5167  ;;  %v1172_v3 = vmul.f32 1.442695, %v1135_v7  ;;  %v1136_v7 = vsub.f32 %v6105_v59, %v6110_v63 }
 0x233   : > { %2195 = vmatmul.bf16.vlgmr.msra.gmra.mxu2 %v2027_v34  ;;  %v6275_v20 = vpop.f32.mrf.mxu1 }
 0x234   : > { %2284 = vmatmul.bf16.vlgmr.msra.gmra.mxu3 %v2028_v22  ;;  %8122 = vst [vmem:[#allocation41_spill] sm:$0xff] %v6275_v20 }
 0x237   : > { %1268 = vperm.xlu0 %5147, %v6136_v27  }
 0x23a   : > { %v1239_v4 = vpop.permute.xlu1 %1238 }
 0x23b   : > { %v1390_v8 = vsub.f32 %v5977_v25, %v1239_v4  ;;  %v1391_v6 = vsub.f32 %v5979_v26, %v1239_v4  ;;  %v1068_v25 = vmax.f32 %v6277_v29, %v6275_v20  ;;  %v4959_v26 = vld [vmem:[%s5759_s30 + $0x78] sm:$0xff] }
 0x23c   : > { %4788 = vmatmul.msk.bf16.gmra.mxu0 %vm743_vm2, %v4959_v26  ;;  %4804 = vmatmul.msk.bf16.gmra.mxu1 %vm743_vm2, %v4959_v26 }
 0x23d   : > { %v1458_v18 = vmul.f32 1.442695, %v1390_v8  ;;  %v1460_v37 = vmul.f32 1.442695, %v1391_v6  ;;  %v1174_v6 = vmul.f32 1.442695, %v1136_v7 }
 0x23f   : > { %5169 = vpow2.f32 %v1458_v18  ;;  %1872 = vperm.xlu0 %5147, %v6272_v10  }
 0x240   : > { %5171 = vpow2.f32 %v1460_v37  ;;  %v6308_v37 = vpop.f32.mrf.mxu0 }
 0x241   : > { %1258 = vperm.xlu2 %5146, %v6110_v63   ;;  %5173 = vpow2.f32 %v1172_v3  ;;  %v6310_v3 = vpop.f32.mrf.mxu1 }
 0x242   : > { %5175 = vpow2.f32 %v1174_v6 }
 0x245   : > { %v5170_v49 = vpop.eup %5169  ;;  %1069 = vmax.xlane.f32.xlu1 %v1068_v25 }
 0x246   : > { %v5172_v53 = vpop.eup %5171 }
 0x247   : > { %v6285_v21 = vadd.f32 %v5172_v53, %v5170_v49  ;;  %v6287_v40 = vpop.eup %5173 }
 0x248   : > { %v6314_v63 = vpop.eup %5175  ;;  %v6319_v6 = vpop.f32.mrf.mxu0 }
 0x249   : > { %1862 = vperm.xlu2 %5146, %v6287_v40   ;;  %8125 = vst [vmem:[#allocation44_spill] sm:$0xff] %v6314_v63  ;;  %v6317_v7 = vpop.f32.mrf.mxu1 }
 0x24a   : > { %8126 = vst [vmem:[#allocation45_spill] sm:$0xff] %v6317_v7 }
 0x24b   : > { %v1055_v34 = vpop.xlane.xlu2 %1054  ;;  %8127 = vst [vmem:[#allocation46_spill] sm:$0xff] %v6319_v6 }
 0x24c   : > { %v6293_v22 = vmax.f32 %v6290_v56, %v1055_v34 }
 0x24e   : > { %2446 = vst.msk [vmem:[#allocation2 + $0x88] sm:$0xff] %vm1770_vm3, %v6293_v22 }
 0x250   : > { %v1058_v4 = vpop.xlane.xlu0 %1057 }
 0x251   : > { %v6302_v8 = vmax.f32 %v6297_v17, %v1058_v4  ;;  %v6321_v17 = vld [vmem:[#allocation2 + $0x98] sm:$0xff] }
 0x252   : > { %8128 = vst [vmem:[#allocation47_spill] sm:$0xff] %v6321_v17 }
 0x253   : > { %v6304_v18 = vpop.permute.xlu2 %1842  ;;  %2447 = vst.msk [vmem:[#allocation2 + $0x90] sm:$0xff] %vm1770_vm3, %v6302_v8 }
 0x25b   : > { %v1244_v25 = vpop.permute.xlu2 %1243 }
 0x25c   : > { %v1392_v26 = vsub.f32 %v5983_v28, %v1244_v25  ;;  %v1393_v59 = vsub.f32 %v5986_v30, %v1244_v25  ;;  %v1074_v25 = vmax.f32 %v6319_v6, %v6317_v7 }
 0x25e   : > { %v1462_v34 = vmul.f32 1.442695, %v1392_v26  ;;  %v1464_v4 = vmul.f32 1.442695, %v1393_v59  ;;  %1867 = vperm.xlu1 %5148, %v6314_v63  }
 0x260   : > { %5177 = vpow2.f32 %v1462_v34 }
 0x261   : > { %5179 = vpow2.f32 %v1464_v4 }
 0x263   : > { %v1249_v56 = vpop.permute.xlu2 %1248 }
 0x264   : > { %v1394_v43 = vsub.f32 %v5992_v32, %v1249_v56  ;;  %v1395_v28 = vsub.f32 %v5994_v33, %v1249_v56 }
 0x265   : > { %v1061_v30 = vpop.xlane.xlu1 %1060 }
 0x266   : > { %v5178_v26 = vpop.eup %5177  ;;  %v1466_v59 = vmul.f32 1.442695, %v1394_v43  ;;  %v1468_v63 = vmul.f32 1.442695, %v1395_v28  ;;  %v6328_v34 = vmax.f32 %v6321_v17, %v1061_v30  ;;  %1278 = vperm.xlu1 %5148, %v6151_v16   ;;  %v1071_v28 = vmax.f32 %v6308_v37, %v6310_v3 }
 0x267   : > { %v5180_v4 = vpop.eup %5179  ;;  %v2029_v20 = vpack.c.bf16 %v5178_v26, %v5170_v49 }
 0x268   : > { %5181 = vpow2.f32 %v1466_v59  ;;  %2448 = vst.msk [vmem:[#allocation2 + $0x98] sm:$0xff] %vm1770_vm3, %v6328_v34  ;;  %v2030_v32 = vpack.c.bf16 %v5180_v4, %v5172_v53  ;;  %v6333_v33 = vadd.f32 %v5180_v4, %v5178_v26  ;;  %v1138_v53 = vsub.f32 %v6131_v12, %v6136_v27  ;;  %v6344_v26 = vpop.permute.xlu0 %1847 }
 0x269   : > { %5183 = vpow2.f32 %v1468_v63  ;;  %2200 = vmatmul.bf16.gmra.mxu2 %v2029_v20  ;;  %1075 = vmax.xlane.f32.xlu0 %v1074_v25 }
 0x26a   : > { %2289 = vmatmul.bf16.gmra.mxu3 %v2030_v32  ;;  %v1178_v20 = vmul.f32 1.442695, %v1138_v53 }
 0x26c   : > { %5185 = vpow2.f32 %v1178_v20 }
 0x26e   : > { %v5182_v43 = vpop.eup %5181 }
 0x26f   : > { %v5184_v56 = vpop.eup %5183 }
 0x270   : > { %v6337_v30 = vadd.f32 %v5184_v56, %v5182_v43  ;;  %v6353_v27 = vpop.permute.xlu0 %1857 }
 0x272   : > { %1072 = vmax.xlane.f32.xlu2 %v1071_v28  ;;  %v6349_v28 = vpop.f32.mrf.mxu1 }
 0x273   : > { %8129 = vst [vmem:[#allocation48_spill] sm:$0xff] %v6349_v28 }
 0x27d   : > { %v6339_v49 = vpop.permute.xlu1 %1852  ;;  %1283 = vperm.xlu0 %5147, %v6170_v9   ;;  %v6351_v9 = vpop.f32.mrf.mxu0 }
 0x27e   : > { %8130 = vst [vmem:[#allocation49_spill] sm:$0xff] %v6351_v9 }
 0x285   : > { %v1254_v63 = vpop.permute.xlu1 %1253  ;;  %v6368_v6 = vpop.f32.mrf.mxu0 }
 0x286   : > { %v1396_v25 = vsub.f32 %v5998_v35, %v1254_v63  ;;  %v1397_v59 = vsub.f32 %v6000_v36, %v1254_v63  ;;  %v1077_v36 = vmax.f32 %v6351_v9, %v6349_v28  ;;  %v6359_v63 = vpop.eup %5185  ;;  %8134 = vst [vmem:[#allocation53_spill] sm:$0xff] %v6368_v6 }
 0x287   : > { %8131 = vst [vmem:[#allocation50_spill] sm:$0xff] %v6359_v63 }
 0x288   : > { %v1470_v4 = vmul.f32 1.442695, %v1396_v25  ;;  %v1472_v32 = vmul.f32 1.442695, %v1397_v59 }
 0x28a   : > { %5187 = vpow2.f32 %v1470_v4  ;;  %1273 = vperm.xlu2 %5146, %v6143_v52  }
 0x28b   : > { %5189 = vpow2.f32 %v1472_v32 }
 0x28d   : > { %v1264_v12 = vpop.permute.xlu1 %1263 }
 0x28e   : > { %v1400_v53 = vsub.f32 %v6010_v41, %v1264_v12  ;;  %v1401_v35 = vsub.f32 %v6012_v42, %v1264_v12  ;;  %v6364_v41 = vld [vmem:[#allocation2 + $0xa8] sm:$0xff]  ;;  %v6366_v42 = vpop.f32.mrf.mxu1 }
 0x28f   : > { %8132 = vst [vmem:[#allocation51_spill] sm:$0xff] %v6364_v41 }
 0x290   : > { %v5188_v20 = vpop.eup %5187  ;;  %v1478_v25 = vmul.f32 1.442695, %v1400_v53  ;;  %v1480_v59 = vmul.f32 1.442695, %v1401_v35  ;;  %1078 = vmax.xlane.f32.xlu1 %v1077_v36  ;;  %8133 = vst [vmem:[#allocation52_spill] sm:$0xff] %v6366_v42 }
 0x291   : > { %v5190_v4 = vpop.eup %5189  ;;  %v2031_v32 = vpack.c.bf16 %v5188_v20, %v5182_v43 }
 0x292   : > { %5191 = vpow2.f32 %v1478_v25  ;;  %1877 = vperm.xlu2 %5146, %v6359_v63   ;;  %v2032_v52 = vpack.c.bf16 %v5190_v4, %v5184_v56  ;;  %v6362_v7 = vadd.f32 %v5190_v4, %v5188_v20  ;;  %v6375_v56 = vld [vmem:[#allocation2 + $0xa0] sm:$0xff] }
 0x293   : > { %5193 = vpow2.f32 %v1480_v59  ;;  %2205 = vmatmul.bf16.gmra.mxu2 %v2031_v32  ;;  %8135 = vst [vmem:[#allocation54_spill] sm:$0xff] %v6375_v56  ;;  %v6386_v59 = vpop.f32.mrf.mxu0 }
 0x294   : > { %2294 = vmatmul.bf16.gmra.mxu3 %v2032_v52  ;;  %8137 = vst [vmem:[#allocation56_spill] sm:$0xff] %v6386_v59 }
 0x296   : > { %v1067_v12 = vpop.xlane.xlu0 %1066  ;;  %v6384_v25 = vpop.f32.mrf.mxu1 }
 0x297   : > { %v6371_v53 = vmax.f32 %v6364_v41, %v1067_v12  ;;  %8136 = vst [vmem:[#allocation55_spill] sm:$0xff] %v6384_v25  ;;  %v1083_v4 = vmax.f32 %v6386_v59, %v6384_v25  ;;  %v1803_v25 = vld [vmem:[#allocation4] sm:$0xff] }
 0x298   : > { %v5192_v43 = vpop.eup %5191 }
 0x299   : > { %v5194_v35 = vpop.eup %5193  ;;  %2450 = vst.msk [vmem:[#allocation2 + $0xa8] sm:$0xff] %vm1770_vm3, %v6371_v53 }
 0x29a   : > { %v6377_v36 = vadd.f32 %v5194_v35, %v5192_v43 }
 0x29c   : > { %v1064_v52 = vpop.xlane.xlu2 %1063 }
 0x29d   : > { %v6380_v20 = vmax.f32 %v6375_v56, %v1064_v52 }
 0x29f   : > { %2449 = vst.msk [vmem:[#allocation2 + $0xa0] sm:$0xff] %vm1770_vm3, %v6380_v20 }
 0x2a4   : > { %v1259_v32 = vpop.permute.xlu2 %1258 }
 0x2a5   : > { %v1398_v12 = vsub.f32 %v6004_v38, %v1259_v32  ;;  %v1399_v41 = vsub.f32 %v6006_v39, %v1259_v32  ;;  %v6395_v38 = vld [vmem:[#allocation2 + $0xb0] sm:$0xff] }
 0x2a6   : > { %8138 = vst [vmem:[#allocation57_spill] sm:$0xff] %v6395_v38 }
 0x2a7   : > { %v1474_v28 = vmul.f32 1.442695, %v1398_v12  ;;  %v1476_v9 = vmul.f32 1.442695, %v1399_v41  ;;  %1084 = vmax.xlane.f32.xlu0 %v1083_v4  ;;  %v1080_v41 = vmax.f32 %v6368_v6, %v6366_v42  ;;  %v6409_v12 = vpop.f32.mrf.mxu0 }
 0x2a8   : > { %8139 = vst [vmem:[#allocation58_spill] sm:$0xff] %v6409_v12 }
 0x2a9   : > { %5195 = vpow2.f32 %v1474_v28  ;;  %1293 = vperm.xlu1 %5148, %v6202_v31   ;;  %v1995_v28 = vmul.f32 %v6263_v15, %v1803_v25 }
 0x2aa   : > { %5197 = vpow2.f32 %v1476_v9 }
 0x2af   : > { %v5196_v52 = vpop.eup %5195 }
 0x2b0   : > { %v5198_v56 = vpop.eup %5197  ;;  %v2033_v63 = vpack.c.bf16 %v5192_v43, %v5196_v52 }
 0x2b1   : > { %v2034_v17 = vpack.c.bf16 %v5194_v35, %v5198_v56  ;;  %v6393_v16 = vadd.f32 %v5198_v56, %v5196_v52  ;;  %v6411_v52 = vpop.f32.mrf.mxu1 }
 0x2b2   : > { %2210 = vmatmul.bf16.gmra.mxu2 %v2033_v63  ;;  %8140 = vst [vmem:[#allocation59_spill] sm:$0xff] %v6411_v52 }
 0x2b3   : > { %2299 = vmatmul.bf16.gmra.mxu3 %v2034_v17  ;;  %v1804_v17 = vld [vmem:[#allocation4 + $0x8] sm:$0xff] }
 0x2b4   : > { %v1996_v56 = vmul.f32 %v6304_v18, %v1804_v17  ;;  %v6420_v18 = vpop.f32.mrf.mxu0 }
 0x2b6   : > { %v2196_v59 = vpop.f32.mrf.mxu2 }
 0x2b7   : > { %v2285_v39 = vpop.f32.mrf.mxu3 }
 0x2b8   : > { %v2286_v4 = vadd.f32 %v2285_v39, %v2196_v59  ;;  %v1070_v9 = vpop.xlane.xlu1 %1069  ;;  %v1269_v59 = vpop.permute.xlu0 %1268  ;;  %v1086_v39 = vmax.f32 %v6409_v12, %v6411_v52 }
 0x2b9   : > { %v6401_v32 = vmax.f32 %v6395_v38, %v1070_v9 }
 0x2ba   : > { %v2365_v43 = vadd.f32 %v2286_v4, %v1995_v28  ;;  %v6422_v4 = vpop.f32.mrf.mxu1 }
 0x2bb   : > { %1081 = vmax.xlane.f32.xlu2 %v1080_v41  ;;  %1298 = vperm.xlu0 %5147, %v6215_v24   ;;  %2451 = vst.msk [vmem:[#allocation2 + $0xb0] sm:$0xff] %vm1770_vm3, %v6401_v32 }
 0x2bc   : > { %2397 = vst.msk [vmem:[#allocation4] sm:$0xff] %vm743_vm2, %v2365_v43  ;;  %v6433_v42 = vpop.f32.mrf.mxu0 }
 0x2bd   : > { %8142 = vst [vmem:[#allocation61_spill] sm:$0xff] %v6433_v42 }
 0x2be   : > { %v2198_v63 = vpop.f32.mrf.mxu2 }
 0x2bf   : > { %v2287_v35 = vpop.f32.mrf.mxu3 }
 0x2c0   : > { %v2288_v15 = vadd.f32 %v2287_v35, %v2198_v63  ;;  %v6418_v28 = vpop.permute.xlu0 %1872  ;;  %v6426_v63 = vld [vmem:[#allocation2 + $0xc0] sm:$0xff] }
 0x2c1   : > { %8141 = vst [vmem:[#allocation60_spill] sm:$0xff] %v6426_v63 }
 0x2c2   : > { %v2366_v25 = vadd.f32 %v2288_v15, %v1996_v56  ;;  %v6435_v6 = vpop.f32.mrf.mxu1 }
 0x2c3   : > { %8143 = vst [vmem:[#allocation62_spill] sm:$0xff] %v6435_v6 }
 0x2c4   : > { %2398 = vst.msk [vmem:[#allocation4 + $0x8] sm:$0xff] %vm743_vm2, %v2366_v25  ;;  %v6428_v25 = vpop.permute.xlu2 %1862 }
 0x2d0   : > { %v6415_v41 = vpop.permute.xlu1 %1867 }
 0x2d3   : > { %1288 = vperm.xlu2 %5146, %v6185_v62   ;;  %1087 = vmax.xlane.f32.xlu1 %v1086_v39 }
 0x2d8   : > { %v1279_v9 = vpop.permute.xlu1 %1278 }
 0x2d9   : > { %v1406_v43 = vsub.f32 %v6028_v50, %v1279_v9  ;;  %v1407_v17 = vsub.f32 %v6030_v51, %v1279_v9  ;;  %v1092_v50 = vmax.f32 %v6433_v42, %v6435_v6  ;;  %v6443_v9 = vld [vmem:[#allocation2 + $0xb8] sm:$0xff]  ;;  %v1403_v6 = vsub.f32 %v6018_v45, %v1269_v59  ;;  %v1805_v42 = vld [vmem:[#allocation4 + $0x10] sm:$0xff] }
 0x2da   : > { %8144 = vst [vmem:[#allocation63_spill] sm:$0xff] %v6443_v9 }
 0x2db   : > { %v1490_v35 = vmul.f32 1.442695, %v1406_v43  ;;  %v1492_v56 = vmul.f32 1.442695, %v1407_v17 }
 0x2dc   : > { %v1076_v15 = vpop.xlane.xlu0 %1075 }
 0x2dd   : > { %5199 = vpow2.f32 %v1490_v35  ;;  %v6431_v39 = vmax.f32 %v6426_v63, %v1076_v15  ;;  %v1402_v15 = vsub.f32 %v6016_v44, %v1269_v59 }
 0x2de   : > { %5201 = vpow2.f32 %v1492_v56 }
 0x2df   : > { %2453 = vst.msk [vmem:[#allocation2 + $0xc0] sm:$0xff] %vm1770_vm3, %v6431_v39  ;;  %v1482_v52 = vmul.f32 1.442695, %v1402_v15 }
 0x2e1   : > { %5203 = vpow2.f32 %v1482_v52 }
 0x2e3   : > { %v6441_v51 = vpop.eup %5199 }
 0x2e4   : > { %v6445_v43 = vpop.eup %5201 }
 0x2e5   : > { %v1073_v17 = vpop.xlane.xlu2 %1072  ;;  %1093 = vmax.xlane.f32.xlu0 %v1092_v50  ;;  %v6449_v35 = vadd.f32 %v6445_v43, %v6441_v51  ;;  %v1484_v50 = vmul.f32 1.442695, %v1403_v6 }
 0x2e6   : > { %v6452_v56 = vmax.f32 %v6443_v9, %v1073_v17  ;;  %v1997_v17 = vmul.f32 %v6344_v26, %v1805_v42  ;;  %v1806_v26 = vld [vmem:[#allocation4 + $0x18] sm:$0xff] }
 0x2e7   : > { %5205 = vpow2.f32 %v1484_v50  ;;  %v1089_v50 = vmax.f32 %v6420_v18, %v6422_v4 }
 0x2e8   : > { %2452 = vst.msk [vmem:[#allocation2 + $0xb8] sm:$0xff] %vm1770_vm3, %v6452_v56 }
 0x2ec   : > { %v2201_v12 = vpop.f32.mrf.mxu2  ;;  %1308 = vperm.xlu1 %5148, %v6242_v19  }
 0x2ed   : > { %v2290_v63 = vpop.f32.mrf.mxu3  ;;  %v1274_v24 = vpop.permute.xlu2 %1273  ;;  %1643 = vadd.xlane.f32.xlu0 %v6252_v5 }
 0x2ee   : > { %v2291_v9 = vadd.f32 %v2290_v63, %v2201_v12  ;;  %v1404_v44 = vsub.f32 %v6022_v47, %v1274_v24  ;;  %v1405_v62 = vsub.f32 %v6024_v48, %v1274_v24  ;;  %v6466_v48 = vpop.eup %5203 }
 0x2ef   : > { %v1284_v38 = vpop.permute.xlu0 %1283 }
 0x2f0   : > { %v2367_v45 = vadd.f32 %v2291_v9, %v1997_v17  ;;  %v1486_v59 = vmul.f32 1.442695, %v1404_v44  ;;  %v1488_v15 = vmul.f32 1.442695, %v1405_v62  ;;  %v1408_v31 = vsub.f32 %v6035_v54, %v1284_v38  ;;  %v6469_v54 = vpop.eup %5205 }
 0x2f1   : > { %v1409_v6 = vsub.f32 %v6039_v55, %v1284_v38  ;;  %v1998_v62 = vmul.f32 %v6339_v49, %v1806_v26  ;;  %v6491_v26 = vpop.f32.mrf.mxu0 }
 0x2f2   : > { %2399 = vst.msk [vmem:[#allocation4 + $0x10] sm:$0xff] %vm743_vm2, %v2367_v45  ;;  %5207 = vpow2.f32 %v1486_v59  ;;  %v1494_v5 = vmul.f32 1.442695, %v1408_v31  ;;  %v6481_v45 = vld [vmem:[#allocation2 + $0xc8] sm:$0xff] }
 0x2f3   : > { %5209 = vpow2.f32 %v1488_v15  ;;  %v1496_v42 = vmul.f32 1.442695, %v1409_v6 }
 0x2f4   : > { %5211 = vpow2.f32 %v1494_v5  ;;  %v2203_v47 = vpop.f32.mrf.mxu2 }
 0x2f5   : > { %5213 = vpow2.f32 %v1496_v42  ;;  %v2292_v24 = vpop.f32.mrf.mxu3  ;;  %v6493_v42 = vpop.f32.mrf.mxu1 }
 0x2f6   : > { %v2293_v12 = vadd.f32 %v2292_v24, %v2203_v47  ;;  %v1095_v47 = vmax.f32 %v6491_v26, %v6493_v42  ;;  %v1807_v24 = vld [vmem:[#allocation4 + $0x20] sm:$0xff] }
 0x2f8   : > { %v5208_v52 = vpop.eup %5207  ;;  %v2368_v55 = vadd.f32 %v2293_v12, %v1998_v62 }
 0x2f9   : > { %v5210_v38 = vpop.eup %5209  ;;  %v2035_v63 = vpack.c.bf16 %v5208_v52, %v6466_v48 }
 0x2fa   : > { %v5212_v31 = vpop.eup %5211  ;;  %2400 = vst.msk [vmem:[#allocation4 + $0x18] sm:$0xff] %vm743_vm2, %v2368_v55  ;;  %v2036_v9 = vpack.c.bf16 %v5210_v38, %v6469_v54  ;;  %v6476_v17 = vadd.f32 %v5210_v38, %v5208_v52  ;;  %v1999_v52 = vmul.f32 %v6353_v27, %v1807_v24  ;;  %v6499_v55 = vld [vmem:[#allocation2 + $0xd8] sm:$0xff] }
 0x2fb   : > { %v5214_v44 = vpop.eup %5213  ;;  %2215 = vmatmul.bf16.gmra.mxu2 %v2035_v63  ;;  %v2037_v6 = vpack.c.bf16 %v5212_v31, %v6441_v51 }
 0x2fc   : > { %2304 = vmatmul.bf16.gmra.mxu3 %v2036_v9  ;;  %1090 = vmax.xlane.f32.xlu2 %v1089_v50  ;;  %v6478_v49 = vadd.f32 %v5214_v44, %v5212_v31  ;;  %v2038_v5 = vpack.c.bf16 %v5214_v44, %v6445_v43  ;;  %v1808_v44 = vld [vmem:[#allocation4 + $0x28] sm:$0xff] }
 0x301   : > { %1313 = vperm.xlu0 %5147, %v6293_v22  }
 0x303   : > { %v1079_v59 = vpop.xlane.xlu1 %1078 }
 0x304   : > { %v6484_v15 = vmax.f32 %v6481_v45, %v1079_v59 }
 0x306   : > { %2454 = vst.msk [vmem:[#allocation2 + $0xc8] sm:$0xff] %vm1770_vm3, %v6484_v15 }
 0x309   : > { %1328 = vperm.xlu0 %5147, %v6380_v20  }
 0x30b   : > { %2220 = vmatmul.bf16.gmra.mxu2 %v2037_v6 }
 0x30c   : > { %2309 = vmatmul.bf16.gmra.mxu3 %v2038_v5 }
 0x314   : > { %1303 = vperm.xlu2 %5146, %v6233_v11  }
 0x316   : > { %v2206_v62 = vpop.f32.mrf.mxu2  ;;  %1096 = vmax.xlane.f32.xlu1 %v1095_v47  ;;  %v2000_v47 = vmul.f32 %v6428_v25, %v1808_v44  ;;  %v1809_v25 = vld [vmem:[#allocation4 + $0x30] sm:$0xff] }
 0x317   : > { %v2295_v12 = vpop.f32.mrf.mxu3 }
 0x318   : > { %v2296_v51 = vadd.f32 %v2295_v12, %v2206_v62 }
 0x31a   : > { %v2369_v43 = vadd.f32 %v2296_v51, %v1999_v52  ;;  %v1085_v38 = vpop.xlane.xlu0 %1084  ;;  %v6516_v51 = vld [vmem:[#allocation2 + $0xd0] sm:$0xff] }
 0x31b   : > { %v1294_v63 = vpop.permute.xlu1 %1293  ;;  %v6502_v31 = vmax.f32 %v6499_v55, %v1085_v38 }
 0x31c   : > { %2401 = vst.msk [vmem:[#allocation4 + $0x20] sm:$0xff] %vm743_vm2, %v2369_v43  ;;  %v1412_v9 = vsub.f32 %v6049_v60, %v1294_v63  ;;  %v1413_v50 = vsub.f32 %v6051_v61, %v1294_v63  ;;  %v6512_v61 = vpop.permute.xlu2 %1877 }
 0x31d   : > { %2456 = vst.msk [vmem:[#allocation2 + $0xd8] sm:$0xff] %vm1770_vm3, %v6502_v31 }
 0x31e   : > { %v1502_v27 = vmul.f32 1.442695, %v1412_v9  ;;  %v1504_v59 = vmul.f32 1.442695, %v1413_v50  ;;  %v2208_v6 = vpop.f32.mrf.mxu2  ;;  %1649 = vadd.xlane.f32.xlu1 %v6285_v21  ;;  %v2001_v50 = vmul.f32 %v6415_v41, %v1809_v25 }
 0x31f   : > { %v2297_v5 = vpop.f32.mrf.mxu3 }
 0x320   : > { %5215 = vpow2.f32 %v1502_v27  ;;  %v2298_v24 = vadd.f32 %v2297_v5, %v2208_v6 }
 0x321   : > { %5217 = vpow2.f32 %v1504_v59 }
 0x322   : > { %v2370_v62 = vadd.f32 %v2298_v24, %v2000_v47 }
 0x324   : > { %2402 = vst.msk [vmem:[#allocation4 + $0x28] sm:$0xff] %vm743_vm2, %v2370_v62 }
 0x326   : > { %v5216_v60 = vpop.eup %5215 }
 0x327   : > { %v5218_v12 = vpop.eup %5217 }
 0x328   : > { %v6514_v52 = vadd.f32 %v5218_v12, %v5216_v60 }
 0x32e   : > { %v1082_v43 = vpop.xlane.xlu2 %1081 }
 0x32f   : > { %v6519_v21 = vmax.f32 %v6516_v51, %v1082_v43 }
 0x331   : > { %2455 = vst.msk [vmem:[#allocation2 + $0xd0] sm:$0xff] %vm1770_vm3, %v6519_v21 }
 0x333   : > { %1655 = vadd.xlane.f32.xlu0 %v6337_v30  ;;  %v1810_v30 = vld [vmem:[#allocation4 + $0x38] sm:$0xff] }
 0x334   : > { %v2002_v41 = vmul.f32 %v6418_v28, %v1810_v30  ;;  %v1299_v28 = vpop.permute.xlu0 %1298 }
 0x335   : > { %v2211_v38 = vpop.f32.mrf.mxu2 }
 0x336   : > { %v2300_v63 = vpop.f32.mrf.mxu3  ;;  %v1289_v9 = vpop.permute.xlu2 %1288 }
 0x337   : > { %v2301_v44 = vadd.f32 %v2300_v63, %v2211_v38  ;;  %v1410_v27 = vsub.f32 %v6043_v57, %v1289_v9  ;;  %v1411_v59 = vsub.f32 %v6045_v58, %v1289_v9  ;;  %1323 = vperm.xlu1 %5148, %v6328_v34  }
 0x339   : > { %v2371_v6 = vadd.f32 %v2301_v44, %v2001_v50  ;;  %v1498_v5 = vmul.f32 1.442695, %v1410_v27  ;;  %v1500_v47 = vmul.f32 1.442695, %v1411_v59  ;;  %v6534_v50 = vld [vmem:[#allocation2 + $0xe0] sm:$0xff] }
 0x33a   : > { %v1578_v59 = vld [vmem:[#allocation3] sm:$0xff] }
 0x33b   : > { %2403 = vst.msk [vmem:[#allocation4 + $0x30] sm:$0xff] %vm743_vm2, %v2371_v6  ;;  %5219 = vpow2.f32 %v1498_v5  ;;  %v1610_v30 = vmul.f32 %v6094_v46, %v1578_v59 }
 0x33c   : > { %5221 = vpow2.f32 %v1500_v47 }
 0x33d   : > { %v2213_v24 = vpop.f32.mrf.mxu2  ;;  %1646 = vadd.xlane.f32.xlu2 %v6265_v23 }
 0x33e   : > { %v2302_v62 = vpop.f32.mrf.mxu3 }
 0x33f   : > { %v2303_v43 = vadd.f32 %v2302_v62, %v2213_v24 }
 0x341   : > { %v5220_v57 = vpop.eup %5219  ;;  %v2372_v25 = vadd.f32 %v2303_v43, %v2002_v41 }
 0x342   : > { %v5222_v58 = vpop.eup %5221  ;;  %v2039_v38 = vpack.c.bf16 %v5216_v60, %v5220_v57  ;;  %v6543_v60 = vld [vmem:[#allocation2 + $0xf0] sm:$0xff] }
 0x343   : > { %2404 = vst.msk [vmem:[#allocation4 + $0x38] sm:$0xff] %vm743_vm2, %v2372_v25  ;;  %v2040_v63 = vpack.c.bf16 %v5218_v12, %v5222_v58  ;;  %v6532_v9 = vadd.f32 %v5222_v58, %v5220_v57 }
 0x344   : > { %2225 = vmatmul.bf16.gmra.mxu2 %v2039_v38  ;;  %8145 = vst [vmem:[#allocation64_spill] sm:$0xff] %v6543_v60  ;;  %v1415_v38 = vsub.f32 %v6057_v1, %v1299_v28  ;;  %v1811_v1 = vld [vmem:[#allocation4 + $0x40] sm:$0xff] }
 0x345   : > { %2314 = vmatmul.bf16.gmra.mxu3 %v2040_v63 }
 0x346   : > { %v1088_v44 = vpop.xlane.xlu1 %1087 }
 0x347   : > { %1343 = vperm.xlu0 %5147, %v6452_v56   ;;  %v6538_v23 = vmax.f32 %v6534_v50, %v1088_v44 }
 0x349   : > { %2457 = vst.msk [vmem:[#allocation2 + $0xe0] sm:$0xff] %vm1770_vm3, %v6538_v23 }
 0x355   : > { %1318 = vperm.xlu2 %5146, %v6302_v8  }
 0x358   : > { %v1094_v12 = vpop.xlane.xlu0 %1093 }
 0x359   : > { %v6546_v27 = vmax.f32 %v6543_v60, %v1094_v12  ;;  %v8148_v12 = vld [vmem:[#allocation14_spill] sm:$0xff]  ;;  %v1586_v60 = vld [vmem:[#allocation3 + $0x40] sm:$0xff] }
 0x35b   : > { %2459 = vst.msk [vmem:[#allocation2 + $0xf0] sm:$0xff] %vm1770_vm3, %v6546_v27 }
 0x35e   : > { %v1309_v6 = vpop.permute.xlu1 %1308 }
 0x35f   : > { %v1418_v5 = vsub.f32 %v6074_v13, %v1309_v6  ;;  %v1419_v47 = vsub.f32 %v6076_v14, %v1309_v6  ;;  %v6563_v14 = vld [vmem:[#allocation2 + $0xe8] sm:$0xff] }
 0x360   : > { %v1644_v24 = vpop.xlane.xlu0 %1643  ;;  %8146 = vst [vmem:[#allocation65_spill] sm:$0xff] %v6563_v14 }
 0x361   : > { %v1514_v62 = vmul.f32 1.442695, %v1418_v5  ;;  %v1516_v41 = vmul.f32 1.442695, %v1419_v47  ;;  %v1738_v43 = vadd.f32 %v1644_v24, %v1610_v30  ;;  %1658 = vadd.xlane.f32.xlu1 %v6362_v7  ;;  %v1414_v7 = vsub.f32 %v6055_v0, %v1299_v28 }
 0x362   : > { %v1508_v30 = vmul.f32 1.442695, %v1415_v38 }
 0x363   : > { %5223 = vpow2.f32 %v1514_v62  ;;  %1771 = vst.msk [vmem:[#allocation3] sm:$0xff] %vm1770_vm3, %v1738_v43  ;;  %v1506_v6 = vmul.f32 1.442695, %v1414_v7  ;;  %v8149_v62 = vld [vmem:[#allocation12_spill] sm:$0xff] }
 0x364   : > { %5225 = vpow2.f32 %v1516_v41  ;;  %v8150_v41 = vld [vmem:[#allocation13_spill] sm:$0xff] }
 0x369   : > { %v6555_v57 = vpop.eup %5223 }
 0x36a   : > { %v6557_v25 = vpop.eup %5225 }
 0x36b   : > { %v6561_v13 = vadd.f32 %v6557_v25, %v6555_v57 }
 0x36f   : > { %v1091_v46 = vpop.xlane.xlu2 %1090 }
 0x370   : > { %v6566_v58 = vmax.f32 %v6563_v14, %v1091_v46  ;;  %v1579_v14 = vld [vmem:[#allocation3 + $0x8] sm:$0xff] }
 0x371   : > { %1664 = vadd.xlane.f32.xlu0 %v6377_v36 }
 0x372   : > { %8147 = vst [vmem:[#allocation66_spill] sm:$0xff] %v6566_v58 }
 0x373   : > { %2458 = vst.msk [vmem:[#allocation2 + $0xe8] sm:$0xff] %vm1770_vm3, %v6566_v58  ;;  %v1314_v63 = vpop.permute.xlu0 %1313 }
 0x374   : > { %v1420_v44 = vsub.f32 %v6114_v2, %v1314_v63  ;;  %v1421_v59 = vsub.f32 %v8148_v12, %v1314_v63 }
 0x376   : > { %v1518_v5 = vmul.f32 1.442695, %v1420_v44  ;;  %v1520_v47 = vmul.f32 1.442695, %v1421_v59  ;;  %v2003_v44 = vmul.f32 %v6512_v61, %v1811_v1  ;;  %v1580_v1 = vld [vmem:[#allocation3 + $0x10] sm:$0xff] }
 0x377   : > { %v1304_v24 = vpop.permute.xlu2 %1303 }
 0x378   : > { %5227 = vpow2.f32 %v1518_v5  ;;  %v1416_v36 = vsub.f32 %v8149_v62, %v1304_v24  ;;  %v1417_v0 = vsub.f32 %v8150_v41, %v1304_v24  ;;  %v6592_v41 = vld [vmem:[#allocation2 + $0xf8] sm:$0xff] }
 0x379   : > { %5229 = vpow2.f32 %v1520_v47  ;;  %8151 = vst [vmem:[#allocation14_spill] sm:$0xff] %v6592_v41 }
 0x37a   : > { %5231 = vpow2.f32 %v1506_v6  ;;  %v1510_v43 = vmul.f32 1.442695, %v1416_v36  ;;  %v1512_v46 = vmul.f32 1.442695, %v1417_v0  ;;  %1338 = vperm.xlu1 %5148, %v6401_v32  }
 0x37b   : > { %5233 = vpow2.f32 %v1508_v30 }
 0x37c   : > { %5235 = vpow2.f32 %v1510_v43 }
 0x37d   : > { %5237 = vpow2.f32 %v1512_v46 }
 0x37e   : > { %v5228_v2 = vpop.eup %5227  ;;  %v2216_v28 = vpop.f32.mrf.mxu2  ;;  %1652 = vadd.xlane.f32.xlu2 %v6333_v33 }
 0x37f   : > { %v5230_v7 = vpop.eup %5229  ;;  %v2305_v38 = vpop.f32.mrf.mxu3 }
 0x380   : > { %v6579_v63 = vpop.eup %5231  ;;  %v2306_v12 = vadd.f32 %v2305_v38, %v2216_v28  ;;  %v6582_v59 = vadd.f32 %v5230_v7, %v5228_v2 }
 0x381   : > { %v6584_v6 = vpop.eup %5233 }
 0x382   : > { %v5236_v5 = vpop.eup %5235  ;;  %v2373_v47 = vadd.f32 %v2306_v12, %v2003_v44  ;;  %v8152_v44 = vld [vmem:[#allocation24_spill] sm:$0xff] }
 0x383   : > { %v5238_v30 = vpop.eup %5237  ;;  %v2041_v24 = vpack.c.bf16 %v5236_v5, %v6579_v63  ;;  %v1612_v12 = vmul.f32 %v8152_v44, %v1580_v1  ;;  %v1666_v1 = vadd.f32 %v6469_v54, %v6466_v48  ;;  %v1582_v44 = vld [vmem:[#allocation3 + $0x20] sm:$0xff]  ;;  %v8156_v48 = vld [vmem:[#allocation23_spill] sm:$0xff] }
 0x384   : > { %2405 = vst.msk [vmem:[#allocation4 + $0x40] sm:$0xff] %vm743_vm2, %v2373_v47  ;;  %v2042_v33 = vpack.c.bf16 %v5238_v30, %v6584_v6  ;;  %v6589_v62 = vadd.f32 %v5238_v30, %v5236_v5  ;;  %v2043_v30 = vpack.c.bf16 %v5228_v2, %v6555_v57  ;;  %v8153_v57 = vld [vmem:[#allocation27_spill] sm:$0xff]  ;;  %v1611_v54 = vmul.f32 %v8156_v48, %v1579_v14 }
 0x385   : > { %2230 = vmatmul.bf16.gmra.mxu2 %v2041_v24  ;;  %1358 = vperm.xlu0 %5147, %v6519_v21   ;;  %v2044_v24 = vpack.c.bf16 %v5230_v7, %v6557_v25  ;;  %v1614_v2 = vmul.f32 %v8153_v57, %v1582_v44  ;;  %v8154_v7 = vld [vmem:[#allocation21_spill] sm:$0xff] }
 0x386   : > { %2319 = vmatmul.bf16.gmra.mxu3 %v2042_v33  ;;  %v2218_v61 = vpop.f32.mrf.mxu2 }
 0x387   : > { %v2307_v36 = vpop.f32.mrf.mxu3 }
 0x388   : > { %v6594_v0 = vadd.f32 %v2307_v36, %v2218_v61 }
 0x389   : > { %v1097_v43 = vpop.xlane.xlu1 %1096 }
 0x38a   : > { %v6597_v46 = vmax.f32 %v6592_v41, %v1097_v43  ;;  %v6612_v43 = vpop.permute.xlu0 %1328 }
 0x38c   : > { %2460 = vst.msk [vmem:[#allocation2 + $0xf8] sm:$0xff] %vm1770_vm3, %v6597_v46 }
 0x38e   : > { %v6601_v28 = vpop.f32.mrf.mxu2 }
 0x38f   : > { %v6603_v38 = vpop.f32.mrf.mxu3 }
 0x391   : > { %v1650_v5 = vpop.xlane.xlu1 %1649 }
 0x392   : > { %v1740_v47 = vadd.f32 %v1650_v5, %v1612_v12 }
 0x394   : > { %1773 = vst.msk [vmem:[#allocation3 + $0x10] sm:$0xff] %vm1770_vm3, %v1740_v47 }
 0x395   : > { %2235 = vmatmul.bf16.gmra.mxu2 %v2043_v30  ;;  %v8155_v30 = vld [vmem:[#allocation22_spill] sm:$0xff] }
 0x396   : > { %2324 = vmatmul.bf16.gmra.mxu3 %v2044_v24  ;;  %v2223_v33 = vpop.f32.mrf.mxu2  ;;  %1333 = vperm.xlu2 %5146, %v6371_v53  }
 0x397   : > { %v2312_v61 = vpop.f32.mrf.mxu3 }
 0x398   : > { %v6610_v36 = vadd.f32 %v2312_v61, %v2223_v33 }
 0x3a4   : > { %1667 = vadd.xlane.f32.xlu1 %v1666_v1 }
 0x3a6   : > { %v1656_v12 = vpop.xlane.xlu0 %1655 }
 0x3a7   : > { %v1742_v5 = vadd.f32 %v1656_v12, %v1614_v2 }
 0x3a9   : > { %1775 = vst.msk [vmem:[#allocation3 + $0x20] sm:$0xff] %vm1770_vm3, %v1742_v5  ;;  %v1324_v25 = vpop.permute.xlu1 %1323 }
 0x3aa   : > { %v1424_v47 = vsub.f32 %v8154_v7, %v1324_v25  ;;  %v1425_v24 = vsub.f32 %v8155_v30, %v1324_v25  ;;  %v8157_v7 = vld [vmem:[#allocation16_spill] sm:$0xff] }
 0x3ac   : > { %v1526_v33 = vmul.f32 1.442695, %v1424_v47  ;;  %v1528_v61 = vmul.f32 1.442695, %v1425_v24  ;;  %v8158_v47 = vld [vmem:[#allocation15_spill] sm:$0xff] }
 0x3ae   : > { %5239 = vpow2.f32 %v1526_v33 }
 0x3af   : > { %5241 = vpow2.f32 %v1528_v61  ;;  %1673 = vadd.xlane.f32.xlu0 %v6449_v35 }
 0x3b0   : > { %v1647_v1 = vpop.xlane.xlu2 %1646 }
 0x3b1   : > { %v1739_v44 = vadd.f32 %v1647_v1, %v1611_v54 }
 0x3b3   : > { %1772 = vst.msk [vmem:[#allocation3 + $0x8] sm:$0xff] %vm1770_vm3, %v1739_v44 }
 0x3b4   : > { %v5240_v57 = vpop.eup %5239 }
 0x3b5   : > { %v5242_v2 = vpop.eup %5241 }
 0x3b6   : > { %v6623_v12 = vadd.f32 %v5242_v2, %v5240_v57 }
 0x3b8   : > { %v1319_v5 = vpop.permute.xlu2 %1318 }
 0x3b9   : > { %v1422_v25 = vsub.f32 %v8157_v7, %v1319_v5  ;;  %v1423_v30 = vsub.f32 %v8158_v47, %v1319_v5  ;;  %v1344_v24 = vpop.permute.xlu0 %1343 }
 0x3ba   : > { %v1432_v33 = vsub.f32 %v6308_v37, %v1344_v24  ;;  %v1433_v35 = vsub.f32 %v6310_v3, %v1344_v24 }
 0x3bb   : > { %v1522_v61 = vmul.f32 1.442695, %v1422_v25  ;;  %v1524_v14 = vmul.f32 1.442695, %v1423_v30 }
 0x3bc   : > { %v1542_v48 = vmul.f32 1.442695, %v1432_v33  ;;  %v1544_v54 = vmul.f32 1.442695, %v1433_v35  ;;  %v1583_v33 = vld [vmem:[#allocation3 + $0x28] sm:$0xff] }
 0x3bd   : > { %5243 = vpow2.f32 %v1522_v61  ;;  %1353 = vperm.xlu1 %5148, %v6484_v15  }
 0x3be   : > { %5245 = vpow2.f32 %v1524_v14 }
 0x3bf   : > { %5247 = vpow2.f32 %v1542_v48  ;;  %1661 = vadd.xlane.f32.xlu2 %v6393_v16 }
 0x3c0   : > { %5249 = vpow2.f32 %v1544_v54 }
 0x3c3   : > { %v5244_v1 = vpop.eup %5243  ;;  %1373 = vperm.xlu0 %5147, %v6566_v58  }
 0x3c4   : > { %v5246_v44 = vpop.eup %5245  ;;  %v2045_v5 = vpack.c.bf16 %v5240_v57, %v5244_v1  ;;  %v1615_v57 = vmul.f32 %v6287_v40, %v1583_v33  ;;  %v8160_v33 = vld [vmem:[#allocation33_spill] sm:$0xff] }
 0x3c5   : > { %v6632_v37 = vpop.eup %5247  ;;  %v2046_v3 = vpack.c.bf16 %v5242_v2, %v5246_v44  ;;  %v6634_v7 = vadd.f32 %v5246_v44, %v5244_v1  ;;  %v1585_v2 = vld [vmem:[#allocation3 + $0x38] sm:$0xff] }
 0x3c6   : > { %v6636_v25 = vpop.eup %5249  ;;  %2240 = vmatmul.bf16.gmra.mxu2 %v2045_v5  ;;  %v1617_v14 = vmul.f32 %v6272_v10, %v1585_v2  ;;  %v8159_v5 = vld [vmem:[#allocation41_spill] sm:$0xff] }
 0x3c7   : > { %2329 = vmatmul.bf16.gmra.mxu3 %v2046_v3  ;;  %v2226_v47 = vpop.f32.mrf.mxu2  ;;  %v6640_v30 = vadd.f32 %v6636_v25, %v6632_v37  ;;  %v1581_v3 = vld [vmem:[#allocation3 + $0x18] sm:$0xff] }
 0x3c8   : > { %v2315_v16 = vpop.f32.mrf.mxu3 }
 0x3c9   : > { %v6642_v24 = vadd.f32 %v2315_v16, %v2226_v47 }
 0x3d4   : > { %v1659_v35 = vpop.xlane.xlu1 %1658 }
 0x3d5   : > { %v1743_v61 = vadd.f32 %v1659_v35, %v1615_v57  ;;  %v1613_v57 = vmul.f32 %v8160_v33, %v1581_v3  ;;  %v8161_v35 = vld [vmem:[#allocation20_spill] sm:$0xff]  ;;  %v8165_v33 = vld [vmem:[#allocation31_spill] sm:$0xff] }
 0x3d7   : > { %1776 = vst.msk [vmem:[#allocation3 + $0x28] sm:$0xff] %vm1770_vm3, %v1743_v61  ;;  %1348 = vperm.xlu2 %5146, %v6431_v39   ;;  %v8162_v61 = vld [vmem:[#allocation19_spill] sm:$0xff] }
 0x3d8   : > { %v1140_v2 = vsub.f32 %v8162_v61, %v8161_v35  ;;  %v8168_v61 = vld [vmem:[#allocation40_spill] sm:$0xff] }
 0x3e4   : > { %v1665_v48 = vpop.xlane.xlu0 %1664 }
 0x3e5   : > { %v1745_v54 = vadd.f32 %v1665_v48, %v1617_v14 }
 0x3e7   : > { %1778 = vst.msk [vmem:[#allocation3 + $0x38] sm:$0xff] %vm1770_vm3, %v1745_v54  ;;  %1676 = vadd.xlane.f32.xlu1 %v6478_v49  ;;  %v8163_v49 = vld [vmem:[#allocation36_spill] sm:$0xff]  ;;  %v1182_v54 = vmul.f32 1.442695, %v1140_v2 }
 0x3e8   : > { %v1426_v48 = vsub.f32 %v8163_v49, %v6612_v43 }
 0x3ec   : > { %v1339_v1 = vpop.permute.xlu1 %1338 }
 0x3ed   : > { %v1430_v44 = vsub.f32 %v6277_v29, %v1339_v1  ;;  %v1431_v40 = vsub.f32 %v8159_v5, %v1339_v1  ;;  %1682 = vadd.xlane.f32.xlu0 %v6514_v52  ;;  %v8164_v29 = vld [vmem:[#allocation37_spill] sm:$0xff]  ;;  %v1530_v5 = vmul.f32 1.442695, %v1426_v48  ;;  %v6667_v48 = vpop.f32.mrf.mxu2 }
 0x3ee   : > { %v1427_v52 = vsub.f32 %v8164_v29, %v6612_v43  ;;  %v6671_v29 = vpop.f32.mrf.mxu3 }
 0x3ef   : > { %v1538_v47 = vmul.f32 1.442695, %v1430_v44  ;;  %v1540_v16 = vmul.f32 1.442695, %v1431_v40 }
 0x3f0   : > { %v1532_v40 = vmul.f32 1.442695, %v1427_v52 }
 0x3f1   : > { %5251 = vpow2.f32 %v1538_v47  ;;  %v1653_v10 = vpop.xlane.xlu2 %1652 }
 0x3f2   : > { %5253 = vpow2.f32 %v1540_v16  ;;  %v1741_v14 = vadd.f32 %v1653_v10, %v1613_v57  ;;  %v8166_v16 = vld [vmem:[#allocation30_spill] sm:$0xff]  ;;  %v8167_v10 = vld [vmem:[#allocation39_spill] sm:$0xff] }
 0x3f3   : > { %5255 = vpow2.f32 %v1182_v54  ;;  %v1143_v57 = vsub.f32 %v8166_v16, %v8165_v33  ;;  %v8169_v54 = vld [vmem:[#allocation38_spill] sm:$0xff] }
 0x3f4   : > { %1774 = vst.msk [vmem:[#allocation3 + $0x18] sm:$0xff] %vm1770_vm3, %v1741_v14  ;;  %5257 = vpow2.f32 %v1530_v5  ;;  %v1146_v5 = vsub.f32 %v8169_v54, %v6242_v19  ;;  %v8170_v19 = vld [vmem:[#allocation47_spill] sm:$0xff] }
 0x3f5   : > { %5259 = vpow2.f32 %v1532_v40  ;;  %v1188_v43 = vmul.f32 1.442695, %v1143_v57 }
 0x3f6   : > { %v1194_v16 = vmul.f32 1.442695, %v1146_v5 }
 0x3f7   : > { %v5252_v1 = vpop.eup %5251 }
 0x3f8   : > { %v5254_v44 = vpop.eup %5253 }
 0x3f9   : > { %v1334_v3 = vpop.permute.xlu2 %1333  ;;  %v6661_v47 = vadd.f32 %v5254_v44, %v5252_v1  ;;  %v5256_v2 = vpop.eup %5255 }
 0x3fa   : > { %v1428_v35 = vsub.f32 %v8167_v10, %v1334_v3  ;;  %v1429_v49 = vsub.f32 %v8168_v61, %v1334_v3  ;;  %v6673_v52 = vpop.eup %5257 }
 0x3fb   : > { %v6677_v40 = vpop.eup %5259 }
 0x3fc   : > { %v1534_v14 = vmul.f32 1.442695, %v1428_v35  ;;  %v1536_v58 = vmul.f32 1.442695, %v1429_v49  ;;  %v1149_v49 = vsub.f32 %v8170_v19, %v6328_v34  ;;  %v2050_v34 = vpack.c.bf16 %v6636_v25, %v5254_v44  ;;  %v6710_v25 = vpop.permute.xlu0 %1358 }
 0x3fe   : > { %5261 = vpow2.f32 %v1534_v14 }
 0x3ff   : > { %5263 = vpow2.f32 %v1536_v58 }
 0x400   : > { %1670 = vadd.xlane.f32.xlu2 %v6476_v17  ;;  %1368 = vperm.xlu1 %5148, %v6538_v23   ;;  %5265 = vpow2.f32 %v1188_v43  ;;  %v1200_v43 = vmul.f32 1.442695, %v1149_v49 }
 0x401   : > { %1887 = vperm.xlu0 %5147, %v5256_v2   ;;  %5267 = vpow2.f32 %v1194_v16  ;;  %v2049_v16 = vpack.c.bf16 %v6632_v37, %v5252_v1  ;;  %v1155_v37 = vsub.f32 %v6481_v45, %v6484_v15  ;;  %v1588_v1 = vld [vmem:[#allocation3 + $0x50] sm:$0xff] }
 0x402   : > { %5269 = vpow2.f32 %v1200_v43 }
 0x404   : > { %v5262_v3 = vpop.eup %5261 }
 0x405   : > { %v5264_v58 = vpop.eup %5263  ;;  %v2047_v33 = vpack.c.bf16 %v5262_v3, %v6673_v52 }
 0x406   : > { %v2048_v17 = vpack.c.bf16 %v5264_v58, %v6677_v40  ;;  %v6681_v57 = vadd.f32 %v5264_v58, %v5262_v3  ;;  %v6683_v10 = vpop.eup %5265  ;;  %v8172_v58 = vld [vmem:[#allocation57_spill] sm:$0xff] }
 0x407   : > { %2245 = vmatmul.bf16.gmra.mxu2 %v2047_v33  ;;  %v6690_v54 = vpop.eup %5267  ;;  %v1152_v33 = vsub.f32 %v8172_v58, %v6401_v32  ;;  %v1620_v58 = vmul.f32 %v5256_v2, %v1588_v1  ;;  %v1584_v2 = vld [vmem:[#allocation3 + $0x30] sm:$0xff] }
 0x408   : > { %2334 = vmatmul.bf16.gmra.mxu3 %v2048_v17  ;;  %v2231_v35 = vpop.f32.mrf.mxu2  ;;  %v6700_v49 = vpop.eup %5269 }
 0x409   : > { %v2320_v61 = vpop.f32.mrf.mxu3  ;;  %1902 = vperm.xlu0 %5147, %v6683_v10   ;;  %v1206_v41 = vmul.f32 1.442695, %v1152_v33 }
 0x40a   : > { %v6688_v14 = vadd.f32 %v2320_v61, %v2231_v35  ;;  %v8173_v35 = vld [vmem:[#allocation50_spill] sm:$0xff] }
 0x40b   : > { %v1618_v61 = vmul.f32 %v8173_v35, %v1586_v60  ;;  %5271 = vpow2.f32 %v1206_v41  ;;  %v1212_v60 = vmul.f32 1.442695, %v1155_v37  ;;  %v1158_v41 = vsub.f32 %v6534_v50, %v6538_v23  ;;  %v8177_v50 = vld [vmem:[#allocation44_spill] sm:$0xff] }
 0x40c   : > { %8171 = vst [vmem:[#allocation12_spill] sm:$0xff] %v6688_v14  ;;  %v1616_v23 = vmul.f32 %v8177_v50, %v1584_v2 }
 0x40d   : > { %5273 = vpow2.f32 %v1212_v60  ;;  %v8178_v60 = vld [vmem:[#allocation49_spill] sm:$0xff] }
 0x410   : > { %v2233_v5 = vpop.f32.mrf.mxu2 }
 0x411   : > { %v2322_v3 = vpop.f32.mrf.mxu3  ;;  %1917 = vperm.xlu0 %5147, %v6690_v54   ;;  %v6713_v44 = vpop.eup %5271 }
 0x412   : > { %v6695_v17 = vadd.f32 %v2322_v3, %v2233_v5  ;;  %8174 = vst [vmem:[#allocation13_spill] sm:$0xff] %v6713_v44 }
 0x417   : > { %2250 = vmatmul.bf16.gmra.mxu2 %v2049_v16  ;;  %v1668_v19 = vpop.xlane.xlu1 %1667  ;;  %v6721_v16 = vpop.eup %5273 }
 0x418   : > { %2339 = vmatmul.bf16.gmra.mxu3 %v2050_v34  ;;  %v1746_v14 = vadd.f32 %v1668_v19, %v1618_v61  ;;  %1363 = vperm.xlu2 %5146, %v6502_v31   ;;  %v6703_v43 = vpop.f32.mrf.mxu2  ;;  %8175 = vst [vmem:[#allocation24_spill] sm:$0xff] %v6721_v16  ;;  %v1684_v34 = vadd.f32 %v6584_v6, %v6579_v63 }
 0x419   : > { %v6705_v32 = vpop.f32.mrf.mxu3  ;;  %1932 = vperm.xlu0 %5147, %v6700_v49  }
 0x41a   : > { %1779 = vst.msk [vmem:[#allocation3 + $0x40] sm:$0xff] %vm1770_vm3, %v1746_v14  ;;  %v1218_v14 = vmul.f32 1.442695, %v1158_v41  ;;  %v8180_v41 = vld [vmem:[#allocation46_spill] sm:$0xff] }
 0x41c   : > { %5275 = vpow2.f32 %v1218_v14 }
 0x420   : > { %v2238_v5 = vpop.f32.mrf.mxu2 }
 0x421   : > { %v2327_v3 = vpop.f32.mrf.mxu3  ;;  %1947 = vperm.xlu0 %5147, %v6713_v44  }
 0x422   : > { %v6718_v33 = vadd.f32 %v2327_v3, %v2238_v5  ;;  %v1674_v45 = vpop.xlane.xlu0 %1673  ;;  %v6726_v35 = vpop.eup %5275  ;;  %v8179_v5 = vld [vmem:[#allocation48_spill] sm:$0xff] }
 0x423   : > { %v1748_v15 = vadd.f32 %v1674_v45, %v1620_v58  ;;  %8176 = vst [vmem:[#allocation27_spill] sm:$0xff] %v6726_v35 }
 0x425   : > { %1781 = vst.msk [vmem:[#allocation3 + $0x50] sm:$0xff] %vm1770_vm3, %v1748_v15  ;;  %v8181_v15 = vld [vmem:[#allocation45_spill] sm:$0xff] }
 0x429   : > { %1962 = vperm.xlu0 %5147, %v6721_v16  }
 0x42a   : > { %1685 = vadd.xlane.f32.xlu1 %v1684_v34  ;;  %v8182_v34 = vld [vmem:[#allocation18_spill] sm:$0xff] }
 0x42f   : > { %v1354_v61 = vpop.permute.xlu1 %1353 }
 0x430   : > { %v1436_v1 = vsub.f32 %v8178_v60, %v1354_v61  ;;  %v1437_v63 = vsub.f32 %v8179_v5, %v1354_v61  ;;  %v8185_v60 = vld [vmem:[#allocation28_spill] sm:$0xff] }
 0x431   : > { %1977 = vperm.xlu0 %5147, %v6726_v35   ;;  %v8183_v35 = vld [vmem:[#allocation17_spill] sm:$0xff] }
 0x432   : > { %v1662_v19 = vpop.xlane.xlu2 %1661  ;;  %v1550_v6 = vmul.f32 1.442695, %v1436_v1  ;;  %v1552_v3 = vmul.f32 1.442695, %v1437_v63  ;;  %v1139_v16 = vsub.f32 %v8183_v35, %v8182_v34 }
 0x433   : > { %v1744_v37 = vadd.f32 %v1662_v19, %v1616_v23 }
 0x434   : > { %5277 = vpow2.f32 %v1550_v6  ;;  %v1180_v23 = vmul.f32 1.442695, %v1139_v16 }
 0x435   : > { %1777 = vst.msk [vmem:[#allocation3 + $0x30] sm:$0xff] %vm1770_vm3, %v1744_v37  ;;  %5279 = vpow2.f32 %v1552_v3  ;;  %v8184_v37 = vld [vmem:[#allocation29_spill] sm:$0xff]  ;;  %v8186_v3 = vld [vmem:[#allocation26_spill] sm:$0xff] }
 0x436   : > { %v1142_v1 = vsub.f32 %v8185_v60, %v8184_v37 }
 0x43a   : > { %v1349_v58 = vpop.permute.xlu2 %1348  ;;  %v6738_v61 = vpop.eup %5277 }
 0x43b   : > { %v1434_v45 = vsub.f32 %v8180_v41, %v1349_v58  ;;  %v1435_v14 = vsub.f32 %v8181_v15, %v1349_v58  ;;  %v6741_v19 = vpop.eup %5279  ;;  %v1186_v41 = vmul.f32 1.442695, %v1142_v1  ;;  %v8189_v1 = vld [vmem:[#allocation43_spill] sm:$0xff] }
 0x43d   : > { %v1546_v2 = vmul.f32 1.442695, %v1434_v45  ;;  %v1548_v50 = vmul.f32 1.442695, %v1435_v14 }
 0x43f   : > { %5281 = vpow2.f32 %v1546_v2 }
 0x440   : > { %5283 = vpow2.f32 %v1548_v50  ;;  %v8188_v50 = vld [vmem:[#allocation35_spill] sm:$0xff] }
 0x441   : > { %1679 = vadd.xlane.f32.xlu2 %v6532_v9  ;;  %5285 = vpow2.f32 %v1180_v23  ;;  %v8187_v9 = vld [vmem:[#allocation25_spill] sm:$0xff]  ;;  %v1145_v23 = vsub.f32 %v8188_v50, %v6233_v11  ;;  %v8190_v11 = vld [vmem:[#allocation34_spill] sm:$0xff] }
 0x442   : > { %v1141_v58 = vsub.f32 %v8187_v9, %v8186_v3  ;;  %5287 = vpow2.f32 %v1186_v41  ;;  %v6763_v3 = vpop.permute.xlu0 %1373  ;;  %v8191_v41 = vld [vmem:[#allocation32_spill] sm:$0xff] }
 0x443   : > { %1383 = vperm.xlu1 %5148, %v6597_v46   ;;  %v1192_v37 = vmul.f32 1.442695, %v1145_v23  ;;  %v1591_v23 = vld [vmem:[#allocation3 + $0x68] sm:$0xff] }
 0x444   : > { %v1184_v2 = vmul.f32 1.442695, %v1141_v58 }
 0x445   : > { %v5282_v35 = vpop.eup %5281 }
 0x446   : > { %v5284_v5 = vpop.eup %5283  ;;  %v2051_v63 = vpack.c.bf16 %v6738_v61, %v5282_v35  ;;  %5289 = vpow2.f32 %v1184_v2 }
 0x447   : > { %v2052_v6 = vpack.c.bf16 %v6741_v19, %v5284_v5  ;;  %v6747_v16 = vadd.f32 %v5284_v5, %v5282_v35  ;;  %v6751_v15 = vpop.eup %5285  ;;  %5291 = vpow2.f32 %v1192_v37  ;;  %v1148_v35 = vsub.f32 %v8189_v1, %v6302_v8  ;;  %v8192_v8 = vld [vmem:[#allocation51_spill] sm:$0xff] }
 0x448   : > { %2255 = vmatmul.bf16.gmra.mxu2 %v2051_v63  ;;  %v6758_v60 = vpop.eup %5287  ;;  %v1589_v63 = vld [vmem:[#allocation3 + $0x58] sm:$0xff]  ;;  %v1151_v50 = vsub.f32 %v8192_v8, %v6371_v53  ;;  %v1623_v1 = vmul.f32 %v6683_v10, %v1591_v23  ;;  %v8194_v53 = vld [vmem:[#allocation60_spill] sm:$0xff]  ;;  %v1717_v23 = vadd.f32 %v6741_v19, %v6738_v61  ;;  %v2311_v61 = vadd.f32 %v6603_v38, %v6601_v28  ;;  %v1816_v38 = vld [vmem:[#allocation4 + $0x68] sm:$0xff] }
 0x449   : > { %2344 = vmatmul.bf16.gmra.mxu3 %v2052_v6  ;;  %v2241_v45 = vpop.f32.mrf.mxu2  ;;  %v1198_v6 = vmul.f32 1.442695, %v1148_v35  ;;  %v1154_v10 = vsub.f32 %v8194_v53, %v6431_v39  ;;  %v1157_v39 = vsub.f32 %v6499_v55, %v6502_v31  ;;  %v8197_v31 = vld [vmem:[#allocation58_spill] sm:$0xff]  ;;  %v1156_v28 = vsub.f32 %v6516_v51, %v6519_v21 }
 0x44a   : > { %v2330_v14 = vpop.f32.mrf.mxu3  ;;  %v1204_v35 = vmul.f32 1.442695, %v1151_v50  ;;  %v1813_v50 = vld [vmem:[#allocation4 + $0x50] sm:$0xff] }
 0x44b   : > { %v6753_v34 = vadd.f32 %v2330_v14, %v2241_v45  ;;  %1882 = vperm.xlu1 %5148, %v6751_v15   ;;  %v1144_v45 = vsub.f32 %v8191_v41, %v8190_v11  ;;  %5293 = vpow2.f32 %v1198_v6  ;;  %v1216_v8 = vmul.f32 1.442695, %v1157_v39  ;;  %v8200_v39 = vld [vmem:[#allocation52_spill] sm:$0xff] }
 0x44c   : > { %v5290_v5 = vpop.eup %5289 }
 0x44d   : > { %v1621_v9 = vmul.f32 %v5290_v5, %v1589_v63  ;;  %v6766_v58 = vpop.eup %5291  ;;  %v1190_v37 = vmul.f32 1.442695, %v1144_v45 }
 0x44f   : > { %5295 = vpow2.f32 %v1190_v37 }
 0x450   : > { %5297 = vpow2.f32 %v1204_v35 }
 0x451   : > { %v6776_v11 = vpop.eup %5293 }
 0x453   : > { %1897 = vperm.xlu1 %5148, %v6758_v60  }
 0x455   : > { %v6785_v41 = vpop.eup %5295 }
 0x456   : > { %v6788_v45 = vpop.eup %5297 }
 0x459   : > { %1378 = vperm.xlu2 %5146, %v6546_v27  }
 0x45a   : > { %v1677_v14 = vpop.xlane.xlu1 %1676 }
 0x45b   : > { %v1749_v2 = vadd.f32 %v1677_v14, %v1621_v9  ;;  %1691 = vadd.xlane.f32.xlu0 %v6561_v13  ;;  %1912 = vperm.xlu1 %5148, %v6766_v58   ;;  %v8193_v13 = vld [vmem:[#allocation42_spill] sm:$0xff]  ;;  %v1587_v14 = vld [vmem:[#allocation3 + $0x48] sm:$0xff] }
 0x45c   : > { %v1147_v9 = vsub.f32 %v8193_v13, %v6293_v22  ;;  %v8195_v22 = vld [vmem:[#allocation54_spill] sm:$0xff]  ;;  %v1619_v55 = vmul.f32 %v6751_v15, %v1587_v14  ;;  %v8199_v15 = vld [vmem:[#allocation53_spill] sm:$0xff] }
 0x45d   : > { %1782 = vst.msk [vmem:[#allocation3 + $0x58] sm:$0xff] %vm1770_vm3, %v1749_v2 }
 0x45e   : > { %v1196_v6 = vmul.f32 1.442695, %v1147_v9 }
 0x460   : > { %v1683_v63 = vpop.xlane.xlu0 %1682  ;;  %5299 = vpow2.f32 %v1196_v6 }
 0x461   : > { %v1751_v44 = vadd.f32 %v1683_v63, %v1623_v1  ;;  %1892 = vperm.xlu2 %5146, %v5290_v5   ;;  %v1210_v5 = vmul.f32 1.442695, %v1154_v10  ;;  %v8198_v63 = vld [vmem:[#allocation59_spill] sm:$0xff] }
 0x463   : > { %1784 = vst.msk [vmem:[#allocation3 + $0x68] sm:$0xff] %vm1770_vm3, %v1751_v44  ;;  %1927 = vperm.xlu1 %5148, %v6776_v11   ;;  %1700 = vadd.xlane.f32.xlu0 %v6623_v12  ;;  %v1150_v44 = vsub.f32 %v8195_v22, %v6380_v20  ;;  %5301 = vpow2.f32 %v1210_v5  ;;  %v1438_v22 = vsub.f32 %v8199_v15, %v6710_v25 }
 0x464   : > { %v2326_v15 = vadd.f32 %v6705_v32, %v6703_v43  ;;  %v1445_v43 = vsub.f32 %v6422_v4, %v6763_v3  ;;  %v1822_v32 = vld [vmem:[#allocation4 + $0x98] sm:$0xff] }
 0x465   : > { %v1202_v12 = vmul.f32 1.442695, %v1150_v44 }
 0x466   : > { %v6796_v2 = vpop.eup %5299 }
 0x467   : > { %5303 = vpow2.f32 %v1202_v12  ;;  %v1439_v12 = vsub.f32 %v8200_v39, %v6710_v25  ;;  %v2318_v25 = vadd.f32 %v6671_v29, %v6667_v48  ;;  %v1819_v48 = vld [vmem:[#allocation4 + $0x80] sm:$0xff]  ;;  %v2243_v29 = vpop.f32.mrf.mxu2 }
 0x468   : > { %5305 = vpow2.f32 %v1216_v8 }
 0x469   : > { %1907 = vperm.xlu2 %5146, %v6785_v41   ;;  %v6801_v20 = vpop.eup %5301 }
 0x46b   : > { %1942 = vperm.xlu1 %5148, %v6788_v45   ;;  %1709 = vadd.xlane.f32.xlu0 %v6661_v47  ;;  %v8196_v47 = vld [vmem:[#allocation63_spill] sm:$0xff] }
 0x46c   : > { %v1153_v37 = vsub.f32 %v8196_v47, %v6452_v56 }
 0x46d   : > { %v6816_v14 = vpop.eup %5303 }
 0x46e   : > { %v1208_v5 = vmul.f32 1.442695, %v1153_v37  ;;  %v6822_v8 = vpop.eup %5305 }
 0x471   : > { %1922 = vperm.xlu2 %5146, %v6796_v2  }
 0x472   : > { %v1369_v1 = vpop.permute.xlu1 %1368 }
 0x473   : > { %v1442_v35 = vsub.f32 %v8197_v31, %v1369_v1  ;;  %v1443_v13 = vsub.f32 %v8198_v63, %v1369_v1  ;;  %v1671_v9 = vpop.xlane.xlu2 %1670  ;;  %v1888_v53 = vpop.permute.xlu0 %1887  ;;  %1957 = vperm.xlu1 %5148, %v6801_v20   ;;  %1718 = vadd.xlane.f32.xlu0 %v1717_v23  ;;  %v1556_v23 = vmul.f32 1.442695, %v1439_v12  ;;  %v8201_v1 = vld [vmem:[#allocation56_spill] sm:$0xff]  ;;  %v8202_v31 = vld [vmem:[#allocation55_spill] sm:$0xff]  ;;  %v1214_v63 = vmul.f32 1.442695, %v1156_v28 }
 0x474   : > { %v1747_v19 = vadd.f32 %v1671_v9, %v1619_v55  ;;  %v2005_v10 = vmul.f32 %v1888_v53, %v1813_v50  ;;  %v1554_v50 = vmul.f32 1.442695, %v1438_v22 }
 0x475   : > { %v1562_v6 = vmul.f32 1.442695, %v1442_v35  ;;  %v1564_v56 = vmul.f32 1.442695, %v1443_v13 }
 0x476   : > { %1780 = vst.msk [vmem:[#allocation3 + $0x48] sm:$0xff] %vm1770_vm3, %v1747_v19  ;;  %v2375_v44 = vadd.f32 %v2311_v61, %v2005_v10 }
 0x477   : > { %5307 = vpow2.f32 %v1562_v6  ;;  %v2332_v6 = vpop.f32.mrf.mxu3 }
 0x478   : > { %5309 = vpow2.f32 %v1564_v56  ;;  %2407 = vst.msk [vmem:[#allocation4 + $0x50] sm:$0xff] %vm743_vm2, %v2375_v44 }
 0x479   : > { %1937 = vperm.xlu2 %5146, %v6816_v14   ;;  %5311 = vpow2.f32 %v1208_v5 }
 0x47a   : > { %5313 = vpow2.f32 %v1554_v50 }
 0x47b   : > { %v1364_v47 = vpop.permute.xlu2 %1363  ;;  %v1903_v37 = vpop.permute.xlu0 %1902  ;;  %1972 = vperm.xlu1 %5148, %v6822_v8   ;;  %5315 = vpow2.f32 %v1556_v23  ;;  %v1444_v23 = vsub.f32 %v6420_v18, %v6763_v3 }
 0x47c   : > { %v1440_v55 = vsub.f32 %v8201_v1, %v1364_v47  ;;  %v1441_v35 = vsub.f32 %v8202_v31, %v1364_v47  ;;  %v2008_v51 = vmul.f32 %v1903_v37, %v1816_v38 }
 0x47d   : > { %v5308_v21 = vpop.eup %5307  ;;  %v1566_v31 = vmul.f32 1.442695, %v1444_v23 }
 0x47e   : > { %v5310_v13 = vpop.eup %5309  ;;  %v1558_v9 = vmul.f32 1.442695, %v1440_v55  ;;  %v1560_v53 = vmul.f32 1.442695, %v1441_v35  ;;  %v2378_v61 = vadd.f32 %v2318_v25, %v2008_v51  ;;  %v2333_v35 = vadd.f32 %v2332_v6, %v2243_v29  ;;  %v1592_v29 = vld [vmem:[#allocation3 + $0x70] sm:$0xff] }
 0x47f   : > { %v1726_v19 = vadd.f32 %v5310_v13, %v5308_v21  ;;  %v6829_v10 = vpop.eup %5311 }
 0x480   : > { %5317 = vpow2.f32 %v1558_v9  ;;  %2410 = vst.msk [vmem:[#allocation4 + $0x68] sm:$0xff] %vm743_vm2, %v2378_v61  ;;  %v6833_v5 = vpop.eup %5313 }
 0x481   : > { %5319 = vpow2.f32 %v1560_v53  ;;  %1727 = vadd.xlane.f32.xlu0 %v1726_v19  ;;  %1952 = vperm.xlu2 %5146, %v6829_v10   ;;  %v6837_v44 = vpop.eup %5315 }
 0x482   : > { %5321 = vpow2.f32 %v1214_v63  ;;  %v1568_v63 = vmul.f32 1.442695, %v1445_v43 }
 0x483   : > { %v1918_v56 = vpop.permute.xlu0 %1917  ;;  %5323 = vpow2.f32 %v1566_v31 }
 0x484   : > { %v2011_v22 = vmul.f32 %v1918_v56, %v1819_v48  ;;  %5325 = vpow2.f32 %v1568_v63 }
 0x486   : > { %v5318_v39 = vpop.eup %5317  ;;  %v2381_v12 = vadd.f32 %v2326_v15, %v2011_v22  ;;  %v1825_v15 = vld [vmem:[#allocation4 + $0xb0] sm:$0xff] }
 0x487   : > { %v5320_v28 = vpop.eup %5319  ;;  %v2053_v38 = vpack.c.bf16 %v5318_v39, %v6833_v5 }
 0x488   : > { %v6840_v50 = vpop.eup %5321  ;;  %2413 = vst.msk [vmem:[#allocation4 + $0x80] sm:$0xff] %vm743_vm2, %v2381_v12  ;;  %v2054_v47 = vpack.c.bf16 %v5320_v28, %v6837_v44  ;;  %v6846_v37 = vadd.f32 %v5320_v28, %v5318_v39 }
 0x489   : > { %1967 = vperm.xlu2 %5146, %v6840_v50   ;;  %2260 = vmatmul.bf16.gmra.mxu2 %v2053_v38  ;;  %v5324_v61 = vpop.eup %5323  ;;  %v1624_v38 = vmul.f32 %v6785_v41, %v1592_v29  ;;  %v1815_v29 = vld [vmem:[#allocation4 + $0x60] sm:$0xff] }
 0x48a   : > { %2349 = vmatmul.bf16.gmra.mxu3 %v2054_v47  ;;  %v2246_v25 = vpop.f32.mrf.mxu2  ;;  %v5326_v19 = vpop.eup %5325  ;;  %v2055_v48 = vpack.c.bf16 %v5324_v61, %v5308_v21  ;;  %v1702_v21 = vadd.f32 %v6677_v40, %v6673_v52  ;;  %v1812_v52 = vld [vmem:[#allocation4 + $0x48] sm:$0xff] }
 0x48b   : > { %v2335_v1 = vpop.f32.mrf.mxu3  ;;  %v1933_v55 = vpop.permute.xlu0 %1932  ;;  %v2056_v56 = vpack.c.bf16 %v5326_v19, %v5310_v13  ;;  %v1590_v13 = vld [vmem:[#allocation3 + $0x60] sm:$0xff] }
 0x48c   : > { %v6851_v18 = vadd.f32 %v2335_v1, %v2246_v25  ;;  %v2014_v51 = vmul.f32 %v1933_v55, %v1822_v32  ;;  %v1622_v32 = vmul.f32 %v6758_v60, %v1590_v13  ;;  %v8203_v60 = vld [vmem:[#allocation61_spill] sm:$0xff] }
 0x48e   : > { %v2384_v9 = vadd.f32 %v2333_v35, %v2014_v51 }
 0x490   : > { %2416 = vst.msk [vmem:[#allocation4 + $0x98] sm:$0xff] %vm743_vm2, %v2384_v9 }
 0x492   : > { %v2248_v4 = vpop.f32.mrf.mxu2 }
 0x493   : > { %v2337_v3 = vpop.f32.mrf.mxu3  ;;  %v1948_v22 = vpop.permute.xlu0 %1947 }
 0x494   : > { %v6854_v53 = vadd.f32 %v2337_v3, %v2248_v4  ;;  %v2017_v12 = vmul.f32 %v1948_v22, %v1825_v15  ;;  %v1729_v22 = vadd.f32 %v5326_v19, %v5324_v61  ;;  %v8205_v61 = vld [vmem:[#allocation14_spill] sm:$0xff] }
 0x495   : > { %v1161_v19 = vsub.f32 %v8205_v61, %v6597_v46 }
 0x499   : > { %2265 = vmatmul.bf16.gmra.mxu2 %v2055_v48 }
 0x49a   : > { %2354 = vmatmul.bf16.gmra.mxu3 %v2056_v56  ;;  %v2251_v6 = vpop.f32.mrf.mxu2 }
 0x49b   : > { %v2340_v39 = vpop.f32.mrf.mxu3  ;;  %v6871_v40 = vpop.permute.xlu0 %1962 }
 0x49c   : > { %v2341_v28 = vadd.f32 %v2340_v39, %v2251_v6 }
 0x49d   : > { %v1686_v23 = vpop.xlane.xlu1 %1685 }
 0x49e   : > { %v2387_v47 = vadd.f32 %v2341_v28, %v2017_v12  ;;  %v1752_v43 = vadd.f32 %v1686_v23, %v1624_v38 }
 0x4a0   : > { %2419 = vst.msk [vmem:[#allocation4 + $0xb0] sm:$0xff] %vm743_vm2, %v2387_v47 }
 0x4a1   : > { %1785 = vst.msk [vmem:[#allocation3 + $0x70] sm:$0xff] %vm1770_vm3, %v1752_v43 }
 0x4a2   : > { %v6878_v15 = vpop.f32.mrf.mxu2 }
 0x4a3   : > { %v6880_v6 = vpop.f32.mrf.mxu3  ;;  %v6882_v28 = vpop.permute.xlu0 %1977 }
 0x4a5   : > { %1694 = vadd.xlane.f32.xlu1 %v6582_v59 }
 0x4ad   : > { %1703 = vadd.xlane.f32.xlu1 %v1702_v21 }
 0x4b2   : > { %1688 = vadd.xlane.f32.xlu2 %v6589_v62  ;;  %v1720_v62 = vadd.f32 %v6837_v44, %v6833_v5  ;;  %v1814_v44 = vld [vmem:[#allocation4 + $0x58] sm:$0xff] }
 0x4b4   : > { %v1680_v25 = vpop.xlane.xlu2 %1679 }
 0x4b5   : > { %v1750_v41 = vadd.f32 %v1680_v25, %v1622_v32  ;;  %1712 = vadd.xlane.f32.xlu1 %v6640_v30  ;;  %v1384_v1 = vpop.permute.xlu1 %1383  ;;  %v1817_v32 = vld [vmem:[#allocation4 + $0x70] sm:$0xff]  ;;  %v1594_v25 = vld [vmem:[#allocation3 + $0x80] sm:$0xff] }
 0x4b6   : > { %v1448_v55 = vsub.f32 %v6491_v26, %v1384_v1  ;;  %v1449_v31 = vsub.f32 %v6493_v42, %v1384_v1  ;;  %v8204_v26 = vld [vmem:[#allocation62_spill] sm:$0xff] }
 0x4b7   : > { %1783 = vst.msk [vmem:[#allocation3 + $0x60] sm:$0xff] %vm1770_vm3, %v1750_v41 }
 0x4b8   : > { %v1574_v59 = vmul.f32 1.442695, %v1448_v55  ;;  %v1576_v35 = vmul.f32 1.442695, %v1449_v31  ;;  %v1224_v55 = vmul.f32 1.442695, %v1161_v19 }
 0x4b9   : > { %v8208_v19 = vld [vmem:[#allocation13_spill] sm:$0xff] }
 0x4ba   : > { %5327 = vpow2.f32 %v1574_v59  ;;  %1697 = vadd.xlane.f32.xlu2 %v6634_v7  ;;  %v1626_v59 = vmul.f32 %v6690_v54, %v1594_v25 }
 0x4bb   : > { %5329 = vpow2.f32 %v1576_v35 }
 0x4bc   : > { %v1379_v30 = vpop.permute.xlu2 %1378 }
 0x4bd   : > { %v1446_v51 = vsub.f32 %v8203_v60, %v1379_v30  ;;  %v1447_v63 = vsub.f32 %v8204_v26, %v1379_v30  ;;  %1721 = vadd.xlane.f32.xlu1 %v1720_v62  ;;  %v1883_v42 = vpop.permute.xlu1 %1882  ;;  %v8207_v30 = vld [vmem:[#allocation12_spill] sm:$0xff] }
 0x4be   : > { %v2004_v9 = vmul.f32 %v1883_v42, %v1812_v52  ;;  %v8206_v52 = vld [vmem:[#allocation64_spill] sm:$0xff]  ;;  %v1820_v42 = vld [vmem:[#allocation4 + $0x88] sm:$0xff] }
 0x4bf   : > { %v1570_v4 = vmul.f32 1.442695, %v1446_v51  ;;  %v1572_v3 = vmul.f32 1.442695, %v1447_v63  ;;  %v1828_v63 = vld [vmem:[#allocation4 + $0xc8] sm:$0xff] }
 0x4c0   : > { %v5328_v48 = vpop.eup %5327  ;;  %v2374_v7 = vadd.f32 %v6594_v0, %v2004_v9 }
 0x4c1   : > { %v5330_v56 = vpop.eup %5329  ;;  %5331 = vpow2.f32 %v1570_v4  ;;  %v1821_v4 = vld [vmem:[#allocation4 + $0x90] sm:$0xff] }
 0x4c2   : > { %5333 = vpow2.f32 %v1572_v3  ;;  %2406 = vst.msk [vmem:[#allocation4 + $0x48] sm:$0xff] %vm743_vm2, %v2374_v7  ;;  %1706 = vadd.xlane.f32.xlu2 %v6681_v57  ;;  %v1735_v5 = vadd.f32 %v5330_v56, %v5328_v48  ;;  %v2020_v7 = vmul.f32 %v6871_v40, %v1828_v63  ;;  %v1823_v40 = vld [vmem:[#allocation4 + $0xa0] sm:$0xff] }
 0x4c3   : > { %5335 = vpow2.f32 %v1224_v55  ;;  %v1603_v55 = vld [vmem:[#allocation3 + $0xc8] sm:$0xff] }
 0x4c4   : > { %1736 = vadd.xlane.f32.xlu0 %v1735_v5  ;;  %v1893_v39 = vpop.permute.xlu2 %1892 }
 0x4c5   : > { %v2006_v12 = vmul.f32 %v1893_v39, %v1814_v44  ;;  %1730 = vadd.xlane.f32.xlu1 %v1729_v22  ;;  %v1898_v0 = vpop.permute.xlu1 %1897 }
 0x4c6   : > { %v2007_v38 = vmul.f32 %v1898_v0, %v1815_v29 }
 0x4c7   : > { %v5332_v23 = vpop.eup %5331  ;;  %v2376_v47 = vadd.f32 %v6610_v36, %v2006_v12  ;;  %v1818_v36 = vld [vmem:[#allocation4 + $0x78] sm:$0xff] }
 0x4c8   : > { %v5334_v57 = vpop.eup %5333  ;;  %v2377_v43 = vadd.f32 %v6642_v24, %v2007_v38  ;;  %v2057_v21 = vpack.c.bf16 %v5328_v48, %v5332_v23 }
 0x4c9   : > { %2408 = vst.msk [vmem:[#allocation4 + $0x58] sm:$0xff] %vm743_vm2, %v2376_v47  ;;  %v2058_v13 = vpack.c.bf16 %v5330_v56, %v5334_v57  ;;  %v6906_v39 = vpop.eup %5335  ;;  %v1732_v47 = vadd.f32 %v5334_v57, %v5332_v23 }
 0x4ca   : > { %2409 = vst.msk [vmem:[#allocation4 + $0x60] sm:$0xff] %vm743_vm2, %v2377_v43  ;;  %1715 = vadd.xlane.f32.xlu2 %v6747_v16  ;;  %2270 = vmatmul.bf16.gmra.mxu2 %v2057_v21  ;;  %v1160_v16 = vsub.f32 %v8206_v52, %v6546_v27  ;;  %v1597_v27 = vld [vmem:[#allocation3 + $0x98] sm:$0xff]  ;;  %v1824_v43 = vld [vmem:[#allocation4 + $0xa8] sm:$0xff]  ;;  %v2343_v52 = vadd.f32 %v6880_v6, %v6878_v15  ;;  %v1606_v15 = vld [vmem:[#allocation3 + $0xe0] sm:$0xff] }
 0x4cb   : > { %2359 = vmatmul.bf16.gmra.mxu3 %v2058_v13  ;;  %v6891_v41 = vpop.f32.mrf.mxu2  ;;  %v1629_v22 = vmul.f32 %v6700_v49, %v1597_v27  ;;  %v1600_v49 = vld [vmem:[#allocation3 + $0xb0] sm:$0xff] }
 0x4cc   : > { %v6893_v1 = vpop.f32.mrf.mxu3  ;;  %v1908_v24 = vpop.permute.xlu2 %1907  ;;  %v1222_v54 = vmul.f32 1.442695, %v1160_v16  ;;  %v1632_v13 = vmul.f32 %v8208_v19, %v1600_v49  ;;  %v1598_v19 = vld [vmem:[#allocation3 + $0xa0] sm:$0xff] }
 0x4cd   : > { %v2009_v31 = vmul.f32 %v1908_v24, %v1817_v32  ;;  %v1913_v46 = vpop.permute.xlu1 %1912  ;;  %v1826_v24 = vld [vmem:[#allocation4 + $0xb8] sm:$0xff] }
 0x4ce   : > { %v2010_v35 = vmul.f32 %v1913_v46, %v1818_v36  ;;  %v1692_v62 = vpop.xlane.xlu0 %1691  ;;  %5337 = vpow2.f32 %v1222_v54  ;;  %v8210_v46 = vld [vmem:[#allocation65_spill] sm:$0xff] }
 0x4cf   : > { %v2379_v60 = vadd.f32 %v8207_v30, %v2009_v31  ;;  %v1754_v51 = vadd.f32 %v1692_v62, %v1626_v59  ;;  %v8209_v31 = vld [vmem:[#allocation66_spill] sm:$0xff]  ;;  %v8211_v30 = vld [vmem:[#allocation24_spill] sm:$0xff] }
 0x4d0   : > { %v2380_v26 = vadd.f32 %v6695_v17, %v2010_v35  ;;  %v1159_v59 = vsub.f32 %v8210_v46, %v8209_v31  ;;  %v1827_v35 = vld [vmem:[#allocation4 + $0xc0] sm:$0xff]  ;;  %v1601_v31 = vld [vmem:[#allocation3 + $0xb8] sm:$0xff] }
 0x4d1   : > { %2411 = vst.msk [vmem:[#allocation4 + $0x70] sm:$0xff] %vm743_vm2, %v2379_v60  ;;  %v2346_v60 = vadd.f32 %v6893_v1, %v6891_v41 }
 0x4d2   : > { %2412 = vst.msk [vmem:[#allocation4 + $0x78] sm:$0xff] %vm743_vm2, %v2380_v26  ;;  %1724 = vadd.xlane.f32.xlu2 %v6846_v37  ;;  %v1220_v63 = vmul.f32 1.442695, %v1159_v59 }
 0x4d3   : > { %1787 = vst.msk [vmem:[#allocation3 + $0x80] sm:$0xff] %vm1770_vm3, %v1754_v51  ;;  %v2258_v9 = vpop.f32.mrf.mxu2 }
 0x4d4   : > { %v2347_v3 = vpop.f32.mrf.mxu3  ;;  %v1923_v48 = vpop.permute.xlu2 %1922  ;;  %5339 = vpow2.f32 %v1220_v63  ;;  %v1607_v63 = vld [vmem:[#allocation3 + $0xe8] sm:$0xff] }
 0x4d5   : > { %v2348_v17 = vadd.f32 %v2347_v3, %v2258_v9  ;;  %v2012_v56 = vmul.f32 %v1923_v48, %v1820_v42  ;;  %v1928_v5 = vpop.permute.xlu1 %1927  ;;  %v1829_v3 = vld [vmem:[#allocation4 + $0xd0] sm:$0xff] }
 0x4d6   : > { %v2013_v44 = vmul.f32 %v1928_v5, %v1821_v4  ;;  %v1701_v29 = vpop.xlane.xlu0 %1700  ;;  %v8212_v4 = vld [vmem:[#allocation27_spill] sm:$0xff] }
 0x4d7   : > { %v2390_v37 = vadd.f32 %v2348_v17, %v2020_v7  ;;  %v2382_v12 = vadd.f32 %v6718_v33, %v2012_v56  ;;  %v1757_v38 = vadd.f32 %v1701_v29, %v1629_v22  ;;  %v6915_v33 = vpop.eup %5337  ;;  %v1638_v41 = vmul.f32 %v8212_v4, %v1606_v15  ;;  %v1830_v29 = vld [vmem:[#allocation4 + $0xd8] sm:$0xff] }
 0x4d8   : > { %v2383_v0 = vadd.f32 %v6753_v34, %v2013_v44  ;;  %1992 = vperm.xlu0 %5147, %v6906_v39  }
 0x4d9   : > { %2422 = vst.msk [vmem:[#allocation4 + $0xc8] sm:$0xff] %vm743_vm2, %v2390_v37 }
 0x4da   : > { %2414 = vst.msk [vmem:[#allocation4 + $0x88] sm:$0xff] %vm743_vm2, %v2382_v12  ;;  %1733 = vadd.xlane.f32.xlu2 %v1732_v47  ;;  %v6934_v6 = vpop.eup %5339  ;;  %v1595_v12 = vld [vmem:[#allocation3 + $0x88] sm:$0xff] }
 0x4db   : > { %2415 = vst.msk [vmem:[#allocation4 + $0x90] sm:$0xff] %vm743_vm2, %v2383_v0  ;;  %v1639_v15 = vmul.f32 %v6934_v6, %v1607_v63 }
 0x4dc   : > { %1790 = vst.msk [vmem:[#allocation3 + $0x98] sm:$0xff] %vm1770_vm3, %v1757_v38  ;;  %v1938_v21 = vpop.permute.xlu2 %1937 }
 0x4dd   : > { %v2015_v34 = vmul.f32 %v1938_v21, %v1823_v40  ;;  %v1943_v61 = vpop.permute.xlu1 %1942  ;;  %v1627_v40 = vmul.f32 %v6796_v2, %v1595_v12  ;;  %v1593_v2 = vld [vmem:[#allocation3 + $0x78] sm:$0xff]  ;;  %v1833_v12 = vld [vmem:[#allocation4 + $0xf0] sm:$0xff] }
 0x4de   : > { %v2016_v23 = vmul.f32 %v1943_v61, %v1824_v43  ;;  %1987 = vperm.xlu1 %5148, %v6915_v33   ;;  %v1710_v57 = vpop.xlane.xlu0 %1709 }
 0x4df   : > { %v2385_v32 = vadd.f32 %v6851_v18, %v2015_v34  ;;  %v1760_v25 = vadd.f32 %v1710_v57, %v1632_v13  ;;  %v1831_v34 = vld [vmem:[#allocation4 + $0xe0] sm:$0xff] }
 0x4e0   : > { %v2386_v36 = vadd.f32 %v6854_v53, %v2016_v23  ;;  %v1635_v53 = vmul.f32 %v8211_v30, %v1603_v55  ;;  %v2023_v23 = vmul.f32 %v6882_v28, %v1831_v34  ;;  %v1625_v55 = vmul.f32 %v6766_v58, %v1593_v2 }
 0x4e1   : > { %2417 = vst.msk [vmem:[#allocation4 + $0xa0] sm:$0xff] %vm743_vm2, %v2385_v32  ;;  %v1630_v32 = vmul.f32 %v6816_v14, %v1598_v19  ;;  %v1596_v14 = vld [vmem:[#allocation3 + $0x90] sm:$0xff] }
 0x4e2   : > { %2418 = vst.msk [vmem:[#allocation4 + $0xa8] sm:$0xff] %vm743_vm2, %v2386_v36 }
 0x4e3   : > { %1793 = vst.msk [vmem:[#allocation3 + $0xb0] sm:$0xff] %vm1770_vm3, %v1760_v25 }
 0x4e4   : > { %v1953_v62 = vpop.permute.xlu2 %1952 }
 0x4e5   : > { %v2018_v18 = vmul.f32 %v1953_v62, %v1826_v24  ;;  %v1958_v16 = vpop.permute.xlu1 %1957 }
 0x4e6   : > { %v2019_v51 = vmul.f32 %v1958_v16, %v1827_v35  ;;  %v1719_v26 = vpop.xlane.xlu0 %1718  ;;  %v1633_v35 = vmul.f32 %v6829_v10, %v1601_v31  ;;  %v1609_v10 = vld [vmem:[#allocation3 + $0xf8] sm:$0xff] }
 0x4e7   : > { %v2388_v42 = vadd.f32 %v2343_v52, %v2018_v18  ;;  %v1763_v54 = vadd.f32 %v1719_v26, %v1635_v53  ;;  %v1628_v52 = vmul.f32 %v6776_v11, %v1596_v14  ;;  %v1604_v18 = vld [vmem:[#allocation3 + $0xd0] sm:$0xff]  ;;  %v1641_v11 = vmul.f32 %v6906_v39, %v1609_v10  ;;  %v1605_v39 = vld [vmem:[#allocation3 + $0xd8] sm:$0xff] }
 0x4e8   : > { %v2389_v9 = vadd.f32 %v2346_v60, %v2019_v51  ;;  %v1636_v53 = vmul.f32 %v6840_v50, %v1604_v18  ;;  %v1599_v51 = vld [vmem:[#allocation3 + $0xa8] sm:$0xff] }
 0x4e9   : > { %2420 = vst.msk [vmem:[#allocation4 + $0xb8] sm:$0xff] %vm743_vm2, %v2388_v42  ;;  %v1631_v26 = vmul.f32 %v6788_v45, %v1599_v51 }
 0x4ea   : > { %2421 = vst.msk [vmem:[#allocation4 + $0xc0] sm:$0xff] %vm743_vm2, %v2389_v9 }
 0x4eb   : > { %1796 = vst.msk [vmem:[#allocation3 + $0xc8] sm:$0xff] %vm1770_vm3, %v1763_v54 }
 0x4ec   : > { %v1968_v48 = vpop.permute.xlu2 %1967 }
 0x4ed   : > { %v2021_v56 = vmul.f32 %v1968_v48, %v1829_v3  ;;  %v1973_v44 = vpop.permute.xlu1 %1972  ;;  %v1637_v48 = vmul.f32 %v6822_v8, %v1605_v39 }
 0x4ee   : > { %v2022_v38 = vmul.f32 %v1973_v44, %v1830_v29 }
 0x4f2   : > { %1982 = vperm.xlu2 %5146, %v6934_v6  }
 0x4f4   : > { %v1728_v1 = vpop.xlane.xlu0 %1727 }
 0x4f5   : > { %v1766_v27 = vadd.f32 %v1728_v1, %v1638_v41  ;;  %v1602_v1 = vld [vmem:[#allocation3 + $0xc0] sm:$0xff] }
 0x4f6   : > { %v1634_v45 = vmul.f32 %v6801_v20, %v1602_v1 }
 0x4f7   : > { %1799 = vst.msk [vmem:[#allocation3 + $0xe0] sm:$0xff] %vm1770_vm3, %v1766_v27 }
 0x50c   : > { %v2261_v7 = vpop.f32.mrf.mxu2 }
 0x50d   : > { %v2350_v17 = vpop.f32.mrf.mxu3 }
 0x50e   : > { %v2351_v5 = vadd.f32 %v2350_v17, %v2261_v7 }
 0x510   : > { %v2391_v22 = vadd.f32 %v2351_v5, %v2021_v56  ;;  %v1608_v5 = vld [vmem:[#allocation3 + $0xf0] sm:$0xff] }
 0x511   : > { %v1640_v44 = vmul.f32 %v6915_v33, %v1608_v5 }
 0x512   : > { %2423 = vst.msk [vmem:[#allocation4 + $0xd0] sm:$0xff] %vm743_vm2, %v2391_v22 }
 0x514   : > { %v2263_v37 = vpop.f32.mrf.mxu2 }
 0x515   : > { %v2352_v0 = vpop.f32.mrf.mxu3 }
 0x516   : > { %v2353_v47 = vadd.f32 %v2352_v0, %v2263_v37 }
 0x518   : > { %v2392_v49 = vadd.f32 %v2353_v47, %v2022_v38  ;;  %v1695_v43 = vpop.xlane.xlu1 %1694 }
 0x519   : > { %v1755_v21 = vadd.f32 %v1695_v43, %v1627_v40  ;;  %v1832_v40 = vld [vmem:[#allocation4 + $0xe8] sm:$0xff] }
 0x51a   : > { %2424 = vst.msk [vmem:[#allocation4 + $0xd8] sm:$0xff] %vm743_vm2, %v2392_v49  ;;  %v1834_v49 = vld [vmem:[#allocation4 + $0xf8] sm:$0xff] }
 0x51b   : > { %1788 = vst.msk [vmem:[#allocation3 + $0x88] sm:$0xff] %vm1770_vm3, %v1755_v21 }
 0x51c   : > { %v2266_v61 = vpop.f32.mrf.mxu2 }
 0x51d   : > { %v2355_v13 = vpop.f32.mrf.mxu3 }
 0x51e   : > { %v2356_v57 = vadd.f32 %v2355_v13, %v2266_v61 }
 0x520   : > { %v2393_v25 = vadd.f32 %v2356_v57, %v2023_v23  ;;  %v1704_v36 = vpop.xlane.xlu1 %1703 }
 0x521   : > { %v1758_v24 = vadd.f32 %v1704_v36, %v1630_v32 }
 0x522   : > { %2425 = vst.msk [vmem:[#allocation4 + $0xe0] sm:$0xff] %vm743_vm2, %v2393_v25 }
 0x523   : > { %1791 = vst.msk [vmem:[#allocation3 + $0xa0] sm:$0xff] %vm1770_vm3, %v1758_v24 }
 0x524   : > { %v2268_v6 = vpop.f32.mrf.mxu2 }
 0x525   : > { %v1689_v46 = vpop.xlane.xlu2 %1688  ;;  %v2357_v17 = vpop.f32.mrf.mxu3 }
 0x526   : > { %v1753_v59 = vadd.f32 %v1689_v46, %v1625_v55  ;;  %v2358_v61 = vadd.f32 %v2357_v17, %v2268_v6 }
 0x528   : > { %1786 = vst.msk [vmem:[#allocation3 + $0x78] sm:$0xff] %vm1770_vm3, %v1753_v59  ;;  %v1713_v28 = vpop.xlane.xlu1 %1712 }
 0x529   : > { %v1761_v62 = vadd.f32 %v1713_v28, %v1633_v35 }
 0x52b   : > { %1794 = vst.msk [vmem:[#allocation3 + $0xb8] sm:$0xff] %vm1770_vm3, %v1761_v62 }
 0x52d   : > { %v1698_v16 = vpop.xlane.xlu2 %1697 }
 0x52e   : > { %v1756_v30 = vadd.f32 %v1698_v16, %v1628_v52 }
 0x530   : > { %1789 = vst.msk [vmem:[#allocation3 + $0x90] sm:$0xff] %vm1770_vm3, %v1756_v30  ;;  %v1722_v58 = vpop.xlane.xlu1 %1721 }
 0x531   : > { %v1764_v60 = vadd.f32 %v1722_v58, %v1636_v53 }
 0x533   : > { %1797 = vst.msk [vmem:[#allocation3 + $0xd0] sm:$0xff] %vm1770_vm3, %v1764_v60 }
 0x535   : > { %v1707_v42 = vpop.xlane.xlu2 %1706 }
 0x536   : > { %v1759_v54 = vadd.f32 %v1707_v42, %v1631_v26 }
 0x537   : > { %v1737_v9 = vpop.xlane.xlu0 %1736 }
 0x538   : > { %1792 = vst.msk [vmem:[#allocation3 + $0xa8] sm:$0xff] %vm1770_vm3, %v1759_v54  ;;  %v1769_v50 = vadd.f32 %v1737_v9, %v1641_v11  ;;  %v1731_v4 = vpop.xlane.xlu1 %1730 }
 0x539   : > { %v1767_v41 = vadd.f32 %v1731_v4, %v1639_v15 }
 0x53a   : > { %1802 = vst.msk [vmem:[#allocation3 + $0xf8] sm:$0xff] %vm1770_vm3, %v1769_v50 }
 0x53b   : > { %1800 = vst.msk [vmem:[#allocation3 + $0xe8] sm:$0xff] %vm1770_vm3, %v1767_v41 }
 0x53d   : > { %v1716_v27 = vpop.xlane.xlu2 %1715 }
 0x53e   : > { %v1762_v3 = vadd.f32 %v1716_v27, %v1634_v45 }
 0x540   : > { %1795 = vst.msk [vmem:[#allocation3 + $0xc0] sm:$0xff] %vm1770_vm3, %v1762_v3 }
 0x545   : > { %v1725_v7 = vpop.xlane.xlu2 %1724 }
 0x546   : > { %v1765_v56 = vadd.f32 %v1725_v7, %v1637_v48 }
 0x548   : > { %1798 = vst.msk [vmem:[#allocation3 + $0xd8] sm:$0xff] %vm1770_vm3, %v1765_v56 }
 0x54a   : > { %v1993_v43 = vpop.permute.xlu0 %1992 }
 0x54b   : > { %v2026_v13 = vmul.f32 %v1993_v43, %v1834_v49 }
 0x54d   : > { %v1734_v22 = vpop.xlane.xlu2 %1733  ;;  %v2271_v29 = vpop.f32.mrf.mxu2 }
 0x54e   : > { %v1768_v37 = vadd.f32 %v1734_v22, %v1640_v44  ;;  %v2360_v20 = vpop.f32.mrf.mxu3 }
 0x54f   : > { %v2361_v38 = vadd.f32 %v2360_v20, %v2271_v29 }
 0x550   : > { %1801 = vst.msk [vmem:[#allocation3 + $0xf0] sm:$0xff] %vm1770_vm3, %v1768_v37  ;;  %v1988_v0 = vpop.permute.xlu1 %1987 }
 0x551   : > { %v2025_v47 = vmul.f32 %v1988_v0, %v1833_v12 }
 0x553   : > { %v2395_v8 = vadd.f32 %v2361_v38, %v2025_v47 }
 0x555   : > { %2427 = vst.msk [vmem:[#allocation4 + $0xf0] sm:$0xff] %vm743_vm2, %v2395_v8  ;;  %v1983_v21 = vpop.permute.xlu2 %1982  ;;  %v2273_v34 = vpop.f32.mrf.mxu2 }
 0x556   : > { %v2024_v33 = vmul.f32 %v1983_v21, %v1832_v40  ;;  %v2362_v19 = vpop.f32.mrf.mxu3 }
 0x557   : > { %v2363_v23 = vadd.f32 %v2362_v19, %v2273_v34  ;;  %2464 = sbr.rel (%p4869_p1) target bundleno = 2764 (0xacc), region = 102 }
 0x558   : > { %v2394_v57 = vadd.f32 %v2358_v61, %v2024_v33 }
 0x559   : > { %v2396_v32 = vadd.f32 %v2363_v23, %v2026_v13 }
 0x55a   : > { %2426 = vst.msk [vmem:[#allocation4 + $0xe8] sm:$0xff] %vm743_vm2, %v2394_v57 }
 0x55b   : > { %2428 = vst.msk [vmem:[#allocation4 + $0xf8] sm:$0xff] %vm743_vm2, %v2396_v32 }
 0x55c   : > { %v2499_v25 = vld [vmem:[#allocation3 + $0x10] sm:$0xff]  ;;  %v2497_v36 = vld [vmem:[#allocation3] sm:$0xff]  ;;  %v5618_v24 = vmov 0   ;;  %v2500_v2 = vld [vmem:[#allocation3 + $0x18] sm:$0xff] }
 0x55d   : > { %5342 = vset.pattern.permute.xlu1 %v5618_v24  ;;  %5341 = vset.pattern.permute.xlu0 %v5618_v24  ;;  %5346 = vrcp.f32 %v2499_v25  ;;  %v2498_v55 = vld [vmem:[#allocation3 + $0x8] sm:$0xff]  ;;  %v2501_v31 = vld [vmem:[#allocation3 + $0x20] sm:$0xff]  ;;  %v2504_v35 = vld [vmem:[#allocation3 + $0x38] sm:$0xff] }
 0x55e   : > { %5348 = vrcp.f32 %v2497_v36  ;;  %5343 = vset.pattern.permute.xlu2 %v5618_v24  ;;  %v2502_v28 = vld [vmem:[#allocation3 + $0x28] sm:$0xff]  ;;  %v2503_v14 = vld [vmem:[#allocation3 + $0x30] sm:$0xff]  ;;  %v2505_v53 = vld [vmem:[#allocation3 + $0x40] sm:$0xff] }
 0x55f   : > { %5350 = vrcp.f32 %v2500_v2  ;;  %v2507_v16 = vld [vmem:[#allocation3 + $0x50] sm:$0xff]  ;;  %v2506_v60 = vld [vmem:[#allocation3 + $0x48] sm:$0xff]  ;;  %v2508_v63 = vld [vmem:[#allocation3 + $0x58] sm:$0xff] }
 0x560   : > { %5352 = vrcp.f32 %v2498_v55  ;;  %v2510_v10 = vld [vmem:[#allocation3 + $0x68] sm:$0xff]  ;;  %v2509_v54 = vld [vmem:[#allocation3 + $0x60] sm:$0xff]  ;;  %v2511_v50 = vld [vmem:[#allocation3 + $0x70] sm:$0xff] }
 0x561   : > { %5354 = vrcp.f32 %v2501_v31  ;;  %v2513_v9 = vld [vmem:[#allocation3 + $0x80] sm:$0xff]  ;;  %v2512_v41 = vld [vmem:[#allocation3 + $0x78] sm:$0xff]  ;;  %v2514_v3 = vld [vmem:[#allocation3 + $0x88] sm:$0xff] }
 0x562   : > { %5356 = vrcp.f32 %v2504_v35  ;;  %v2516_v45 = vld [vmem:[#allocation3 + $0x98] sm:$0xff]  ;;  %v2515_v48 = vld [vmem:[#allocation3 + $0x90] sm:$0xff]  ;;  %v2517_v56 = vld [vmem:[#allocation3 + $0xa0] sm:$0xff] }
 0x563   : > { %v5347_v46 = vpop.eup %5346  ;;  %5358 = vrcp.f32 %v2502_v28  ;;  %v2519_v7 = vld [vmem:[#allocation3 + $0xb0] sm:$0xff]  ;;  %v2518_v44 = vld [vmem:[#allocation3 + $0xa8] sm:$0xff]  ;;  %v2525_v29 = vld [vmem:[#allocation3 + $0xe0] sm:$0xff] }
 0x564   : > { %v5349_v59 = vpop.eup %5348  ;;  %2573 = vperm.xlu1 %5342, %v5347_v46   ;;  %5360 = vrcp.f32 %v2503_v14  ;;  %v2520_v20 = vld [vmem:[#allocation3 + $0xb8] sm:$0xff]  ;;  %v2521_v47 = vld [vmem:[#allocation3 + $0xc0] sm:$0xff]  ;;  %v2522_v40 = vld [vmem:[#allocation3 + $0xc8] sm:$0xff] }
 0x565   : > { %2563 = vperm.xlu0 %5341, %v5349_v59   ;;  %v5351_v62 = vpop.eup %5350  ;;  %5362 = vrcp.f32 %v2507_v16  ;;  %v2523_v43 = vld [vmem:[#allocation3 + $0xd0] sm:$0xff]  ;;  %v2524_v34 = vld [vmem:[#allocation3 + $0xd8] sm:$0xff]  ;;  %v4978_v33 = vld [vmem:[%s8005_s4] sm:$0xff] }
 0x566   : > { %v5353_v52 = vpop.eup %5352  ;;  %5364 = vrcp.f32 %v2505_v53  ;;  %2896 = vmatpush.bf16.msra.mxu0 %v4978_v33  ;;  %5063 = vmatpush.bf16.msra.mxu3 %v4978_v33  ;;  %v2465_v25 = vld [vmem:[#allocation4] sm:$0xff]  ;;  %v2466_v36 = vld [vmem:[#allocation4 + $0x8] sm:$0xff]  ;;  %v2467_v28 = vld [vmem:[#allocation4 + $0x10] sm:$0xff] }
 0x567   : > { %v5355_v18 = vpop.eup %5354  ;;  %5366 = vrcp.f32 %v2506_v60  ;;  %v2470_v60 = vld [vmem:[#allocation4 + $0x28] sm:$0xff] }
 0x568   : > { %2583 = vperm.xlu2 %5343, %v5355_v18   ;;  %v5357_v30 = vpop.eup %5356  ;;  %5368 = vrcp.f32 %v2510_v10 }
 0x569   : > { %v5359_v58 = vpop.eup %5358  ;;  %5370 = vrcp.f32 %v2508_v63 }
 0x56a   : > { %v5361_v51 = vpop.eup %5360  ;;  %5372 = vrcp.f32 %v2509_v54  ;;  %v2489_v54 = vld [vmem:[#allocation4 + $0xc0] sm:$0xff] }
 0x56b   : > { %v5363_v26 = vpop.eup %5362  ;;  %5374 = vrcp.f32 %v2513_v9  ;;  %v2472_v9 = vld [vmem:[#allocation4 + $0x38] sm:$0xff] }
 0x56c   : > { %2578 = vperm.xlu1 %5342, %v5351_v62   ;;  %v5365_v42 = vpop.eup %5364  ;;  %5376 = vrcp.f32 %v2511_v50  ;;  %v2468_v62 = vld [vmem:[#allocation4 + $0x18] sm:$0xff]  ;;  %v2471_v50 = vld [vmem:[#allocation4 + $0x30] sm:$0xff] }
 0x56d   : > { %2568 = vperm.xlu0 %5341, %v5353_v52   ;;  %v5367_v11 = vpop.eup %5366  ;;  %5378 = vrcp.f32 %v2512_v41 }
 0x56e   : > { %v5369_v15 = vpop.eup %5368  ;;  %5380 = vrcp.f32 %v2516_v45 }
 0x56f   : > { %v5371_v4 = vpop.eup %5370  ;;  %5382 = vrcp.f32 %v2514_v3 }
 0x570   : > { %2588 = vperm.xlu2 %5343, %v5359_v58   ;;  %v5373_v1 = vpop.eup %5372  ;;  %5384 = vrcp.f32 %v2515_v48  ;;  %v2469_v58 = vld [vmem:[#allocation4 + $0x20] sm:$0xff] }
 0x571   : > { %v5375_v27 = vpop.eup %5374  ;;  %5386 = vrcp.f32 %v2519_v7  ;;  %v2491_v7 = vld [vmem:[#allocation4 + $0xd0] sm:$0xff] }
 0x572   : > { %v5377_v39 = vpop.eup %5376  ;;  %5388 = vrcp.f32 %v2517_v56 }
 0x573   : > { %v5379_v6 = vpop.eup %5378  ;;  %5390 = vrcp.f32 %v2518_v44  ;;  %v2492_v44 = vld [vmem:[#allocation4 + $0xd8] sm:$0xff] }
 0x574   : > { %2598 = vperm.xlu1 %5342, %v5357_v30   ;;  %v5381_v17 = vpop.eup %5380  ;;  %5392 = vrcp.f32 %v2525_v29 }
 0x575   : > { %2593 = vperm.xlu0 %5341, %v5361_v51   ;;  %v5383_v5 = vpop.eup %5382  ;;  %5394 = vrcp.f32 %v2520_v20 }
 0x576   : > { %v5385_v22 = vpop.eup %5384  ;;  %5396 = vrcp.f32 %v2521_v47  ;;  %v2475_v47 = vld [vmem:[#allocation4 + $0x50] sm:$0xff] }
 0x577   : > { %v5387_v37 = vpop.eup %5386  ;;  %5398 = vrcp.f32 %v2522_v40 }
 0x578   : > { %2603 = vperm.xlu2 %5343, %v5365_v42   ;;  %v5389_v12 = vpop.eup %5388  ;;  %5400 = vrcp.f32 %v2523_v43 }
 0x579   : > { %v5391_v0 = vpop.eup %5390  ;;  %5402 = vrcp.f32 %v2524_v34 }
 0x57a   : > { %v5393_v38 = vpop.eup %5392 }
 0x57b   : > { %v5395_v8 = vpop.eup %5394 }
 0x57c   : > { %2613 = vperm.xlu1 %5342, %v5363_v26   ;;  %v5397_v49 = vpop.eup %5396 }
 0x57d   : > { %2608 = vperm.xlu0 %5341, %v5367_v11   ;;  %v5399_v21 = vpop.eup %5398 }
 0x57e   : > { %v5401_v61 = vpop.eup %5400 }
 0x57f   : > { %v5403_v19 = vpop.eup %5402 }
 0x580   : > { %2618 = vperm.xlu2 %5343, %v5371_v4   ;;  %v2490_v4 = vld [vmem:[#allocation4 + $0xc8] sm:$0xff] }
 0x584   : > { %2628 = vperm.xlu1 %5342, %v5369_v15  }
 0x585   : > { %2623 = vperm.xlu0 %5341, %v5373_v1  }
 0x588   : > { %2633 = vperm.xlu2 %5343, %v5377_v39  }
 0x58c   : > { %2643 = vperm.xlu1 %5342, %v5375_v27  }
 0x58d   : > { %2638 = vperm.xlu0 %5341, %v5379_v6  }
 0x590   : > { %2648 = vperm.xlu2 %5343, %v5383_v5   ;;  %v2474_v5 = vld [vmem:[#allocation4 + $0x48] sm:$0xff] }
 0x594   : > { %2658 = vperm.xlu1 %5342, %v5381_v17   ;;  %v2473_v17 = vld [vmem:[#allocation4 + $0x40] sm:$0xff] }
 0x595   : > { %2653 = vperm.xlu0 %5341, %v5385_v22  }
 0x598   : > { %2663 = vperm.xlu2 %5343, %v5389_v12  }
 0x59c   : > { %2673 = vperm.xlu1 %5342, %v5387_v37  }
 0x59d   : > { %2668 = vperm.xlu0 %5341, %v5391_v0  }
 0x5a0   : > { %2678 = vperm.xlu2 %5343, %v5395_v8   ;;  %v2476_v8 = vld [vmem:[#allocation4 + $0x58] sm:$0xff] }
 0x5a4   : > { %2703 = vperm.xlu1 %5342, %v5393_v38  }
 0x5a8   : > { %2683 = vperm.xlu2 %5343, %v5397_v49  }
 0x5b0   : > { %2688 = vperm.xlu2 %5343, %v5399_v21  }
 0x5b8   : > { %2693 = vperm.xlu2 %5343, %v5401_v61   ;;  %v2478_v61 = vld [vmem:[#allocation4 + $0x68] sm:$0xff] }
 0x5c0   : > { %2698 = vperm.xlu2 %5343, %v5403_v19   ;;  %v2477_v19 = vld [vmem:[#allocation4 + $0x60] sm:$0xff] }
 0x5c2   : > { %v2584_v13 = vpop.permute.xlu2 %2583 }
 0x5c3   : > { %v2725_v51 = vmul.f32 %v2584_v13, %v2469_v58 }
 0x5ca   : > { %v2589_v23 = vpop.permute.xlu2 %2588 }
 0x5cb   : > { %v2726_v10 = vmul.f32 %v2589_v23, %v2470_v60 }
 0x5cd   : > { %v2819_v63 = vpack.c.bf16 %v2726_v10, %v2725_v51 }
 0x5d2   : > { %v2604_v57 = vpop.permute.xlu2 %2603 }
 0x5d3   : > { %v2729_v29 = vmul.f32 %v2604_v57, %v2473_v17 }
 0x5d6   : > { %v2574_v46 = vpop.permute.xlu1 %2573 }
 0x5d7   : > { %v2564_v32 = vpop.permute.xlu0 %2563  ;;  %v2723_v52 = vmul.f32 %v2574_v46, %v2467_v28  ;;  %v2482_v46 = vld [vmem:[#allocation4 + $0x88] sm:$0xff] }
 0x5d8   : > { %v2721_v55 = vmul.f32 %v2564_v32, %v2465_v25  ;;  %v2479_v32 = vld [vmem:[#allocation4 + $0x70] sm:$0xff] }
 0x5da   : > { %v2619_v24 = vpop.permute.xlu2 %2618 }
 0x5db   : > { %v2732_v43 = vmul.f32 %v2619_v24, %v2476_v8 }
 0x5de   : > { %v2579_v14 = vpop.permute.xlu1 %2578 }
 0x5df   : > { %v2569_v2 = vpop.permute.xlu0 %2568  ;;  %v2724_v18 = vmul.f32 %v2579_v14, %v2468_v62 }
 0x5e0   : > { %v2722_v31 = vmul.f32 %v2569_v2, %v2466_v36  ;;  %v2480_v36 = vld [vmem:[#allocation4 + $0x78] sm:$0xff] }
 0x5e1   : > { %v2818_v30 = vpack.c.bf16 %v2724_v18, %v2723_v52 }
 0x5e2   : > { %v2817_v59 = vpack.c.bf16 %v2722_v31, %v2721_v55  ;;  %v6975_v35 = vpop.permute.xlu2 %2633  ;;  %v2481_v31 = vld [vmem:[#allocation4 + $0x80] sm:$0xff] }
 0x5e3   : > { %v2735_v2 = vmul.f32 %v6975_v35, %v2479_v32 }
 0x5e4   : > { %4874 = vmatmul.msk.bf16.vlgmr.msra.gmra.mxu0 %vm743_vm2, %v2817_v59  ;;  %v4985_v59 = vld [vmem:[%s5754_s29] sm:$0xff]  }
 0x5e5   : > { %v4986_v52 = vunpack.c.l.bf16 %v4985_v59  ;;  %v4987_v60 = vunpack.c.h.bf16 %v4985_v59 }
 0x5e6   : > { %v2599_v11 = vpop.permute.xlu1 %2598 }
 0x5e7   : > { %v2594_v15 = vpop.permute.xlu0 %2593  ;;  %v2728_v1 = vmul.f32 %v2599_v11, %v2472_v9  ;;  %v2483_v11 = vld [vmem:[#allocation4 + $0x90] sm:$0xff] }
 0x5e8   : > { %v2727_v45 = vmul.f32 %v2594_v15, %v2471_v50  ;;  %v2526_v15 = vld [vmem:[#allocation3 + $0xe8] sm:$0xff] }
 0x5e9   : > { %5404 = vrcp.f32 %v2526_v15 }
 0x5ea   : > { %v6977_v16 = vpop.permute.xlu2 %2648  ;;  %v2820_v48 = vpack.c.bf16 %v2728_v1, %v2727_v45 }
 0x5eb   : > { %v2738_v14 = vmul.f32 %v6977_v16, %v2482_v46  ;;  %v5048_v16 = vld [vmem:[%s5754_s29 + $0x8] sm:$0xff]   ;;  %v5050_v46 = vld [vmem:[%s5754_s29 + $0x18] sm:$0xff]  }
 0x5ec   : > { %v4990_v1 = vunpack.c.l.bf16 %v5048_v16 }
 0x5ee   : > { %v2614_v40 = vpop.permute.xlu1 %2613 }
 0x5ef   : > { %v2609_v56 = vpop.permute.xlu0 %2608  ;;  %v2731_v49 = vmul.f32 %v2614_v40, %v2475_v47 }
 0x5f0   : > { %v2730_v37 = vmul.f32 %v2609_v56, %v2474_v5  ;;  %v2485_v56 = vld [vmem:[#allocation4 + $0xa0] sm:$0xff] }
 0x5f1   : > { %v2822_v21 = vpack.c.bf16 %v2732_v43, %v2731_v49  ;;  %v2487_v49 = vld [vmem:[#allocation4 + $0xb0] sm:$0xff]  ;;  %v2488_v43 = vld [vmem:[#allocation4 + $0xb8] sm:$0xff] }
 0x5f2   : > { %v6980_v53 = vpop.permute.xlu2 %2663  ;;  %v2821_v38 = vpack.c.bf16 %v2730_v37, %v2729_v29 }
 0x5f3   : > { %v2741_v29 = vmul.f32 %v6980_v53, %v2485_v56 }
 0x5f4   : > { %4875 = vmatmul.msk.bf16.gmra.mxu0 %vm743_vm2, %v2818_v30 }
 0x5f6   : > { %v2629_v34 = vpop.permute.xlu1 %2628 }
 0x5f7   : > { %v2624_v33 = vpop.permute.xlu0 %2623  ;;  %v2734_v13 = vmul.f32 %v2629_v34, %v2478_v61 }
 0x5f8   : > { %v2733_v23 = vmul.f32 %v2624_v33, %v2477_v19  ;;  %v2528_v19 = vld [vmem:[#allocation3 + $0xf8] sm:$0xff] }
 0x5fa   : > { %v6982_v26 = vpop.permute.xlu2 %2678  ;;  %v2823_v57 = vpack.c.bf16 %v2734_v13, %v2733_v23  ;;  %v4991_v23 = vunpack.c.h.bf16 %v5048_v16 }
 0x5fb   : > { %v2744_v61 = vmul.f32 %v6982_v26, %v2488_v43  ;;  %v5052_v43 = vld [vmem:[%s5754_s29 + $0x28] sm:$0xff]  }
 0x5fe   : > { %v2644_v28 = vpop.permute.xlu1 %2643 }
 0x5ff   : > { %v2639_v25 = vpop.permute.xlu0 %2638  ;;  %v2737_v62 = vmul.f32 %v2644_v28, %v2481_v31 }
 0x600   : > { %v2736_v55 = vmul.f32 %v2639_v25, %v2480_v36 }
 0x601   : > { %v2825_v58 = vpack.c.bf16 %v2738_v14, %v2737_v62  ;;  %v4998_v14 = vunpack.c.l.bf16 %v5050_v46 }
 0x602   : > { %v2684_v42 = vpop.permute.xlu2 %2683  ;;  %v2824_v24 = vpack.c.bf16 %v2736_v55, %v2735_v2  ;;  %v7029_v55 = vld [vmem:[%s5754_s29 + $0x68] sm:$0xff]  }
 0x603   : > { %v6985_v41 = vmul.f32 %v2684_v42, %v2489_v54  ;;  %v2484_v42 = vld [vmem:[#allocation4 + $0x98] sm:$0xff]  ;;  %v5038_v26 = vunpack.c.l.bf16 %v7029_v55 }
 0x604   : > { %4876 = vmatmul.msk.bf16.gmra.mxu0 %vm743_vm2, %v2819_v63 }
 0x606   : > { %v2659_v63 = vpop.permute.xlu1 %2658 }
 0x607   : > { %v2654_v54 = vpop.permute.xlu0 %2653  ;;  %v2740_v50 = vmul.f32 %v2659_v63, %v2484_v42 }
 0x60a   : > { %v2689_v27 = vpop.permute.xlu2 %2688 }
 0x60b   : > { %v6987_v3 = vmul.f32 %v2689_v27, %v2490_v4  ;;  %v2739_v4 = vmul.f32 %v2654_v54, %v2483_v11 }
 0x60d   : > { %v2829_v39 = vpack.c.bf16 %v6987_v3, %v6985_v41 }
 0x60e   : > { %v2674_v34 = vpop.permute.xlu1 %2673 }
 0x60f   : > { %v2669_v5 = vpop.permute.xlu0 %2668  ;;  %v2743_v53 = vmul.f32 %v2674_v34, %v2487_v49 }
 0x611   : > { %v2828_v33 = vpack.c.bf16 %v2744_v61, %v2743_v53  ;;  %v5006_v61 = vunpack.c.l.bf16 %v5052_v43 }
 0x612   : > { %v2694_v6 = vpop.permute.xlu2 %2693 }
 0x613   : > { %v2747_v22 = vmul.f32 %v2694_v6, %v2491_v7  ;;  %v5405_v7 = vpop.eup %5404 }
 0x614   : > { %4877 = vmatmul.msk.bf16.gmra.mxu0 %vm743_vm2, %v2820_v48  ;;  %v2826_v48 = vpack.c.bf16 %v2740_v50, %v2739_v4 }
 0x616   : > { %v2704_v4 = vpop.permute.xlu1 %2703 }
 0x61a   : > { %v2699_v20 = vpop.permute.xlu2 %2698 }
 0x61b   : > { %v2748_v12 = vmul.f32 %v2699_v20, %v2492_v44  ;;  %v2486_v44 = vld [vmem:[#allocation4 + $0xa8] sm:$0xff] }
 0x61c   : > { %v2742_v37 = vmul.f32 %v2669_v5, %v2486_v44 }
 0x61d   : > { %v2830_v0 = vpack.c.bf16 %v2748_v12, %v2747_v22  ;;  %v5049_v22 = vld [vmem:[%s5754_s29 + $0x10] sm:$0xff]  }
 0x61e   : > { %v4994_v20 = vunpack.c.l.bf16 %v5049_v22  ;;  %v2827_v47 = vpack.c.bf16 %v2742_v37, %v2741_v29  ;;  %v4995_v36 = vunpack.c.h.bf16 %v5049_v22  ;;  %v4999_v22 = vunpack.c.h.bf16 %v5050_v46 }
 0x61f   : > { %4887 = vmatmul.msk.bf16.vlgmr.msra.gmra.mxu3 %vm743_vm2, %v2830_v0  ;;  %v2527_v0 = vld [vmem:[#allocation3 + $0xf0] sm:$0xff] }
 0x620   : > { %5406 = vrcp.f32 %v2527_v0  ;;  %v2494_v0 = vld [vmem:[#allocation4 + $0xe8] sm:$0xff] }
 0x621   : > { %5408 = vrcp.f32 %v2528_v19 }
 0x624   : > { %4878 = vmatmul.msk.bf16.gmra.mxu0 %vm743_vm2, %v2821_v38 }
 0x626   : > { %v5407_v40 = vpop.eup %5406 }
 0x634   : > { %4879 = vmatmul.msk.bf16.gmra.mxu0 %vm743_vm2, %v2822_v21 }
 0x644   : > { %4880 = vmatmul.msk.bf16.gmra.mxu0 %vm743_vm2, %v2823_v57  ;;  %v5409_v57 = vpop.eup %5408 }
 0x654   : > { %4881 = vmatmul.msk.bf16.gmra.mxu0 %vm743_vm2, %v2824_v24 }
 0x661   : > { %v2898_v18 = vpop.f32.mrf.mxu0 }
 0x662   : > { %v7000_v30 = vadd.f32 %v4986_v52, %v2898_v18  ;;  %v5051_v18 = vld [vmem:[%s5754_s29 + $0x20] sm:$0xff]  }
 0x664   : > { %4882 = vmatmul.msk.bf16.gmra.mxu0 %vm743_vm2, %v2825_v58  ;;  %v3012_v35 = vsel %vm743_vm2, %v7000_v30, 0.0  ;;  %v5003_v58 = vunpack.c.h.bf16 %v5051_v18 }
 0x665   : > { %3013 = vadd.xlane.f32.xlu0 %v3012_v35 }
 0x669   : > { %v2900_v51 = vpop.f32.mrf.mxu0 }
 0x66a   : > { %v7005_v10 = vadd.f32 %v4987_v60, %v2900_v51  ;;  %v5619_v60 = vmov 16.0   ;;  %v5002_v51 = vunpack.c.l.bf16 %v5051_v18 }
 0x66b   : > { %5410 = vrcp.f32 %v5619_v60 }
 0x66c   : > { %v3015_v9 = vsel %vm743_vm2, %v7005_v10, 0.0 }
 0x66d   : > { %3016 = vadd.xlane.f32.xlu1 %v3015_v9 }
 0x671   : > { %v2903_v45 = vpop.f32.mrf.mxu0  ;;  %v5411_v63 = vpop.eup %5410 }
 0x672   : > { %v7010_v27 = vadd.f32 %v4990_v1, %v2903_v45  ;;  %v3109_v54 = vmul.f32 16.0, %v5411_v63  ;;  %vm3113_vm4 = vweird.f32 %v5411_v63 }
 0x674   : > { %4883 = vmatmul.msk.bf16.gmra.mxu0 %vm743_vm2, %v2826_v48  ;;  %v3018_v6 = vsel %vm743_vm2, %v7010_v27, 0.0  ;;  %v3110_v16 = vsub.f32 1.0, %v3109_v54 }
 0x675   : > { %3019 = vadd.xlane.f32.xlu2 %v3018_v6 }
 0x676   : > { %v3111_v9 = vmul.f32 %v5411_v63, %v3110_v16 }
 0x678   : > { %v3112_v15 = vadd.f32 %v5411_v63, %v3111_v9 }
 0x679   : > { %2708 = vperm.xlu0 %5341, %v5405_v7   ;;  %v2905_v17 = vpop.f32.mrf.mxu0 }
 0x67a   : > { %v7024_v32 = vadd.f32 %v4991_v23, %v2905_v17  ;;  %v7056_v50 = vsel %vm3113_vm4, %v5411_v63, %v3112_v15 }
 0x67c   : > { %v3021_v2 = vsel %vm743_vm2, %v7024_v32, 0.0 }
 0x681   : > { %v2908_v12 = vpop.f32.mrf.mxu0 }
 0x682   : > { %v7017_v38 = vadd.f32 %v4994_v20, %v2908_v12  ;;  %v2493_v20 = vld [vmem:[#allocation4 + $0xe0] sm:$0xff] }
 0x683   : > { %v2749_v49 = vmul.f32 %v2704_v4, %v2493_v20 }
 0x684   : > { %4884 = vmatmul.msk.bf16.gmra.mxu0 %vm743_vm2, %v2827_v47  ;;  %v3024_v8 = vsel %vm743_vm2, %v7017_v38, 0.0 }
 0x685   : > { %3025 = vadd.xlane.f32.xlu1 %v3024_v8 }
 0x689   : > { %v2910_v21 = vpop.f32.mrf.mxu0 }
 0x68a   : > { %v7032_v24 = vadd.f32 %v4995_v36, %v2910_v21  ;;  %v2495_v36 = vld [vmem:[#allocation4 + $0xf0] sm:$0xff] }
 0x68c   : > { %v3027_v28 = vsel %vm743_vm2, %v7032_v24, 0.0 }
 0x68d   : > { %2713 = vperm.xlu2 %5343, %v5407_v40  }
 0x691   : > { %v2913_v13 = vpop.f32.mrf.mxu0 }
 0x692   : > { %v7043_v52 = vadd.f32 %v4998_v14, %v2913_v13 }
 0x694   : > { %4885 = vmatmul.msk.bf16.gmra.mxu0 %vm743_vm2, %v2828_v33  ;;  %v3030_v35 = vsel %vm743_vm2, %v7043_v52, 0.0 }
 0x699   : > { %v2915_v25 = vpop.f32.mrf.mxu0 }
 0x69a   : > { %v7073_v47 = vadd.f32 %v4999_v22, %v2915_v25 }
 0x69c   : > { %v3033_v33 = vsel %vm743_vm2, %v7073_v47, 0.0 }
 0x69e   : > { %2718 = vperm.xlu1 %5342, %v5409_v57  }
 0x6a1   : > { %v2918_v62 = vpop.f32.mrf.mxu0 }
 0x6a2   : > { %v2963_v31 = vpop.f32.mrf.mxu3  ;;  %v7052_v42 = vadd.f32 %v5002_v51, %v2918_v62 }
 0x6a3   : > { %3022 = vadd.xlane.f32.xlu0 %v3021_v2  ;;  %v7039_v59 = vadd.f32 %v5038_v26, %v2963_v31  ;;  %v2496_v26 = vld [vmem:[#allocation4 + $0xf8] sm:$0xff] }
 0x6a4   : > { %4886 = vmatmul.msk.bf16.gmra.mxu0 %vm743_vm2, %v2829_v39  ;;  %v3036_v11 = vsel %vm743_vm2, %v7052_v42, 0.0 }
 0x6a9   : > { %v2920_v41 = vpop.f32.mrf.mxu0 }
 0x6aa   : > { %v7048_v3 = vadd.f32 %v5003_v58, %v2920_v41 }
 0x6ab   : > { %3028 = vadd.xlane.f32.xlu0 %v3027_v28 }
 0x6ac   : > { %v3039_v39 = vsel %vm743_vm2, %v7048_v3, 0.0 }
 0x6b1   : > { %v2923_v13 = vpop.f32.mrf.mxu0 }
 0x6b2   : > { %v7085_v23 = vadd.f32 %v5006_v61, %v2923_v13 }
 0x6b3   : > { %3031 = vadd.xlane.f32.xlu0 %v3030_v35 }
 0x6b4   : > { %v3042_v57 = vsel %vm743_vm2, %v7085_v23, 0.0 }
 0x6b9   : > { %v2925_v58 = vpop.f32.mrf.mxu0 }
 0x6bb   : > { %3040 = vadd.xlane.f32.xlu0 %v3039_v39 }
 0x6c1   : > { %v2928_v16 = vpop.f32.mrf.mxu0 }
 0x6c8   : > { %3037 = vadd.xlane.f32.xlu1 %v3036_v11 }
 0x6c9   : > { %v7120_v22 = vpop.f32.mrf.mxu0 }
 0x6d8   : > { %v3014_v1 = vpop.xlane.xlu0 %3013 }
 0x6d9   : > { %v3115_v45 = vmul.f32 %v7056_v50, %v3014_v1 }
 0x6db   : > { %v7060_v48 = vsub.f32 %v7000_v30, %v3115_v45 }
 0x6dd   : > { %v3179_v6 = vmul.f32 %v7060_v48, %v7060_v48 }
 0x6df   : > { %v3211_v7 = vsel %vm743_vm2, %v3179_v6, 0.0 }
 0x6e0   : > { %v3017_v17 = vpop.xlane.xlu1 %3016  ;;  %3212 = vadd.xlane.f32.xlu2 %v3211_v7  ;;  %v7115_v7 = vld [vmem:[%s5754_s29 + $0x30] sm:$0xff]  }
 0x6e1   : > { %v3116_v56 = vmul.f32 %v7056_v50, %v3017_v17 }
 0x6e3   : > { %v7067_v5 = vsub.f32 %v7005_v10, %v3116_v56  ;;  %v5007_v56 = vunpack.c.h.bf16 %v5052_v43 }
 0x6e5   : > { %v3180_v44 = vmul.f32 %v7067_v5, %v7067_v5 }
 0x6e7   : > { %v3214_v29 = vsel %vm743_vm2, %v3180_v44, 0.0  ;;  %v5010_v44 = vunpack.c.l.bf16 %v7115_v7 }
 0x6e8   : > { %3215 = vadd.xlane.f32.xlu2 %v3214_v29  ;;  %v3020_v37 = vpop.xlane.xlu2 %3019 }
 0x6e9   : > { %v3117_v12 = vmul.f32 %v7056_v50, %v3020_v37 }
 0x6eb   : > { %v7076_v8 = vsub.f32 %v7010_v27, %v3117_v12  ;;  %v2709_v40 = vpop.permute.xlu0 %2708  ;;  %v7124_v12 = vadd.f32 %v5007_v56, %v2925_v58 }
 0x6ec   : > { %v2750_v21 = vmul.f32 %v2709_v40, %v2494_v0  ;;  %v7126_v0 = vadd.f32 %v5010_v44, %v2928_v16 }
 0x6ed   : > { %v3181_v34 = vmul.f32 %v7076_v8, %v7076_v8  ;;  %8213 = vst [vmem:[#allocation67_spill] sm:$0xff] %v7124_v12  ;;  %v3045_v43 = vsel %vm743_vm2, %v7124_v12, 0.0 }
 0x6ee   : > { %v2831_v53 = vpack.c.bf16 %v2750_v21, %v2749_v49  ;;  %8214 = vst [vmem:[#allocation68_spill] sm:$0xff] %v7126_v0  ;;  %v3048_v21 = vsel %vm743_vm2, %v7126_v0, 0.0 }
 0x6ef   : > { %v3217_v19 = vsel %vm743_vm2, %v3181_v34, 0.0  ;;  %v7136_v34 = vpop.f32.mrf.mxu0 }
 0x6f0   : > { %4888 = vmatmul.msk.bf16.gmra.mxu3 %vm743_vm2, %v2831_v53  ;;  %3034 = vadd.xlane.f32.xlu2 %v3033_v33  ;;  %v2714_v2 = vpop.permute.xlu2 %2713 }
 0x6f1   : > { %3218 = vadd.xlane.f32.xlu0 %v3217_v19  ;;  %v2751_v46 = vmul.f32 %v2714_v2, %v2495_v36 }
 0x6f7   : > { %v2935_v36 = vpop.f32.mrf.mxu0 }
 0x6f8   : > { %3043 = vadd.xlane.f32.xlu2 %v3042_v57  ;;  %v3026_v25 = vpop.xlane.xlu1 %3025 }
 0x6f9   : > { %v3119_v35 = vmul.f32 %v7056_v50, %v3026_v25  ;;  %v7148_v25 = vld [vmem:[%s5754_s29 + $0x38] sm:$0xff]  }
 0x6fa   : > { %v5015_v2 = vunpack.c.h.bf16 %v7148_v25 }
 0x6fb   : > { %v7098_v60 = vsub.f32 %v7017_v38, %v3119_v35 }
 0x6fd   : > { %v3183_v11 = vmul.f32 %v7098_v60, %v7098_v60 }
 0x6ff   : > { %v3223_v15 = vsel %vm743_vm2, %v3183_v11, 0.0 }
 0x710   : > { %v2719_v31 = vpop.permute.xlu1 %2718 }
 0x711   : > { %v2752_v28 = vmul.f32 %v2719_v31, %v2496_v26  ;;  %v7152_v31 = vadd.f32 %v5015_v2, %v2935_v36 }
 0x713   : > { %v2832_v62 = vpack.c.bf16 %v2752_v28, %v2751_v46  ;;  %8215 = vst [vmem:[#allocation69_spill] sm:$0xff] %v7152_v31  ;;  %v7155_v46 = vld [vmem:[%s5754_s29 + $0x40] sm:$0xff]  }
 0x714   : > { %v5018_v28 = vunpack.c.l.bf16 %v7155_v46 }
 0x715   : > { %4889 = vmatmul.msk.bf16.gmra.mxu3 %vm743_vm2, %v2832_v62  ;;  %v3057_v62 = vsel %vm743_vm2, %v7152_v31, 0.0 }
 0x716   : > { %v3023_v14 = vpop.xlane.xlu0 %3022 }
 0x717   : > { %v3118_v18 = vmul.f32 %v7056_v50, %v3023_v14  ;;  %v2938_v14 = vpop.f32.mrf.mxu0 }
 0x719   : > { %v7093_v41 = vsub.f32 %v7024_v32, %v3118_v18  ;;  %v7160_v18 = vadd.f32 %v5018_v28, %v2938_v14 }
 0x71b   : > { %v3182_v39 = vmul.f32 %v7093_v41, %v7093_v41  ;;  %8216 = vst [vmem:[#allocation70_spill] sm:$0xff] %v7160_v18  ;;  %v3060_v58 = vsel %vm743_vm2, %v7160_v18, 0.0 }
 0x71d   : > { %v3220_v51 = vsel %vm743_vm2, %v3182_v39, 0.0 }
 0x71e   : > { %v3029_v63 = vpop.xlane.xlu0 %3028  ;;  %3221 = vadd.xlane.f32.xlu0 %v3220_v51 }
 0x71f   : > { %v3120_v54 = vmul.f32 %v7056_v50, %v3029_v63  ;;  %v4979_v63 = vld [vmem:[%s8006_s5] sm:$0xff] }
 0x720   : > { %3872 = vmatpush.bf16.msra.mxu1 %v4979_v63  ;;  %5064 = vmatpush.bf16.msrb.mxu3 %v4979_v63 }
 0x721   : > { %v7105_v9 = vsub.f32 %v7032_v24, %v3120_v54 }
 0x723   : > { %v3184_v6 = vmul.f32 %v7105_v9, %v7105_v9 }
 0x725   : > { %v3226_v29 = vsel %vm743_vm2, %v3184_v6, 0.0 }
 0x726   : > { %v3032_v4 = vpop.xlane.xlu0 %3031  ;;  %3224 = vadd.xlane.f32.xlu0 %v3223_v15 }
 0x727   : > { %v3121_v1 = vmul.f32 %v7056_v50, %v3032_v4 }
 0x729   : > { %v7110_v45 = vsub.f32 %v7043_v52, %v3121_v1 }
 0x72b   : > { %v3185_v17 = vmul.f32 %v7110_v45, %v7110_v45 }
 0x72d   : > { %v3229_v37 = vsel %vm743_vm2, %v3185_v17, 0.0 }
 0x72e   : > { %3227 = vadd.xlane.f32.xlu0 %v3226_v29  ;;  %v3041_v20 = vpop.xlane.xlu0 %3040  ;;  %3230 = vadd.xlane.f32.xlu2 %v3229_v37 }
 0x72f   : > { %v3124_v40 = vmul.f32 %v7056_v50, %v3041_v20 }
 0x731   : > { %v7130_v49 = vsub.f32 %v7048_v3, %v3124_v40 }
 0x733   : > { %v3188_v53 = vmul.f32 %v7130_v49, %v7130_v49 }
 0x735   : > { %v3238_v19 = vsel %vm743_vm2, %v3188_v53, 0.0  ;;  %v5011_v53 = vunpack.c.h.bf16 %v7115_v7  ;;  %v7188_v7 = vld [vmem:[%s8008_s7] ss:$0 sm:$0xff] }
 0x736   : > { %3046 = vadd.xlane.f32.xlu0 %v3045_v43  ;;  %3049 = vadd.xlane.f32.xlu2 %v3048_v21 }
 0x73b   : > { %v3038_v61 = vpop.xlane.xlu1 %3037 }
 0x73c   : > { %v3123_v33 = vmul.f32 %v7056_v50, %v3038_v61 }
 0x73e   : > { %v7143_v13 = vsub.f32 %v7052_v42, %v3123_v33  ;;  %3239 = vadd.xlane.f32.xlu2 %v3238_v19 }
 0x740   : > { %v3187_v57 = vmul.f32 %v7143_v13, %v7143_v13 }
 0x742   : > { %v3235_v26 = vsel %vm743_vm2, %v3187_v57, 0.0 }
 0x743   : > { %3236 = vadd.xlane.f32.xlu1 %v3235_v26  ;;  %v7179_v26 = vadd.f32 %v5011_v53, %v7120_v22  ;;  %v5019_v22 = vunpack.c.h.bf16 %v7155_v46 }
 0x745   : > { %8217 = vst [vmem:[#allocation71_spill] sm:$0xff] %v7179_v26  ;;  %v3051_v63 = vsel %vm743_vm2, %v7179_v26, 0.0 }
 0x74b   : > { %3058 = vadd.xlane.f32.xlu1 %v3057_v62 }
 0x753   : > { %v3213_v35 = vpop.xlane.xlu2 %3212  ;;  %3061 = vadd.xlane.f32.xlu1 %v3060_v58 }
 0x754   : > { %v3307_v39 = vmul.f32 %v3213_v35, %v7056_v50  ;;  %v5014_v35 = vunpack.c.l.bf16 %v7148_v25 }
 0x756   : > { %v3339_v51 = vadd.f32 1e-05, %v3307_v39  ;;  %v2940_v39 = vpop.f32.mrf.mxu0  ;;  %v7206_v46 = vadd.f32 %v5014_v35, %v7136_v34 }
 0x758   : > { %5412 = vrsqrt.f32 %v3339_v51  ;;  %vm3377_vm6 = vweird.f32 %v3339_v51  ;;  %8218 = vst [vmem:[#allocation72_spill] sm:$0xff] %v7206_v46 }
 0x75b   : > { %v3216_v54 = vpop.xlane.xlu2 %3215 }
 0x75c   : > { %v3308_v11 = vmul.f32 %v3216_v54, %v7056_v50 }
 0x75e   : > { %v5413_v16 = vpop.eup %5412  ;;  %v3340_v15 = vadd.f32 1e-05, %v3308_v11 }
 0x75f   : > { %v3372_v4 = vmul.f32 %v5413_v16, %v3339_v51  ;;  %vm3378_vm5 = vweird.f32 %v5413_v16 }
 0x760   : > { %5414 = vrsqrt.f32 %v3340_v15  ;;  %vm3379_vm7 = vmor %vm3377_vm6, %vm3378_vm5  ;;  %vm3387_vm9 = vweird.f32 %v3340_v15 }
 0x761   : > { %v3373_v1 = vmul.f32 %v5413_v16, %v3372_v4 }
 0x763   : > { %v3374_v6 = vmul.f32 0.5, %v3373_v1  ;;  %v3035_v17 = vpop.xlane.xlu2 %3034  ;;  %v7213_v1 = vld [vmem:[%s5754_s29 + $0x48] sm:$0xff]  }
 0x764   : > { %v3122_v56 = vmul.f32 %v7056_v50, %v3035_v17  ;;  %v3219_v17 = vpop.xlane.xlu0 %3218 }
 0x765   : > { %v3375_v44 = vsub.f32 1.5, %v3374_v6 }
 0x766   : > { %v5415_v29 = vpop.eup %5414  ;;  %v7171_v37 = vsub.f32 %v7073_v47, %v3122_v56  ;;  %v5022_v56 = vunpack.c.l.bf16 %v7213_v1 }
 0x767   : > { %v3376_v20 = vmul.f32 %v5413_v16, %v3375_v44  ;;  %v3382_v40 = vmul.f32 %v5415_v29, %v3340_v15  ;;  %vm3388_vm8 = vweird.f32 %v5415_v29  ;;  %v7208_v15 = vadd.f32 %v5019_v22, %v2940_v39 }
 0x768   : > { %v3186_v43 = vmul.f32 %v7171_v37, %v7171_v37  ;;  %vm3389_vm10 = vmor %vm3387_vm9, %vm3388_vm8  ;;  %v3054_v44 = vsel %vm743_vm2, %v7206_v46, 0.0 }
 0x769   : > { %v3383_v21 = vmul.f32 %v5415_v29, %v3382_v40  ;;  %v3380_v57 = vsel %vm3379_vm7, %v5413_v16, %v3376_v20  ;;  %v7202_v16 = vld [vmem:[%s8009_s8] ss:$0 sm:$0xff]  ;;  %8219 = vst [vmem:[#allocation73_spill] sm:$0xff] %v7208_v15  ;;  %v3063_v34 = vsel %vm743_vm2, %v7208_v15, 0.0  ;;  %v3309_v20 = vmul.f32 %v3219_v17, %v7056_v50 }
 0x76a   : > { %v3232_v61 = vsel %vm743_vm2, %v3186_v43, 0.0  ;;  %v3691_v62 = vmul.f32 %v3380_v57, %v7060_v48 }
 0x76b   : > { %v3384_v33 = vmul.f32 0.5, %v3383_v21  ;;  %v3044_v19 = vpop.xlane.xlu2 %3043  ;;  %3233 = vadd.xlane.f32.xlu0 %v3232_v61  ;;  %v3341_v43 = vadd.f32 1e-05, %v3309_v20 }
 0x76c   : > { %v3125_v36 = vmul.f32 %v7056_v50, %v3044_v19  ;;  %v3726_v11 = vmul.f32 %v7188_v7, %v3691_v62 }
 0x76d   : > { %v3385_v2 = vsub.f32 1.5, %v3384_v33  ;;  %5416 = vrsqrt.f32 %v3341_v43  ;;  %vm3397_vm12 = vweird.f32 %v3341_v43 }
 0x76e   : > { %v7182_v28 = vsub.f32 %v7085_v23, %v3125_v36  ;;  %v3761_v4 = vadd.f32 %v7202_v16, %v3726_v11 }
 0x76f   : > { %v3386_v14 = vmul.f32 %v5415_v29, %v3385_v2 }
 0x770   : > { %v3189_v58 = vmul.f32 %v7182_v28, %v7182_v28 }
 0x771   : > { %v3390_v51 = vsel %vm3389_vm10, %v5415_v29, %v3386_v14  ;;  %v2943_v29 = vpop.f32.mrf.mxu0 }
 0x772   : > { %v3241_v48 = vsel %vm743_vm2, %v3189_v58, 0.0  ;;  %v3692_v54 = vmul.f32 %v3390_v51, %v7067_v5  ;;  %v7222_v40 = vadd.f32 %v5022_v56, %v2943_v29 }
 0x773   : > { %3242 = vadd.xlane.f32.xlu2 %v3241_v48  ;;  %3052 = vadd.xlane.f32.xlu0 %v3051_v63  ;;  %v5417_v53 = vpop.eup %5416 }
 0x774   : > { %v3727_v25 = vmul.f32 %v7188_v7, %v3692_v54  ;;  %v3066_v21 = vsel %vm743_vm2, %v7222_v40, 0.0  ;;  %v3392_v61 = vmul.f32 %v5417_v53, %v3341_v43  ;;  %vm3398_vm11 = vweird.f32 %v5417_v53 }
 0x775   : > { %vm3399_vm13 = vmor %vm3397_vm12, %vm3398_vm11 }
 0x776   : > { %v3762_v5 = vadd.f32 %v7202_v16, %v3727_v25  ;;  %v3393_v33 = vmul.f32 %v5417_v53, %v3392_v61 }
 0x778   : > { %v3793_v6 = vpack.c.bf16 %v3762_v5, %v3761_v4  ;;  %v3394_v2 = vmul.f32 0.5, %v3393_v33 }
 0x779   : > { %v2945_v17 = vpop.f32.mrf.mxu0 }
 0x77a   : > { %4894 = vmatmul.msk.bf16.vlgmr.msra.gmra.mxu1 %vm743_vm2, %v3793_v6  ;;  %v3395_v62 = vsub.f32 1.5, %v3394_v2 }
 0x77b   : > { %3055 = vadd.xlane.f32.xlu0 %v3054_v44  ;;  %3064 = vadd.xlane.f32.xlu2 %v3063_v34 }
 0x77c   : > { %v3396_v39 = vmul.f32 %v5417_v53, %v3395_v62 }
 0x77e   : > { %v3400_v25 = vsel %vm3399_vm13, %v5417_v53, %v3396_v39 }
 0x77f   : > { %v3693_v44 = vmul.f32 %v3400_v25, %v7076_v8 }
 0x781   : > { %v3728_v53 = vmul.f32 %v7188_v7, %v3693_v44 }
 0x783   : > { %3067 = vadd.xlane.f32.xlu2 %v3066_v21 }
 0x791   : > { %v3222_v19 = vpop.xlane.xlu0 %3221 }
 0x792   : > { %v3310_v57 = vmul.f32 %v3222_v19, %v7056_v50 }
 0x794   : > { %v3342_v36 = vadd.f32 1e-05, %v3310_v57 }
 0x796   : > { %5418 = vrsqrt.f32 %v3342_v36  ;;  %vm3407_vm15 = vweird.f32 %v3342_v36 }
 0x799   : > { %v3225_v14 = vpop.xlane.xlu0 %3224 }
 0x79a   : > { %v3311_v58 = vmul.f32 %v3225_v14, %v7056_v50 }
 0x79c   : > { %v5419_v35 = vpop.eup %5418  ;;  %v3343_v22 = vadd.f32 1e-05, %v3311_v58  ;;  %v3763_v58 = vadd.f32 %v7202_v16, %v3728_v53  ;;  %v5023_v53 = vunpack.c.h.bf16 %v7213_v1 }
 0x79d   : > { %v3402_v51 = vmul.f32 %v5419_v35, %v3342_v36  ;;  %vm3408_vm14 = vweird.f32 %v5419_v35 }
 0x79e   : > { %5420 = vrsqrt.f32 %v3343_v22  ;;  %vm3409_vm0 = vmor %vm3407_vm15, %vm3408_vm14  ;;  %vm3417_vm3 = vweird.f32 %v3343_v22 }
 0x79f   : > { %v3403_v48 = vmul.f32 %v5419_v35, %v3402_v51  ;;  %v2948_v51 = vpop.f32.mrf.mxu0 }
 0x7a1   : > { %v3404_v63 = vmul.f32 0.5, %v3403_v48  ;;  %v3228_v54 = vpop.xlane.xlu0 %3227  ;;  %v7228_v11 = vpop.xlane.xlu2 %3230 }
 0x7a2   : > { %v3312_v4 = vmul.f32 %v3228_v54, %v7056_v50 }
 0x7a3   : > { %v3405_v5 = vsub.f32 1.5, %v3404_v63 }
 0x7a4   : > { %v5421_v6 = vpop.eup %5420  ;;  %v3344_v56 = vadd.f32 1e-05, %v3312_v4 }
 0x7a5   : > { %v3406_v34 = vmul.f32 %v5419_v35, %v3405_v5  ;;  %v3412_v29 = vmul.f32 %v5421_v6, %v3343_v22  ;;  %vm3418_vm1 = vweird.f32 %v5421_v6 }
 0x7a6   : > { %5422 = vrsqrt.f32 %v3344_v56  ;;  %vm3419_vm4 = vmor %vm3417_vm3, %vm3418_vm1  ;;  %vm3427_vm6 = vweird.f32 %v3344_v56 }
 0x7a7   : > { %v3413_v20 = vmul.f32 %v5421_v6, %v3412_v29  ;;  %v3410_v43 = vsel %vm3409_vm0, %v5419_v35, %v3406_v34 }
 0x7a8   : > { %v3694_v21 = vmul.f32 %v3410_v43, %v7093_v41 }
 0x7a9   : > { %v3414_v61 = vmul.f32 0.5, %v3413_v20  ;;  %v3047_v33 = vpop.xlane.xlu0 %3046  ;;  %v3050_v19 = vpop.xlane.xlu2 %3049 }
 0x7aa   : > { %v3126_v57 = vmul.f32 %v7056_v50, %v3047_v33  ;;  %v3729_v2 = vmul.f32 %v7188_v7, %v3694_v21  ;;  %v3127_v14 = vmul.f32 %v7056_v50, %v3050_v19 }
 0x7ab   : > { %v3415_v62 = vsub.f32 1.5, %v3414_v61  ;;  %v7253_v61 = vpop.f32.mrf.mxu0 }
 0x7ac   : > { %v5423_v8 = vpop.eup %5422  ;;  %v7237_v36 = vsub.f32 %v7124_v12, %v3126_v57  ;;  %v3764_v41 = vadd.f32 %v7202_v16, %v3729_v2  ;;  %v7245_v25 = vsub.f32 %v7126_v0, %v3127_v14  ;;  %v4981_v12 = vld [vmem:[%s8007_s6 + $0x8] sm:$0xff] }
 0x7ad   : > { %v3416_v35 = vmul.f32 %v5421_v6, %v3415_v62  ;;  %v3422_v39 = vmul.f32 %v5423_v8, %v3344_v56  ;;  %vm3428_vm5 = vweird.f32 %v5423_v8  ;;  %v7264_v62 = vld [vmem:[%s5754_s29 + $0x50] sm:$0xff]  }
 0x7ae   : > { %v3794_v48 = vpack.c.bf16 %v3764_v41, %v3763_v58  ;;  %v3190_v63 = vmul.f32 %v7237_v36, %v7237_v36  ;;  %v3191_v29 = vmul.f32 %v7245_v25, %v7245_v25  ;;  %vm3429_vm7 = vmor %vm3427_vm6, %vm3428_vm5  ;;  %v5026_v58 = vunpack.c.l.bf16 %v7264_v62 }
 0x7af   : > { %v3423_v54 = vmul.f32 %v5423_v8, %v3422_v39  ;;  %v3420_v44 = vsel %vm3419_vm4, %v5421_v6, %v3416_v35  ;;  %vm4290_vm5 = vcmask 523264  }
 0x7b0   : > { %4895 = vmatmul.msk.bf16.gmra.mxu1 %vm743_vm2, %v3794_v48  ;;  %v3244_v4 = vsel %vm743_vm2, %v3190_v63, 0.0  ;;  %v3695_v20 = vmul.f32 %v3420_v44, %v7098_v60  ;;  %v3247_v33 = vsel %vm743_vm2, %v3191_v29, 0.0  ;;  %v7259_v60 = vadd.f32 %v5023_v53, %v2945_v17 }
 0x7b1   : > { %v3424_v5 = vmul.f32 0.5, %v3423_v54  ;;  %3245 = vadd.xlane.f32.xlu0 %v3244_v4  ;;  %v7278_v39 = vadd.f32 %v5026_v58, %v2948_v51 }
 0x7b2   : > { %v3730_v19 = vmul.f32 %v7188_v7, %v3695_v20 }
 0x7b3   : > { %v3425_v34 = vsub.f32 1.5, %v3424_v5  ;;  %v7274_v41 = vpop.f32.mrf.mxu0  ;;  %v3072_v4 = vsel %vm743_vm2, %v7278_v39, 0.0  ;;  %v3313_v5 = vmul.f32 %v7228_v11, %v7056_v50  ;;  %v7299_v11 = vld [vmem:[%s5754_s29 + $0x60] sm:$0xff]  }
 0x7b4   : > { %v3765_v56 = vadd.f32 %v7202_v16, %v3730_v19 }
 0x7b5   : > { %v3426_v22 = vmul.f32 %v5423_v8, %v3425_v34  ;;  %v7292_v34 = vld [vmem:[%s5754_s29 + $0x58] sm:$0xff]  }
 0x7b6   : > { %v3237_v43 = vpop.xlane.xlu1 %3236  ;;  %v5031_v20 = vunpack.c.h.bf16 %v7292_v34 }
 0x7b7   : > { %v3430_v21 = vsel %vm3429_vm7, %v5423_v8, %v3426_v22  ;;  %v3345_v22 = vadd.f32 1e-05, %v3313_v5 }
 0x7b8   : > { %v3696_v6 = vmul.f32 %v3430_v21, %v7105_v9  ;;  %v3069_v9 = vsel %vm743_vm2, %v7259_v60, 0.0 }
 0x7b9   : > { %3248 = vadd.xlane.f32.xlu0 %v3247_v33  ;;  %5424 = vrsqrt.f32 %v3345_v22  ;;  %v5034_v33 = vunpack.c.l.bf16 %v7299_v11  ;;  %vm3437_vm9 = vweird.f32 %v3345_v22 }
 0x7ba   : > { %v3731_v57 = vmul.f32 %v7188_v7, %v3696_v6 }
 0x7bb   : > { %v2955_v29 = vpop.f32.mrf.mxu0 }
 0x7bc   : > { %v3766_v2 = vadd.f32 %v7202_v16, %v3731_v57  ;;  %v7296_v53 = vadd.f32 %v5031_v20, %v2955_v29  ;;  %v3240_v57 = vpop.xlane.xlu2 %3239 }
 0x7be   : > { %v3059_v1 = vpop.xlane.xlu1 %3058  ;;  %v3795_v8 = vpack.c.bf16 %v3766_v2, %v3765_v56  ;;  %v3081_v6 = vsel %vm743_vm2, %v7296_v53, 0.0  ;;  %v3315_v2 = vmul.f32 %v3237_v43, %v7056_v50 }
 0x7bf   : > { %v3130_v14 = vmul.f32 %v7056_v50, %v3059_v1  ;;  %v7304_v56 = vpop.eup %5424 }
 0x7c0   : > { %4896 = vmatmul.msk.bf16.gmra.mxu1 %vm743_vm2, %v3795_v8  ;;  %v3316_v8 = vmul.f32 %v3240_v57, %v7056_v50  ;;  %v7311_v58 = vadd.f32 1e-05, %v3315_v2  ;;  %vm3438_vm8 = vweird.f32 %v7304_v56 }
 0x7c1   : > { %v7272_v17 = vsub.f32 %v7152_v31, %v3130_v14  ;;  %3070 = vadd.xlane.f32.xlu0 %v3069_v9  ;;  %v3432_v14 = vmul.f32 %v7304_v56, %v3345_v22  ;;  %v5039_v9 = vunpack.c.h.bf16 %v7029_v55  ;;  %v7325_v55 = vld [vmem:[%s5754_s29 + $0x70] sm:$0xff]   ;;  %vm7354_vm10 = vmor %vm3437_vm9, %vm3438_vm8 }
 0x7c2   : > { %5426 = vrsqrt.f32 %v7311_v58  ;;  %v4982_v31 = vld [vmem:[%s8007_s6 + $0x10] sm:$0xff]  ;;  %vm3457_vm0 = vweird.f32 %v7311_v58 }
 0x7c3   : > { %v3194_v35 = vmul.f32 %v7272_v17, %v7272_v17  ;;  %v2958_v19 = vpop.f32.mrf.mxu0 }
 0x7c4   : > { %v7307_v1 = vadd.f32 %v5034_v33, %v2958_v19 }
 0x7c5   : > { %v3256_v48 = vsel %vm743_vm2, %v3194_v35, 0.0  ;;  %v2965_v35 = vpop.f32.mrf.mxu3 }
 0x7c6   : > { %v3062_v63 = vpop.xlane.xlu1 %3061  ;;  %3257 = vadd.xlane.f32.xlu2 %v3256_v48  ;;  %8220 = vst [vmem:[#allocation74_spill] sm:$0xff] %v7307_v1  ;;  %v7314_v48 = vadd.f32 1e-05, %v3316_v8  ;;  %v7321_v5 = vadd.f32 %v5039_v9, %v2965_v35 }
 0x7c7   : > { %v3131_v54 = vmul.f32 %v7056_v50, %v3062_v63  ;;  %v3084_v63 = vsel %vm743_vm2, %v7307_v1, 0.0 }
 0x7c8   : > { %8221 = vst [vmem:[#allocation75_spill] sm:$0xff] %v7321_v5  ;;  %5428 = vrsqrt.f32 %v7314_v48  ;;  %v7327_v20 = vpop.eup %5426  ;;  %vm3467_vm3 = vweird.f32 %v7314_v48 }
 0x7c9   : > { %v7287_v44 = vsub.f32 %v7160_v18, %v3131_v54  ;;  %3073 = vadd.xlane.f32.xlu0 %v3072_v4  ;;  %v3433_v54 = vmul.f32 %v7304_v56, %v3432_v14  ;;  %v3452_v9 = vmul.f32 %v7327_v20, %v7311_v58  ;;  %vm3458_vm14 = vweird.f32 %v7327_v20 }
 0x7ca   : > { %vm7412_vm1 = vmor %vm3457_vm0, %vm3458_vm14  ;;  %v5035_v58 = vunpack.c.h.bf16 %v7299_v11 }
 0x7cb   : > { %v3195_v51 = vmul.f32 %v7287_v44, %v7287_v44  ;;  %v3434_v29 = vmul.f32 0.5, %v3433_v54 }
 0x7cd   : > { %v3259_v21 = vsel %vm743_vm2, %v3195_v51, 0.0  ;;  %v2968_v33 = vpop.f32.mrf.mxu3  ;;  %v3435_v19 = vsub.f32 1.5, %v3434_v29 }
 0x7ce   : > { %3260 = vadd.xlane.f32.xlu2 %v3259_v21  ;;  %v5042_v21 = vunpack.c.l.bf16 %v7325_v55  ;;  %v7334_v8 = vpop.eup %5428 }
 0x7cf   : > { %v3462_v29 = vmul.f32 %v7334_v8, %v7314_v48  ;;  %vm3468_vm15 = vweird.f32 %v7334_v8 }
 0x7d0   : > { %vm3469_vm4 = vmor %vm3467_vm3, %vm3468_vm15 }
 0x7d6   : > { %3082 = vadd.xlane.f32.xlu2 %v3081_v6  ;;  %v3093_v6 = vsel %vm743_vm2, %v7321_v5, 0.0 }
 0x7de   : > { %v3234_v43 = vpop.xlane.xlu0 %3233  ;;  %3085 = vadd.xlane.f32.xlu2 %v3084_v63  ;;  %v7339_v63 = vadd.f32 %v5042_v21, %v2968_v33  ;;  %v3453_v21 = vmul.f32 %v7327_v20, %v3452_v9 }
 0x7df   : > { %v3314_v4 = vmul.f32 %v3234_v43, %v7056_v50  ;;  %v4983_v43 = vld [vmem:[%s8007_s6 + $0x18] sm:$0xff] }
 0x7e0   : > { %8222 = vst [vmem:[#allocation76_spill] sm:$0xff] %v7339_v63  ;;  %4343 = vmatpush.bf16.msra.mxu2 %v4983_v43  ;;  %5065 = vmatpush.bf16.msra.mxu3 %v4983_v43  ;;  %v3096_v18 = vsel %vm743_vm2, %v7339_v63, 0.0 }
 0x7e1   : > { %v3346_v51 = vadd.f32 1e-05, %v3314_v4  ;;  %v3436_v4 = vmul.f32 %v7304_v56, %v3435_v19 }
 0x7e3   : > { %5430 = vrsqrt.f32 %v3346_v51  ;;  %vm3447_vm12 = vweird.f32 %v3346_v51 }
 0x7e4   : > { %4344 = vmatpush.bf16.msra.mxu2 %v4982_v31  ;;  %5066 = vmatpush.bf16.msra.mxu3 %v4982_v31 }
 0x7e6   : > { %v7332_v57 = vpop.xlane.xlu2 %3242  ;;  %v3053_v2 = vpop.xlane.xlu0 %3052  ;;  %3094 = vadd.xlane.f32.xlu2 %v3093_v6 }
 0x7e7   : > { %v3128_v14 = vmul.f32 %v7056_v50, %v3053_v2 }
 0x7e8   : > { %4345 = vmatpush.bf16.msra.mxu2 %v4981_v12  ;;  %5067 = vmatpush.bf16.msra.mxu3 %v4981_v12 }
 0x7e9   : > { %v5431_v35 = vpop.eup %5430  ;;  %v7342_v54 = vsub.f32 %v7179_v26, %v3128_v14  ;;  %v3463_v26 = vmul.f32 %v7334_v8, %v3462_v29  ;;  %v3454_v29 = vmul.f32 0.5, %v3453_v21  ;;  %v4980_v21 = vld [vmem:[%s8007_s6] sm:$0xff] }
 0x7ea   : > { %v3442_v6 = vmul.f32 %v5431_v35, %v3346_v51  ;;  %vm3448_vm11 = vweird.f32 %v5431_v35 }
 0x7eb   : > { %v3192_v2 = vmul.f32 %v7342_v54, %v7342_v54  ;;  %vm3449_vm13 = vmor %vm3447_vm12, %vm3448_vm11 }
 0x7ec   : > { %v3443_v33 = vmul.f32 %v5431_v35, %v3442_v6  ;;  %v3440_v6 = vsel %vm7354_vm10, %v7304_v56, %v3436_v4  ;;  %v3464_v4 = vmul.f32 0.5, %v3463_v26  ;;  %4346 = vmatpush.bf16.msra.mxu2 %v4980_v21  ;;  %5068 = vmatpush.bf16.msra.mxu3 %v4980_v21 }
 0x7ed   : > { %v3250_v19 = vsel %vm743_vm2, %v3192_v2, 0.0  ;;  %v3697_v56 = vmul.f32 %v3440_v6, %v7110_v45 }
 0x7ee   : > { %v3444_v43 = vmul.f32 0.5, %v3443_v33  ;;  %v3056_v22 = vpop.xlane.xlu0 %3055  ;;  %3251 = vadd.xlane.f32.xlu1 %v3250_v19  ;;  %v3065_v9 = vpop.xlane.xlu2 %3064  ;;  %3097 = vadd.xlane.f32.xlu2 %v3096_v18 }
 0x7ef   : > { %v3129_v2 = vmul.f32 %v7056_v50, %v3056_v22  ;;  %v3132_v0 = vmul.f32 %v7056_v50, %v3065_v9  ;;  %v3732_v6 = vmul.f32 %v7188_v7, %v3697_v56 }
 0x7f0   : > { %v3445_v33 = vsub.f32 1.5, %v3444_v43  ;;  %v3455_v43 = vsub.f32 1.5, %v3454_v29 }
 0x7f1   : > { %v7374_v19 = vsub.f32 %v7206_v46, %v3129_v2  ;;  %v7377_v18 = vsub.f32 %v7208_v15, %v3132_v0  ;;  %v5027_v0 = vunpack.c.h.bf16 %v7264_v62  ;;  %v3465_v2 = vsub.f32 1.5, %v3464_v4 }
 0x7f2   : > { %v3446_v14 = vmul.f32 %v5431_v35, %v3445_v33  ;;  %v3456_v62 = vmul.f32 %v7327_v20, %v3455_v43  ;;  %v3767_v56 = vadd.f32 %v7202_v16, %v3732_v6  ;;  %v5030_v43 = vunpack.c.l.bf16 %v7292_v34 }
 0x7f3   : > { %v3193_v22 = vmul.f32 %v7374_v19, %v7374_v19  ;;  %v3196_v31 = vmul.f32 %v7377_v18, %v7377_v18 }
 0x7f4   : > { %v3450_v45 = vsel %vm3449_vm13, %v5431_v35, %v3446_v14  ;;  %v7401_v35 = vadd.f32 %v5027_v0, %v7253_v61  ;;  %v3466_v14 = vmul.f32 %v7334_v8, %v3465_v2  ;;  %v3460_v0 = vsel %vm7412_vm1, %v7327_v20, %v3456_v62 }
 0x7f5   : > { %v3253_v26 = vsel %vm743_vm2, %v3193_v22, 0.0  ;;  %v3262_v51 = vsel %vm743_vm2, %v3196_v31, 0.0  ;;  %v3698_v9 = vmul.f32 %v3450_v45, %v7171_v37  ;;  %v3699_v34 = vmul.f32 %v3460_v0, %v7143_v13 }
 0x7f6   : > { %3254 = vadd.xlane.f32.xlu1 %v3253_v26  ;;  %v3068_v33 = vpop.xlane.xlu2 %3067  ;;  %3263 = vadd.xlane.f32.xlu0 %v3262_v51  ;;  %v3075_v26 = vsel %vm743_vm2, %v7401_v35, 0.0  ;;  %v2960_v51 = vpop.f32.mrf.mxu0  ;;  %v7432_v2 = vadd.f32 %v5030_v43, %v7274_v41 }
 0x7f7   : > { %v3133_v15 = vmul.f32 %v7056_v50, %v3068_v33  ;;  %v7393_v46 = vpop.f32.mrf.mxu1  ;;  %v3733_v12 = vmul.f32 %v7188_v7, %v3698_v9  ;;  %v3470_v9 = vsel %vm3469_vm4, %v7334_v8, %v3466_v14  ;;  %v7434_v33 = vadd.f32 %v5035_v58, %v2960_v51 }
 0x7f8   : > { %v3954_v37 = vmul.f32 %v7393_v46, %v7393_v46  ;;  %v3078_v8 = vsel %vm743_vm2, %v7432_v2, 0.0 }
 0x7f9   : > { %v7404_v29 = vsub.f32 %v7222_v40, %v3133_v15  ;;  %v3768_v4 = vadd.f32 %v7202_v16, %v3733_v12  ;;  %v3700_v12 = vmul.f32 %v3470_v9, %v7130_v49  ;;  %v3087_v13 = vsel %vm743_vm2, %v7434_v33, 0.0 }
 0x7fa   : > { %v3986_v22 = vmul.f32 %v3954_v37, %v7393_v46  ;;  %v3734_v37 = vmul.f32 %v7188_v7, %v3699_v34 }
 0x7fb   : > { %v3796_v61 = vpack.c.bf16 %v3768_v4, %v3767_v56  ;;  %v3197_v15 = vmul.f32 %v7404_v29, %v7404_v29  ;;  %v3735_v4 = vmul.f32 %v7188_v7, %v3700_v12 }
 0x7fc   : > { %v4018_v21 = vmul.f32 0.044715, %v3986_v22  ;;  %v3769_v41 = vadd.f32 %v7202_v16, %v3734_v37 }
 0x7fd   : > { %4897 = vmatmul.msk.bf16.gmra.mxu1 %vm743_vm2, %v3796_v61  ;;  %v3265_v45 = vsel %vm743_vm2, %v3197_v15, 0.0  ;;  %v3770_v49 = vadd.f32 %v7202_v16, %v3735_v4 }
 0x7fe   : > { %v4050_v48 = vadd.f32 %v4018_v21, %v7393_v46  ;;  %3266 = vadd.xlane.f32.xlu0 %v3265_v45  ;;  %3076 = vadd.xlane.f32.xlu1 %v3075_v26  ;;  %v3317_v21 = vmul.f32 %v7332_v57, %v7056_v50 }
 0x7ff   : > { %v3876_v20 = vpop.f32.mrf.mxu1  ;;  %v3797_v61 = vpack.c.bf16 %v3770_v49, %v3769_v41 }
 0x800   : > { %v4082_v6 = vmul.f32 0.7978846, %v4050_v48  ;;  %v3955_v11 = vmul.f32 %v3876_v20, %v3876_v20  ;;  %v3349_v45 = vadd.f32 1e-05, %v3317_v21 }
 0x802   : > { %v3987_v62 = vmul.f32 %v3955_v11, %v3876_v20  ;;  %5432 = vtanh.f32 %v4082_v6  ;;  %vm3477_vm7 = vweird.f32 %v3349_v45 }
 0x804   : > { %v4019_v56 = vmul.f32 0.044715, %v3987_v62 }
 0x806   : > { %v4051_v14 = vadd.f32 %v4019_v56, %v3876_v20  ;;  %3079 = vadd.xlane.f32.xlu1 %v3078_v8  ;;  %3088 = vadd.xlane.f32.xlu0 %v3087_v13 }
 0x808   : > { %v4083_v22 = vmul.f32 0.7978846, %v4051_v14  ;;  %v5433_v31 = vpop.eup %5432 }
 0x809   : > { %v4146_v15 = vadd.f32 1.0, %v5433_v31 }
 0x80a   : > { %5434 = vtanh.f32 %v4083_v22 }
 0x80b   : > { %v4178_v43 = vmul.f32 0.5, %v4146_v15  ;;  %5436 = vrsqrt.f32 %v3349_v45 }
 0x80d   : > { %4898 = vmatmul.msk.bf16.gmra.mxu1 %vm743_vm2, %v3797_v61  ;;  %v4210_v51 = vmul.f32 %v4178_v43, %v7393_v46 }
 0x810   : > { %v5435_v0 = vpop.eup %5434 }
 0x811   : > { %v4147_v58 = vadd.f32 1.0, %v5435_v0  ;;  %v5437_v34 = vpop.eup %5436 }
 0x812   : > { %v3472_v6 = vmul.f32 %v5437_v34, %v3349_v45  ;;  %vm3478_vm6 = vweird.f32 %v5437_v34 }
 0x813   : > { %v4179_v26 = vmul.f32 0.5, %v4147_v58  ;;  %vm3479_vm8 = vmor %vm3477_vm7, %vm3478_vm6 }
 0x814   : > { %v3473_v11 = vmul.f32 %v5437_v34, %v3472_v6 }
 0x815   : > { %v4211_v48 = vmul.f32 %v4179_v26, %v3876_v20 }
 0x816   : > { %v3474_v57 = vmul.f32 0.5, %v3473_v11 }
 0x817   : > { %v4242_v9 = vpack.c.bf16 %v4211_v48, %v4210_v51 }
 0x818   : > { %v3475_v56 = vsub.f32 1.5, %v3474_v57 }
 0x819   : > { %4926 = vmatmul.msk.bf16.vlgmr.msra.gmra.mxu2 %vm4290_vm5, %v4242_v9 }
 0x81a   : > { %v3476_v4 = vmul.f32 %v5437_v34, %v3475_v56 }
 0x81c   : > { %v3480_v31 = vsel %vm3479_vm8, %v5437_v34, %v3476_v4 }
 0x81d   : > { %v3701_v51 = vmul.f32 %v3480_v31, %v7182_v28 }
 0x824   : > { %v3246_v12 = vpop.xlane.xlu0 %3245 }
 0x825   : > { %v3318_v62 = vmul.f32 %v3246_v12, %v7056_v50 }
 0x827   : > { %v3350_v37 = vadd.f32 1e-05, %v3318_v62  ;;  %v3736_v62 = vmul.f32 %v7188_v7, %v3701_v51  ;;  %v5043_v51 = vunpack.c.h.bf16 %v7325_v55  ;;  %v7502_v55 = vld [vmem:[%s5754_s29 + $0x78] sm:$0xff]  }
 0x829   : > { %5438 = vrsqrt.f32 %v3350_v37  ;;  %vm3487_vm10 = vweird.f32 %v3350_v37  ;;  %v3771_v31 = vadd.f32 %v7202_v16, %v3736_v62 }
 0x82c   : > { %v7451_v8 = vpop.xlane.xlu0 %3248 }
 0x82d   : > { %v7453_v13 = vpop.f32.mrf.mxu1 }
 0x82e   : > { %v3956_v46 = vmul.f32 %v7453_v13, %v7453_v13 }
 0x82f   : > { %v5439_v20 = vpop.eup %5438 }
 0x830   : > { %v3482_v14 = vmul.f32 %v5439_v20, %v3350_v37  ;;  %v3988_v41 = vmul.f32 %v3956_v46, %v7453_v13  ;;  %vm3488_vm9 = vweird.f32 %v5439_v20 }
 0x831   : > { %vm3489_vm11 = vmor %vm3487_vm10, %vm3488_vm9 }
 0x832   : > { %v3483_v22 = vmul.f32 %v5439_v20, %v3482_v14  ;;  %v4020_v49 = vmul.f32 0.044715, %v3988_v41 }
 0x834   : > { %v3484_v61 = vmul.f32 0.5, %v3483_v22  ;;  %v4052_v15 = vadd.f32 %v4020_v49, %v7453_v13  ;;  %v3071_v21 = vpop.xlane.xlu0 %3070 }
 0x835   : > { %v3134_v0 = vmul.f32 %v7056_v50, %v3071_v21  ;;  %v7460_v43 = vpop.f32.mrf.mxu1 }
 0x836   : > { %v3485_v58 = vsub.f32 1.5, %v3484_v61  ;;  %v3957_v26 = vmul.f32 %v7460_v43, %v7460_v43  ;;  %v4084_v45 = vmul.f32 0.7978846, %v4052_v15 }
 0x837   : > { %v7466_v48 = vsub.f32 %v7259_v60, %v3134_v0 }
 0x838   : > { %v3486_v9 = vmul.f32 %v5439_v20, %v3485_v58  ;;  %v3989_v34 = vmul.f32 %v3957_v26, %v7460_v43  ;;  %5440 = vtanh.f32 %v4084_v45  ;;  %v3090_v45 = vsel %vm743_vm2, %v7039_v59, 0.0 }
 0x839   : > { %v7469_v6 = vpop.xlane.xlu2 %3257  ;;  %v3198_v11 = vmul.f32 %v7466_v48, %v7466_v48 }
 0x83a   : > { %v3490_v12 = vsel %vm3489_vm11, %v5439_v20, %v3486_v9  ;;  %v4021_v57 = vmul.f32 0.044715, %v3989_v34  ;;  %v2970_v34 = vpop.f32.mrf.mxu3 }
 0x83b   : > { %v3268_v28 = vsel %vm743_vm2, %v3198_v11, 0.0  ;;  %v3702_v56 = vmul.f32 %v3490_v12, %v7237_v36 }
 0x83c   : > { %v3074_v46 = vpop.xlane.xlu0 %3073  ;;  %3269 = vadd.xlane.f32.xlu1 %v3268_v28  ;;  %v4053_v37 = vadd.f32 %v4021_v57, %v7460_v43 }
 0x83d   : > { %v3135_v4 = vmul.f32 %v7056_v50, %v3074_v46  ;;  %v7478_v14 = vpop.f32.mrf.mxu1  ;;  %v3737_v41 = vmul.f32 %v7188_v7, %v3702_v56  ;;  %v7499_v46 = vadd.f32 %v5043_v51, %v2970_v34 }
 0x83e   : > { %v3958_v20 = vmul.f32 %v7478_v14, %v7478_v14  ;;  %v4085_v22 = vmul.f32 0.7978846, %v4053_v37  ;;  %v5441_v15 = vpop.eup %5440 }
 0x83f   : > { %v7484_v49 = vsub.f32 %v7278_v39, %v3135_v4  ;;  %v3772_v36 = vadd.f32 %v7202_v16, %v3737_v41  ;;  %v4148_v11 = vadd.f32 1.0, %v5441_v15  ;;  %v5046_v15 = vunpack.c.l.bf16 %v7502_v55 }
 0x840   : > { %v3990_v61 = vmul.f32 %v3958_v20, %v7478_v14  ;;  %5442 = vtanh.f32 %v4085_v22  ;;  %v3319_v20 = vmul.f32 %v7451_v8, %v7056_v50 }
 0x841   : > { %v7489_v21 = vpop.xlane.xlu2 %3260  ;;  %v3798_v0 = vpack.c.bf16 %v3772_v36, %v3771_v31  ;;  %v3199_v58 = vmul.f32 %v7484_v49, %v7484_v49  ;;  %v4180_v37 = vmul.f32 0.5, %v4148_v11 }
 0x842   : > { %v4022_v26 = vmul.f32 0.044715, %v3990_v61  ;;  %v3351_v8 = vadd.f32 1e-05, %v3319_v20 }
 0x843   : > { %4899 = vmatmul.msk.bf16.gmra.mxu1 %vm743_vm2, %v3798_v0  ;;  %v3271_v9 = vsel %vm743_vm2, %v3199_v58, 0.0  ;;  %v3099_v0 = vsel %vm743_vm2, %v7499_v46, 0.0  ;;  %v2973_v58 = vpop.f32.mrf.mxu3 }
 0x844   : > { %v4054_v12 = vadd.f32 %v4022_v26, %v7478_v14  ;;  %3091 = vadd.xlane.f32.xlu1 %v3090_v45  ;;  %3272 = vadd.xlane.f32.xlu0 %v3271_v9  ;;  %v4212_v26 = vmul.f32 %v4180_v37, %v7453_v13  ;;  %vm3497_vm13 = vweird.f32 %v3351_v8 }
 0x845   : > { %v3886_v62 = vpop.f32.mrf.mxu1 }
 0x846   : > { %v4086_v57 = vmul.f32 0.7978846, %v4054_v12  ;;  %v3959_v28 = vmul.f32 %v3886_v62, %v3886_v62  ;;  %v5443_v56 = vpop.eup %5442 }
 0x847   : > { %v4149_v4 = vadd.f32 1.0, %v5443_v56 }
 0x848   : > { %v3991_v41 = vmul.f32 %v3959_v28, %v3886_v62  ;;  %5444 = vtanh.f32 %v4086_v57  ;;  %v7517_v57 = vadd.f32 %v5046_v15, %v2973_v58 }
 0x849   : > { %v3083_v22 = vpop.xlane.xlu2 %3082  ;;  %v4181_v31 = vmul.f32 0.5, %v4149_v4 }
 0x84a   : > { %v4023_v36 = vmul.f32 0.044715, %v3991_v41  ;;  %v3138_v61 = vmul.f32 %v7056_v50, %v3083_v22  ;;  %v3102_v4 = vsel %vm743_vm2, %v7517_v57, 0.0 }
 0x84b   : > { %v4213_v51 = vmul.f32 %v4181_v31, %v7460_v43 }
 0x84c   : > { %v4055_v45 = vadd.f32 %v4023_v36, %v3886_v62  ;;  %v7513_v9 = vsub.f32 %v7296_v53, %v3138_v61  ;;  %3100 = vadd.xlane.f32.xlu0 %v3099_v0  ;;  %v3322_v0 = vmul.f32 %v7469_v6, %v7056_v50 }
 0x84d   : > { %v4243_v11 = vpack.c.bf16 %v4213_v51, %v4212_v26 }
 0x84e   : > { %v4087_v34 = vmul.f32 0.7978846, %v4055_v45  ;;  %v3202_v12 = vmul.f32 %v7513_v9, %v7513_v9  ;;  %v5445_v28 = vpop.eup %5444 }
 0x84f   : > { %4927 = vmatmul.msk.bf16.gmra.mxu2 %vm4290_vm5, %v4243_v11  ;;  %v4150_v37 = vadd.f32 1.0, %v5445_v28  ;;  %v7537_v28 = vadd.f32 1e-05, %v3322_v0 }
 0x850   : > { %5446 = vtanh.f32 %v4087_v34  ;;  %v3280_v13 = vsel %vm743_vm2, %v3202_v12, 0.0 }
 0x851   : > { %5448 = vrsqrt.f32 %v3351_v8  ;;  %3281 = vadd.xlane.f32.xlu2 %v3280_v13  ;;  %v3086_v43 = vpop.xlane.xlu2 %3085  ;;  %v4182_v36 = vmul.f32 0.5, %v4150_v37  ;;  %vm3527_vm8 = vweird.f32 %v7537_v28 }
 0x852   : > { %v3139_v56 = vmul.f32 %v7056_v50, %v3086_v43  ;;  %5450 = vrsqrt.f32 %v7537_v28 }
 0x853   : > { %v4214_v34 = vmul.f32 %v4182_v36, %v7478_v14 }
 0x854   : > { %v7525_v41 = vsub.f32 %v7307_v1, %v3139_v56  ;;  %3103 = vadd.xlane.f32.xlu0 %v3102_v4 }
 0x856   : > { %v5447_v20 = vpop.eup %5446  ;;  %v3203_v22 = vmul.f32 %v7525_v41, %v7525_v41 }
 0x857   : > { %v5449_v31 = vpop.eup %5448  ;;  %v4151_v61 = vadd.f32 1.0, %v5447_v20 }
 0x858   : > { %v3283_v15 = vsel %vm743_vm2, %v3203_v22, 0.0  ;;  %v3492_v51 = vmul.f32 %v5449_v31, %v3351_v8  ;;  %v7545_v22 = vpop.eup %5450  ;;  %vm3498_vm12 = vweird.f32 %v5449_v31 }
 0x859   : > { %v4183_v58 = vmul.f32 0.5, %v4151_v61  ;;  %3284 = vadd.xlane.f32.xlu2 %v3283_v15  ;;  %v3095_v26 = vpop.xlane.xlu2 %3094  ;;  %v3522_v0 = vmul.f32 %v7545_v22, %v7537_v28  ;;  %vm3499_vm14 = vmor %vm3497_vm13, %vm3498_vm12  ;;  %vm3528_vm3 = vweird.f32 %v7545_v22 }
 0x85a   : > { %v3142_v45 = vmul.f32 %v7056_v50, %v3095_v26  ;;  %v3493_v43 = vmul.f32 %v5449_v31, %v3492_v51  ;;  %vm7625_vm9 = vmor %vm3527_vm8, %vm3528_vm3 }
 0x85b   : > { %v4215_v11 = vmul.f32 %v4183_v58, %v3886_v62 }
 0x85c   : > { %v7535_v12 = vsub.f32 %v7321_v5, %v3142_v45  ;;  %v3494_v14 = vmul.f32 0.5, %v3493_v43  ;;  %v3323_v45 = vmul.f32 %v7489_v21, %v7056_v50 }
 0x85d   : > { %v4244_v13 = vpack.c.bf16 %v4215_v11, %v4214_v34 }
 0x85e   : > { %v3206_v56 = vmul.f32 %v7535_v12, %v7535_v12  ;;  %v3495_v20 = vsub.f32 1.5, %v3494_v14 }
 0x85f   : > { %4928 = vmatmul.msk.bf16.gmra.mxu2 %vm4290_vm5, %v4244_v13  ;;  %v3523_v13 = vmul.f32 %v7545_v22, %v3522_v0 }
 0x860   : > { %v3292_v6 = vsel %vm743_vm2, %v3206_v56, 0.0  ;;  %v3496_v15 = vmul.f32 %v5449_v31, %v3495_v20 }
 0x861   : > { %v3252_v37 = vpop.xlane.xlu1 %3251  ;;  %3293 = vadd.xlane.f32.xlu2 %v3292_v6 }
 0x862   : > { %v3320_v62 = vmul.f32 %v3252_v37, %v7056_v50  ;;  %v3500_v56 = vsel %vm3499_vm14, %v5449_v31, %v3496_v15  ;;  %v7556_v37 = vadd.f32 1e-05, %v3323_v45 }
 0x863   : > { %v3703_v8 = vmul.f32 %v3500_v56, %v7245_v25 }
 0x864   : > { %v3352_v4 = vadd.f32 1e-05, %v3320_v62  ;;  %vm3537_vm14 = vweird.f32 %v7556_v37 }
 0x865   : > { %v3738_v25 = vmul.f32 %v7188_v7, %v3703_v8 }
 0x866   : > { %5452 = vrsqrt.f32 %v3352_v4  ;;  %vm3507_vm0 = vweird.f32 %v3352_v4 }
 0x867   : > { %v3773_v8 = vadd.f32 %v7202_v16, %v3738_v25 }
 0x869   : > { %v3255_v36 = vpop.xlane.xlu1 %3254  ;;  %v3264_v61 = vpop.xlane.xlu0 %3263 }
 0x86a   : > { %v3321_v58 = vmul.f32 %v3255_v36, %v7056_v50  ;;  %v3324_v26 = vmul.f32 %v3264_v61, %v7056_v50  ;;  %v3524_v36 = vmul.f32 0.5, %v3523_v13 }
 0x86c   : > { %v5453_v51 = vpop.eup %5452  ;;  %v3353_v34 = vadd.f32 1e-05, %v3321_v58  ;;  %v7554_v43 = vadd.f32 1e-05, %v3324_v26  ;;  %v3525_v26 = vsub.f32 1.5, %v3524_v36 }
 0x86d   : > { %v3502_v11 = vmul.f32 %v5453_v51, %v3352_v4  ;;  %vm3508_vm15 = vweird.f32 %v5453_v51 }
 0x86e   : > { %5454 = vrsqrt.f32 %v3353_v34  ;;  %vm3509_vm1 = vmor %vm3507_vm0, %vm3508_vm15  ;;  %vm3517_vm6 = vweird.f32 %v3353_v34  ;;  %vm3547_vm12 = vweird.f32 %v7554_v43  ;;  %vm4492_vm0 = vcmask 125952  }
 0x86f   : > { %v3503_v6 = vmul.f32 %v5453_v51, %v3502_v11  ;;  %5456 = vrsqrt.f32 %v7554_v43 }
 0x870   : > { %5458 = vrsqrt.f32 %v7556_v37 }
 0x871   : > { %v3504_v14 = vmul.f32 0.5, %v3503_v6  ;;  %v7558_v62 = vpop.xlane.xlu0 %3266  ;;  %v3077_v20 = vpop.xlane.xlu1 %3076 }
 0x872   : > { %v3136_v21 = vmul.f32 %v7056_v50, %v3077_v20  ;;  %v3098_v6 = vpop.xlane.xlu2 %3097 }
 0x873   : > { %v3505_v61 = vsub.f32 1.5, %v3504_v14 }
 0x874   : > { %v7563_v0 = vpop.eup %5454  ;;  %v7567_v31 = vsub.f32 %v7401_v35, %v3136_v21 }
 0x875   : > { %v3506_v15 = vmul.f32 %v5453_v51, %v3505_v61  ;;  %v3512_v58 = vmul.f32 %v7563_v0, %v3353_v34  ;;  %v7574_v56 = vpop.eup %5456  ;;  %v3526_v61 = vmul.f32 %v7545_v22, %v3525_v26  ;;  %vm3518_vm4 = vweird.f32 %v7563_v0 }
 0x876   : > { %v3200_v11 = vmul.f32 %v7567_v31, %v7567_v31  ;;  %v7580_v36 = vpop.eup %5458  ;;  %v3542_v25 = vmul.f32 %v7574_v56, %v7554_v43  ;;  %vm7610_vm7 = vmor %vm3517_vm6, %vm3518_vm4  ;;  %vm3548_vm10 = vweird.f32 %v7574_v56 }
 0x877   : > { %v3513_v45 = vmul.f32 %v7563_v0, %v3512_v58  ;;  %v3510_v13 = vsel %vm3509_vm1, %v5453_v51, %v3506_v15  ;;  %vm3538_vm11 = vweird.f32 %v7580_v36  ;;  %vm3549_vm13 = vmor %vm3547_vm12, %vm3548_vm10 }
 0x878   : > { %v3704_v14 = vmul.f32 %v3510_v13, %v7342_v54  ;;  %v3274_v20 = vsel %vm743_vm2, %v3200_v11, 0.0  ;;  %v7590_v54 = vld [vmem:[%s8008_s7] ss:$0 sm:$0xff]  ;;  %v3143_v13 = vmul.f32 %v7056_v50, %v3098_v6  ;;  %vm3539_vm15 = vmor %vm3537_vm14, %vm3538_vm11 }
 0x879   : > { %v3514_v4 = vmul.f32 0.5, %v3513_v45  ;;  %v3080_v21 = vpop.xlane.xlu1 %3079  ;;  %v3089_v7 = vpop.xlane.xlu0 %3088  ;;  %3275 = vadd.xlane.f32.xlu1 %v3274_v20 }
 0x87a   : > { %v3137_v51 = vmul.f32 %v7056_v50, %v3080_v21  ;;  %v3140_v15 = vmul.f32 %v7056_v50, %v3089_v7  ;;  %v7585_v58 = vpop.f32.mrf.mxu1  ;;  %v3739_v45 = vmul.f32 %v7590_v54, %v3704_v14  ;;  %v3532_v14 = vmul.f32 %v7580_v36, %v7556_v37 }
 0x87b   : > { %v3515_v11 = vsub.f32 1.5, %v3514_v4  ;;  %v3960_v26 = vmul.f32 %v7585_v58, %v7585_v58 }
 0x87c   : > { %v7600_v20 = vsub.f32 %v7432_v2, %v3137_v51  ;;  %v7603_v21 = vsub.f32 %v7434_v33, %v3140_v15  ;;  %v3774_v7 = vadd.f32 %v7202_v16, %v3739_v45  ;;  %v3543_v16 = vmul.f32 %v7574_v56, %v3542_v25 }
 0x87d   : > { %v3516_v4 = vmul.f32 %v7563_v0, %v3515_v11  ;;  %v3992_v5 = vmul.f32 %v3960_v26, %v7585_v58  ;;  %v3533_v1 = vmul.f32 %v7580_v36, %v3532_v14  ;;  %v3530_v26 = vsel %vm7625_vm9, %v7545_v22, %v3526_v61 }
 0x87e   : > { %v3799_v6 = vpack.c.bf16 %v3774_v7, %v3773_v8  ;;  %v3201_v51 = vmul.f32 %v7600_v20, %v7600_v20  ;;  %v3204_v15 = vmul.f32 %v7603_v21, %v7603_v21  ;;  %v7630_v8 = vsub.f32 %v7339_v63, %v3143_v13  ;;  %v2975_v7 = vpop.f32.mrf.mxu3 }
 0x87f   : > { %v4024_v45 = vmul.f32 0.044715, %v3992_v5  ;;  %v3520_v34 = vsel %vm7610_vm7, %v7563_v0, %v3516_v4  ;;  %v5047_v5 = vunpack.c.h.bf16 %v7502_v55  ;;  %v3706_v14 = vmul.f32 %v3530_v26, %v7272_v17 }
 0x880   : > { %4900 = vmatmul.msk.bf16.gmra.mxu1 %vm743_vm2, %v3799_v6  ;;  %v3277_v28 = vsel %vm743_vm2, %v3201_v51, 0.0  ;;  %v3286_v25 = vsel %vm743_vm2, %v3204_v15, 0.0  ;;  %v3705_v4 = vmul.f32 %v3520_v34, %v7374_v19  ;;  %v3544_v6 = vmul.f32 0.5, %v3543_v16 }
 0x881   : > { %v4056_v0 = vadd.f32 %v4024_v45, %v7585_v58  ;;  %3287 = vadd.xlane.f32.xlu0 %v3286_v25  ;;  %3278 = vadd.xlane.f32.xlu1 %v3277_v28  ;;  %v3207_v55 = vmul.f32 %v7630_v8, %v7630_v8  ;;  %v7645_v15 = vadd.f32 %v5047_v5, %v2975_v7  ;;  %v3534_v45 = vmul.f32 0.5, %v3533_v1 }
 0x882   : > { %v3891_v13 = vpop.f32.mrf.mxu1  ;;  %v3740_v11 = vmul.f32 %v7590_v54, %v3705_v4  ;;  %v3545_v22 = vsub.f32 1.5, %v3544_v6  ;;  %v3741_v19 = vmul.f32 %v7590_v54, %v3706_v14 }
 0x883   : > { %v4088_v51 = vmul.f32 0.7978846, %v4056_v0  ;;  %v3961_v63 = vmul.f32 %v3891_v13, %v3891_v13  ;;  %v3295_v28 = vsel %vm743_vm2, %v3207_v55, 0.0  ;;  %v3535_v16 = vsub.f32 1.5, %v3534_v45 }
 0x884   : > { %v3105_v0 = vsel %vm743_vm2, %v7645_v15, 0.0  ;;  %v3546_v1 = vmul.f32 %v7574_v56, %v3545_v22 }
 0x885   : > { %v3993_v25 = vmul.f32 %v3961_v63, %v3891_v13  ;;  %5460 = vtanh.f32 %v4088_v51  ;;  %v7657_v63 = vld [vmem:[%s8009_s8] ss:$0 sm:$0xff]  ;;  %v3536_v51 = vmul.f32 %v7580_v36, %v3535_v16 }
 0x886   : > { %v3775_v5 = vadd.f32 %v7657_v63, %v3740_v11  ;;  %v3776_v4 = vadd.f32 %v7657_v63, %v3741_v19 }
 0x887   : > { %v4025_v61 = vmul.f32 0.044715, %v3993_v25  ;;  %v3550_v25 = vsel %vm3549_vm13, %v7574_v56, %v3546_v1 }
 0x888   : > { %v3800_v14 = vpack.c.bf16 %v3776_v4, %v3775_v5  ;;  %v3708_v43 = vmul.f32 %v3550_v25, %v7377_v18  ;;  %v3325_v18 = vmul.f32 %v7558_v62, %v7056_v50 }
 0x889   : > { %v4057_v34 = vadd.f32 %v4025_v61, %v3891_v13  ;;  %3296 = vadd.xlane.f32.xlu0 %v3295_v28  ;;  %3106 = vadd.xlane.f32.xlu1 %v3105_v0  ;;  %v3540_v61 = vsel %vm3539_vm15, %v7580_v36, %v3536_v51 }
 0x88a   : > { %v7652_v17 = vpop.f32.mrf.mxu1  ;;  %v3707_v37 = vmul.f32 %v3540_v61, %v7287_v44  ;;  %v3743_v1 = vmul.f32 %v7590_v54, %v3708_v43 }
 0x88b   : > { %v4089_v26 = vmul.f32 0.7978846, %v4057_v34  ;;  %v3962_v7 = vmul.f32 %v7652_v17, %v7652_v17  ;;  %v5461_v6 = vpop.eup %5460 }
 0x88c   : > { %v4152_v11 = vadd.f32 1.0, %v5461_v6  ;;  %v3742_v36 = vmul.f32 %v7590_v54, %v3707_v37 }
 0x88d   : > { %5462 = vtanh.f32 %v4089_v26  ;;  %v3994_v55 = vmul.f32 %v3962_v7, %v7652_v17 }
 0x88e   : > { %v4184_v0 = vmul.f32 0.5, %v4152_v11  ;;  %v3777_v25 = vadd.f32 %v7657_v63, %v3742_v36 }
 0x88f   : > { %v4026_v45 = vmul.f32 0.044715, %v3994_v55 }
 0x890   : > { %4901 = vmatmul.msk.bf16.gmra.mxu1 %vm743_vm2, %v3800_v14  ;;  %v4216_v4 = vmul.f32 %v4184_v0, %v7585_v58  ;;  %v3778_v14 = vadd.f32 %v7657_v63, %v3743_v1 }
 0x891   : > { %v4058_v22 = vadd.f32 %v4026_v45, %v7652_v17 }
 0x892   : > { %v3896_v28 = vpop.f32.mrf.mxu1 }
 0x893   : > { %v5463_v19 = vpop.eup %5462  ;;  %v4090_v16 = vmul.f32 0.7978846, %v4058_v22  ;;  %v3963_v34 = vmul.f32 %v3896_v28, %v3896_v28  ;;  %v3357_v22 = vadd.f32 1e-05, %v3325_v18 }
 0x894   : > { %v4153_v5 = vadd.f32 1.0, %v5463_v19 }
 0x895   : > { %v3995_v26 = vmul.f32 %v3963_v34, %v3896_v28  ;;  %5464 = vtanh.f32 %v4090_v16  ;;  %vm3557_vm3 = vweird.f32 %v3357_v22 }
 0x896   : > { %v4185_v56 = vmul.f32 0.5, %v4153_v5 }
 0x897   : > { %v4027_v7 = vmul.f32 0.044715, %v3995_v26 }
 0x898   : > { %v4217_v6 = vmul.f32 %v4185_v56, %v3891_v13  ;;  %v3801_v13 = vpack.c.bf16 %v3778_v14, %v3777_v25 }
 0x899   : > { %v4059_v51 = vadd.f32 %v4027_v7, %v3896_v28 }
 0x89a   : > { %v4245_v55 = vpack.c.bf16 %v4217_v6, %v4216_v4 }
 0x89b   : > { %v4091_v44 = vmul.f32 0.7978846, %v4059_v51  ;;  %v5465_v11 = vpop.eup %5464 }
 0x89c   : > { %v4348_v45 = vpop.f32.mrf.mxu2  ;;  %4929 = vmatmul.msk.bf16.gmra.mxu2 %vm4290_vm5, %v4245_v55  ;;  %v4154_v61 = vadd.f32 1.0, %v5465_v11 }
 0x89d   : > { %5466 = vtanh.f32 %v4091_v44  ;;  %v4428_v58 = vadd.f32 %v4348_v45, %v7000_v30 }
 0x89e   : > { %5468 = vrsqrt.f32 %v3357_v22  ;;  %v4186_v19 = vmul.f32 0.5, %v4154_v61 }
 0x89f   : > { %v4460_v62 = vpack.c.bf16 %v4428_v58, %v4428_v58 }
 0x8a0   : > { %4902 = vmatmul.msk.bf16.gmra.mxu1 %vm743_vm2, %v3801_v13  ;;  %v4218_v30 = vmul.f32 %v4186_v19, %v7652_v17 }
 0x8a1   : > { %4493 = vst.msk [vmem:[%s5764_s2] sm:$0xf] %vm4492_vm0, %v4460_v62 }
 0x8a3   : > { %v5467_v43 = vpop.eup %5466 }
 0x8a4   : > { %v4155_v16 = vadd.f32 1.0, %v5467_v43  ;;  %v4350_v34 = vpop.f32.mrf.mxu2  ;;  %v5469_v37 = vpop.eup %5468 }
 0x8a5   : > { %v4429_v0 = vadd.f32 %v4350_v34, %v7005_v10  ;;  %v3552_v1 = vmul.f32 %v5469_v37, %v3357_v22  ;;  %vm3558_vm1 = vweird.f32 %v5469_v37 }
 0x8a6   : > { %v4187_v5 = vmul.f32 0.5, %v4155_v16  ;;  %vm3559_vm4 = vmor %vm3557_vm3, %vm3558_vm1 }
 0x8a7   : > { %v4461_v26 = vpack.c.bf16 %v4429_v0, %v4429_v0  ;;  %v3553_v4 = vmul.f32 %v5469_v37, %v3552_v1 }
 0x8a8   : > { %v4219_v56 = vmul.f32 %v4187_v5, %v3896_v28 }
 0x8a9   : > { %4494 = vst.msk [vmem:[%s5764_s2 + $0x4] sm:$0xf] %vm4492_vm0, %v4461_v26  ;;  %v3554_v18 = vmul.f32 0.5, %v3553_v4 }
 0x8aa   : > { %v4246_v7 = vpack.c.bf16 %v4219_v56, %v4218_v30 }
 0x8ab   : > { %v3555_v10 = vsub.f32 1.5, %v3554_v18 }
 0x8ac   : > { %4930 = vmatmul.msk.bf16.gmra.mxu2 %vm4290_vm5, %v4246_v7 }
 0x8ad   : > { %v3556_v28 = vmul.f32 %v5469_v37, %v3555_v10 }
 0x8af   : > { %v3270_v6 = vpop.xlane.xlu1 %3269  ;;  %v3560_v62 = vsel %vm3559_vm4, %v5469_v37, %v3556_v28 }
 0x8b0   : > { %v3326_v36 = vmul.f32 %v3270_v6, %v7056_v50  ;;  %v3709_v5 = vmul.f32 %v3560_v62, %v7404_v29 }
 0x8b2   : > { %v3358_v51 = vadd.f32 1e-05, %v3326_v36  ;;  %v3744_v7 = vmul.f32 %v7590_v54, %v3709_v5 }
 0x8b4   : > { %5470 = vrsqrt.f32 %v3358_v51  ;;  %vm3567_vm7 = vweird.f32 %v3358_v51 }
 0x8b7   : > { %v3092_v55 = vpop.xlane.xlu1 %3091  ;;  %v3273_v14 = vpop.xlane.xlu0 %3272 }
 0x8b8   : > { %v3141_v44 = vmul.f32 %v7056_v50, %v3092_v55  ;;  %v3779_v55 = vadd.f32 %v7657_v63, %v3744_v7 }
 0x8ba   : > { %v5471_v17 = vpop.eup %5470  ;;  %v7696_v45 = vsub.f32 %v7039_v59, %v3141_v44 }
 0x8bb   : > { %v3562_v25 = vmul.f32 %v5471_v17, %v3358_v51  ;;  %vm3568_vm6 = vweird.f32 %v5471_v17 }
 0x8bc   : > { %v3205_v11 = vmul.f32 %v7696_v45, %v7696_v45  ;;  %vm3569_vm8 = vmor %vm3567_vm7, %vm3568_vm6 }
 0x8bd   : > { %v3563_v58 = vmul.f32 %v5471_v17, %v3562_v25 }
 0x8be   : > { %v3289_v13 = vsel %vm743_vm2, %v3205_v11, 0.0 }
 0x8bf   : > { %v3564_v61 = vmul.f32 0.5, %v3563_v58  ;;  %3290 = vadd.xlane.f32.xlu1 %v3289_v13  ;;  %v3101_v43 = vpop.xlane.xlu0 %3100 }
 0x8c0   : > { %v3144_v19 = vmul.f32 %v7056_v50, %v3101_v43  ;;  %v3899_v16 = vpop.f32.mrf.mxu1 }
 0x8c1   : > { %v3565_v34 = vsub.f32 1.5, %v3564_v61  ;;  %v3964_v0 = vmul.f32 %v3899_v16, %v3899_v16 }
 0x8c2   : > { %v7704_v22 = vsub.f32 %v7499_v46, %v3144_v19 }
 0x8c3   : > { %v3566_v26 = vmul.f32 %v5471_v17, %v3565_v34  ;;  %v3996_v30 = vmul.f32 %v3964_v0, %v3899_v16 }
 0x8c4   : > { %v3208_v37 = vmul.f32 %v7704_v22, %v7704_v22 }
 0x8c5   : > { %v4028_v56 = vmul.f32 0.044715, %v3996_v30  ;;  %v3570_v1 = vsel %vm3569_vm8, %v5471_v17, %v3566_v26  ;;  %v3327_v30 = vmul.f32 %v3273_v14, %v7056_v50 }
 0x8c6   : > { %v3298_v4 = vsel %vm743_vm2, %v3208_v37, 0.0  ;;  %v3710_v6 = vmul.f32 %v3570_v1, %v7466_v48 }
 0x8c7   : > { %v4060_v36 = vadd.f32 %v4028_v56, %v3899_v16  ;;  %3299 = vadd.xlane.f32.xlu1 %v3298_v4  ;;  %v3104_v29 = vpop.xlane.xlu0 %3103  ;;  %v3359_v4 = vadd.f32 1e-05, %v3327_v30 }
 0x8c8   : > { %v3145_v18 = vmul.f32 %v7056_v50, %v3104_v29  ;;  %v3901_v10 = vpop.f32.mrf.mxu1  ;;  %v3745_v51 = vmul.f32 %v7590_v54, %v3710_v6 }
 0x8c9   : > { %v4092_v44 = vmul.f32 0.7978846, %v4060_v36  ;;  %v3965_v17 = vmul.f32 %v3901_v10, %v3901_v10  ;;  %vm3577_vm10 = vweird.f32 %v3359_v4 }
 0x8ca   : > { %v7715_v28 = vsub.f32 %v7517_v57, %v3145_v18  ;;  %v3780_v25 = vadd.f32 %v7657_v63, %v3745_v51 }
 0x8cb   : > { %v3997_v11 = vmul.f32 %v3965_v17, %v3901_v10  ;;  %5472 = vtanh.f32 %v4092_v44  ;;  %v3282_v17 = vpop.xlane.xlu2 %3281 }
 0x8cc   : > { %v3802_v58 = vpack.c.bf16 %v3780_v25, %v3779_v55  ;;  %v3209_v48 = vmul.f32 %v7715_v28, %v7715_v28 }
 0x8cd   : > { %v4029_v13 = vmul.f32 0.044715, %v3997_v11  ;;  %v3330_v11 = vmul.f32 %v3282_v17, %v7056_v50 }
 0x8ce   : > { %4903 = vmatmul.msk.bf16.gmra.mxu1 %vm743_vm2, %v3802_v58  ;;  %v3301_v62 = vsel %vm743_vm2, %v3209_v48, 0.0 }
 0x8cf   : > { %3302 = vadd.xlane.f32.xlu2 %v3301_v62  ;;  %v4061_v61 = vadd.f32 %v4029_v13, %v3901_v10  ;;  %v7735_v48 = vadd.f32 1e-05, %v3330_v11 }
 0x8d1   : > { %v4093_v43 = vmul.f32 0.7978846, %v4061_v61  ;;  %v5473_v34 = vpop.eup %5472  ;;  %vm3607_vm6 = vweird.f32 %v7735_v48 }
 0x8d2   : > { %v4353_v19 = vpop.f32.mrf.mxu2  ;;  %v4156_v26 = vadd.f32 1.0, %v5473_v34 }
 0x8d3   : > { %5474 = vtanh.f32 %v4093_v43  ;;  %v4430_v0 = vadd.f32 %v4353_v19, %v7010_v27 }
 0x8d4   : > { %v4188_v56 = vmul.f32 0.5, %v4156_v26  ;;  %5476 = vrsqrt.f32 %v3359_v4 }
 0x8d5   : > { %v4462_v5 = vpack.c.bf16 %v4430_v0, %v4430_v0  ;;  %5478 = vrsqrt.f32 %v7735_v48  ;;  %v3285_v0 = vpop.xlane.xlu2 %3284 }
 0x8d6   : > { %v4220_v18 = vmul.f32 %v4188_v56, %v3899_v16  ;;  %v3331_v56 = vmul.f32 %v3285_v0, %v7056_v50 }
 0x8d7   : > { %4495 = vst.msk [vmem:[%s5764_s2 + $0x8] sm:$0xf] %vm4492_vm0, %v4462_v5 }
 0x8d9   : > { %v5475_v37 = vpop.eup %5474 }
 0x8da   : > { %v4157_v1 = vadd.f32 1.0, %v5475_v37  ;;  %v4355_v7 = vpop.f32.mrf.mxu2  ;;  %v5477_v44 = vpop.eup %5476 }
 0x8db   : > { %v4431_v6 = vadd.f32 %v4355_v7, %v7024_v32  ;;  %v3572_v32 = vmul.f32 %v5477_v44, %v3359_v4  ;;  %v7742_v26 = vpop.eup %5478  ;;  %vm3578_vm9 = vweird.f32 %v5477_v44 }
 0x8dc   : > { %v4189_v36 = vmul.f32 0.5, %v4157_v1  ;;  %vm7750_vm11 = vmor %vm3577_vm10, %vm3578_vm9  ;;  %vm3608_vm1 = vweird.f32 %v7742_v26 }
 0x8dd   : > { %v4463_v29 = vpack.c.bf16 %v4431_v6, %v4431_v6  ;;  %v3573_v58 = vmul.f32 %v5477_v44, %v3572_v32  ;;  %vm3609_vm7 = vmor %vm3607_vm6, %vm3608_vm1 }
 0x8de   : > { %v4221_v51 = vmul.f32 %v4189_v36, %v3901_v10  ;;  %v3602_v36 = vmul.f32 %v7742_v26, %v7735_v48 }
 0x8df   : > { %4496 = vst.msk [vmem:[%s5764_s2 + $0xc] sm:$0xf] %vm4492_vm0, %v4463_v29  ;;  %v3574_v43 = vmul.f32 0.5, %v3573_v58 }
 0x8e0   : > { %v4247_v27 = vpack.c.bf16 %v4221_v51, %v4220_v18  ;;  %v3603_v32 = vmul.f32 %v7742_v26, %v3602_v36 }
 0x8e1   : > { %v3575_v34 = vsub.f32 1.5, %v3574_v43 }
 0x8e2   : > { %v4358_v55 = vpop.f32.mrf.mxu2  ;;  %4931 = vmatmul.msk.bf16.gmra.mxu2 %vm4290_vm5, %v4247_v27  ;;  %v7754_v27 = vadd.f32 1e-05, %v3331_v56  ;;  %v3604_v43 = vmul.f32 0.5, %v3603_v32 }
 0x8e3   : > { %v4432_v14 = vadd.f32 %v4358_v55, %v7017_v38  ;;  %v3576_v7 = vmul.f32 %v5477_v44, %v3575_v34 }
 0x8e5   : > { %v4464_v25 = vpack.c.bf16 %v4432_v14, %v4432_v14 }
 0x8e7   : > { %4497 = vst.msk [vmem:[%s5764_s2 + $0x10] sm:$0xf] %vm4492_vm0, %v4464_v25  ;;  %v3580_v25 = vsel %vm7750_vm11, %v5477_v44, %v3576_v7  ;;  %vm3617_vm11 = vweird.f32 %v7754_v27 }
 0x8e8   : > { %v3711_v44 = vmul.f32 %v3580_v25, %v7484_v49 }
 0x8ea   : > { %v4360_v16 = vpop.f32.mrf.mxu2  ;;  %v3746_v7 = vmul.f32 %v7590_v54, %v3711_v44 }
 0x8eb   : > { %v4433_v10 = vadd.f32 %v4360_v16, %v7032_v24 }
 0x8ec   : > { %v3276_v13 = vpop.xlane.xlu1 %3275  ;;  %v3781_v25 = vadd.f32 %v7657_v63, %v3746_v7 }
 0x8ed   : > { %v4465_v62 = vpack.c.bf16 %v4433_v10, %v4433_v10  ;;  %v3328_v61 = vmul.f32 %v3276_v13, %v7056_v50 }
 0x8ef   : > { %4498 = vst.msk [vmem:[%s5764_s2 + $0x14] sm:$0xf] %vm4492_vm0, %v4465_v62  ;;  %v3360_v38 = vadd.f32 1e-05, %v3328_v61 }
 0x8f1   : > { %5480 = vrsqrt.f32 %v3360_v38  ;;  %vm3587_vm13 = vweird.f32 %v3360_v38 }
 0x8f4   : > { %v3288_v19 = vpop.xlane.xlu0 %3287  ;;  %v3279_v5 = vpop.xlane.xlu1 %3278 }
 0x8f5   : > { %v3329_v24 = vmul.f32 %v3279_v5, %v7056_v50  ;;  %v3332_v30 = vmul.f32 %v3288_v19, %v7056_v50 }
 0x8f7   : > { %v5481_v37 = vpop.eup %5480  ;;  %v3361_v1 = vadd.f32 1e-05, %v3329_v24  ;;  %v7748_v18 = vadd.f32 1e-05, %v3332_v30 }
 0x8f8   : > { %v3582_v6 = vmul.f32 %v5481_v37, %v3360_v38  ;;  %vm3588_vm12 = vweird.f32 %v5481_v37 }
 0x8f9   : > { %5482 = vrsqrt.f32 %v3361_v1  ;;  %vm3589_vm14 = vmor %vm3587_vm13, %vm3588_vm12  ;;  %vm3597_vm3 = vweird.f32 %v3361_v1  ;;  %vm3627_vm10 = vweird.f32 %v7748_v18 }
 0x8fa   : > { %v3583_v29 = vmul.f32 %v5481_v37, %v3582_v6  ;;  %5484 = vrsqrt.f32 %v7748_v18 }
 0x8fb   : > { %5486 = vrsqrt.f32 %v7754_v27 }
 0x8fc   : > { %v3584_v55 = vmul.f32 0.5, %v3583_v29  ;;  %v3107_v14 = vpop.xlane.xlu1 %3106  ;;  %v3605_v29 = vsub.f32 1.5, %v3604_v43 }
 0x8fd   : > { %v7756_v17 = vpop.f32.mrf.mxu1  ;;  %v3146_v4 = vmul.f32 %v7056_v50, %v3107_v14 }
 0x8fe   : > { %v3966_v11 = vmul.f32 %v7756_v17, %v7756_v17  ;;  %v3585_v16 = vsub.f32 1.5, %v3584_v55 }
 0x8ff   : > { %v5483_v10 = vpop.eup %5482  ;;  %v7767_v58 = vsub.f32 %v7645_v15, %v3146_v4 }
 0x900   : > { %v3998_v13 = vmul.f32 %v3966_v11, %v7756_v17  ;;  %v3586_v62 = vmul.f32 %v5481_v37, %v3585_v16  ;;  %v3592_v61 = vmul.f32 %v5483_v10, %v3361_v1  ;;  %v7777_v49 = vpop.eup %5484  ;;  %vm3598_vm15 = vweird.f32 %v5483_v10 }
 0x901   : > { %v3210_v34 = vmul.f32 %v7767_v58, %v7767_v58  ;;  %v7781_v36 = vpop.eup %5486  ;;  %vm3599_vm4 = vmor %vm3597_vm3, %vm3598_vm15  ;;  %vm3628_vm8 = vweird.f32 %v7777_v49 }
 0x902   : > { %v4030_v19 = vmul.f32 0.044715, %v3998_v13  ;;  %v3593_v0 = vmul.f32 %v5483_v10, %v3592_v61  ;;  %v3590_v5 = vsel %vm3589_vm14, %v5481_v37, %v3586_v62  ;;  %v3612_v32 = vmul.f32 %v7781_v36, %v7754_v27  ;;  %vm3629_vm12 = vmor %vm3627_vm10, %vm3628_vm8 }
 0x903   : > { %v3304_v30 = vsel %vm743_vm2, %v3210_v34, 0.0  ;;  %v3712_v56 = vmul.f32 %v3590_v5, %v7567_v31  ;;  %v3622_v31 = vmul.f32 %v7777_v49, %v7748_v18  ;;  %v3606_v13 = vmul.f32 %v7742_v26, %v3605_v29 }
 0x904   : > { %v4062_v24 = vadd.f32 %v4030_v19, %v7756_v17  ;;  %v3594_v38 = vmul.f32 0.5, %v3593_v0  ;;  %3305 = vadd.xlane.f32.xlu0 %v3304_v30  ;;  %v3613_v19 = vmul.f32 %v7781_v36, %v3612_v32  ;;  %vm3618_vm9 = vweird.f32 %v7781_v36 }
 0x905   : > { %v7779_v6 = vpop.f32.mrf.mxu1  ;;  %v3747_v51 = vmul.f32 %v7590_v54, %v3712_v56  ;;  %v3623_v61 = vmul.f32 %v7777_v49, %v3622_v31  ;;  %v3610_v5 = vsel %vm3609_vm7, %v7742_v26, %v3606_v13  ;;  %vm3619_vm13 = vmor %vm3617_vm11, %vm3618_vm9 }
 0x906   : > { %v3967_v37 = vmul.f32 %v7779_v6, %v7779_v6  ;;  %v3595_v55 = vsub.f32 1.5, %v3594_v38  ;;  %v4094_v14 = vmul.f32 0.7978846, %v4062_v24  ;;  %v3614_v7 = vmul.f32 0.5, %v3613_v19 }
 0x907   : > { %v3782_v16 = vadd.f32 %v7657_v63, %v3747_v51  ;;  %v3624_v30 = vmul.f32 0.5, %v3623_v61  ;;  %v3714_v38 = vmul.f32 %v3610_v5, %v7513_v9 }
 0x908   : > { %v3596_v4 = vmul.f32 %v5483_v10, %v3595_v55  ;;  %v3999_v11 = vmul.f32 %v3967_v37, %v7779_v6  ;;  %5488 = vtanh.f32 %v4094_v14  ;;  %v3615_v31 = vsub.f32 1.5, %v3614_v7 }
 0x909   : > { %v3803_v62 = vpack.c.bf16 %v3782_v16, %v3781_v25  ;;  %v3625_v51 = vsub.f32 1.5, %v3624_v30 }
 0x90a   : > { %v4031_v44 = vmul.f32 0.044715, %v3999_v11  ;;  %v3600_v43 = vsel %vm3599_vm4, %v5483_v10, %v3596_v4 }
 0x90b   : > { %4904 = vmatmul.msk.bf16.gmra.mxu1 %vm743_vm2, %v3803_v62  ;;  %v3713_v48 = vmul.f32 %v3600_v43, %v7600_v20  ;;  %v3749_v20 = vmul.f32 %v7590_v54, %v3714_v38  ;;  %v3626_v11 = vmul.f32 %v7777_v49, %v3625_v51  ;;  %v3616_v62 = vmul.f32 %v7781_v36, %v3615_v31  ;;  %v3294_v43 = vpop.xlane.xlu2 %3293 }
 0x90c   : > { %v4063_v34 = vadd.f32 %v4031_v44, %v7779_v6  ;;  %v3334_v18 = vmul.f32 %v3294_v43, %v7056_v50 }
 0x90d   : > { %v7800_v0 = vpop.f32.mrf.mxu1  ;;  %v3748_v37 = vmul.f32 %v7590_v54, %v3713_v48  ;;  %v3784_v61 = vadd.f32 %v7657_v63, %v3749_v20  ;;  %v3630_v5 = vsel %vm3629_vm12, %v7777_v49, %v3626_v11  ;;  %v3620_v27 = vsel %vm3619_vm13, %v7781_v36, %v3616_v62 }
 0x90e   : > { %v3968_v1 = vmul.f32 %v7800_v0, %v7800_v0  ;;  %v4095_v24 = vmul.f32 0.7978846, %v4063_v34  ;;  %v5489_v56 = vpop.eup %5488  ;;  %v3715_v51 = vmul.f32 %v3620_v27, %v7525_v41  ;;  %v7842_v36 = vadd.f32 1e-05, %v3334_v18 }
 0x90f   : > { %v4158_v55 = vadd.f32 1.0, %v5489_v56  ;;  %v3783_v9 = vadd.f32 %v7657_v63, %v3748_v37 }
 0x910   : > { %v4000_v10 = vmul.f32 %v3968_v1, %v7800_v0  ;;  %5490 = vtanh.f32 %v4095_v24  ;;  %vm3647_vm15 = vweird.f32 %v7842_v36 }
 0x911   : > { %v4190_v16 = vmul.f32 0.5, %v4158_v55  ;;  %v3804_v1 = vpack.c.bf16 %v3784_v61, %v3783_v9 }
 0x912   : > { %v4032_v29 = vmul.f32 0.044715, %v4000_v10 }
 0x913   : > { %v4222_v24 = vmul.f32 %v4190_v16, %v7756_v17  ;;  %v3716_v17 = vmul.f32 %v3630_v5, %v7603_v21 }
 0x914   : > { %v4064_v14 = vadd.f32 %v4032_v29, %v7800_v0 }
 0x915   : > { %v7810_v26 = vpop.f32.mrf.mxu1  ;;  %v3751_v20 = vmul.f32 %v7590_v54, %v3716_v17 }
 0x916   : > { %v4096_v25 = vmul.f32 0.7978846, %v4064_v14  ;;  %v3969_v32 = vmul.f32 %v7810_v26, %v7810_v26  ;;  %v5491_v4 = vpop.eup %5490 }
 0x917   : > { %v4159_v13 = vadd.f32 1.0, %v5491_v4 }
 0x918   : > { %v4001_v44 = vmul.f32 %v3969_v32, %v7810_v26  ;;  %5492 = vtanh.f32 %v4096_v25 }
 0x919   : > { %v4191_v19 = vmul.f32 0.5, %v4159_v13  ;;  %v3786_v13 = vadd.f32 %v7657_v63, %v3751_v20 }
 0x91a   : > { %v4033_v34 = vmul.f32 0.044715, %v4001_v44 }
 0x91b   : > { %v4223_v48 = vmul.f32 %v4191_v19, %v7779_v6  ;;  %4905 = vmatmul.msk.bf16.gmra.mxu1 %vm743_vm2, %v3804_v1  ;;  %v3297_v19 = vpop.xlane.xlu0 %3296 }
 0x91c   : > { %v4065_v30 = vadd.f32 %v4033_v34, %v7810_v26  ;;  %v3335_v27 = vmul.f32 %v3297_v19, %v7056_v50 }
 0x91d   : > { %v7832_v10 = vpop.f32.mrf.mxu1  ;;  %v4248_v49 = vpack.c.bf16 %v4223_v48, %v4222_v24 }
 0x91e   : > { %v4097_v56 = vmul.f32 0.7978846, %v4065_v30  ;;  %v3970_v7 = vmul.f32 %v7832_v10, %v7832_v10  ;;  %v5493_v38 = vpop.eup %5492 }
 0x91f   : > { %v4363_v6 = vpop.f32.mrf.mxu2  ;;  %4932 = vmatmul.msk.bf16.gmra.mxu2 %vm4290_vm5, %v4248_v49  ;;  %v4160_v31 = vadd.f32 1.0, %v5493_v38 }
 0x920   : > { %5494 = vtanh.f32 %v4097_v56  ;;  %v4002_v29 = vmul.f32 %v3970_v7, %v7832_v10  ;;  %v4434_v37 = vadd.f32 %v4363_v6, %v7043_v52  ;;  %v3750_v52 = vmul.f32 %v7590_v54, %v3715_v51 }
 0x921   : > { %5496 = vrsqrt.f32 %v7842_v36  ;;  %v4192_v41 = vmul.f32 0.5, %v4160_v31 }
 0x922   : > { %v4034_v55 = vmul.f32 0.044715, %v4002_v29  ;;  %v4466_v14 = vpack.c.bf16 %v4434_v37, %v4434_v37  ;;  %v3785_v43 = vadd.f32 %v7657_v63, %v3750_v52 }
 0x923   : > { %v4224_v24 = vmul.f32 %v4192_v41, %v7800_v0 }
 0x924   : > { %v4066_v21 = vadd.f32 %v4034_v55, %v7832_v10  ;;  %4499 = vst.msk [vmem:[%s5764_s2 + $0x18] sm:$0xf] %vm4492_vm0, %v4466_v14  ;;  %v3805_v30 = vpack.c.bf16 %v3786_v13, %v3785_v43 }
 0x925   : > { %v3916_v25 = vpop.f32.mrf.mxu1 }
 0x926   : > { %v5495_v32 = vpop.eup %5494  ;;  %v4098_v4 = vmul.f32 0.7978846, %v4066_v21  ;;  %v3971_v9 = vmul.f32 %v3916_v25, %v3916_v25 }
 0x927   : > { %v4161_v11 = vadd.f32 1.0, %v5495_v32  ;;  %v4365_v16 = vpop.f32.mrf.mxu2  ;;  %v5497_v5 = vpop.eup %5496 }
 0x928   : > { %v4003_v44 = vmul.f32 %v3971_v9, %v3916_v25  ;;  %v4435_v62 = vadd.f32 %v4365_v16, %v7073_v47  ;;  %5498 = vtanh.f32 %v4098_v4  ;;  %v3642_v56 = vmul.f32 %v5497_v5, %v7842_v36 }
 0x929   : > { %v4193_v61 = vmul.f32 0.5, %v4161_v11  ;;  %vm3648_vm14 = vweird.f32 %v5497_v5 }
 0x92a   : > { %v4035_v34 = vmul.f32 0.044715, %v4003_v44  ;;  %v4467_v1 = vpack.c.bf16 %v4435_v62, %v4435_v62  ;;  %v3643_v6 = vmul.f32 %v5497_v5, %v3642_v56  ;;  %vm3649_vm1 = vmor %vm3647_vm15, %vm3648_vm14 }
 0x92b   : > { %v4225_v48 = vmul.f32 %v4193_v61, %v7810_v26  ;;  %4906 = vmatmul.msk.bf16.gmra.mxu1 %vm743_vm2, %v3805_v30  ;;  %v7862_v26 = vadd.f32 1e-05, %v3335_v27 }
 0x92c   : > { %v4067_v18 = vadd.f32 %v4035_v34, %v3916_v25  ;;  %4500 = vst.msk [vmem:[%s5764_s2 + $0x1c] sm:$0xf] %vm4492_vm0, %v4467_v1  ;;  %v3644_v31 = vmul.f32 0.5, %v3643_v6 }
 0x92d   : > { %v4249_v47 = vpack.c.bf16 %v4225_v48, %v4224_v24  ;;  %vm3657_vm11 = vweird.f32 %v7862_v26 }
 0x92e   : > { %v4099_v7 = vmul.f32 0.7978846, %v4067_v18  ;;  %v5499_v17 = vpop.eup %5498  ;;  %v3645_v4 = vsub.f32 1.5, %v3644_v31 }
 0x92f   : > { %v4368_v49 = vpop.f32.mrf.mxu2  ;;  %4933 = vmatmul.msk.bf16.gmra.mxu2 %vm4290_vm5, %v4249_v47  ;;  %v4162_v37 = vadd.f32 1.0, %v5499_v17 }
 0x930   : > { %5500 = vtanh.f32 %v4099_v7  ;;  %v4436_v0 = vadd.f32 %v4368_v49, %v7052_v42  ;;  %v3646_v19 = vmul.f32 %v5497_v5, %v3645_v4 }
 0x931   : > { %5502 = vrsqrt.f32 %v7862_v26  ;;  %v4194_v20 = vmul.f32 0.5, %v4162_v37 }
 0x932   : > { %v4468_v38 = vpack.c.bf16 %v4436_v0, %v4436_v0  ;;  %v3291_v29 = vpop.xlane.xlu1 %3290 }
 0x933   : > { %v3333_v51 = vmul.f32 %v3291_v29, %v7056_v50  ;;  %v4226_v16 = vmul.f32 %v4194_v20, %v7832_v10  ;;  %v3650_v10 = vsel %vm3649_vm1, %v5497_v5, %v3646_v19 }
 0x934   : > { %4501 = vst.msk [vmem:[%s5764_s2 + $0x20] sm:$0xf] %vm4492_vm0, %v4468_v38  ;;  %v3718_v18 = vmul.f32 %v3650_v10, %v7535_v12 }
 0x935   : > { %v3365_v55 = vadd.f32 1e-05, %v3333_v51 }
 0x936   : > { %v5501_v14 = vpop.eup %5500  ;;  %v3753_v17 = vmul.f32 %v7590_v54, %v3718_v18 }
 0x937   : > { %v4163_v42 = vadd.f32 1.0, %v5501_v14  ;;  %5504 = vrsqrt.f32 %v3365_v55  ;;  %v4370_v21 = vpop.f32.mrf.mxu2  ;;  %v5503_v11 = vpop.eup %5502  ;;  %vm3637_vm4 = vweird.f32 %v3365_v55 }
 0x938   : > { %v4437_v52 = vadd.f32 %v4370_v21, %v7048_v3  ;;  %v3652_v34 = vmul.f32 %v5503_v11, %v7862_v26  ;;  %vm3658_vm8 = vweird.f32 %v5503_v11  ;;  %v3788_v51 = vadd.f32 %v7657_v63, %v3753_v17 }
 0x939   : > { %v4195_v32 = vmul.f32 0.5, %v4163_v42  ;;  %vm3659_vm12 = vmor %vm3657_vm11, %vm3658_vm8 }
 0x93a   : > { %v4469_v9 = vpack.c.bf16 %v4437_v52, %v4437_v52  ;;  %v3300_v41 = vpop.xlane.xlu1 %3299 }
 0x93b   : > { %v4227_v13 = vmul.f32 %v4195_v32, %v3916_v25  ;;  %v3336_v44 = vmul.f32 %v3300_v41, %v7056_v50  ;;  %v3653_v25 = vmul.f32 %v5503_v11, %v3652_v34 }
 0x93c   : > { %4502 = vst.msk [vmem:[%s5764_s2 + $0x24] sm:$0xf] %vm4492_vm0, %v4469_v9 }
 0x93d   : > { %v5505_v62 = vpop.eup %5504  ;;  %v3368_v61 = vadd.f32 1e-05, %v3336_v44  ;;  %v4250_v43 = vpack.c.bf16 %v4227_v13, %v4226_v16  ;;  %v3654_v27 = vmul.f32 0.5, %v3653_v25 }
 0x93e   : > { %v3632_v3 = vmul.f32 %v5505_v62, %v3365_v55  ;;  %vm3638_vm3 = vweird.f32 %v5505_v62 }
 0x93f   : > { %5506 = vrsqrt.f32 %v3368_v61  ;;  %4934 = vmatmul.msk.bf16.gmra.mxu2 %vm4290_vm5, %v4250_v43  ;;  %vm3639_vm6 = vmor %vm3637_vm4, %vm3638_vm3  ;;  %v3655_v0 = vsub.f32 1.5, %v3654_v27  ;;  %vm3667_vm9 = vweird.f32 %v3368_v61 }
 0x940   : > { %v3633_v1 = vmul.f32 %v5505_v62, %v3632_v3 }
 0x941   : > { %v3656_v55 = vmul.f32 %v5503_v11, %v3655_v0 }
 0x942   : > { %v3634_v24 = vmul.f32 0.5, %v3633_v1  ;;  %v3303_v3 = vpop.xlane.xlu2 %3302 }
 0x943   : > { %v3660_v52 = vsel %vm3659_vm12, %v5503_v11, %v3656_v55 }
 0x944   : > { %v3635_v48 = vsub.f32 1.5, %v3634_v24  ;;  %v3719_v16 = vmul.f32 %v3660_v52, %v7630_v8  ;;  %v3337_v8 = vmul.f32 %v3303_v3, %v7056_v50 }
 0x945   : > { %v5507_v30 = vpop.eup %5506 }
 0x946   : > { %v3636_v47 = vmul.f32 %v5505_v62, %v3635_v48  ;;  %v3662_v56 = vmul.f32 %v5507_v30, %v3368_v61  ;;  %vm3668_vm7 = vweird.f32 %v5507_v30  ;;  %v3754_v26 = vmul.f32 %v7590_v54, %v3719_v16 }
 0x947   : > { %vm3669_vm10 = vmor %vm3667_vm9, %vm3668_vm7  ;;  %v3369_v48 = vadd.f32 1e-05, %v3337_v8 }
 0x948   : > { %v3640_v7 = vsel %vm3639_vm6, %v5505_v62, %v3636_v47  ;;  %v3663_v49 = vmul.f32 %v5507_v30, %v3662_v56  ;;  %v3789_v11 = vadd.f32 %v7657_v63, %v3754_v26 }
 0x949   : > { %v3717_v36 = vmul.f32 %v3640_v7, %v7696_v45  ;;  %vm3677_vm14 = vweird.f32 %v3369_v48 }
 0x94a   : > { %v3664_v5 = vmul.f32 0.5, %v3663_v49 }
 0x94b   : > { %v3919_v6 = vpop.f32.mrf.mxu1  ;;  %v3752_v38 = vmul.f32 %v7590_v54, %v3717_v36  ;;  %v8233_v36 = vld [vmem:[#allocation67_spill] sm:$0xff] }
 0x94c   : > { %v3665_v29 = vsub.f32 1.5, %v3664_v5  ;;  %v3972_v37 = vmul.f32 %v3919_v6, %v3919_v6 }
 0x94d   : > { %v3787_v12 = vadd.f32 %v7657_v63, %v3752_v38 }
 0x94e   : > { %v3666_v14 = vmul.f32 %v5507_v30, %v3665_v29  ;;  %v4004_v31 = vmul.f32 %v3972_v37, %v3919_v6 }
 0x94f   : > { %v3806_v45 = vpack.c.bf16 %v3788_v51, %v3787_v12 }
 0x950   : > { %v4036_v20 = vmul.f32 0.044715, %v4004_v31  ;;  %v3670_v42 = vsel %vm3669_vm10, %v5507_v30, %v3666_v14 }
 0x951   : > { %4907 = vmatmul.msk.bf16.vlgmr.msrb.gmra.mxu3 %vm743_vm2, %v3806_v45  ;;  %v3720_v4 = vmul.f32 %v3670_v42, %v7704_v22 }
 0x952   : > { %v4068_v21 = vadd.f32 %v4036_v20, %v3919_v6 }
 0x953   : > { %v3921_v32 = vpop.f32.mrf.mxu1  ;;  %v3755_v44 = vmul.f32 %v7590_v54, %v3720_v4 }
 0x954   : > { %v4100_v9 = vmul.f32 0.7978846, %v4068_v21  ;;  %v3973_v41 = vmul.f32 %v3921_v32, %v3921_v32 }
 0x955   : > { %v3790_v43 = vadd.f32 %v7657_v63, %v3755_v44  ;;  %v5542_v44 = vld [vmem:[%s8008_s7] ss:$0 sm:$0xff] }
 0x956   : > { %v4005_v13 = vmul.f32 %v3973_v41, %v3921_v32  ;;  %5508 = vtanh.f32 %v4100_v9 }
 0x957   : > { %v3807_v22 = vpack.c.bf16 %v3790_v43, %v3789_v11 }
 0x958   : > { %v4037_v62 = vmul.f32 0.044715, %v4005_v13 }
 0x95a   : > { %v4069_v61 = vadd.f32 %v4037_v62, %v3921_v32 }
 0x95c   : > { %v4101_v19 = vmul.f32 0.7978846, %v4069_v61  ;;  %v5509_v34 = vpop.eup %5508 }
 0x95d   : > { %v4164_v1 = vadd.f32 1.0, %v5509_v34 }
 0x95e   : > { %5510 = vtanh.f32 %v4101_v19 }
 0x95f   : > { %v4196_v25 = vmul.f32 0.5, %v4164_v1  ;;  %5512 = vrsqrt.f32 %v3369_v48 }
 0x961   : > { %4908 = vmatmul.msk.bf16.gmra.mxu3 %vm743_vm2, %v3807_v22  ;;  %v4228_v27 = vmul.f32 %v4196_v25, %v3919_v6 }
 0x964   : > { %v5511_v10 = vpop.eup %5510 }
 0x965   : > { %v4165_v24 = vadd.f32 1.0, %v5511_v10  ;;  %v4373_v54 = vpop.f32.mrf.mxu2  ;;  %v5513_v0 = vpop.eup %5512 }
 0x966   : > { %v4438_v18 = vadd.f32 %v4373_v54, %v7085_v23  ;;  %v3672_v38 = vmul.f32 %v5513_v0, %v3369_v48  ;;  %vm3678_vm13 = vweird.f32 %v5513_v0 }
 0x967   : > { %v4197_v30 = vmul.f32 0.5, %v4165_v24  ;;  %vm3679_vm15 = vmor %vm3677_vm14, %vm3678_vm13 }
 0x968   : > { %v4470_v56 = vpack.c.bf16 %v4438_v18, %v4438_v18  ;;  %v3673_v29 = vmul.f32 %v5513_v0, %v3672_v38 }
 0x969   : > { %v4229_v47 = vmul.f32 %v4197_v30, %v3921_v32 }
 0x96a   : > { %4503 = vst.msk [vmem:[%s5764_s2 + $0x28] sm:$0xf] %vm4492_vm0, %v4470_v56  ;;  %v3674_v12 = vmul.f32 0.5, %v3673_v29 }
 0x96b   : > { %v4251_v7 = vpack.c.bf16 %v4229_v47, %v4228_v27 }
 0x96c   : > { %v3675_v51 = vsub.f32 1.5, %v3674_v12 }
 0x96d   : > { %4935 = vmatmul.msk.bf16.gmra.mxu2 %vm4290_vm5, %v4251_v7  ;;  %v4375_v49 = vpop.f32.mrf.mxu2 }
 0x96e   : > { %v4439_v17 = vadd.f32 %v4375_v49, %v8233_v36  ;;  %v3676_v14 = vmul.f32 %v5513_v0, %v3675_v51 }
 0x970   : > { %v4471_v5 = vpack.c.bf16 %v4439_v17, %v4439_v17  ;;  %v3680_v42 = vsel %vm3679_vm15, %v5513_v0, %v3676_v14  ;;  %v8234_v17 = vld [vmem:[#allocation68_spill] sm:$0xff] }
 0x971   : > { %v3721_v4 = vmul.f32 %v3680_v42, %v7715_v28 }
 0x972   : > { %4504 = vst.msk [vmem:[%s5764_s2 + $0x2c] sm:$0xf] %vm4492_vm0, %v4471_v5 }
 0x973   : > { %v3756_v62 = vmul.f32 %v5542_v44, %v3721_v4 }
 0x975   : > { %v3791_v28 = vadd.f32 %v7657_v63, %v3756_v62 }
 0x977   : > { %v3306_v37 = vpop.xlane.xlu0 %3305 }
 0x978   : > { %v3338_v23 = vmul.f32 %v3306_v37, %v7056_v50 }
 0x97a   : > { %v3370_v6 = vadd.f32 1e-05, %v3338_v23 }
 0x97c   : > { %5514 = vrsqrt.f32 %v3370_v6  ;;  %vm3687_vm3 = vweird.f32 %v3370_v6 }
 0x982   : > { %v5515_v55 = vpop.eup %5514 }
 0x983   : > { %v3682_v31 = vmul.f32 %v5515_v55, %v3370_v6  ;;  %vm3688_vm1 = vweird.f32 %v5515_v55 }
 0x984   : > { %vm3689_vm4 = vmor %vm3687_vm3, %vm3688_vm1 }
 0x985   : > { %v3683_v45 = vmul.f32 %v5515_v55, %v3682_v31 }
 0x987   : > { %v3684_v20 = vmul.f32 0.5, %v3683_v45 }
 0x988   : > { %v3924_v52 = vpop.f32.mrf.mxu1 }
 0x989   : > { %v3685_v21 = vsub.f32 1.5, %v3684_v20  ;;  %v3974_v32 = vmul.f32 %v3924_v52, %v3924_v52  ;;  %v8235_v20 = vld [vmem:[#allocation71_spill] sm:$0xff] }
 0x98b   : > { %v3686_v50 = vmul.f32 %v5515_v55, %v3685_v21  ;;  %v4006_v9 = vmul.f32 %v3974_v32, %v3924_v52 }
 0x98d   : > { %v3690_v41 = vsel %vm3689_vm4, %v5515_v55, %v3686_v50  ;;  %v4038_v16 = vmul.f32 0.044715, %v4006_v9 }
 0x98e   : > { %v3722_v13 = vmul.f32 %v3690_v41, %v7767_v58 }
 0x98f   : > { %v4070_v26 = vadd.f32 %v4038_v16, %v3924_v52 }
 0x990   : > { %v3757_v61 = vmul.f32 %v5542_v44, %v3722_v13  ;;  %v3926_v43 = vpop.f32.mrf.mxu1 }
 0x991   : > { %v4102_v19 = vmul.f32 0.7978846, %v4070_v26  ;;  %v3975_v11 = vmul.f32 %v3926_v43, %v3926_v43 }
 0x992   : > { %v3792_v34 = vadd.f32 %v7657_v63, %v3757_v61 }
 0x993   : > { %v4007_v22 = vmul.f32 %v3975_v11, %v3926_v43  ;;  %5516 = vtanh.f32 %v4102_v19 }
 0x994   : > { %v3808_v3 = vpack.c.bf16 %v3792_v34, %v3791_v28 }
 0x995   : > { %v4039_v1 = vmul.f32 0.044715, %v4007_v22 }
 0x996   : > { %4909 = vmatmul.msk.bf16.gmra.mxu3 %vm743_vm2, %v3808_v3 }
 0x997   : > { %v4071_v58 = vadd.f32 %v4039_v1, %v3926_v43 }
 0x998   : > { %v3929_v8 = vpop.f32.mrf.mxu1 }
 0x999   : > { %v4103_v10 = vmul.f32 0.7978846, %v4071_v58  ;;  %v3976_v25 = vmul.f32 %v3929_v8, %v3929_v8  ;;  %v5517_v24 = vpop.eup %5516 }
 0x99a   : > { %v4166_v30 = vadd.f32 1.0, %v5517_v24 }
 0x99b   : > { %5518 = vtanh.f32 %v4103_v10  ;;  %v4008_v54 = vmul.f32 %v3976_v25, %v3929_v8 }
 0x99c   : > { %v4198_v49 = vmul.f32 0.5, %v4166_v30 }
 0x99d   : > { %v4040_v48 = vmul.f32 0.044715, %v4008_v54  ;;  %v8237_v54 = vld [vmem:[#allocation69_spill] sm:$0xff] }
 0x99e   : > { %v4230_v23 = vmul.f32 %v4198_v49, %v3924_v52 }
 0x99f   : > { %v4072_v18 = vadd.f32 %v4040_v48, %v3929_v8 }
 0x9a0   : > { %v3931_v27 = vpop.f32.mrf.mxu1 }
 0x9a1   : > { %v5519_v47 = vpop.eup %5518  ;;  %v4104_v63 = vmul.f32 0.7978846, %v4072_v18  ;;  %v3977_v56 = vmul.f32 %v3931_v27, %v3931_v27 }
 0x9a2   : > { %v4378_v7 = vpop.f32.mrf.mxu2  ;;  %v4167_v36 = vadd.f32 1.0, %v5519_v47 }
 0x9a3   : > { %v4440_v0 = vadd.f32 %v4378_v7, %v8234_v17  ;;  %v4009_v5 = vmul.f32 %v3977_v56, %v3931_v27  ;;  %5520 = vtanh.f32 %v4104_v63  ;;  %v8238_v7 = vld [vmem:[#allocation70_spill] sm:$0xff] }
 0x9a4   : > { %v4199_v38 = vmul.f32 0.5, %v4167_v36 }
 0x9a5   : > { %v4472_v29 = vpack.c.bf16 %v4440_v0, %v4440_v0  ;;  %v4041_v37 = vmul.f32 0.044715, %v4009_v5 }
 0x9a6   : > { %v4231_v6 = vmul.f32 %v4199_v38, %v3926_v43  ;;  %v8236_v43 = vld [vmem:[#allocation72_spill] sm:$0xff] }
 0x9a7   : > { %4505 = vst.msk [vmem:[%s5764_s2 + $0x30] sm:$0xf] %vm4492_vm0, %v4472_v29  ;;  %v4073_v12 = vadd.f32 %v4041_v37, %v3931_v27  ;;  %v8239_v37 = vld [vmem:[#allocation73_spill] sm:$0xff] }
 0x9a8   : > { %v3934_v51 = vpop.f32.mrf.mxu1  ;;  %v4252_v55 = vpack.c.bf16 %v4231_v6, %v4230_v23 }
 0x9a9   : > { %v4105_v14 = vmul.f32 0.7978846, %v4073_v12  ;;  %v3978_v31 = vmul.f32 %v3934_v51, %v3934_v51  ;;  %v5521_v21 = vpop.eup %5520 }
 0x9aa   : > { %v4380_v45 = vpop.f32.mrf.mxu2  ;;  %4936 = vmatmul.msk.bf16.gmra.mxu2 %vm4290_vm5, %v4252_v55  ;;  %v4168_v52 = vadd.f32 1.0, %v5521_v21 }
 0x9ab   : > { %v4441_v42 = vadd.f32 %v4380_v45, %v8235_v20  ;;  %5522 = vtanh.f32 %v4105_v14  ;;  %v4010_v32 = vmul.f32 %v3978_v31, %v3934_v51 }
 0x9ac   : > { %v4200_v26 = vmul.f32 0.5, %v4168_v52 }
 0x9ad   : > { %v4473_v4 = vpack.c.bf16 %v4441_v42, %v4441_v42  ;;  %v4042_v50 = vmul.f32 0.044715, %v4010_v32 }
 0x9ae   : > { %v4232_v3 = vmul.f32 %v4200_v26, %v3929_v8 }
 0x9af   : > { %4506 = vst.msk [vmem:[%s5764_s2 + $0x34] sm:$0xf] %vm4492_vm0, %v4473_v4  ;;  %v4074_v9 = vadd.f32 %v4042_v50, %v3934_v51 }
 0x9b0   : > { %v3936_v41 = vpop.f32.mrf.mxu1 }
 0x9b1   : > { %v5523_v16 = vpop.eup %5522  ;;  %v4106_v13 = vmul.f32 0.7978846, %v4074_v9  ;;  %v3979_v44 = vmul.f32 %v3936_v41, %v3936_v41 }
 0x9b2   : > { %v4383_v62 = vpop.f32.mrf.mxu2  ;;  %v4169_v61 = vadd.f32 1.0, %v5523_v16 }
 0x9b3   : > { %v4442_v19 = vadd.f32 %v4383_v62, %v8236_v43  ;;  %v4011_v11 = vmul.f32 %v3979_v44, %v3936_v41  ;;  %5524 = vtanh.f32 %v4106_v13 }
 0x9b4   : > { %v4201_v28 = vmul.f32 0.5, %v4169_v61 }
 0x9b5   : > { %v4474_v34 = vpack.c.bf16 %v4442_v19, %v4442_v19  ;;  %v4043_v22 = vmul.f32 0.044715, %v4011_v11 }
 0x9b6   : > { %v4233_v1 = vmul.f32 %v4201_v28, %v3931_v27 }
 0x9b7   : > { %4507 = vst.msk [vmem:[%s5764_s2 + $0x38] sm:$0xf] %vm4492_vm0, %v4474_v34  ;;  %v4075_v58 = vadd.f32 %v4043_v22, %v3936_v41 }
 0x9b8   : > { %v4253_v10 = vpack.c.bf16 %v4233_v1, %v4232_v3 }
 0x9b9   : > { %v4107_v25 = vmul.f32 0.7978846, %v4075_v58  ;;  %v5525_v30 = vpop.eup %5524 }
 0x9ba   : > { %v4385_v24 = vpop.f32.mrf.mxu2  ;;  %4937 = vmatmul.msk.bf16.gmra.mxu2 %vm4290_vm5, %v4253_v10  ;;  %v4170_v47 = vadd.f32 1.0, %v5525_v30 }
 0x9bb   : > { %v4443_v48 = vadd.f32 %v4385_v24, %v8237_v54  ;;  %5526 = vtanh.f32 %v4107_v25 }
 0x9bc   : > { %v4202_v63 = vmul.f32 0.5, %v4170_v47 }
 0x9bd   : > { %v4475_v18 = vpack.c.bf16 %v4443_v48, %v4443_v48 }
 0x9be   : > { %v4234_v0 = vmul.f32 %v4202_v63, %v3934_v51 }
 0x9bf   : > { %4508 = vst.msk [vmem:[%s5764_s2 + $0x3c] sm:$0xf] %vm4492_vm0, %v4475_v18 }
 0x9c1   : > { %v5527_v8 = vpop.eup %5526 }
 0x9c2   : > { %v4388_v27 = vpop.f32.mrf.mxu2  ;;  %v4171_v56 = vadd.f32 1.0, %v5527_v8 }
 0x9c3   : > { %v4444_v49 = vadd.f32 %v4388_v27, %v8238_v7 }
 0x9c4   : > { %v4203_v36 = vmul.f32 0.5, %v4171_v56 }
 0x9c5   : > { %v4476_v17 = vpack.c.bf16 %v4444_v49, %v4444_v49 }
 0x9c6   : > { %v4235_v5 = vmul.f32 %v4203_v36, %v3936_v41 }
 0x9c7   : > { %4509 = vst.msk [vmem:[%s5764_s2 + $0x40] sm:$0xf] %vm4492_vm0, %v4476_v17 }
 0x9c8   : > { %v4254_v38 = vpack.c.bf16 %v4235_v5, %v4234_v0 }
 0x9ca   : > { %v4390_v29 = vpop.f32.mrf.mxu2  ;;  %4938 = vmatmul.msk.bf16.vlgmr.msra.gmra.mxu3 %vm4290_vm5, %v4254_v38 }
 0x9cb   : > { %v4445_v23 = vadd.f32 %v4390_v29, %v8239_v37 }
 0x9cd   : > { %v4477_v6 = vpack.c.bf16 %v4445_v23, %v4445_v23 }
 0x9cf   : > { %4510 = vst.msk [vmem:[%s5764_s2 + $0x44] sm:$0xf] %vm4492_vm0, %v4477_v6 }
 0x9d4   : > { %v3939_v12 = vpop.f32.mrf.mxu3 }
 0x9d5   : > { %v3980_v55 = vmul.f32 %v3939_v12, %v3939_v12 }
 0x9d7   : > { %v4012_v14 = vmul.f32 %v3980_v55, %v3939_v12 }
 0x9d9   : > { %v4044_v31 = vmul.f32 0.044715, %v4012_v14 }
 0x9db   : > { %v4076_v45 = vadd.f32 %v4044_v31, %v3939_v12 }
 0x9dc   : > { %v3941_v20 = vpop.f32.mrf.mxu3 }
 0x9dd   : > { %v4108_v42 = vmul.f32 0.7978846, %v4076_v45  ;;  %v3981_v51 = vmul.f32 %v3941_v20, %v3941_v20 }
 0x9df   : > { %v4013_v21 = vmul.f32 %v3981_v51, %v3941_v20  ;;  %5528 = vtanh.f32 %v4108_v42 }
 0x9e1   : > { %v4045_v32 = vmul.f32 0.044715, %v4013_v21 }
 0x9e3   : > { %v4077_v4 = vadd.f32 %v4045_v32, %v3941_v20 }
 0x9e4   : > { %v3944_v50 = vpop.f32.mrf.mxu3 }
 0x9e5   : > { %v4109_v52 = vmul.f32 0.7978846, %v4077_v4  ;;  %v3982_v9 = vmul.f32 %v3944_v50, %v3944_v50  ;;  %v5529_v41 = vpop.eup %5528 }
 0x9e6   : > { %v4172_v44 = vadd.f32 1.0, %v5529_v41 }
 0x9e7   : > { %5530 = vtanh.f32 %v4109_v52  ;;  %v4014_v16 = vmul.f32 %v3982_v9, %v3944_v50 }
 0x9e8   : > { %v4204_v11 = vmul.f32 0.5, %v4172_v44 }
 0x9e9   : > { %v4046_v13 = vmul.f32 0.044715, %v4014_v16 }
 0x9ea   : > { %v4236_v10 = vmul.f32 %v4204_v11, %v3939_v12 }
 0x9eb   : > { %v4078_v62 = vadd.f32 %v4046_v13, %v3944_v50 }
 0x9ec   : > { %v3946_v26 = vpop.f32.mrf.mxu3 }
 0x9ed   : > { %v5531_v61 = vpop.eup %5530  ;;  %v4110_v43 = vmul.f32 0.7978846, %v4078_v62  ;;  %v3983_v19 = vmul.f32 %v3946_v26, %v3946_v26 }
 0x9ee   : > { %v4173_v28 = vadd.f32 1.0, %v5531_v61 }
 0x9ef   : > { %v4015_v34 = vmul.f32 %v3983_v19, %v3946_v26  ;;  %5532 = vtanh.f32 %v4110_v43 }
 0x9f0   : > { %v4205_v22 = vmul.f32 0.5, %v4173_v28  ;;  %v4393_v3 = vpop.f32.mrf.mxu2 }
 0x9f1   : > { %v4047_v1 = vmul.f32 0.044715, %v4015_v34  ;;  %v4446_v58 = vadd.f32 %v4393_v3, %v7222_v40  ;;  %v8240_v34 = vld [vmem:[#allocation74_spill] sm:$0xff] }
 0x9f2   : > { %v4237_v25 = vmul.f32 %v4205_v22, %v3941_v20 }
 0x9f3   : > { %v4079_v24 = vadd.f32 %v4047_v1, %v3946_v26  ;;  %v4478_v54 = vpack.c.bf16 %v4446_v58, %v4446_v58 }
 0x9f4   : > { %v4255_v48 = vpack.c.bf16 %v4237_v25, %v4236_v10 }
 0x9f5   : > { %v4111_v30 = vmul.f32 0.7978846, %v4079_v24  ;;  %4511 = vst.msk [vmem:[%s5764_s2 + $0x48] sm:$0xf] %vm4492_vm0, %v4478_v54  ;;  %v5533_v18 = vpop.eup %5532  ;;  %v8241_v54 = vld [vmem:[#allocation75_spill] sm:$0xff] }
 0x9f6   : > { %4939 = vmatmul.msk.bf16.gmra.mxu3 %vm4290_vm5, %v4255_v48  ;;  %v4174_v27 = vadd.f32 1.0, %v5533_v18 }
 0x9f7   : > { %5534 = vtanh.f32 %v4111_v30 }
 0x9f8   : > { %v4395_v47 = vpop.f32.mrf.mxu2  ;;  %v4206_v40 = vmul.f32 0.5, %v4174_v27 }
 0x9f9   : > { %v4447_v8 = vadd.f32 %v4395_v47, %v7259_v60 }
 0x9fa   : > { %v4238_v36 = vmul.f32 %v4206_v40, %v3944_v50 }
 0x9fb   : > { %v4479_v63 = vpack.c.bf16 %v4447_v8, %v4447_v8 }
 0x9fd   : > { %v5535_v56 = vpop.eup %5534  ;;  %4512 = vst.msk [vmem:[%s5764_s2 + $0x4c] sm:$0xf] %vm4492_vm0, %v4479_v63 }
 0x9fe   : > { %v4175_v7 = vadd.f32 1.0, %v5535_v56 }
 0xa00   : > { %v4207_v49 = vmul.f32 0.5, %v4175_v7 }
 0xa02   : > { %v4239_v17 = vmul.f32 %v4207_v49, %v3946_v26 }
 0xa04   : > { %v4256_v0 = vpack.c.bf16 %v4239_v17, %v4238_v36 }
 0xa06   : > { %4940 = vmatmul.msk.bf16.gmra.mxu3 %vm4290_vm5, %v4256_v0 }
 0xa19   : > { %v3949_v5 = vpop.f32.mrf.mxu3 }
 0xa1a   : > { %v3984_v38 = vmul.f32 %v3949_v5, %v3949_v5 }
 0xa1c   : > { %v4016_v29 = vmul.f32 %v3984_v38, %v3949_v5 }
 0xa1e   : > { %v4048_v37 = vmul.f32 0.044715, %v4016_v29 }
 0xa20   : > { %v4080_v23 = vadd.f32 %v4048_v37, %v3949_v5 }
 0xa21   : > { %v3951_v6 = vpop.f32.mrf.mxu3 }
 0xa22   : > { %v4112_v60 = vmul.f32 0.7978846, %v4080_v23  ;;  %v3985_v12 = vmul.f32 %v3951_v6, %v3951_v6 }
 0xa24   : > { %v4017_v55 = vmul.f32 %v3985_v12, %v3951_v6  ;;  %5536 = vtanh.f32 %v4112_v60 }
 0xa26   : > { %v4049_v14 = vmul.f32 0.044715, %v4017_v55 }
 0xa28   : > { %v4081_v31 = vadd.f32 %v4049_v14, %v3951_v6 }
 0xa2a   : > { %v4113_v45 = vmul.f32 0.7978846, %v4081_v31  ;;  %v5537_v20 = vpop.eup %5536 }
 0xa2b   : > { %v4176_v51 = vadd.f32 1.0, %v5537_v20 }
 0xa2c   : > { %5538 = vtanh.f32 %v4113_v45 }
 0xa2d   : > { %v4398_v42 = vpop.f32.mrf.mxu2  ;;  %v4208_v50 = vmul.f32 0.5, %v4176_v51 }
 0xa2e   : > { %v4448_v21 = vadd.f32 %v4398_v42, %v7278_v39 }
 0xa2f   : > { %v4240_v16 = vmul.f32 %v4208_v50, %v3949_v5 }
 0xa30   : > { %v4480_v32 = vpack.c.bf16 %v4448_v21, %v4448_v21 }
 0xa32   : > { %v5539_v4 = vpop.eup %5538  ;;  %4513 = vst.msk [vmem:[%s5764_s2 + $0x50] sm:$0xf] %vm4492_vm0, %v4480_v32 }
 0xa33   : > { %v4177_v52 = vadd.f32 1.0, %v5539_v4 }
 0xa35   : > { %v4209_v9 = vmul.f32 0.5, %v4177_v52  ;;  %v4400_v41 = vpop.f32.mrf.mxu2 }
 0xa36   : > { %v4449_v44 = vadd.f32 %v4400_v41, %v7401_v35 }
 0xa37   : > { %v4241_v13 = vmul.f32 %v4209_v9, %v3951_v6 }
 0xa38   : > { %v4481_v62 = vpack.c.bf16 %v4449_v44, %v4449_v44 }
 0xa39   : > { %v4257_v26 = vpack.c.bf16 %v4241_v13, %v4240_v16 }
 0xa3a   : > { %4514 = vst.msk [vmem:[%s5764_s2 + $0x54] sm:$0xf] %vm4492_vm0, %v4481_v62 }
 0xa3b   : > { %4941 = vmatmul.msk.bf16.gmra.mxu3 %vm4290_vm5, %v4257_v26 }
 0xa3d   : > { %v4403_v39 = vpop.f32.mrf.mxu2 }
 0xa3e   : > { %v4450_v61 = vadd.f32 %v4403_v39, %v7432_v2 }
 0xa40   : > { %v4482_v43 = vpack.c.bf16 %v4450_v61, %v4450_v61 }
 0xa42   : > { %4515 = vst.msk [vmem:[%s5764_s2 + $0x58] sm:$0xf] %vm4492_vm0, %v4482_v43 }
 0xa45   : > { %v4405_v19 = vpop.f32.mrf.mxu2 }
 0xa46   : > { %v4451_v11 = vadd.f32 %v4405_v19, %v7296_v53 }
 0xa48   : > { %v4483_v28 = vpack.c.bf16 %v4451_v11, %v4451_v11 }
 0xa4a   : > { %4516 = vst.msk [vmem:[%s5764_s2 + $0x5c] sm:$0xf] %vm4492_vm0, %v4483_v28 }
 0xa4d   : > { %v4408_v35 = vpop.f32.mrf.mxu3 }
 0xa4e   : > { %v4452_v22 = vadd.f32 %v4408_v35, %v8240_v34 }
 0xa50   : > { %v4484_v3 = vpack.c.bf16 %v4452_v22, %v4452_v22 }
 0xa52   : > { %4517 = vst.msk [vmem:[%s5764_s2 + $0x60] sm:$0xf] %vm4492_vm0, %v4484_v3 }
 0xa55   : > { %v4410_v1 = vpop.f32.mrf.mxu3 }
 0xa56   : > { %v4453_v2 = vadd.f32 %v4410_v1, %v7434_v33  ;;  %v8242_v33 = vld [vmem:[#allocation76_spill] sm:$0xff] }
 0xa58   : > { %v4485_v58 = vpack.c.bf16 %v4453_v2, %v4453_v2 }
 0xa5a   : > { %4518 = vst.msk [vmem:[%s5764_s2 + $0x64] sm:$0xf] %vm4492_vm0, %v4485_v58 }
 0xa79   : > { %v4413_v10 = vpop.f32.mrf.mxu3 }
 0xa7a   : > { %v4454_v53 = vadd.f32 %v4413_v10, %v7039_v59 }
 0xa7c   : > { %v4486_v25 = vpack.c.bf16 %v4454_v53, %v4454_v53 }
 0xa7e   : > { %4519 = vst.msk [vmem:[%s5764_s2 + $0x68] sm:$0xf] %vm4492_vm0, %v4486_v25 }
 0xa81   : > { %v4415_v24 = vpop.f32.mrf.mxu3 }
 0xa82   : > { %v4455_v48 = vadd.f32 %v4415_v24, %v8241_v54 }
 0xa84   : > { %v4487_v30 = vpack.c.bf16 %v4455_v48, %v4455_v48 }
 0xa86   : > { %4520 = vst.msk [vmem:[%s5764_s2 + $0x6c] sm:$0xf] %vm4492_vm0, %v4487_v30 }
 0xa89   : > { %v4418_v18 = vpop.f32.mrf.mxu3 }
 0xa8a   : > { %v4456_v47 = vadd.f32 %v4418_v18, %v8242_v33 }
 0xa8c   : > { %v4488_v8 = vpack.c.bf16 %v4456_v47, %v4456_v47 }
 0xa8e   : > { %4521 = vst.msk [vmem:[%s5764_s2 + $0x70] sm:$0xf] %vm4492_vm0, %v4488_v8 }
 0xa91   : > { %v4420_v27 = vpop.f32.mrf.mxu3 }
 0xa92   : > { %v4457_v59 = vadd.f32 %v4420_v27, %v7499_v46 }
 0xa94   : > { %v4489_v63 = vpack.c.bf16 %v4457_v59, %v4457_v59 }
 0xa96   : > { %4522 = vst.msk [vmem:[%s5764_s2 + $0x74] sm:$0xf] %vm4492_vm0, %v4489_v63 }
 0xabe   : > { %v4423_v56 = vpop.f32.mrf.mxu3 }
 0xabf   : > { %v4458_v40 = vadd.f32 %v4423_v56, %v7517_v57 }
 0xac1   : > { %v4490_v7 = vpack.c.bf16 %v4458_v40, %v4458_v40 }
 0xac3   : > { %4523 = vst.msk [vmem:[%s5764_s2 + $0x78] sm:$0xf] %vm4492_vm0, %v4490_v7 }
 0xac6   : > { %v4425_v49 = vpop.f32.mrf.mxu3 }
 0xac7   : > { %v4459_v36 = vadd.f32 %v4425_v49, %v7645_v15 }
 0xac9   : > { %v4491_v17 = vpack.c.bf16 %v4459_v36, %v4459_v36 }
 0xacb   : > { %4524 = vst.msk [vmem:[%s5764_s2 + $0x7c] sm:$0xf] %vm4492_vm0, %v4491_v17 }
 0xacc PF: > { %s19_s17 = sadd.s32 1, %s5613_s17   ;;  %s8243_s11 = sld [smem:[#allocation6_spill]] }
 0xacd   : > { %p16_p2 = scmp.ge.s32.totalorder %s19_s17, 10   ;;  %s8244_s12 = sld [smem:[#allocation7_spill]] }
 0xace   : > { %s8245_s13 = sld [smem:[#allocation8_spill]]  ;;  %s8249_s30 = smov %s5585_s10 }
 0xacf   : > { %s8246_s14 = sld [smem:[#allocation9_spill]]  ;;  %s8250_s10 = smov %s5735_s25 }
 0xad0   : > { %s8247_s15 = sld [smem:[#allocation10_spill]]  ;;  %18 = sbr.rel (!%p16_p2) target bundleno = 7 (0x7), region = 146 }
 0xad1   : > { %s8248_s16 = sld [smem:[#allocation11_spill]] }

// kernel: tsm_forward.7
= control target key start
LH: loop header
LB: loop body
LE: loop exit
PB: predicated region body
PF: predicated region fallthrough
CT: control target
= control target key end

     0   :  { %s2886_s12 = smov 0   ;;  %s3482_s0 = inlined_call_operand.vmem [shape: bf16[1024,432], index: 0, kind: input, shape index: {}]   ;;  %s3483_s1 = inlined_call_operand.vmem [shape: bf16[432,8], index: 1, kind: input, shape index: {}]   ;;  %s3484_s2 = inlined_call_operand.vmem [shape: f32[1,8], index: 2, kind: input, shape index: {}]   ;;  %s3485_s3 = inlined_call_operand.vmem [shape: f32[1024,8], index: 3, kind: output, shape index: {}]  }
   0x1 LB: > { %s2028_s13 = sadd.s32 4294967295, %s2864_s12   ;;  %p2032_p0 = scmp.ge.s32.totalorder %s2864_s12, 1  ;;  %s2864_s12 = sphi %s2886_s12, %s13_s12  }
   0x2   : > { %p139_p1 = scmp.lt.s32.totalorder %s2864_s12, 3 }
   0x4   : > { %p140_p2 = pnand %p2032_p0, %p139_p1 }
   0x5   : > { %s2033_s20 = sshll.u32 (!%p140_p2), %s2028_s13, 6 }
   0x6   : > { %143 = sbr.rel (%p140_p2) target bundleno = 686 (0x2ae), region = 32  ;;  %p165_p3 = scmp.lt.s32.totalorder (!%p140_p2), %s2033_s20, 127 }
   0xb   : > { %v2828_v0 = vld [vmem:[%s3483_s1 + $0x38] sm:$0xff]  ;;  %v2827_v3 = vld [vmem:[%s3483_s1 + $0x30] sm:$0xff]  ;;  %s3487_s20 = smov (!%p165_p3, %s2033_s20), 127  ;;  %v2826_v7 = vld [vmem:[%s3483_s1 + $0x28] sm:$0xff]  ;;  %vm1134_vm0 = vcmask 392192   ;;  %vm1907_vm1 = vcmask 64512  }
   0xc   : > { %v2836_v1 = vld [vmem:[%s3483_s1 + $0x78] sm:$0xff]  ;;  %1231 = vmatpush.bf16.msra.mxu0 %v2828_v0  ;;  %v2835_v4 = vld [vmem:[%s3483_s1 + $0x70] sm:$0xff]  ;;  %v2834_v8 = vld [vmem:[%s3483_s1 + $0x68] sm:$0xff]  ;;  %s2692_s6 = sshll.u32 %s3487_s20, 4  ;;  %s2037_s26 = sshll.u32 %s3487_s20, 3 }
   0xd   : > { %v2844_v2 = vld [vmem:[%s3483_s1 + $0xb8] sm:$0xff]  ;;  %1400 = vmatpush.bf16.msra.mxu1 %v2836_v1  ;;  %v2843_v5 = vld [vmem:[%s3483_s1 + $0xb0] sm:$0xff]  ;;  %v2842_v9 = vld [vmem:[%s3483_s1 + $0xa8] sm:$0xff]  ;;  %s2933_s14 = scalar_lea.vmem %s3482_s0, %s2692_s6  ;;  %s3077_s29 = scalar_lea.vmem %s3485_s3, %s2037_s26 }
   0xe   : > { %1569 = vmatpush.bf16.msra.mxu2 %v2844_v2  ;;  %v2847_v6 = vld [vmem:[%s3483_s1 + $0xd0] sm:$0xff]  ;;  %v2846_v10 = vld [vmem:[%s3483_s1 + $0xc8] sm:$0xff]  ;;  %v2825_v11 = vld [vmem:[%s3483_s1 + $0x20] sm:$0xff] }
   0xf   : > { %1743 = vmatpush.bf16.msra.mxu3 %v2847_v6  ;;  %v2833_v12 = vld [vmem:[%s3483_s1 + $0x60] sm:$0xff]  ;;  %v2694_v15 = vld [vmem:[%s2933_s14 + $0xc] sm:$0xf]  ;;  %v2050_v16 = vld [vmem:[%s2933_s14 + $0x18] sm:$0xf0] }
  0x10   : > { %1232 = vmatpush.bf16.msra.mxu0 %v2827_v3  ;;  %v2841_v13 = vld [vmem:[%s3483_s1 + $0xa0] sm:$0xff]  ;;  %v2824_v17 = vld [vmem:[%s3483_s1 + $0x18] sm:$0xff]  ;;  %v2053_v20 = vor.u32 %v2694_v15, %v2050_v16  ;;  %v2823_v21 = vld [vmem:[%s3483_s1 + $0x10] sm:$0xff] }
  0x11   : > { %1401 = vmatpush.bf16.msra.mxu1 %v2835_v4  ;;  %v2845_v14 = vld [vmem:[%s3483_s1 + $0xc0] sm:$0xff]  ;;  %v2832_v18 = vld [vmem:[%s3483_s1 + $0x58] sm:$0xff]  ;;  %v2831_v22 = vld [vmem:[%s3483_s1 + $0x50] sm:$0xff] }
  0x12   : > { %1570 = vmatpush.bf16.msra.mxu2 %v2843_v5  ;;  %v2840_v19 = vld [vmem:[%s3483_s1 + $0x98] sm:$0xff]  ;;  %v2839_v23 = vld [vmem:[%s3483_s1 + $0x90] sm:$0xff]  ;;  %v2822_v24 = vld [vmem:[%s3483_s1 + $0x8] sm:$0xff] }
  0x13   : > { %1744 = vmatpush.bf16.msra.mxu3 %v2846_v10  ;;  %v2830_v25 = vld [vmem:[%s3483_s1 + $0x48] sm:$0xff]  ;;  %v2821_v27 = vld [vmem:[%s3483_s1] sm:$0xff]  ;;  %v2695_v30 = vld [vmem:[%s2933_s14 + $0xc] sm:$0xf0] }
  0x14   : > { %1233 = vmatpush.bf16.msra.mxu0 %v2826_v7  ;;  %v2838_v26 = vld [vmem:[%s3483_s1 + $0x88] sm:$0xff]  ;;  %v2829_v28 = vld [vmem:[%s3483_s1 + $0x40] sm:$0xff]  ;;  %v2042_v32 = vld [vmem:[%s2933_s14 + $0x10] sm:$0xf0] }
  0x15   : > { %1402 = vmatpush.bf16.msra.mxu1 %v2834_v8  ;;  %v2040_v29 = vld [vmem:[%s2933_s14] sm:$0xf]  ;;  %v2693_v31 = vld [vmem:[%s2933_s14 + $0x4] sm:$0xf]  ;;  %v2048_v34 = vld [vmem:[%s2933_s14 + $0x8] sm:$0xf] }
  0x16   : > { %1571 = vmatpush.bf16.msra.mxu2 %v2842_v9  ;;  %v2837_v33 = vld [vmem:[%s3483_s1 + $0x80] sm:$0xff]  ;;  %v2696_v35 = vld [vmem:[%s2933_s14 + $0x14] sm:$0xf0]  ;;  %v2698_v36 = vld [vmem:[%s2933_s14 + $0x2c] sm:$0xf]  ;;  %v2041_v38 = vor.u32 %v2695_v30, %v2040_v29  ;;  %v2045_v39 = vor.u32 %v2693_v31, %v2042_v32 }
  0x17   : > { %1745 = vmatpush.bf16.msra.mxu3 %v2845_v14  ;;  %v2066_v37 = vld [vmem:[%s2933_s14 + $0x38] sm:$0xf0]  ;;  %v2049_v40 = vor.u32 %v2696_v35, %v2048_v34  ;;  %v2056_v42 = vld [vmem:[%s2933_s14 + $0x20] sm:$0xf]  ;;  %v2699_v43 = vld [vmem:[%s2933_s14 + $0x2c] sm:$0xf0] }
  0x18   : > { %1234 = vmatpush.bf16.msra.mxu0 %v2825_v11  ;;  %v2069_v41 = vor.u32 %v2698_v36, %v2066_v37  ;;  %v2697_v44 = vld [vmem:[%s2933_s14 + $0x24] sm:$0xf]  ;;  %v2058_v45 = vld [vmem:[%s2933_s14 + $0x30] sm:$0xf0]  ;;  %v2064_v46 = vld [vmem:[%s2933_s14 + $0x28] sm:$0xf]  ;;  %v2057_v50 = vor.u32 %v2699_v43, %v2056_v42 }
  0x19   : > { %1403 = vmatpush.bf16.msra.mxu1 %v2833_v12  ;;  %v2700_v47 = vld [vmem:[%s2933_s14 + $0x34] sm:$0xf0]  ;;  %v2702_v48 = vld [vmem:[%s2933_s14 + $0x4c] sm:$0xf]  ;;  %v2082_v49 = vld [vmem:[%s2933_s14 + $0x58] sm:$0xf0]  ;;  %v2061_v51 = vor.u32 %v2697_v44, %v2058_v45 }
  0x1a   : > { %1572 = vmatpush.bf16.msra.mxu2 %v2841_v13  ;;  %2658 = vmatmul.msk.bf16.vlgmr.msra.gmra.mxu3 %vm1134_vm0, %v2053_v20  ;;  %v2065_v52 = vor.u32 %v2700_v47, %v2064_v46  ;;  %v2085_v53 = vor.u32 %v2702_v48, %v2082_v49  ;;  %v2072_v54 = vld [vmem:[%s2933_s14 + $0x40] sm:$0xf]  ;;  %v2703_v55 = vld [vmem:[%s2933_s14 + $0x4c] sm:$0xf0]  ;;  %v2701_v56 = vld [vmem:[%s2933_s14 + $0x44] sm:$0xf] }
  0x1b   : > { %v2074_v57 = vld [vmem:[%s2933_s14 + $0x50] sm:$0xf0]  ;;  %v2080_v58 = vld [vmem:[%s2933_s14 + $0x48] sm:$0xf]  ;;  %v2704_v59 = vld [vmem:[%s2933_s14 + $0x54] sm:$0xf0]  ;;  %v2073_v62 = vor.u32 %v2703_v55, %v2072_v54 }
  0x1c   : > { %1235 = vmatpush.bf16.msra.mxu0 %v2824_v17  ;;  %v2706_v60 = vld [vmem:[%s2933_s14 + $0x6c] sm:$0xf]  ;;  %v2098_v61 = vld [vmem:[%s2933_s14 + $0x78] sm:$0xf0]  ;;  %v2077_v63 = vor.u32 %v2701_v56, %v2074_v57  ;;  %v2081_v0 = vor.u32 %v2704_v59, %v2080_v58  ;;  %v2088_v2 = vld [vmem:[%s2933_s14 + $0x60] sm:$0xf] }
  0x1d   : > { %1404 = vmatpush.bf16.msra.mxu1 %v2832_v18  ;;  %v2101_v1 = vor.u32 %v2706_v60, %v2098_v61  ;;  %v2707_v3 = vld [vmem:[%s2933_s14 + $0x6c] sm:$0xf0]  ;;  %v2705_v4 = vld [vmem:[%s2933_s14 + $0x64] sm:$0xf]  ;;  %v2090_v5 = vld [vmem:[%s2933_s14 + $0x70] sm:$0xf0] }
  0x1e   : > { %1573 = vmatpush.bf16.msra.mxu2 %v2840_v19  ;;  %v2096_v6 = vld [vmem:[%s2933_s14 + $0x68] sm:$0xf]  ;;  %v2708_v7 = vld [vmem:[%s2933_s14 + $0x74] sm:$0xf0]  ;;  %v2710_v8 = vld [vmem:[%s2933_s14 + $0x8c] sm:$0xf]  ;;  %v2089_v10 = vor.u32 %v2707_v3, %v2088_v2  ;;  %v2093_v11 = vor.u32 %v2705_v4, %v2090_v5 }
  0x1f   : > { %v2114_v9 = vld [vmem:[%s2933_s14 + $0x98] sm:$0xf0]  ;;  %v2097_v12 = vor.u32 %v2708_v7, %v2096_v6  ;;  %v2104_v14 = vld [vmem:[%s2933_s14 + $0x80] sm:$0xf]  ;;  %v2711_v15 = vld [vmem:[%s2933_s14 + $0x8c] sm:$0xf0] }
  0x20   : > { %1236 = vmatpush.bf16.msra.mxu0 %v2823_v21  ;;  %v2117_v13 = vor.u32 %v2710_v8, %v2114_v9  ;;  %v2709_v16 = vld [vmem:[%s2933_s14 + $0x84] sm:$0xf]  ;;  %v2106_v17 = vld [vmem:[%s2933_s14 + $0x90] sm:$0xf0]  ;;  %v2112_v18 = vld [vmem:[%s2933_s14 + $0x88] sm:$0xf] }
  0x21   : > { %1405 = vmatpush.bf16.msra.mxu1 %v2831_v22  ;;  %v2712_v19 = vld [vmem:[%s2933_s14 + $0x94] sm:$0xf0]  ;;  %v2714_v20 = vld [vmem:[%s2933_s14 + $0xac] sm:$0xf]  ;;  %v2130_v21 = vld [vmem:[%s2933_s14 + $0xb8] sm:$0xf0]  ;;  %v2105_v22 = vor.u32 %v2711_v15, %v2104_v14 }
  0x22   : > { %1574 = vmatpush.bf16.msra.mxu2 %v2839_v23  ;;  %v2109_v23 = vor.u32 %v2709_v16, %v2106_v17  ;;  %v2122_v29 = vld [vmem:[%s2933_s14 + $0xb0] sm:$0xf0]  ;;  %v2128_v30 = vld [vmem:[%s2933_s14 + $0xa8] sm:$0xf]  ;;  %v2716_v31 = vld [vmem:[%s2933_s14 + $0xb4] sm:$0xf0] }
  0x23   : > { %v2718_v32 = vld [vmem:[%s2933_s14 + $0xcc] sm:$0xf]  ;;  %v2129_v36 = vor.u32 %v2716_v31, %v2128_v30  ;;  %v2144_v42 = vld [vmem:[%s2933_s14 + $0xc8] sm:$0xf]  ;;  %v2720_v43 = vld [vmem:[%s2933_s14 + $0xd4] sm:$0xf0] }
  0x24   : > { %1237 = vmatpush.bf16.msra.mxu0 %v2822_v24  ;;  %v2113_v24 = vor.u32 %v2712_v19, %v2112_v18  ;;  %v2722_v44 = vld [vmem:[%s2933_s14 + $0xec] sm:$0xf]  ;;  %v2162_v45 = vld [vmem:[%s2933_s14 + $0xf8] sm:$0xf0]  ;;  %v2145_v48 = vor.u32 %v2720_v43, %v2144_v42  ;;  %v2160_v54 = vld [vmem:[%s2933_s14 + $0xe8] sm:$0xf] }
  0x25   : > { %1406 = vmatpush.bf16.msra.mxu1 %v2830_v25  ;;  %v2133_v25 = vor.u32 %v2714_v20, %v2130_v21  ;;  %v2165_v49 = vor.u32 %v2722_v44, %v2162_v45  ;;  %v2724_v55 = vld [vmem:[%s2933_s14 + $0xf4] sm:$0xf0]  ;;  %v2726_v56 = vld [vmem:[%s2933_s14 + $0x10c] sm:$0xf]  ;;  %v2178_v57 = vld [vmem:[%s2933_s14 + $0x118] sm:$0xf0] }
  0x26   : > { %1575 = vmatpush.bf16.msra.mxu2 %v2838_v26  ;;  %v2120_v26 = vld [vmem:[%s2933_s14 + $0xa0] sm:$0xf]  ;;  %v2161_v60 = vor.u32 %v2724_v55, %v2160_v54  ;;  %v2181_v61 = vor.u32 %v2726_v56, %v2178_v57  ;;  %v2170_v2 = vld [vmem:[%s2933_s14 + $0x110] sm:$0xf0]  ;;  %v2176_v4 = vld [vmem:[%s2933_s14 + $0x108] sm:$0xf] }
  0x27   : > { %v3065_v3 = vld [vmem:[%s3484_s2] ss:$0 sm:$0xff]  ;;  %v2728_v5 = vld [vmem:[%s2933_s14 + $0x114] sm:$0xf0]  ;;  %v2730_v6 = vld [vmem:[%s2933_s14 + $0x12c] sm:$0xf] }
  0x28   : > { %1238 = vmatpush.bf16.msra.mxu0 %v2821_v27  ;;  %v2715_v27 = vld [vmem:[%s2933_s14 + $0xac] sm:$0xf0]  ;;  %v2194_v7 = vld [vmem:[%s2933_s14 + $0x138] sm:$0xf0]  ;;  %v2734_v31 = vld [vmem:[%s2933_s14 + $0x14c] sm:$0xf] }
  0x29   : > { %1407 = vmatpush.bf16.msra.mxu1 %v2829_v28  ;;  %v2713_v28 = vld [vmem:[%s2933_s14 + $0xa4] sm:$0xf]  ;;  %v2121_v34 = vor.u32 %v2715_v27, %v2120_v26  ;;  %v2197_v15 = vor.u32 %v2730_v6, %v2194_v7  ;;  %v2186_v27 = vld [vmem:[%s2933_s14 + $0x130] sm:$0xf0]  ;;  %v2208_v56 = vld [vmem:[%s2933_s14 + $0x148] sm:$0xf] }
  0x2a   : > { %1576 = vmatpush.bf16.msra.mxu2 %v2837_v33  ;;  %2659 = vmatmul.msk.bf16.gmra.mxu3 %vm1134_vm0, %v2069_v41  ;;  %v2146_v33 = vld [vmem:[%s2933_s14 + $0xd8] sm:$0xf0]  ;;  %v2125_v35 = vor.u32 %v2713_v28, %v2122_v29  ;;  %v2138_v41 = vld [vmem:[%s2933_s14 + $0xd0] sm:$0xf0]  ;;  %v2729_v26 = vld [vmem:[%s2933_s14 + $0x124] sm:$0xf] }
  0x2b   : > { %1239 = vmatmul.bf16.vlgmr.msra.gmra.mxu0 %v2041_v38  ;;  %v2149_v37 = vor.u32 %v2718_v32, %v2146_v33  ;;  %v2136_v38 = vld [vmem:[%s2933_s14 + $0xc0] sm:$0xf]  ;;  %v2192_v28 = vld [vmem:[%s2933_s14 + $0x128] sm:$0xf]  ;;  %v2732_v29 = vld [vmem:[%s2933_s14 + $0x134] sm:$0xf0] }
  0x2c   : > { %1408 = vmatmul.bf16.vlgmr.msra.gmra.mxu1 %v2045_v39  ;;  %v2719_v39 = vld [vmem:[%s2933_s14 + $0xcc] sm:$0xf0]  ;;  %v2210_v32 = vld [vmem:[%s2933_s14 + $0x158] sm:$0xf0]  ;;  %v2733_v54 = vld [vmem:[%s2933_s14 + $0x144] sm:$0xf] }
  0x2d   : > { %1577 = vmatmul.bf16.vlgmr.msra.gmra.mxu2 %v2049_v40  ;;  %v2717_v40 = vld [vmem:[%s2933_s14 + $0xc4] sm:$0xf]  ;;  %v2137_v46 = vor.u32 %v2719_v39, %v2136_v38  ;;  %v2193_v39 = vor.u32 %v2732_v29, %v2192_v28  ;;  %v2213_v42 = vor.u32 %v2734_v31, %v2210_v32  ;;  %v2202_v55 = vld [vmem:[%s2933_s14 + $0x150] sm:$0xf0]  ;;  %v2736_v57 = vld [vmem:[%s2933_s14 + $0x154] sm:$0xf0] }
  0x2e   : > { %v2141_v47 = vor.u32 %v2717_v40, %v2138_v41 }
  0x3a   : > { %2660 = vmatmul.msk.bf16.gmra.mxu3 %vm1134_vm0, %v2085_v53  ;;  %v2154_v53 = vld [vmem:[%s2933_s14 + $0xf0] sm:$0xf0] }
  0x3b   : > { %1244 = vmatmul.bf16.gmra.mxu0 %v2057_v50  ;;  %v2152_v50 = vld [vmem:[%s2933_s14 + $0xe0] sm:$0xf] }
  0x3c   : > { %1413 = vmatmul.bf16.gmra.mxu1 %v2061_v51  ;;  %v2723_v51 = vld [vmem:[%s2933_s14 + $0xec] sm:$0xf0] }
  0x3d   : > { %1582 = vmatmul.bf16.gmra.mxu2 %v2065_v52  ;;  %v2721_v52 = vld [vmem:[%s2933_s14 + $0xe4] sm:$0xf]  ;;  %v2153_v58 = vor.u32 %v2723_v51, %v2152_v50 }
  0x3e   : > { %v2157_v59 = vor.u32 %v2721_v52, %v2154_v53  ;;  %v2200_v52 = vld [vmem:[%s2933_s14 + $0x140] sm:$0xf]  ;;  %v2735_v53 = vld [vmem:[%s2933_s14 + $0x14c] sm:$0xf0] }
  0x4a   : > { %2661 = vmatmul.msk.bf16.gmra.mxu3 %vm1134_vm0, %v2101_v1  ;;  %v2725_v1 = vld [vmem:[%s2933_s14 + $0x104] sm:$0xf] }
  0x4b   : > { %1249 = vmatmul.bf16.gmra.mxu0 %v2073_v62  ;;  %v2173_v9 = vor.u32 %v2725_v1, %v2170_v2 }
  0x4c   : > { %1418 = vmatmul.bf16.gmra.mxu1 %v2077_v63  ;;  %v2168_v63 = vld [vmem:[%s2933_s14 + $0x100] sm:$0xf] }
  0x4d   : > { %1587 = vmatmul.bf16.gmra.mxu2 %v2081_v0  ;;  %v2727_v0 = vld [vmem:[%s2933_s14 + $0x10c] sm:$0xf0] }
  0x4e   : > { %v2169_v8 = vor.u32 %v2727_v0, %v2168_v63  ;;  %v2205_v63 = vor.u32 %v2733_v54, %v2202_v55 }
  0x5a   : > { %2662 = vmatmul.msk.bf16.gmra.mxu3 %vm1134_vm0, %v2117_v13 }
  0x5b   : > { %1254 = vmatmul.bf16.gmra.mxu0 %v2089_v10 }
  0x5c   : > { %1423 = vmatmul.bf16.gmra.mxu1 %v2093_v11 }
  0x5d   : > { %1592 = vmatmul.bf16.gmra.mxu2 %v2097_v12  ;;  %v2177_v12 = vor.u32 %v2728_v5, %v2176_v4  ;;  %v2209_v4 = vor.u32 %v2736_v57, %v2208_v56 }
  0x6a   : > { %2663 = vmatmul.msk.bf16.gmra.mxu3 %vm1134_vm0, %v2133_v25  ;;  %v2731_v25 = vld [vmem:[%s2933_s14 + $0x12c] sm:$0xf0] }
  0x6b   : > { %1259 = vmatmul.bf16.gmra.mxu0 %v2105_v22 }
  0x6c   : > { %1428 = vmatmul.bf16.gmra.mxu1 %v2109_v23 }
  0x6d   : > { %1597 = vmatmul.bf16.gmra.mxu2 %v2113_v24  ;;  %v2184_v24 = vld [vmem:[%s2933_s14 + $0x120] sm:$0xf] }
  0x7a   : > { %2664 = vmatmul.msk.bf16.gmra.mxu3 %vm1134_vm0, %v2149_v37 }
  0x7b   : > { %1264 = vmatmul.bf16.gmra.mxu0 %v2121_v34  ;;  %v2185_v34 = vor.u32 %v2731_v25, %v2184_v24  ;;  %v2742_v24 = vld [vmem:[%s2933_s14 + $0x18c] sm:$0xf]  ;;  %v2242_v25 = vld [vmem:[%s2933_s14 + $0x198] sm:$0xf0] }
  0x7c   : > { %1433 = vmatmul.bf16.gmra.mxu1 %v2125_v35  ;;  %v2189_v35 = vor.u32 %v2729_v26, %v2186_v27 }
  0x7d   : > { %1602 = vmatmul.bf16.gmra.mxu2 %v2129_v36 }
  0x8a   : > { %2665 = vmatmul.msk.bf16.gmra.mxu3 %vm1134_vm0, %v2165_v49 }
  0x8b   : > { %1269 = vmatmul.bf16.gmra.mxu0 %v2137_v46 }
  0x8c   : > { %1438 = vmatmul.bf16.gmra.mxu1 %v2141_v47 }
  0x8d   : > { %1607 = vmatmul.bf16.gmra.mxu2 %v2145_v48 }
  0x9a   : > { %2666 = vmatmul.msk.bf16.gmra.mxu3 %vm1134_vm0, %v2181_v61 }
  0x9b   : > { %1274 = vmatmul.bf16.gmra.mxu0 %v2153_v58 }
  0x9c   : > { %1443 = vmatmul.bf16.gmra.mxu1 %v2157_v59  ;;  %v2738_v59 = vld [vmem:[%s2933_s14 + $0x16c] sm:$0xf] }
  0x9d   : > { %1612 = vmatmul.bf16.gmra.mxu2 %v2161_v60  ;;  %v1747_v62 = vpop.f32.mrf.mxu3  ;;  %v2226_v60 = vld [vmem:[%s2933_s14 + $0x178] sm:$0xf0] }
  0x9e   : > { %v2229_v7 = vor.u32 %v2738_v59, %v2226_v60 }
  0xa5   : > { %v1749_v14 = vpop.f32.mrf.mxu3 }
  0xa8   : > { %v1240_v10 = vpop.f32.mrf.mxu0 }
  0xa9   : > { %v1409_v11 = vpop.f32.mrf.mxu1  ;;  %v1241_v13 = vadd.f32 %v3065_v3, %v1240_v10 }
  0xaa   : > { %2667 = vmatmul.msk.bf16.gmra.mxu3 %vm1134_vm0, %v2197_v15 }
  0xab   : > { %1279 = vmatmul.bf16.gmra.mxu0 %v2169_v8  ;;  %v1410_v16 = vadd.f32 %v1409_v11, %v1241_v13 }
  0xac   : > { %1448 = vmatmul.bf16.gmra.mxu1 %v2173_v9 }
  0xad   : > { %1617 = vmatmul.bf16.gmra.mxu2 %v2177_v12  ;;  %v1752_v21 = vpop.f32.mrf.mxu3 }
  0xb0   : > { %v1578_v17 = vpop.f32.mrf.mxu2  ;;  %v1242_v19 = vpop.f32.mrf.mxu0 }
  0xb1   : > { %v1579_v18 = vadd.f32 %v1578_v17, %v1410_v16  ;;  %v1411_v20 = vpop.f32.mrf.mxu1  ;;  %v1243_v23 = vadd.f32 %v3065_v3, %v1242_v19  ;;  %v2216_v17 = vld [vmem:[%s2933_s14 + $0x160] sm:$0xf]  ;;  %v2737_v19 = vld [vmem:[%s2933_s14 + $0x164] sm:$0xf] }
  0xb3   : > { %v1748_v22 = vadd.f32 %v1747_v62, %v1579_v18  ;;  %v1412_v30 = vadd.f32 %v1411_v20, %v1243_v23  ;;  %v2201_v62 = vor.u32 %v2735_v53, %v2200_v52  ;;  %v2739_v18 = vld [vmem:[%s2933_s14 + $0x16c] sm:$0xf0]  ;;  %v2218_v20 = vld [vmem:[%s2933_s14 + $0x170] sm:$0xf0]  ;;  %v2746_v52 = vld [vmem:[%s2933_s14 + $0x1ac] sm:$0xf] }
  0xb4   : > { %v2217_v27 = vor.u32 %v2739_v18, %v2216_v17  ;;  %v2221_v28 = vor.u32 %v2737_v19, %v2218_v20  ;;  %v2258_v53 = vld [vmem:[%s2933_s14 + $0x1b8] sm:$0xf0]  ;;  %v2750_v17 = vld [vmem:[%s2933_s14 + $0x1cc] sm:$0xf] }
  0xb5   : > { %1908 = vst.msk [vmem:[%s3077_s29] sm:$0xff] %vm1907_vm1, %v1748_v22  ;;  %v1754_v41 = vpop.f32.mrf.mxu3  ;;  %v2740_v22 = vld [vmem:[%s2933_s14 + $0x174] sm:$0xf0]  ;;  %v2274_v18 = vld [vmem:[%s2933_s14 + $0x1d8] sm:$0xf0] }
  0xb8   : > { %v1580_v33 = vpop.f32.mrf.mxu2  ;;  %v1245_v37 = vpop.f32.mrf.mxu0 }
  0xb9   : > { %v1581_v36 = vadd.f32 %v1580_v33, %v1412_v30  ;;  %v1414_v38 = vpop.f32.mrf.mxu1  ;;  %v1246_v40 = vadd.f32 %v3065_v3, %v1245_v37 }
  0xba   : > { %2668 = vmatmul.msk.bf16.gmra.mxu3 %vm1134_vm0, %v2213_v42 }
  0xbb   : > { %v1750_v43 = vadd.f32 %v1749_v14, %v1581_v36  ;;  %1284 = vmatmul.bf16.gmra.mxu0 %v2185_v34  ;;  %v1415_v44 = vadd.f32 %v1414_v38, %v1246_v40 }
  0xbc   : > { %1453 = vmatmul.bf16.gmra.mxu1 %v2189_v35  ;;  %v2245_v35 = vor.u32 %v2742_v24, %v2242_v25 }
  0xbd   : > { %1909 = vst.msk [vmem:[%s3077_s29 + $0x8] sm:$0xff] %vm1907_vm1, %v1750_v43  ;;  %1622 = vmatmul.bf16.gmra.mxu2 %v2193_v39  ;;  %v1757_v49 = vpop.f32.mrf.mxu3 }
  0xc0   : > { %v1583_v45 = vpop.f32.mrf.mxu2  ;;  %v1247_v47 = vpop.f32.mrf.mxu0 }
  0xc1   : > { %v1584_v46 = vadd.f32 %v1583_v45, %v1415_v44  ;;  %v1416_v48 = vpop.f32.mrf.mxu1  ;;  %v1248_v51 = vadd.f32 %v3065_v3, %v1247_v47  ;;  %v2232_v45 = vld [vmem:[%s2933_s14 + $0x180] sm:$0xf]  ;;  %v2741_v47 = vld [vmem:[%s2933_s14 + $0x184] sm:$0xf] }
  0xc3   : > { %v1753_v50 = vadd.f32 %v1752_v21, %v1584_v46  ;;  %v1417_v58 = vadd.f32 %v1416_v48, %v1248_v51  ;;  %v2224_v21 = vld [vmem:[%s2933_s14 + $0x168] sm:$0xf]  ;;  %v2743_v46 = vld [vmem:[%s2933_s14 + $0x18c] sm:$0xf0]  ;;  %v2234_v48 = vld [vmem:[%s2933_s14 + $0x190] sm:$0xf0] }
  0xc4   : > { %v2225_v32 = vor.u32 %v2740_v22, %v2224_v21  ;;  %v2233_v55 = vor.u32 %v2743_v46, %v2232_v45  ;;  %v2237_v56 = vor.u32 %v2741_v47, %v2234_v48  ;;  %v2754_v45 = vld [vmem:[%s2933_s14 + $0x1ec] sm:$0xf]  ;;  %v2290_v46 = vld [vmem:[%s2933_s14 + $0x1f8] sm:$0xf0] }
  0xc5   : > { %1910 = vst.msk [vmem:[%s3077_s29 + $0x10] sm:$0xff] %vm1907_vm1, %v1753_v50  ;;  %v1759_v6 = vpop.f32.mrf.mxu3  ;;  %v2744_v50 = vld [vmem:[%s2933_s14 + $0x194] sm:$0xf0] }
  0xc8   : > { %v1585_v61 = vpop.f32.mrf.mxu2  ;;  %v1250_v1 = vpop.f32.mrf.mxu0 }
  0xc9   : > { %v1586_v0 = vadd.f32 %v1585_v61, %v1417_v58  ;;  %v1419_v2 = vpop.f32.mrf.mxu1  ;;  %v1251_v5 = vadd.f32 %v3065_v3, %v1250_v1 }
  0xca   : > { %2669 = vmatmul.msk.bf16.gmra.mxu3 %vm1134_vm0, %v2229_v7 }
  0xcb   : > { %v1755_v8 = vadd.f32 %v1754_v41, %v1586_v0  ;;  %1289 = vmatmul.bf16.gmra.mxu0 %v2201_v62  ;;  %v1420_v9 = vadd.f32 %v1419_v2, %v1251_v5 }
  0xcc   : > { %1458 = vmatmul.bf16.gmra.mxu1 %v2205_v63  ;;  %v2261_v63 = vor.u32 %v2746_v52, %v2258_v53 }
  0xcd   : > { %1911 = vst.msk [vmem:[%s3077_s29 + $0x18] sm:$0xff] %vm1907_vm1, %v1755_v8  ;;  %1627 = vmatmul.bf16.gmra.mxu2 %v2209_v4  ;;  %v1762_v14 = vpop.f32.mrf.mxu3 }
  0xd0   : > { %v1588_v10 = vpop.f32.mrf.mxu2  ;;  %v1252_v12 = vpop.f32.mrf.mxu0 }
  0xd1   : > { %v1589_v11 = vadd.f32 %v1588_v10, %v1420_v9  ;;  %v1421_v13 = vpop.f32.mrf.mxu1  ;;  %v1253_v16 = vadd.f32 %v3065_v3, %v1252_v12  ;;  %v2248_v10 = vld [vmem:[%s2933_s14 + $0x1a0] sm:$0xf]  ;;  %v2745_v12 = vld [vmem:[%s2933_s14 + $0x1a4] sm:$0xf] }
  0xd3   : > { %v1758_v15 = vadd.f32 %v1757_v49, %v1589_v11  ;;  %v1422_v23 = vadd.f32 %v1421_v13, %v1253_v16  ;;  %v2240_v49 = vld [vmem:[%s2933_s14 + $0x188] sm:$0xf]  ;;  %v2747_v11 = vld [vmem:[%s2933_s14 + $0x1ac] sm:$0xf0]  ;;  %v2250_v13 = vld [vmem:[%s2933_s14 + $0x1b0] sm:$0xf0] }
  0xd4   : > { %v2241_v60 = vor.u32 %v2744_v50, %v2240_v49  ;;  %v2249_v20 = vor.u32 %v2747_v11, %v2248_v10  ;;  %v2253_v21 = vor.u32 %v2745_v12, %v2250_v13  ;;  %v2758_v10 = vld [vmem:[%s2933_s14 + $0x20c] sm:$0xf]  ;;  %v2306_v11 = vld [vmem:[%s2933_s14 + $0x218] sm:$0xf0] }
  0xd5   : > { %1912 = vst.msk [vmem:[%s3077_s29 + $0x20] sm:$0xff] %vm1907_vm1, %v1758_v15  ;;  %v1764_v34 = vpop.f32.mrf.mxu3  ;;  %v2748_v15 = vld [vmem:[%s2933_s14 + $0x1b4] sm:$0xf0] }
  0xd8   : > { %v1590_v26 = vpop.f32.mrf.mxu2  ;;  %v1255_v30 = vpop.f32.mrf.mxu0 }
  0xd9   : > { %v1591_v29 = vadd.f32 %v1590_v26, %v1422_v23  ;;  %v1424_v31 = vpop.f32.mrf.mxu1  ;;  %v1256_v33 = vadd.f32 %v3065_v3, %v1255_v30 }
  0xda   : > { %2670 = vmatmul.msk.bf16.gmra.mxu3 %vm1134_vm0, %v2245_v35 }
  0xdb   : > { %v1760_v36 = vadd.f32 %v1759_v6, %v1591_v29  ;;  %1294 = vmatmul.bf16.gmra.mxu0 %v2217_v27  ;;  %v1425_v37 = vadd.f32 %v1424_v31, %v1256_v33 }
  0xdc   : > { %1463 = vmatmul.bf16.gmra.mxu1 %v2221_v28  ;;  %v2277_v28 = vor.u32 %v2750_v17, %v2274_v18 }
  0xdd   : > { %1913 = vst.msk [vmem:[%s3077_s29 + $0x28] sm:$0xff] %vm1907_vm1, %v1760_v36  ;;  %1632 = vmatmul.bf16.gmra.mxu2 %v2225_v32  ;;  %v1767_v42 = vpop.f32.mrf.mxu3 }
  0xe0   : > { %v1593_v38 = vpop.f32.mrf.mxu2  ;;  %v1257_v40 = vpop.f32.mrf.mxu0 }
  0xe1   : > { %v1594_v39 = vadd.f32 %v1593_v38, %v1425_v37  ;;  %v1426_v41 = vpop.f32.mrf.mxu1  ;;  %v1258_v44 = vadd.f32 %v3065_v3, %v1257_v40  ;;  %v2264_v38 = vld [vmem:[%s2933_s14 + $0x1c0] sm:$0xf]  ;;  %v2749_v40 = vld [vmem:[%s2933_s14 + $0x1c4] sm:$0xf] }
  0xe3   : > { %v1763_v43 = vadd.f32 %v1762_v14, %v1594_v39  ;;  %v1427_v51 = vadd.f32 %v1426_v41, %v1258_v44  ;;  %v2256_v14 = vld [vmem:[%s2933_s14 + $0x1a8] sm:$0xf]  ;;  %v2751_v39 = vld [vmem:[%s2933_s14 + $0x1cc] sm:$0xf0]  ;;  %v2266_v41 = vld [vmem:[%s2933_s14 + $0x1d0] sm:$0xf0] }
  0xe4   : > { %v2257_v25 = vor.u32 %v2748_v15, %v2256_v14  ;;  %v2265_v48 = vor.u32 %v2751_v39, %v2264_v38  ;;  %v2269_v49 = vor.u32 %v2749_v40, %v2266_v41  ;;  %v2762_v38 = vld [vmem:[%s2933_s14 + $0x22c] sm:$0xf]  ;;  %v2322_v39 = vld [vmem:[%s2933_s14 + $0x238] sm:$0xf0] }
  0xe5   : > { %1914 = vst.msk [vmem:[%s3077_s29 + $0x30] sm:$0xff] %vm1907_vm1, %v1763_v43  ;;  %v1769_v62 = vpop.f32.mrf.mxu3  ;;  %v2752_v43 = vld [vmem:[%s2933_s14 + $0x1d4] sm:$0xf0] }
  0xe8   : > { %v1595_v54 = vpop.f32.mrf.mxu2  ;;  %v1260_v58 = vpop.f32.mrf.mxu0 }
  0xe9   : > { %v1596_v57 = vadd.f32 %v1595_v54, %v1427_v51  ;;  %v1429_v59 = vpop.f32.mrf.mxu1  ;;  %v1261_v61 = vadd.f32 %v3065_v3, %v1260_v58 }
  0xea   : > { %2671 = vmatmul.msk.bf16.gmra.mxu3 %vm1134_vm0, %v2261_v63 }
  0xeb   : > { %v1765_v0 = vadd.f32 %v1764_v34, %v1596_v57  ;;  %1299 = vmatmul.bf16.gmra.mxu0 %v2233_v55  ;;  %v1430_v1 = vadd.f32 %v1429_v59, %v1261_v61 }
  0xec   : > { %1468 = vmatmul.bf16.gmra.mxu1 %v2237_v56  ;;  %v2293_v56 = vor.u32 %v2754_v45, %v2290_v46 }
  0xed   : > { %1915 = vst.msk [vmem:[%s3077_s29 + $0x38] sm:$0xff] %vm1907_vm1, %v1765_v0  ;;  %1637 = vmatmul.bf16.gmra.mxu2 %v2241_v60  ;;  %v1772_v7 = vpop.f32.mrf.mxu3 }
  0xf0   : > { %v1598_v2 = vpop.f32.mrf.mxu2  ;;  %v1262_v5 = vpop.f32.mrf.mxu0 }
  0xf1   : > { %v1599_v4 = vadd.f32 %v1598_v2, %v1430_v1  ;;  %v1431_v6 = vpop.f32.mrf.mxu1  ;;  %v1263_v9 = vadd.f32 %v3065_v3, %v1262_v5  ;;  %v2280_v2 = vld [vmem:[%s2933_s14 + $0x1e0] sm:$0xf]  ;;  %v2753_v5 = vld [vmem:[%s2933_s14 + $0x1e4] sm:$0xf] }
  0xf3   : > { %v1768_v8 = vadd.f32 %v1767_v42, %v1599_v4  ;;  %v1432_v16 = vadd.f32 %v1431_v6, %v1263_v9  ;;  %v2272_v42 = vld [vmem:[%s2933_s14 + $0x1c8] sm:$0xf]  ;;  %v2755_v4 = vld [vmem:[%s2933_s14 + $0x1ec] sm:$0xf0]  ;;  %v2282_v6 = vld [vmem:[%s2933_s14 + $0x1f0] sm:$0xf0] }
  0xf4   : > { %v2273_v53 = vor.u32 %v2752_v43, %v2272_v42  ;;  %v2281_v13 = vor.u32 %v2755_v4, %v2280_v2  ;;  %v2285_v14 = vor.u32 %v2753_v5, %v2282_v6  ;;  %v2766_v2 = vld [vmem:[%s2933_s14 + $0x24c] sm:$0xf]  ;;  %v2338_v4 = vld [vmem:[%s2933_s14 + $0x258] sm:$0xf0] }
  0xf5   : > { %1916 = vst.msk [vmem:[%s3077_s29 + $0x40] sm:$0xff] %vm1907_vm1, %v1768_v8  ;;  %v1774_v27 = vpop.f32.mrf.mxu3  ;;  %v2756_v8 = vld [vmem:[%s2933_s14 + $0x1f4] sm:$0xf0] }
  0xf8   : > { %v1600_v19 = vpop.f32.mrf.mxu2  ;;  %v1265_v23 = vpop.f32.mrf.mxu0 }
  0xf9   : > { %v1601_v22 = vadd.f32 %v1600_v19, %v1432_v16  ;;  %v1434_v24 = vpop.f32.mrf.mxu1  ;;  %v1266_v26 = vadd.f32 %v3065_v3, %v1265_v23 }
  0xfa   : > { %2672 = vmatmul.msk.bf16.gmra.mxu3 %vm1134_vm0, %v2277_v28 }
  0xfb   : > { %v1770_v29 = vadd.f32 %v1769_v62, %v1601_v22  ;;  %1304 = vmatmul.bf16.gmra.mxu0 %v2249_v20  ;;  %v1435_v30 = vadd.f32 %v1434_v24, %v1266_v26 }
  0xfc   : > { %1473 = vmatmul.bf16.gmra.mxu1 %v2253_v21  ;;  %v2309_v21 = vor.u32 %v2758_v10, %v2306_v11 }
  0xfd   : > { %1917 = vst.msk [vmem:[%s3077_s29 + $0x48] sm:$0xff] %vm1907_vm1, %v1770_v29  ;;  %1642 = vmatmul.bf16.gmra.mxu2 %v2257_v25  ;;  %v1777_v35 = vpop.f32.mrf.mxu3 }
 0x100   : > { %v1603_v31 = vpop.f32.mrf.mxu2  ;;  %v1267_v33 = vpop.f32.mrf.mxu0 }
 0x101   : > { %v1604_v32 = vadd.f32 %v1603_v31, %v1435_v30  ;;  %v1436_v34 = vpop.f32.mrf.mxu1  ;;  %v1268_v37 = vadd.f32 %v3065_v3, %v1267_v33  ;;  %v2296_v31 = vld [vmem:[%s2933_s14 + $0x200] sm:$0xf]  ;;  %v2757_v33 = vld [vmem:[%s2933_s14 + $0x204] sm:$0xf] }
 0x103   : > { %v1773_v36 = vadd.f32 %v1772_v7, %v1604_v32  ;;  %v1437_v44 = vadd.f32 %v1436_v34, %v1268_v37  ;;  %v2288_v7 = vld [vmem:[%s2933_s14 + $0x1e8] sm:$0xf]  ;;  %v2759_v32 = vld [vmem:[%s2933_s14 + $0x20c] sm:$0xf0]  ;;  %v2298_v34 = vld [vmem:[%s2933_s14 + $0x210] sm:$0xf0] }
 0x104   : > { %v2289_v18 = vor.u32 %v2756_v8, %v2288_v7  ;;  %v2297_v41 = vor.u32 %v2759_v32, %v2296_v31  ;;  %v2301_v42 = vor.u32 %v2757_v33, %v2298_v34  ;;  %v2770_v31 = vld [vmem:[%s2933_s14 + $0x26c] sm:$0xf]  ;;  %v2354_v32 = vld [vmem:[%s2933_s14 + $0x278] sm:$0xf0] }
 0x105   : > { %1918 = vst.msk [vmem:[%s3077_s29 + $0x50] sm:$0xff] %vm1907_vm1, %v1773_v36  ;;  %v1779_v55 = vpop.f32.mrf.mxu3  ;;  %v2760_v36 = vld [vmem:[%s2933_s14 + $0x214] sm:$0xf0] }
 0x108   : > { %v1605_v47 = vpop.f32.mrf.mxu2  ;;  %v1270_v51 = vpop.f32.mrf.mxu0 }
 0x109   : > { %v1606_v50 = vadd.f32 %v1605_v47, %v1437_v44  ;;  %v1439_v52 = vpop.f32.mrf.mxu1  ;;  %v1271_v54 = vadd.f32 %v3065_v3, %v1270_v51 }
 0x10a   : > { %2673 = vmatmul.msk.bf16.gmra.mxu3 %vm1134_vm0, %v2293_v56 }
 0x10b   : > { %v1775_v57 = vadd.f32 %v1774_v27, %v1606_v50  ;;  %1309 = vmatmul.bf16.gmra.mxu0 %v2265_v48  ;;  %v1440_v58 = vadd.f32 %v1439_v52, %v1271_v54 }
 0x10c   : > { %1478 = vmatmul.bf16.gmra.mxu1 %v2269_v49  ;;  %v2325_v49 = vor.u32 %v2762_v38, %v2322_v39 }
 0x10d   : > { %1919 = vst.msk [vmem:[%s3077_s29 + $0x58] sm:$0xff] %vm1907_vm1, %v1775_v57  ;;  %1647 = vmatmul.bf16.gmra.mxu2 %v2273_v53  ;;  %v1782_v63 = vpop.f32.mrf.mxu3 }
 0x110   : > { %v1608_v59 = vpop.f32.mrf.mxu2  ;;  %v1272_v61 = vpop.f32.mrf.mxu0 }
 0x111   : > { %v1609_v60 = vadd.f32 %v1608_v59, %v1440_v58  ;;  %v1441_v62 = vpop.f32.mrf.mxu1  ;;  %v1273_v1 = vadd.f32 %v3065_v3, %v1272_v61  ;;  %v2312_v59 = vld [vmem:[%s2933_s14 + $0x220] sm:$0xf]  ;;  %v2761_v61 = vld [vmem:[%s2933_s14 + $0x224] sm:$0xf] }
 0x113   : > { %v1778_v0 = vadd.f32 %v1777_v35, %v1609_v60  ;;  %v1442_v9 = vadd.f32 %v1441_v62, %v1273_v1  ;;  %v2304_v35 = vld [vmem:[%s2933_s14 + $0x208] sm:$0xf]  ;;  %v2763_v60 = vld [vmem:[%s2933_s14 + $0x22c] sm:$0xf0]  ;;  %v2314_v62 = vld [vmem:[%s2933_s14 + $0x230] sm:$0xf0] }
 0x114   : > { %v2305_v46 = vor.u32 %v2760_v36, %v2304_v35  ;;  %v2313_v6 = vor.u32 %v2763_v60, %v2312_v59  ;;  %v2317_v7 = vor.u32 %v2761_v61, %v2314_v62  ;;  %v2774_v59 = vld [vmem:[%s2933_s14 + $0x28c] sm:$0xf]  ;;  %v2370_v60 = vld [vmem:[%s2933_s14 + $0x298] sm:$0xf0] }
 0x115   : > { %1920 = vst.msk [vmem:[%s3077_s29 + $0x60] sm:$0xff] %vm1907_vm1, %v1778_v0  ;;  %v1784_v20 = vpop.f32.mrf.mxu3  ;;  %v2764_v0 = vld [vmem:[%s2933_s14 + $0x234] sm:$0xf0] }
 0x118   : > { %v1610_v12 = vpop.f32.mrf.mxu2  ;;  %v1275_v16 = vpop.f32.mrf.mxu0 }
 0x119   : > { %v1611_v15 = vadd.f32 %v1610_v12, %v1442_v9  ;;  %v1444_v17 = vpop.f32.mrf.mxu1  ;;  %v1276_v19 = vadd.f32 %v3065_v3, %v1275_v16 }
 0x11a   : > { %2674 = vmatmul.msk.bf16.gmra.mxu3 %vm1134_vm0, %v2309_v21 }
 0x11b   : > { %v1780_v22 = vadd.f32 %v1779_v55, %v1611_v15  ;;  %1314 = vmatmul.bf16.gmra.mxu0 %v2281_v13  ;;  %v1445_v23 = vadd.f32 %v1444_v17, %v1276_v19 }
 0x11c   : > { %1483 = vmatmul.bf16.gmra.mxu1 %v2285_v14  ;;  %v2341_v14 = vor.u32 %v2766_v2, %v2338_v4 }
 0x11d   : > { %1921 = vst.msk [vmem:[%s3077_s29 + $0x68] sm:$0xff] %vm1907_vm1, %v1780_v22  ;;  %1652 = vmatmul.bf16.gmra.mxu2 %v2289_v18  ;;  %v1787_v28 = vpop.f32.mrf.mxu3 }
 0x120   : > { %v1613_v24 = vpop.f32.mrf.mxu2  ;;  %v1277_v26 = vpop.f32.mrf.mxu0 }
 0x121   : > { %v1614_v25 = vadd.f32 %v1613_v24, %v1445_v23  ;;  %v1446_v27 = vpop.f32.mrf.mxu1  ;;  %v1278_v30 = vadd.f32 %v3065_v3, %v1277_v26  ;;  %v2328_v24 = vld [vmem:[%s2933_s14 + $0x240] sm:$0xf]  ;;  %v2765_v26 = vld [vmem:[%s2933_s14 + $0x244] sm:$0xf] }
 0x123   : > { %v1783_v29 = vadd.f32 %v1782_v63, %v1614_v25  ;;  %v1447_v37 = vadd.f32 %v1446_v27, %v1278_v30  ;;  %v2320_v63 = vld [vmem:[%s2933_s14 + $0x228] sm:$0xf]  ;;  %v2767_v25 = vld [vmem:[%s2933_s14 + $0x24c] sm:$0xf0]  ;;  %v2330_v27 = vld [vmem:[%s2933_s14 + $0x250] sm:$0xf0] }
 0x124   : > { %v2321_v11 = vor.u32 %v2764_v0, %v2320_v63  ;;  %v2329_v34 = vor.u32 %v2767_v25, %v2328_v24  ;;  %v2333_v35 = vor.u32 %v2765_v26, %v2330_v27  ;;  %v2778_v24 = vld [vmem:[%s2933_s14 + $0x2ac] sm:$0xf]  ;;  %v2386_v25 = vld [vmem:[%s2933_s14 + $0x2b8] sm:$0xf0] }
 0x125   : > { %1922 = vst.msk [vmem:[%s3077_s29 + $0x70] sm:$0xff] %vm1907_vm1, %v1783_v29  ;;  %v1789_v48 = vpop.f32.mrf.mxu3  ;;  %v2768_v29 = vld [vmem:[%s2933_s14 + $0x254] sm:$0xf0] }
 0x128   : > { %v1615_v40 = vpop.f32.mrf.mxu2  ;;  %v1280_v44 = vpop.f32.mrf.mxu0 }
 0x129   : > { %v1616_v43 = vadd.f32 %v1615_v40, %v1447_v37  ;;  %v1449_v45 = vpop.f32.mrf.mxu1  ;;  %v1281_v47 = vadd.f32 %v3065_v3, %v1280_v44 }
 0x12a   : > { %2675 = vmatmul.msk.bf16.gmra.mxu3 %vm1134_vm0, %v2325_v49 }
 0x12b   : > { %v1785_v50 = vadd.f32 %v1784_v20, %v1616_v43  ;;  %1319 = vmatmul.bf16.gmra.mxu0 %v2297_v41  ;;  %v1450_v51 = vadd.f32 %v1449_v45, %v1281_v47 }
 0x12c   : > { %1488 = vmatmul.bf16.gmra.mxu1 %v2301_v42  ;;  %v2357_v42 = vor.u32 %v2770_v31, %v2354_v32 }
 0x12d   : > { %1923 = vst.msk [vmem:[%s3077_s29 + $0x78] sm:$0xff] %vm1907_vm1, %v1785_v50  ;;  %1657 = vmatmul.bf16.gmra.mxu2 %v2305_v46  ;;  %v1792_v56 = vpop.f32.mrf.mxu3 }
 0x130   : > { %v1618_v52 = vpop.f32.mrf.mxu2  ;;  %v1282_v54 = vpop.f32.mrf.mxu0 }
 0x131   : > { %v1619_v53 = vadd.f32 %v1618_v52, %v1450_v51  ;;  %v1451_v55 = vpop.f32.mrf.mxu1  ;;  %v1283_v58 = vadd.f32 %v3065_v3, %v1282_v54  ;;  %v2344_v52 = vld [vmem:[%s2933_s14 + $0x260] sm:$0xf]  ;;  %v2769_v54 = vld [vmem:[%s2933_s14 + $0x264] sm:$0xf] }
 0x133   : > { %v1788_v57 = vadd.f32 %v1787_v28, %v1619_v53  ;;  %v1452_v1 = vadd.f32 %v1451_v55, %v1283_v58  ;;  %v2336_v28 = vld [vmem:[%s2933_s14 + $0x248] sm:$0xf]  ;;  %v2771_v53 = vld [vmem:[%s2933_s14 + $0x26c] sm:$0xf0]  ;;  %v2346_v55 = vld [vmem:[%s2933_s14 + $0x270] sm:$0xf0] }
 0x134   : > { %v2337_v39 = vor.u32 %v2768_v29, %v2336_v28  ;;  %v2345_v62 = vor.u32 %v2771_v53, %v2344_v52  ;;  %v2349_v63 = vor.u32 %v2769_v54, %v2346_v55  ;;  %v2782_v52 = vld [vmem:[%s2933_s14 + $0x2cc] sm:$0xf]  ;;  %v2402_v53 = vld [vmem:[%s2933_s14 + $0x2d8] sm:$0xf0] }
 0x135   : > { %1924 = vst.msk [vmem:[%s3077_s29 + $0x80] sm:$0xff] %vm1907_vm1, %v1788_v57  ;;  %v1794_v13 = vpop.f32.mrf.mxu3  ;;  %v2772_v57 = vld [vmem:[%s2933_s14 + $0x274] sm:$0xf0] }
 0x138   : > { %v1620_v5 = vpop.f32.mrf.mxu2  ;;  %v1285_v9 = vpop.f32.mrf.mxu0 }
 0x139   : > { %v1621_v8 = vadd.f32 %v1620_v5, %v1452_v1  ;;  %v1454_v10 = vpop.f32.mrf.mxu1  ;;  %v1286_v12 = vadd.f32 %v3065_v3, %v1285_v9 }
 0x13a   : > { %2676 = vmatmul.msk.bf16.gmra.mxu3 %vm1134_vm0, %v2341_v14 }
 0x13b   : > { %v1790_v15 = vadd.f32 %v1789_v48, %v1621_v8  ;;  %1324 = vmatmul.bf16.gmra.mxu0 %v2313_v6  ;;  %v1455_v16 = vadd.f32 %v1454_v10, %v1286_v12 }
 0x13c   : > { %1493 = vmatmul.bf16.gmra.mxu1 %v2317_v7  ;;  %v2373_v7 = vor.u32 %v2774_v59, %v2370_v60 }
 0x13d   : > { %1925 = vst.msk [vmem:[%s3077_s29 + $0x88] sm:$0xff] %vm1907_vm1, %v1790_v15  ;;  %1662 = vmatmul.bf16.gmra.mxu2 %v2321_v11  ;;  %v1797_v21 = vpop.f32.mrf.mxu3 }
 0x140   : > { %v1623_v17 = vpop.f32.mrf.mxu2  ;;  %v1287_v19 = vpop.f32.mrf.mxu0 }
 0x141   : > { %v1624_v18 = vadd.f32 %v1623_v17, %v1455_v16  ;;  %v1456_v20 = vpop.f32.mrf.mxu1  ;;  %v1288_v23 = vadd.f32 %v3065_v3, %v1287_v19  ;;  %v2360_v17 = vld [vmem:[%s2933_s14 + $0x280] sm:$0xf]  ;;  %v2773_v19 = vld [vmem:[%s2933_s14 + $0x284] sm:$0xf] }
 0x143   : > { %v1793_v22 = vadd.f32 %v1792_v56, %v1624_v18  ;;  %v1457_v30 = vadd.f32 %v1456_v20, %v1288_v23  ;;  %v2352_v56 = vld [vmem:[%s2933_s14 + $0x268] sm:$0xf]  ;;  %v2775_v18 = vld [vmem:[%s2933_s14 + $0x28c] sm:$0xf0]  ;;  %v2362_v20 = vld [vmem:[%s2933_s14 + $0x290] sm:$0xf0] }
 0x144   : > { %v2353_v4 = vor.u32 %v2772_v57, %v2352_v56  ;;  %v2361_v27 = vor.u32 %v2775_v18, %v2360_v17  ;;  %v2365_v28 = vor.u32 %v2773_v19, %v2362_v20  ;;  %v2786_v17 = vld [vmem:[%s2933_s14 + $0x2ec] sm:$0xf]  ;;  %v2418_v18 = vld [vmem:[%s2933_s14 + $0x2f8] sm:$0xf0] }
 0x145   : > { %1926 = vst.msk [vmem:[%s3077_s29 + $0x90] sm:$0xff] %vm1907_vm1, %v1793_v22  ;;  %v1799_v41 = vpop.f32.mrf.mxu3  ;;  %v2776_v22 = vld [vmem:[%s2933_s14 + $0x294] sm:$0xf0] }
 0x148   : > { %v1625_v33 = vpop.f32.mrf.mxu2  ;;  %v1290_v37 = vpop.f32.mrf.mxu0 }
 0x149   : > { %v1626_v36 = vadd.f32 %v1625_v33, %v1457_v30  ;;  %v1459_v38 = vpop.f32.mrf.mxu1  ;;  %v1291_v40 = vadd.f32 %v3065_v3, %v1290_v37 }
 0x14a   : > { %2677 = vmatmul.msk.bf16.gmra.mxu3 %vm1134_vm0, %v2357_v42 }
 0x14b   : > { %v1795_v43 = vadd.f32 %v1794_v13, %v1626_v36  ;;  %1329 = vmatmul.bf16.gmra.mxu0 %v2329_v34  ;;  %v1460_v44 = vadd.f32 %v1459_v38, %v1291_v40 }
 0x14c   : > { %1498 = vmatmul.bf16.gmra.mxu1 %v2333_v35  ;;  %v2389_v35 = vor.u32 %v2778_v24, %v2386_v25 }
 0x14d   : > { %1927 = vst.msk [vmem:[%s3077_s29 + $0x98] sm:$0xff] %vm1907_vm1, %v1795_v43  ;;  %1667 = vmatmul.bf16.gmra.mxu2 %v2337_v39  ;;  %v1802_v49 = vpop.f32.mrf.mxu3 }
 0x150   : > { %v1628_v45 = vpop.f32.mrf.mxu2  ;;  %v1292_v47 = vpop.f32.mrf.mxu0 }
 0x151   : > { %v1629_v46 = vadd.f32 %v1628_v45, %v1460_v44  ;;  %v1461_v48 = vpop.f32.mrf.mxu1  ;;  %v1293_v51 = vadd.f32 %v3065_v3, %v1292_v47  ;;  %v2376_v45 = vld [vmem:[%s2933_s14 + $0x2a0] sm:$0xf]  ;;  %v2777_v47 = vld [vmem:[%s2933_s14 + $0x2a4] sm:$0xf] }
 0x153   : > { %v1798_v50 = vadd.f32 %v1797_v21, %v1629_v46  ;;  %v1462_v58 = vadd.f32 %v1461_v48, %v1293_v51  ;;  %v2368_v21 = vld [vmem:[%s2933_s14 + $0x288] sm:$0xf]  ;;  %v2779_v46 = vld [vmem:[%s2933_s14 + $0x2ac] sm:$0xf0]  ;;  %v2378_v48 = vld [vmem:[%s2933_s14 + $0x2b0] sm:$0xf0] }
 0x154   : > { %v2369_v32 = vor.u32 %v2776_v22, %v2368_v21  ;;  %v2377_v55 = vor.u32 %v2779_v46, %v2376_v45  ;;  %v2381_v56 = vor.u32 %v2777_v47, %v2378_v48  ;;  %v2790_v45 = vld [vmem:[%s2933_s14 + $0x30c] sm:$0xf]  ;;  %v2434_v46 = vld [vmem:[%s2933_s14 + $0x318] sm:$0xf0] }
 0x155   : > { %1928 = vst.msk [vmem:[%s3077_s29 + $0xa0] sm:$0xff] %vm1907_vm1, %v1798_v50  ;;  %v1804_v6 = vpop.f32.mrf.mxu3  ;;  %v2780_v50 = vld [vmem:[%s2933_s14 + $0x2b4] sm:$0xf0] }
 0x158   : > { %v1630_v61 = vpop.f32.mrf.mxu2  ;;  %v1295_v1 = vpop.f32.mrf.mxu0 }
 0x159   : > { %v1631_v0 = vadd.f32 %v1630_v61, %v1462_v58  ;;  %v1464_v2 = vpop.f32.mrf.mxu1  ;;  %v1296_v5 = vadd.f32 %v3065_v3, %v1295_v1 }
 0x15a   : > { %2678 = vmatmul.msk.bf16.gmra.mxu3 %vm1134_vm0, %v2373_v7 }
 0x15b   : > { %v1800_v8 = vadd.f32 %v1799_v41, %v1631_v0  ;;  %1334 = vmatmul.bf16.gmra.mxu0 %v2345_v62  ;;  %v1465_v9 = vadd.f32 %v1464_v2, %v1296_v5 }
 0x15c   : > { %1503 = vmatmul.bf16.gmra.mxu1 %v2349_v63  ;;  %v2405_v63 = vor.u32 %v2782_v52, %v2402_v53 }
 0x15d   : > { %1929 = vst.msk [vmem:[%s3077_s29 + $0xa8] sm:$0xff] %vm1907_vm1, %v1800_v8  ;;  %1672 = vmatmul.bf16.gmra.mxu2 %v2353_v4  ;;  %v1807_v14 = vpop.f32.mrf.mxu3 }
 0x160   : > { %v1633_v10 = vpop.f32.mrf.mxu2  ;;  %v1297_v12 = vpop.f32.mrf.mxu0 }
 0x161   : > { %v1634_v11 = vadd.f32 %v1633_v10, %v1465_v9  ;;  %v1466_v13 = vpop.f32.mrf.mxu1  ;;  %v1298_v16 = vadd.f32 %v3065_v3, %v1297_v12  ;;  %v2392_v10 = vld [vmem:[%s2933_s14 + $0x2c0] sm:$0xf]  ;;  %v2781_v12 = vld [vmem:[%s2933_s14 + $0x2c4] sm:$0xf] }
 0x163   : > { %v1803_v15 = vadd.f32 %v1802_v49, %v1634_v11  ;;  %v1467_v23 = vadd.f32 %v1466_v13, %v1298_v16  ;;  %v2384_v49 = vld [vmem:[%s2933_s14 + $0x2a8] sm:$0xf]  ;;  %v2783_v11 = vld [vmem:[%s2933_s14 + $0x2cc] sm:$0xf0]  ;;  %v2394_v13 = vld [vmem:[%s2933_s14 + $0x2d0] sm:$0xf0] }
 0x164   : > { %v2385_v60 = vor.u32 %v2780_v50, %v2384_v49  ;;  %v2393_v20 = vor.u32 %v2783_v11, %v2392_v10  ;;  %v2397_v21 = vor.u32 %v2781_v12, %v2394_v13  ;;  %v2794_v10 = vld [vmem:[%s2933_s14 + $0x32c] sm:$0xf]  ;;  %v2450_v11 = vld [vmem:[%s2933_s14 + $0x338] sm:$0xf0] }
 0x165   : > { %1930 = vst.msk [vmem:[%s3077_s29 + $0xb0] sm:$0xff] %vm1907_vm1, %v1803_v15  ;;  %v1809_v34 = vpop.f32.mrf.mxu3  ;;  %v2784_v15 = vld [vmem:[%s2933_s14 + $0x2d4] sm:$0xf0] }
 0x168   : > { %v1635_v26 = vpop.f32.mrf.mxu2  ;;  %v1300_v30 = vpop.f32.mrf.mxu0 }
 0x169   : > { %v1636_v29 = vadd.f32 %v1635_v26, %v1467_v23  ;;  %v1469_v31 = vpop.f32.mrf.mxu1  ;;  %v1301_v33 = vadd.f32 %v3065_v3, %v1300_v30 }
 0x16a   : > { %2679 = vmatmul.msk.bf16.gmra.mxu3 %vm1134_vm0, %v2389_v35 }
 0x16b   : > { %v1805_v36 = vadd.f32 %v1804_v6, %v1636_v29  ;;  %1339 = vmatmul.bf16.gmra.mxu0 %v2361_v27  ;;  %v1470_v37 = vadd.f32 %v1469_v31, %v1301_v33 }
 0x16c   : > { %1508 = vmatmul.bf16.gmra.mxu1 %v2365_v28  ;;  %v2421_v28 = vor.u32 %v2786_v17, %v2418_v18 }
 0x16d   : > { %1931 = vst.msk [vmem:[%s3077_s29 + $0xb8] sm:$0xff] %vm1907_vm1, %v1805_v36  ;;  %1677 = vmatmul.bf16.gmra.mxu2 %v2369_v32  ;;  %v1812_v42 = vpop.f32.mrf.mxu3 }
 0x170   : > { %v1638_v38 = vpop.f32.mrf.mxu2  ;;  %v1302_v40 = vpop.f32.mrf.mxu0 }
 0x171   : > { %v1639_v39 = vadd.f32 %v1638_v38, %v1470_v37  ;;  %v1471_v41 = vpop.f32.mrf.mxu1  ;;  %v1303_v44 = vadd.f32 %v3065_v3, %v1302_v40  ;;  %v2408_v38 = vld [vmem:[%s2933_s14 + $0x2e0] sm:$0xf]  ;;  %v2785_v40 = vld [vmem:[%s2933_s14 + $0x2e4] sm:$0xf] }
 0x173   : > { %v1808_v43 = vadd.f32 %v1807_v14, %v1639_v39  ;;  %v1472_v51 = vadd.f32 %v1471_v41, %v1303_v44  ;;  %v2400_v14 = vld [vmem:[%s2933_s14 + $0x2c8] sm:$0xf]  ;;  %v2787_v39 = vld [vmem:[%s2933_s14 + $0x2ec] sm:$0xf0]  ;;  %v2410_v41 = vld [vmem:[%s2933_s14 + $0x2f0] sm:$0xf0] }
 0x174   : > { %v2401_v25 = vor.u32 %v2784_v15, %v2400_v14  ;;  %v2409_v48 = vor.u32 %v2787_v39, %v2408_v38  ;;  %v2413_v49 = vor.u32 %v2785_v40, %v2410_v41  ;;  %v2798_v38 = vld [vmem:[%s2933_s14 + $0x34c] sm:$0xf]  ;;  %v2466_v39 = vld [vmem:[%s2933_s14 + $0x358] sm:$0xf0] }
 0x175   : > { %1932 = vst.msk [vmem:[%s3077_s29 + $0xc0] sm:$0xff] %vm1907_vm1, %v1808_v43  ;;  %v1814_v62 = vpop.f32.mrf.mxu3  ;;  %v2788_v43 = vld [vmem:[%s2933_s14 + $0x2f4] sm:$0xf0] }
 0x178   : > { %v1640_v54 = vpop.f32.mrf.mxu2  ;;  %v1305_v58 = vpop.f32.mrf.mxu0 }
 0x179   : > { %v1641_v57 = vadd.f32 %v1640_v54, %v1472_v51  ;;  %v1474_v59 = vpop.f32.mrf.mxu1  ;;  %v1306_v61 = vadd.f32 %v3065_v3, %v1305_v58 }
 0x17a   : > { %2680 = vmatmul.msk.bf16.gmra.mxu3 %vm1134_vm0, %v2405_v63 }
 0x17b   : > { %v1810_v0 = vadd.f32 %v1809_v34, %v1641_v57  ;;  %1344 = vmatmul.bf16.gmra.mxu0 %v2377_v55  ;;  %v1475_v1 = vadd.f32 %v1474_v59, %v1306_v61 }
 0x17c   : > { %1513 = vmatmul.bf16.gmra.mxu1 %v2381_v56  ;;  %v2437_v56 = vor.u32 %v2790_v45, %v2434_v46 }
 0x17d   : > { %1933 = vst.msk [vmem:[%s3077_s29 + $0xc8] sm:$0xff] %vm1907_vm1, %v1810_v0  ;;  %1682 = vmatmul.bf16.gmra.mxu2 %v2385_v60  ;;  %v1817_v7 = vpop.f32.mrf.mxu3 }
 0x180   : > { %v1643_v2 = vpop.f32.mrf.mxu2  ;;  %v1307_v5 = vpop.f32.mrf.mxu0 }
 0x181   : > { %v1644_v4 = vadd.f32 %v1643_v2, %v1475_v1  ;;  %v1476_v6 = vpop.f32.mrf.mxu1  ;;  %v1308_v9 = vadd.f32 %v3065_v3, %v1307_v5  ;;  %v2424_v2 = vld [vmem:[%s2933_s14 + $0x300] sm:$0xf]  ;;  %v2789_v5 = vld [vmem:[%s2933_s14 + $0x304] sm:$0xf] }
 0x183   : > { %v1813_v8 = vadd.f32 %v1812_v42, %v1644_v4  ;;  %v1477_v16 = vadd.f32 %v1476_v6, %v1308_v9  ;;  %v2416_v42 = vld [vmem:[%s2933_s14 + $0x2e8] sm:$0xf]  ;;  %v2791_v4 = vld [vmem:[%s2933_s14 + $0x30c] sm:$0xf0]  ;;  %v2426_v6 = vld [vmem:[%s2933_s14 + $0x310] sm:$0xf0] }
 0x184   : > { %v2417_v53 = vor.u32 %v2788_v43, %v2416_v42  ;;  %v2425_v13 = vor.u32 %v2791_v4, %v2424_v2  ;;  %v2429_v14 = vor.u32 %v2789_v5, %v2426_v6  ;;  %v2802_v2 = vld [vmem:[%s2933_s14 + $0x36c] sm:$0xf]  ;;  %v2482_v4 = vld [vmem:[%s2933_s14 + $0x378] sm:$0xf0] }
 0x185   : > { %1934 = vst.msk [vmem:[%s3077_s29 + $0xd0] sm:$0xff] %vm1907_vm1, %v1813_v8  ;;  %v1819_v27 = vpop.f32.mrf.mxu3  ;;  %v2792_v8 = vld [vmem:[%s2933_s14 + $0x314] sm:$0xf0] }
 0x188   : > { %v1645_v19 = vpop.f32.mrf.mxu2  ;;  %v1310_v23 = vpop.f32.mrf.mxu0 }
 0x189   : > { %v1646_v22 = vadd.f32 %v1645_v19, %v1477_v16  ;;  %v1479_v24 = vpop.f32.mrf.mxu1  ;;  %v1311_v26 = vadd.f32 %v3065_v3, %v1310_v23 }
 0x18a   : > { %2681 = vmatmul.msk.bf16.gmra.mxu3 %vm1134_vm0, %v2421_v28 }
 0x18b   : > { %v1815_v29 = vadd.f32 %v1814_v62, %v1646_v22  ;;  %1349 = vmatmul.bf16.gmra.mxu0 %v2393_v20  ;;  %v1480_v30 = vadd.f32 %v1479_v24, %v1311_v26 }
 0x18c   : > { %1518 = vmatmul.bf16.gmra.mxu1 %v2397_v21  ;;  %v2453_v21 = vor.u32 %v2794_v10, %v2450_v11 }
 0x18d   : > { %1935 = vst.msk [vmem:[%s3077_s29 + $0xd8] sm:$0xff] %vm1907_vm1, %v1815_v29  ;;  %1687 = vmatmul.bf16.gmra.mxu2 %v2401_v25  ;;  %v1822_v35 = vpop.f32.mrf.mxu3 }
 0x190   : > { %v1648_v31 = vpop.f32.mrf.mxu2  ;;  %v1312_v33 = vpop.f32.mrf.mxu0 }
 0x191   : > { %v1649_v32 = vadd.f32 %v1648_v31, %v1480_v30  ;;  %v1481_v34 = vpop.f32.mrf.mxu1  ;;  %v1313_v37 = vadd.f32 %v3065_v3, %v1312_v33  ;;  %v3303_v3 = vld [vmem:[%s3484_s2] ss:$0 sm:$0xff]  ;;  %v2793_v33 = vld [vmem:[%s2933_s14 + $0x324] sm:$0xf] }
 0x192   : > { %v2440_v31 = vld [vmem:[%s2933_s14 + $0x320] sm:$0xf] }
 0x193   : > { %v1818_v36 = vadd.f32 %v1817_v7, %v1649_v32  ;;  %v1482_v44 = vadd.f32 %v1481_v34, %v1313_v37  ;;  %v2432_v7 = vld [vmem:[%s2933_s14 + $0x308] sm:$0xf]  ;;  %v2795_v32 = vld [vmem:[%s2933_s14 + $0x32c] sm:$0xf0]  ;;  %v2442_v34 = vld [vmem:[%s2933_s14 + $0x330] sm:$0xf0] }
 0x194   : > { %v2433_v18 = vor.u32 %v2792_v8, %v2432_v7  ;;  %v2441_v41 = vor.u32 %v2795_v32, %v2440_v31  ;;  %v2445_v42 = vor.u32 %v2793_v33, %v2442_v34  ;;  %v2806_v31 = vld [vmem:[%s2933_s14 + $0x38c] sm:$0xf]  ;;  %v2498_v32 = vld [vmem:[%s2933_s14 + $0x398] sm:$0xf0] }
 0x195   : > { %1936 = vst.msk [vmem:[%s3077_s29 + $0xe0] sm:$0xff] %vm1907_vm1, %v1818_v36  ;;  %v1824_v55 = vpop.f32.mrf.mxu3  ;;  %v2796_v36 = vld [vmem:[%s2933_s14 + $0x334] sm:$0xf0] }
 0x198   : > { %v1650_v47 = vpop.f32.mrf.mxu2  ;;  %v1315_v51 = vpop.f32.mrf.mxu0 }
 0x199   : > { %v1651_v50 = vadd.f32 %v1650_v47, %v1482_v44  ;;  %v1484_v52 = vpop.f32.mrf.mxu1  ;;  %v1316_v54 = vadd.f32 %v3303_v3, %v1315_v51 }
 0x19a   : > { %2682 = vmatmul.msk.bf16.gmra.mxu3 %vm1134_vm0, %v2437_v56 }
 0x19b   : > { %v1820_v57 = vadd.f32 %v1819_v27, %v1651_v50  ;;  %1354 = vmatmul.bf16.gmra.mxu0 %v2409_v48  ;;  %v1485_v58 = vadd.f32 %v1484_v52, %v1316_v54 }
 0x19c   : > { %1523 = vmatmul.bf16.gmra.mxu1 %v2413_v49  ;;  %v2469_v49 = vor.u32 %v2798_v38, %v2466_v39 }
 0x19d   : > { %1937 = vst.msk [vmem:[%s3077_s29 + $0xe8] sm:$0xff] %vm1907_vm1, %v1820_v57  ;;  %1692 = vmatmul.bf16.gmra.mxu2 %v2417_v53  ;;  %v1827_v63 = vpop.f32.mrf.mxu3 }
 0x1a0   : > { %v1653_v59 = vpop.f32.mrf.mxu2  ;;  %v1317_v61 = vpop.f32.mrf.mxu0 }
 0x1a1   : > { %v1654_v60 = vadd.f32 %v1653_v59, %v1485_v58  ;;  %v1486_v62 = vpop.f32.mrf.mxu1  ;;  %v1318_v1 = vadd.f32 %v3303_v3, %v1317_v61  ;;  %v2456_v59 = vld [vmem:[%s2933_s14 + $0x340] sm:$0xf]  ;;  %v2797_v61 = vld [vmem:[%s2933_s14 + $0x344] sm:$0xf] }
 0x1a3   : > { %v1823_v0 = vadd.f32 %v1822_v35, %v1654_v60  ;;  %v1487_v9 = vadd.f32 %v1486_v62, %v1318_v1  ;;  %v2448_v35 = vld [vmem:[%s2933_s14 + $0x328] sm:$0xf]  ;;  %v2799_v60 = vld [vmem:[%s2933_s14 + $0x34c] sm:$0xf0]  ;;  %v2458_v62 = vld [vmem:[%s2933_s14 + $0x350] sm:$0xf0] }
 0x1a4   : > { %v2449_v46 = vor.u32 %v2796_v36, %v2448_v35  ;;  %v2457_v6 = vor.u32 %v2799_v60, %v2456_v59  ;;  %v2461_v7 = vor.u32 %v2797_v61, %v2458_v62  ;;  %v2810_v59 = vld [vmem:[%s2933_s14 + $0x3ac] sm:$0xf]  ;;  %v2514_v60 = vld [vmem:[%s2933_s14 + $0x3b8] sm:$0xf0] }
 0x1a5   : > { %1938 = vst.msk [vmem:[%s3077_s29 + $0xf0] sm:$0xff] %vm1907_vm1, %v1823_v0  ;;  %v1829_v20 = vpop.f32.mrf.mxu3  ;;  %v2800_v0 = vld [vmem:[%s2933_s14 + $0x354] sm:$0xf0] }
 0x1a8   : > { %v1655_v12 = vpop.f32.mrf.mxu2  ;;  %v1320_v16 = vpop.f32.mrf.mxu0 }
 0x1a9   : > { %v1656_v15 = vadd.f32 %v1655_v12, %v1487_v9  ;;  %v1489_v17 = vpop.f32.mrf.mxu1  ;;  %v1321_v19 = vadd.f32 %v3303_v3, %v1320_v16 }
 0x1aa   : > { %2683 = vmatmul.msk.bf16.gmra.mxu3 %vm1134_vm0, %v2453_v21 }
 0x1ab   : > { %v1825_v22 = vadd.f32 %v1824_v55, %v1656_v15  ;;  %1359 = vmatmul.bf16.gmra.mxu0 %v2425_v13  ;;  %v1490_v23 = vadd.f32 %v1489_v17, %v1321_v19 }
 0x1ac   : > { %1528 = vmatmul.bf16.gmra.mxu1 %v2429_v14  ;;  %v2485_v14 = vor.u32 %v2802_v2, %v2482_v4 }
 0x1ad   : > { %1939 = vst.msk [vmem:[%s3077_s29 + $0xf8] sm:$0xff] %vm1907_vm1, %v1825_v22  ;;  %1697 = vmatmul.bf16.gmra.mxu2 %v2433_v18  ;;  %v1832_v28 = vpop.f32.mrf.mxu3 }
 0x1b0   : > { %v1658_v24 = vpop.f32.mrf.mxu2  ;;  %v1322_v26 = vpop.f32.mrf.mxu0 }
 0x1b1   : > { %v1659_v25 = vadd.f32 %v1658_v24, %v1490_v23  ;;  %v1491_v27 = vpop.f32.mrf.mxu1  ;;  %v1323_v30 = vadd.f32 %v3303_v3, %v1322_v26  ;;  %v2472_v24 = vld [vmem:[%s2933_s14 + $0x360] sm:$0xf]  ;;  %v2801_v26 = vld [vmem:[%s2933_s14 + $0x364] sm:$0xf] }
 0x1b3   : > { %v1828_v29 = vadd.f32 %v1827_v63, %v1659_v25  ;;  %v1492_v37 = vadd.f32 %v1491_v27, %v1323_v30  ;;  %v2464_v63 = vld [vmem:[%s2933_s14 + $0x348] sm:$0xf]  ;;  %v2803_v25 = vld [vmem:[%s2933_s14 + $0x36c] sm:$0xf0]  ;;  %v2474_v27 = vld [vmem:[%s2933_s14 + $0x370] sm:$0xf0] }
 0x1b4   : > { %v2465_v11 = vor.u32 %v2800_v0, %v2464_v63  ;;  %v2473_v34 = vor.u32 %v2803_v25, %v2472_v24  ;;  %v2477_v35 = vor.u32 %v2801_v26, %v2474_v27  ;;  %v2814_v24 = vld [vmem:[%s2933_s14 + $0x3cc] sm:$0xf]  ;;  %v2530_v25 = vld [vmem:[%s2933_s14 + $0x3d8] sm:$0xf0] }
 0x1b5   : > { %1940 = vst.msk [vmem:[%s3077_s29 + $0x100] sm:$0xff] %vm1907_vm1, %v1828_v29  ;;  %v1834_v48 = vpop.f32.mrf.mxu3  ;;  %v2804_v29 = vld [vmem:[%s2933_s14 + $0x374] sm:$0xf0] }
 0x1b8   : > { %v1660_v40 = vpop.f32.mrf.mxu2  ;;  %v1325_v44 = vpop.f32.mrf.mxu0 }
 0x1b9   : > { %v1661_v43 = vadd.f32 %v1660_v40, %v1492_v37  ;;  %v1494_v45 = vpop.f32.mrf.mxu1  ;;  %v1326_v47 = vadd.f32 %v3303_v3, %v1325_v44 }
 0x1ba   : > { %2684 = vmatmul.msk.bf16.gmra.mxu3 %vm1134_vm0, %v2469_v49 }
 0x1bb   : > { %v1830_v50 = vadd.f32 %v1829_v20, %v1661_v43  ;;  %1364 = vmatmul.bf16.gmra.mxu0 %v2441_v41  ;;  %v1495_v51 = vadd.f32 %v1494_v45, %v1326_v47 }
 0x1bc   : > { %1533 = vmatmul.bf16.gmra.mxu1 %v2445_v42  ;;  %v2501_v42 = vor.u32 %v2806_v31, %v2498_v32 }
 0x1bd   : > { %1941 = vst.msk [vmem:[%s3077_s29 + $0x108] sm:$0xff] %vm1907_vm1, %v1830_v50  ;;  %1702 = vmatmul.bf16.gmra.mxu2 %v2449_v46  ;;  %v1837_v56 = vpop.f32.mrf.mxu3 }
 0x1c0   : > { %v1663_v52 = vpop.f32.mrf.mxu2  ;;  %v1327_v54 = vpop.f32.mrf.mxu0 }
 0x1c1   : > { %v1664_v53 = vadd.f32 %v1663_v52, %v1495_v51  ;;  %v1496_v55 = vpop.f32.mrf.mxu1  ;;  %v1328_v58 = vadd.f32 %v3303_v3, %v1327_v54  ;;  %v2488_v52 = vld [vmem:[%s2933_s14 + $0x380] sm:$0xf]  ;;  %v2805_v54 = vld [vmem:[%s2933_s14 + $0x384] sm:$0xf] }
 0x1c3   : > { %v1833_v57 = vadd.f32 %v1832_v28, %v1664_v53  ;;  %v1497_v1 = vadd.f32 %v1496_v55, %v1328_v58  ;;  %v2480_v28 = vld [vmem:[%s2933_s14 + $0x368] sm:$0xf]  ;;  %v2807_v53 = vld [vmem:[%s2933_s14 + $0x38c] sm:$0xf0]  ;;  %v2490_v55 = vld [vmem:[%s2933_s14 + $0x390] sm:$0xf0] }
 0x1c4   : > { %v2481_v39 = vor.u32 %v2804_v29, %v2480_v28  ;;  %v2489_v62 = vor.u32 %v2807_v53, %v2488_v52  ;;  %v2493_v63 = vor.u32 %v2805_v54, %v2490_v55  ;;  %v2818_v52 = vld [vmem:[%s2933_s14 + $0x3ec] sm:$0xf]  ;;  %v2546_v53 = vld [vmem:[%s2933_s14 + $0x3f8] sm:$0xf0] }
 0x1c5   : > { %1942 = vst.msk [vmem:[%s3077_s29 + $0x110] sm:$0xff] %vm1907_vm1, %v1833_v57  ;;  %v1839_v13 = vpop.f32.mrf.mxu3  ;;  %v2808_v57 = vld [vmem:[%s2933_s14 + $0x394] sm:$0xf0] }
 0x1c8   : > { %v1665_v5 = vpop.f32.mrf.mxu2  ;;  %v1330_v9 = vpop.f32.mrf.mxu0 }
 0x1c9   : > { %v1666_v8 = vadd.f32 %v1665_v5, %v1497_v1  ;;  %v1499_v10 = vpop.f32.mrf.mxu1  ;;  %v1331_v12 = vadd.f32 %v3303_v3, %v1330_v9 }
 0x1ca   : > { %2685 = vmatmul.msk.bf16.gmra.mxu3 %vm1134_vm0, %v2485_v14 }
 0x1cb   : > { %v1835_v15 = vadd.f32 %v1834_v48, %v1666_v8  ;;  %1369 = vmatmul.bf16.gmra.mxu0 %v2457_v6  ;;  %v1500_v16 = vadd.f32 %v1499_v10, %v1331_v12 }
 0x1cc   : > { %1538 = vmatmul.bf16.gmra.mxu1 %v2461_v7  ;;  %v2517_v7 = vor.u32 %v2810_v59, %v2514_v60 }
 0x1cd   : > { %1943 = vst.msk [vmem:[%s3077_s29 + $0x118] sm:$0xff] %vm1907_vm1, %v1835_v15  ;;  %1707 = vmatmul.bf16.gmra.mxu2 %v2465_v11  ;;  %v1842_v21 = vpop.f32.mrf.mxu3 }
 0x1d0   : > { %v1668_v17 = vpop.f32.mrf.mxu2  ;;  %v1332_v19 = vpop.f32.mrf.mxu0 }
 0x1d1   : > { %v1669_v18 = vadd.f32 %v1668_v17, %v1500_v16  ;;  %v1501_v20 = vpop.f32.mrf.mxu1  ;;  %v1333_v23 = vadd.f32 %v3303_v3, %v1332_v19  ;;  %v2504_v17 = vld [vmem:[%s2933_s14 + $0x3a0] sm:$0xf]  ;;  %v2809_v19 = vld [vmem:[%s2933_s14 + $0x3a4] sm:$0xf] }
 0x1d3   : > { %v1838_v22 = vadd.f32 %v1837_v56, %v1669_v18  ;;  %v1502_v30 = vadd.f32 %v1501_v20, %v1333_v23  ;;  %v2496_v56 = vld [vmem:[%s2933_s14 + $0x388] sm:$0xf]  ;;  %v2811_v18 = vld [vmem:[%s2933_s14 + $0x3ac] sm:$0xf0]  ;;  %v2506_v20 = vld [vmem:[%s2933_s14 + $0x3b0] sm:$0xf0] }
 0x1d4   : > { %v2497_v4 = vor.u32 %v2808_v57, %v2496_v56  ;;  %v2505_v27 = vor.u32 %v2811_v18, %v2504_v17  ;;  %v2509_v28 = vor.u32 %v2809_v19, %v2506_v20 }
 0x1d5   : > { %1944 = vst.msk [vmem:[%s3077_s29 + $0x120] sm:$0xff] %vm1907_vm1, %v1838_v22  ;;  %v1844_v41 = vpop.f32.mrf.mxu3  ;;  %v2812_v22 = vld [vmem:[%s2933_s14 + $0x3b4] sm:$0xf0] }
 0x1d8   : > { %v1670_v33 = vpop.f32.mrf.mxu2  ;;  %v1335_v37 = vpop.f32.mrf.mxu0 }
 0x1d9   : > { %v1671_v36 = vadd.f32 %v1670_v33, %v1502_v30  ;;  %v1504_v38 = vpop.f32.mrf.mxu1  ;;  %v1336_v40 = vadd.f32 %v3303_v3, %v1335_v37 }
 0x1da   : > { %2686 = vmatmul.msk.bf16.gmra.mxu3 %vm1134_vm0, %v2501_v42 }
 0x1db   : > { %v1840_v43 = vadd.f32 %v1839_v13, %v1671_v36  ;;  %1374 = vmatmul.bf16.gmra.mxu0 %v2473_v34  ;;  %v1505_v44 = vadd.f32 %v1504_v38, %v1336_v40 }
 0x1dc   : > { %1543 = vmatmul.bf16.gmra.mxu1 %v2477_v35  ;;  %v2533_v35 = vor.u32 %v2814_v24, %v2530_v25 }
 0x1dd   : > { %1945 = vst.msk [vmem:[%s3077_s29 + $0x128] sm:$0xff] %vm1907_vm1, %v1840_v43  ;;  %1712 = vmatmul.bf16.gmra.mxu2 %v2481_v39  ;;  %v1847_v49 = vpop.f32.mrf.mxu3 }
 0x1e0   : > { %v1673_v45 = vpop.f32.mrf.mxu2  ;;  %v1337_v47 = vpop.f32.mrf.mxu0 }
 0x1e1   : > { %v1674_v46 = vadd.f32 %v1673_v45, %v1505_v44  ;;  %v1506_v48 = vpop.f32.mrf.mxu1  ;;  %v1338_v51 = vadd.f32 %v3303_v3, %v1337_v47  ;;  %v2520_v45 = vld [vmem:[%s2933_s14 + $0x3c0] sm:$0xf]  ;;  %v2813_v47 = vld [vmem:[%s2933_s14 + $0x3c4] sm:$0xf] }
 0x1e3   : > { %v1843_v50 = vadd.f32 %v1842_v21, %v1674_v46  ;;  %v1507_v58 = vadd.f32 %v1506_v48, %v1338_v51  ;;  %v2512_v21 = vld [vmem:[%s2933_s14 + $0x3a8] sm:$0xf]  ;;  %v2815_v46 = vld [vmem:[%s2933_s14 + $0x3cc] sm:$0xf0]  ;;  %v2522_v48 = vld [vmem:[%s2933_s14 + $0x3d0] sm:$0xf0] }
 0x1e4   : > { %v2513_v32 = vor.u32 %v2812_v22, %v2512_v21  ;;  %v2521_v55 = vor.u32 %v2815_v46, %v2520_v45  ;;  %v2525_v56 = vor.u32 %v2813_v47, %v2522_v48 }
 0x1e5   : > { %1946 = vst.msk [vmem:[%s3077_s29 + $0x130] sm:$0xff] %vm1907_vm1, %v1843_v50  ;;  %v1849_v6 = vpop.f32.mrf.mxu3  ;;  %v2816_v50 = vld [vmem:[%s2933_s14 + $0x3d4] sm:$0xf0] }
 0x1e8   : > { %v1675_v61 = vpop.f32.mrf.mxu2  ;;  %v1340_v1 = vpop.f32.mrf.mxu0 }
 0x1e9   : > { %v1676_v0 = vadd.f32 %v1675_v61, %v1507_v58  ;;  %v1509_v2 = vpop.f32.mrf.mxu1  ;;  %v1341_v5 = vadd.f32 %v3303_v3, %v1340_v1 }
 0x1ea   : > { %2687 = vmatmul.msk.bf16.gmra.mxu3 %vm1134_vm0, %v2517_v7 }
 0x1eb   : > { %v1845_v8 = vadd.f32 %v1844_v41, %v1676_v0  ;;  %1379 = vmatmul.bf16.gmra.mxu0 %v2489_v62  ;;  %v1510_v9 = vadd.f32 %v1509_v2, %v1341_v5 }
 0x1ec   : > { %1548 = vmatmul.bf16.gmra.mxu1 %v2493_v63  ;;  %v2549_v63 = vor.u32 %v2818_v52, %v2546_v53 }
 0x1ed   : > { %1947 = vst.msk [vmem:[%s3077_s29 + $0x138] sm:$0xff] %vm1907_vm1, %v1845_v8  ;;  %1717 = vmatmul.bf16.gmra.mxu2 %v2497_v4  ;;  %v1852_v14 = vpop.f32.mrf.mxu3 }
 0x1f0   : > { %v1678_v10 = vpop.f32.mrf.mxu2  ;;  %v1342_v12 = vpop.f32.mrf.mxu0 }
 0x1f1   : > { %v1679_v11 = vadd.f32 %v1678_v10, %v1510_v9  ;;  %v1511_v13 = vpop.f32.mrf.mxu1  ;;  %v1343_v16 = vadd.f32 %v3303_v3, %v1342_v12  ;;  %v2536_v10 = vld [vmem:[%s2933_s14 + $0x3e0] sm:$0xf]  ;;  %v2817_v12 = vld [vmem:[%s2933_s14 + $0x3e4] sm:$0xf] }
 0x1f3   : > { %v1848_v15 = vadd.f32 %v1847_v49, %v1679_v11  ;;  %v1512_v23 = vadd.f32 %v1511_v13, %v1343_v16  ;;  %v2528_v49 = vld [vmem:[%s2933_s14 + $0x3c8] sm:$0xf]  ;;  %v2819_v11 = vld [vmem:[%s2933_s14 + $0x3ec] sm:$0xf0]  ;;  %v2538_v13 = vld [vmem:[%s2933_s14 + $0x3f0] sm:$0xf0] }
 0x1f4   : > { %v2529_v60 = vor.u32 %v2816_v50, %v2528_v49  ;;  %v2537_v18 = vor.u32 %v2819_v11, %v2536_v10  ;;  %v2541_v19 = vor.u32 %v2817_v12, %v2538_v13 }
 0x1f5   : > { %1948 = vst.msk [vmem:[%s3077_s29 + $0x140] sm:$0xff] %vm1907_vm1, %v1848_v15  ;;  %v1854_v34 = vpop.f32.mrf.mxu3  ;;  %v2820_v15 = vld [vmem:[%s2933_s14 + $0x3f4] sm:$0xf0] }
 0x1f8   : > { %v1680_v26 = vpop.f32.mrf.mxu2  ;;  %v1345_v30 = vpop.f32.mrf.mxu0 }
 0x1f9   : > { %v1681_v29 = vadd.f32 %v1680_v26, %v1512_v23  ;;  %v1514_v31 = vpop.f32.mrf.mxu1  ;;  %v1346_v33 = vadd.f32 %v3303_v3, %v1345_v30 }
 0x1fa   : > { %2688 = vmatmul.msk.bf16.gmra.mxu3 %vm1134_vm0, %v2533_v35 }
 0x1fb   : > { %v1850_v36 = vadd.f32 %v1849_v6, %v1681_v29  ;;  %1384 = vmatmul.bf16.gmra.mxu0 %v2505_v27  ;;  %v1515_v37 = vadd.f32 %v1514_v31, %v1346_v33 }
 0x1fc   : > { %1553 = vmatmul.bf16.gmra.mxu1 %v2509_v28 }
 0x1fd   : > { %1949 = vst.msk [vmem:[%s3077_s29 + $0x148] sm:$0xff] %vm1907_vm1, %v1850_v36  ;;  %1722 = vmatmul.bf16.gmra.mxu2 %v2513_v32  ;;  %v1857_v42 = vpop.f32.mrf.mxu3 }
 0x200   : > { %v1683_v38 = vpop.f32.mrf.mxu2  ;;  %v1347_v40 = vpop.f32.mrf.mxu0 }
 0x201   : > { %v1684_v39 = vadd.f32 %v1683_v38, %v1515_v37  ;;  %v1516_v41 = vpop.f32.mrf.mxu1  ;;  %v1348_v44 = vadd.f32 %v3303_v3, %v1347_v40 }
 0x203   : > { %v1853_v43 = vadd.f32 %v1852_v14, %v1684_v39  ;;  %v1517_v51 = vadd.f32 %v1516_v41, %v1348_v44  ;;  %v2544_v14 = vld [vmem:[%s2933_s14 + $0x3e8] sm:$0xf] }
 0x204   : > { %v2545_v23 = vor.u32 %v2820_v15, %v2544_v14 }
 0x205   : > { %1950 = vst.msk [vmem:[%s3077_s29 + $0x150] sm:$0xff] %vm1907_vm1, %v1853_v43  ;;  %v1859_v62 = vpop.f32.mrf.mxu3 }
 0x208   : > { %v1685_v54 = vpop.f32.mrf.mxu2  ;;  %v1350_v58 = vpop.f32.mrf.mxu0 }
 0x209   : > { %v1686_v57 = vadd.f32 %v1685_v54, %v1517_v51  ;;  %v1519_v59 = vpop.f32.mrf.mxu1  ;;  %v1351_v61 = vadd.f32 %v3303_v3, %v1350_v58 }
 0x20a   : > { %2689 = vmatmul.msk.bf16.gmra.mxu3 %vm1134_vm0, %v2549_v63 }
 0x20b   : > { %v1855_v0 = vadd.f32 %v1854_v34, %v1686_v57  ;;  %1389 = vmatmul.bf16.gmra.mxu0 %v2521_v55  ;;  %v1520_v1 = vadd.f32 %v1519_v59, %v1351_v61 }
 0x20c   : > { %1558 = vmatmul.bf16.gmra.mxu1 %v2525_v56 }
 0x20d   : > { %1951 = vst.msk [vmem:[%s3077_s29 + $0x158] sm:$0xff] %vm1907_vm1, %v1855_v0  ;;  %1727 = vmatmul.bf16.gmra.mxu2 %v2529_v60  ;;  %v1862_v7 = vpop.f32.mrf.mxu3 }
 0x210   : > { %v1688_v2 = vpop.f32.mrf.mxu2  ;;  %v1352_v5 = vpop.f32.mrf.mxu0 }
 0x211   : > { %v1689_v4 = vadd.f32 %v1688_v2, %v1520_v1  ;;  %v1521_v6 = vpop.f32.mrf.mxu1  ;;  %v1353_v9 = vadd.f32 %v3303_v3, %v1352_v5 }
 0x213   : > { %v1858_v8 = vadd.f32 %v1857_v42, %v1689_v4  ;;  %v1522_v16 = vadd.f32 %v1521_v6, %v1353_v9 }
 0x215   : > { %1952 = vst.msk [vmem:[%s3077_s29 + $0x160] sm:$0xff] %vm1907_vm1, %v1858_v8  ;;  %v1864_v25 = vpop.f32.mrf.mxu3 }
 0x218   : > { %v1690_v17 = vpop.f32.mrf.mxu2  ;;  %v1355_v21 = vpop.f32.mrf.mxu0 }
 0x219   : > { %v1691_v20 = vadd.f32 %v1690_v17, %v1522_v16  ;;  %v1524_v22 = vpop.f32.mrf.mxu1  ;;  %v1356_v24 = vadd.f32 %v3303_v3, %v1355_v21 }
 0x21b   : > { %v1860_v26 = vadd.f32 %v1859_v62, %v1691_v20  ;;  %1394 = vmatmul.bf16.gmra.mxu0 %v2537_v18  ;;  %v1525_v27 = vadd.f32 %v1524_v22, %v1356_v24 }
 0x21c   : > { %1563 = vmatmul.bf16.gmra.mxu1 %v2541_v19 }
 0x21d   : > { %1953 = vst.msk [vmem:[%s3077_s29 + $0x168] sm:$0xff] %vm1907_vm1, %v1860_v26  ;;  %1732 = vmatmul.bf16.gmra.mxu2 %v2545_v23  ;;  %v1867_v32 = vpop.f32.mrf.mxu3 }
 0x220   : > { %v1693_v28 = vpop.f32.mrf.mxu2  ;;  %v1357_v30 = vpop.f32.mrf.mxu0 }
 0x221   : > { %v1694_v29 = vadd.f32 %v1693_v28, %v1525_v27  ;;  %v1526_v31 = vpop.f32.mrf.mxu1  ;;  %v1358_v34 = vadd.f32 %v3303_v3, %v1357_v30 }
 0x223   : > { %v1863_v33 = vadd.f32 %v1862_v7, %v1694_v29  ;;  %v1527_v35 = vadd.f32 %v1526_v31, %v1358_v34 }
 0x225   : > { %1954 = vst.msk [vmem:[%s3077_s29 + $0x170] sm:$0xff] %vm1907_vm1, %v1863_v33  ;;  %v1869_v41 = vpop.f32.mrf.mxu3 }
 0x228   : > { %v1695_v36 = vpop.f32.mrf.mxu2  ;;  %v1360_v38 = vpop.f32.mrf.mxu0 }
 0x229   : > { %v1696_v37 = vadd.f32 %v1695_v36, %v1527_v35  ;;  %v1529_v39 = vpop.f32.mrf.mxu1  ;;  %v1361_v40 = vadd.f32 %v3303_v3, %v1360_v38 }
 0x22b   : > { %v1865_v42 = vadd.f32 %v1864_v25, %v1696_v37  ;;  %v1530_v43 = vadd.f32 %v1529_v39, %v1361_v40 }
 0x22d   : > { %1955 = vst.msk [vmem:[%s3077_s29 + $0x178] sm:$0xff] %vm1907_vm1, %v1865_v42  ;;  %v1872_v48 = vpop.f32.mrf.mxu3 }
 0x230   : > { %v1698_v44 = vpop.f32.mrf.mxu2  ;;  %v1362_v46 = vpop.f32.mrf.mxu0 }
 0x231   : > { %v1699_v45 = vadd.f32 %v1698_v44, %v1530_v43  ;;  %v1531_v47 = vpop.f32.mrf.mxu1  ;;  %v1363_v50 = vadd.f32 %v3303_v3, %v1362_v46 }
 0x233   : > { %v1868_v49 = vadd.f32 %v1867_v32, %v1699_v45  ;;  %v1532_v51 = vadd.f32 %v1531_v47, %v1363_v50 }
 0x235   : > { %1956 = vst.msk [vmem:[%s3077_s29 + $0x180] sm:$0xff] %vm1907_vm1, %v1868_v49  ;;  %v1874_v57 = vpop.f32.mrf.mxu3 }
 0x238   : > { %v1700_v52 = vpop.f32.mrf.mxu2  ;;  %v1365_v54 = vpop.f32.mrf.mxu0 }
 0x239   : > { %v1701_v53 = vadd.f32 %v1700_v52, %v1532_v51  ;;  %v1534_v55 = vpop.f32.mrf.mxu1  ;;  %v1366_v56 = vadd.f32 %v3303_v3, %v1365_v54 }
 0x23b   : > { %v1870_v58 = vadd.f32 %v1869_v41, %v1701_v53  ;;  %v1535_v59 = vadd.f32 %v1534_v55, %v1366_v56 }
 0x23d   : > { %1957 = vst.msk [vmem:[%s3077_s29 + $0x188] sm:$0xff] %vm1907_vm1, %v1870_v58  ;;  %v1877_v0 = vpop.f32.mrf.mxu3 }
 0x240   : > { %v1703_v60 = vpop.f32.mrf.mxu2  ;;  %v1367_v62 = vpop.f32.mrf.mxu0 }
 0x241   : > { %v1704_v61 = vadd.f32 %v1703_v60, %v1535_v59  ;;  %v1536_v63 = vpop.f32.mrf.mxu1  ;;  %v1368_v2 = vadd.f32 %v3303_v3, %v1367_v62 }
 0x243   : > { %v1873_v1 = vadd.f32 %v1872_v48, %v1704_v61  ;;  %v1537_v4 = vadd.f32 %v1536_v63, %v1368_v2 }
 0x245   : > { %1958 = vst.msk [vmem:[%s3077_s29 + $0x190] sm:$0xff] %vm1907_vm1, %v1873_v1  ;;  %v1879_v10 = vpop.f32.mrf.mxu3 }
 0x248   : > { %v1705_v5 = vpop.f32.mrf.mxu2  ;;  %v1370_v7 = vpop.f32.mrf.mxu0 }
 0x249   : > { %v1706_v6 = vadd.f32 %v1705_v5, %v1537_v4  ;;  %v1539_v8 = vpop.f32.mrf.mxu1  ;;  %v1371_v9 = vadd.f32 %v3303_v3, %v1370_v7 }
 0x24b   : > { %v1875_v11 = vadd.f32 %v1874_v57, %v1706_v6  ;;  %v1540_v12 = vadd.f32 %v1539_v8, %v1371_v9 }
 0x24d   : > { %1959 = vst.msk [vmem:[%s3077_s29 + $0x198] sm:$0xff] %vm1907_vm1, %v1875_v11  ;;  %v1882_v17 = vpop.f32.mrf.mxu3 }
 0x250   : > { %v1708_v13 = vpop.f32.mrf.mxu2  ;;  %v1372_v15 = vpop.f32.mrf.mxu0 }
 0x251   : > { %v1709_v14 = vadd.f32 %v1708_v13, %v1540_v12  ;;  %v1541_v16 = vpop.f32.mrf.mxu1  ;;  %v1373_v19 = vadd.f32 %v3303_v3, %v1372_v15 }
 0x253   : > { %v1878_v18 = vadd.f32 %v1877_v0, %v1709_v14  ;;  %v1542_v20 = vadd.f32 %v1541_v16, %v1373_v19 }
 0x255   : > { %1960 = vst.msk [vmem:[%s3077_s29 + $0x1a0] sm:$0xff] %vm1907_vm1, %v1878_v18  ;;  %v1884_v26 = vpop.f32.mrf.mxu3 }
 0x258   : > { %v1710_v21 = vpop.f32.mrf.mxu2  ;;  %v1375_v23 = vpop.f32.mrf.mxu0 }
 0x259   : > { %v1711_v22 = vadd.f32 %v1710_v21, %v1542_v20  ;;  %v1544_v24 = vpop.f32.mrf.mxu1  ;;  %v1376_v25 = vadd.f32 %v3303_v3, %v1375_v23 }
 0x25b   : > { %v1880_v27 = vadd.f32 %v1879_v10, %v1711_v22  ;;  %v1545_v28 = vadd.f32 %v1544_v24, %v1376_v25 }
 0x25d   : > { %1961 = vst.msk [vmem:[%s3077_s29 + $0x1a8] sm:$0xff] %vm1907_vm1, %v1880_v27  ;;  %v1887_v35 = vpop.f32.mrf.mxu3 }
 0x260   : > { %v1713_v29 = vpop.f32.mrf.mxu2  ;;  %v1377_v31 = vpop.f32.mrf.mxu0 }
 0x261   : > { %v1714_v30 = vadd.f32 %v1713_v29, %v1545_v28  ;;  %v1546_v32 = vpop.f32.mrf.mxu1  ;;  %v1378_v34 = vadd.f32 %v3303_v3, %v1377_v31 }
 0x263   : > { %v1883_v33 = vadd.f32 %v1882_v17, %v1714_v30  ;;  %v1547_v36 = vadd.f32 %v1546_v32, %v1378_v34 }
 0x265   : > { %1962 = vst.msk [vmem:[%s3077_s29 + $0x1b0] sm:$0xff] %vm1907_vm1, %v1883_v33  ;;  %v1889_v44 = vpop.f32.mrf.mxu3 }
 0x268   : > { %v1715_v37 = vpop.f32.mrf.mxu2  ;;  %v1380_v39 = vpop.f32.mrf.mxu0 }
 0x269   : > { %v1716_v38 = vadd.f32 %v1715_v37, %v1547_v36  ;;  %v1549_v40 = vpop.f32.mrf.mxu1  ;;  %v1381_v41 = vadd.f32 %v3303_v3, %v1380_v39 }
 0x26b   : > { %v1885_v42 = vadd.f32 %v1884_v26, %v1716_v38  ;;  %v1550_v43 = vadd.f32 %v1549_v40, %v1381_v41 }
 0x26d   : > { %1963 = vst.msk [vmem:[%s3077_s29 + $0x1b8] sm:$0xff] %vm1907_vm1, %v1885_v42  ;;  %v1892_v53 = vpop.f32.mrf.mxu3 }
 0x270   : > { %v1718_v45 = vpop.f32.mrf.mxu2  ;;  %v1382_v47 = vpop.f32.mrf.mxu0 }
 0x271   : > { %v1719_v46 = vadd.f32 %v1718_v45, %v1550_v43  ;;  %v1551_v48 = vpop.f32.mrf.mxu1  ;;  %v1383_v50 = vadd.f32 %v3303_v3, %v1382_v47 }
 0x273   : > { %v1888_v49 = vadd.f32 %v1887_v35, %v1719_v46  ;;  %v1552_v51 = vadd.f32 %v1551_v48, %v1383_v50 }
 0x275   : > { %1964 = vst.msk [vmem:[%s3077_s29 + $0x1c0] sm:$0xff] %vm1907_vm1, %v1888_v49  ;;  %v1894_v0 = vpop.f32.mrf.mxu3 }
 0x278   : > { %v1720_v52 = vpop.f32.mrf.mxu2  ;;  %v1385_v55 = vpop.f32.mrf.mxu0 }
 0x279   : > { %v1721_v54 = vadd.f32 %v1720_v52, %v1552_v51  ;;  %v1554_v56 = vpop.f32.mrf.mxu1  ;;  %v1386_v57 = vadd.f32 %v3303_v3, %v1385_v55 }
 0x27b   : > { %v1890_v58 = vadd.f32 %v1889_v44, %v1721_v54  ;;  %v1555_v59 = vadd.f32 %v1554_v56, %v1386_v57 }
 0x27d   : > { %1965 = vst.msk [vmem:[%s3077_s29 + $0x1c8] sm:$0xff] %vm1907_vm1, %v1890_v58  ;;  %v1897_v11 = vpop.f32.mrf.mxu3 }
 0x280   : > { %v1723_v60 = vpop.f32.mrf.mxu2  ;;  %v1387_v62 = vpop.f32.mrf.mxu0 }
 0x281   : > { %v1724_v61 = vadd.f32 %v1723_v60, %v1555_v59  ;;  %v1556_v63 = vpop.f32.mrf.mxu1  ;;  %v1388_v2 = vadd.f32 %v3303_v3, %v1387_v62 }
 0x283   : > { %v1893_v1 = vadd.f32 %v1892_v53, %v1724_v61  ;;  %v1557_v4 = vadd.f32 %v1556_v63, %v1388_v2 }
 0x285   : > { %1966 = vst.msk [vmem:[%s3077_s29 + $0x1d0] sm:$0xff] %vm1907_vm1, %v1893_v1  ;;  %v1899_v19 = vpop.f32.mrf.mxu3 }
 0x288   : > { %v1725_v5 = vpop.f32.mrf.mxu2  ;;  %v1390_v7 = vpop.f32.mrf.mxu0 }
 0x289   : > { %v1726_v6 = vadd.f32 %v1725_v5, %v1557_v4  ;;  %v1559_v8 = vpop.f32.mrf.mxu1  ;;  %v1391_v9 = vadd.f32 %v3303_v3, %v1390_v7 }
 0x28b   : > { %v1895_v10 = vadd.f32 %v1894_v0, %v1726_v6  ;;  %v1560_v12 = vadd.f32 %v1559_v8, %v1391_v9 }
 0x28d   : > { %1967 = vst.msk [vmem:[%s3077_s29 + $0x1d8] sm:$0xff] %vm1907_vm1, %v1895_v10  ;;  %v1902_v28 = vpop.f32.mrf.mxu3 }
 0x290   : > { %v1728_v13 = vpop.f32.mrf.mxu2  ;;  %v1392_v15 = vpop.f32.mrf.mxu0 }
 0x291   : > { %v1729_v14 = vadd.f32 %v1728_v13, %v1560_v12  ;;  %v1561_v16 = vpop.f32.mrf.mxu1  ;;  %v1393_v18 = vadd.f32 %v3303_v3, %v1392_v15 }
 0x293   : > { %v1898_v17 = vadd.f32 %v1897_v11, %v1729_v14  ;;  %v1562_v20 = vadd.f32 %v1561_v16, %v1393_v18 }
 0x295   : > { %1968 = vst.msk [vmem:[%s3077_s29 + $0x1e0] sm:$0xff] %vm1907_vm1, %v1898_v17  ;;  %v1904_v38 = vpop.f32.mrf.mxu3 }
 0x298   : > { %v1730_v21 = vpop.f32.mrf.mxu2  ;;  %v1395_v23 = vpop.f32.mrf.mxu0 }
 0x299   : > { %v1731_v22 = vadd.f32 %v1730_v21, %v1562_v20  ;;  %v1396_v24 = vadd.f32 %v3303_v3, %v1395_v23  ;;  %v1564_v26 = vpop.f32.mrf.mxu1 }
 0x29b   : > { %v1900_v25 = vadd.f32 %v1899_v19, %v1731_v22  ;;  %v1565_v27 = vadd.f32 %v1564_v26, %v1396_v24 }
 0x29d   : > { %1969 = vst.msk [vmem:[%s3077_s29 + $0x1e8] sm:$0xff] %vm1907_vm1, %v1900_v25 }
 0x2a0   : > { %v1733_v29 = vpop.f32.mrf.mxu2  ;;  %v1397_v31 = vpop.f32.mrf.mxu0 }
 0x2a1   : > { %v1734_v30 = vadd.f32 %v1733_v29, %v1565_v27  ;;  %v1398_v33 = vadd.f32 %v3303_v3, %v1397_v31  ;;  %v1566_v34 = vpop.f32.mrf.mxu1 }
 0x2a3   : > { %v1903_v32 = vadd.f32 %v1902_v28, %v1734_v30  ;;  %v1567_v35 = vadd.f32 %v1566_v34, %v1398_v33 }
 0x2a5   : > { %1970 = vst.msk [vmem:[%s3077_s29 + $0x1f0] sm:$0xff] %vm1907_vm1, %v1903_v32 }
 0x2a8   : > { %v1735_v36 = vpop.f32.mrf.mxu2 }
 0x2a9   : > { %v1736_v37 = vadd.f32 %v1735_v36, %v1567_v35 }
 0x2ab   : > { %v1905_v39 = vadd.f32 %v1904_v38, %v1736_v37 }
 0x2ad   : > { %1971 = vst.msk [vmem:[%s3077_s29 + $0x1f8] sm:$0xff] %vm1907_vm1, %v1905_v39 }
 0x2ae PF: > { %s13_s12 = sadd.s32 1, %s2864_s12  }
 0x2af   : > { %p10_p4 = scmp.ge.s32.totalorder %s13_s12, 4  }
 0x2b1   :  { %12 = sbr.rel (!%p10_p4) target bundleno = 1 (0x1), region = 62 }

</bundles_post_ra>
